<compile_context>
chip_gen: v7x
topology: tpu7x:2x2x1
jax: 0.10.0
libtpu: 0.0.40
codegen_flags: <defaults>
</compile_context>

<pallas_src>
import jax
import jax.numpy as jnp
from jax.experimental import pallas as pl
from jax.experimental.pallas import tpu as pltpu

PRIMITIVES = [
    "none",
    "max_pool_3x3",
    "avg_pool_3x3",
    "skip_connect",
    "sep_conv_3x3",
    "sep_conv_5x5",
    "dil_conv_3x3",
    "dil_conv_5x5",
]

_PMAX = 4           # largest spatial padding used (dil_conv_5x5: dilation 2 -> pad 4)
_EPS = 1e-5         # BatchNorm eps
_NEG_INF = float("-inf")


# --------------------------- fused kernel ------------------------------------

def _make_mixed_op_kernel(ops_meta, N, H, W, C):
    """Builds the fused MixedOp kernel for a fixed op list and input shape."""
    NC = N * C
    WNC = W * NC                      # lane axis of all dense tensors
    HP = H + 2 * _PMAX                # padded rows
    WP_LANES = (W + 2 * _PMAX) * NC   # padded lanes
    inv_nhw = 1.0 / float(N * H * W)
    n_params = sum(meta["n_refs"] for _, meta in ops_meta)

    def kernel(*refs):
        # inputs: weights(SMEM), x, rcnt, sel, selT, per-op param tensors...
        w_ref, x_ref, rcnt_ref, sel_ref, selT_ref = refs[:5]
        param_refs = refs[5:5 + n_params]
        out_ref = refs[5 + n_params]
        relu_pad = refs[5 + n_params + 1]   # VMEM scratch (HP, WP_LANES)
        padbuf = refs[5 + n_params + 2]     # VMEM scratch (HP, WP_LANES)

        x = x_ref[...]                      # (H, W*N*C)
        sel = sel_ref[...]                  # (W*N*C, C)  channel selector
        selT = selT_ref[...]                # (C, W*N*C)  channel broadcaster

        # ---------- padded-buffer helpers (halo-only writes) -----------------
        def write_border(buf, value):
            top = jnp.full((_PMAX, WP_LANES), value, jnp.float32)
            side = jnp.full((H, _PMAX * NC), value, jnp.float32)
            buf[0:_PMAX, :] = top
            buf[_PMAX + H:HP, :] = top
            buf[_PMAX:_PMAX + H, 0:_PMAX * NC] = side
            buf[_PMAX:_PMAX + H, (_PMAX + W) * NC:WP_LANES] = side

        def write_center(buf, val):
            buf[_PMAX:_PMAX + H, _PMAX * NC:(_PMAX + W) * NC] = val

        # Trace-time state machine: minimal border/center refreshes of padbuf.
        pad_state = {"border": None, "center": None}

        def set_padbuf(border_val, center_tag, center_val):
            if pad_state["border"] != border_val:
                write_border(padbuf, border_val)
                pad_state["border"] = border_val
            if pad_state["center"] != center_tag:
                write_center(padbuf, center_val)
                pad_state["center"] = center_tag

        # relu(x), zero-padded once, shared by every conv branch's 1st stage.
        relu_state = {"ready": False}

        def relu_pad_ref():
            if not relu_state["ready"]:
                write_border(relu_pad, 0.0)
                write_center(relu_pad, jnp.maximum(x, 0.0))
                relu_state["ready"] = True
            return relu_pad

        # ---------- spatial taps: kw lane shift hoisted out of kh loop -------
        def tap_planes(src, K, dil, pad):
            off = _PMAX - pad
            return [src[:, (off + kw * dil) * NC:(off + kw * dil) * NC + WNC]
                    for kw in range(K)]                      # K x (HP, WNC)

        def dwconv(src, wt_ref, K, dil, pad):
            """Depthwise KxK conv (stride 1, 'same') from a padded buffer."""
            # TODO(synk): use stride-0 pl.ds sublane-broadcast loads for the
            # per-tap weight rows once verified on the target toolchain.
            off = _PMAX - pad
            planes = tap_planes(src, K, dil, pad)
            acc = jnp.zeros((H, WNC), jnp.float32)
            for kh in range(K):
                r0 = off + kh * dil
                for kw in range(K):
                    t = kh * K + kw
                    acc = acc + planes[kw][r0:r0 + H, :] * wt_ref[t:t + 1, :]
            return acc

        def pwconv(val, bd_ref):
            """1x1 conv as a block-diagonal kron(I_{W*N}, Wpw) matmul (MXU)."""
            return jnp.dot(val, bd_ref[...], preferred_element_type=jnp.float32)

        def maxpool3():
            planes = tap_planes(padbuf, 3, 1, 1)
            off = _PMAX - 1
            acc = jnp.full((H, WNC), _NEG_INF, jnp.float32)
            for kh in range(3):
                r0 = off + kh
                for kw in range(3):
                    acc = jnp.maximum(acc, planes[kw][r0:r0 + H, :])
            return acc

        def avgpool3():
            planes = tap_planes(padbuf, 3, 1, 1)
            off = _PMAX - 1
            acc = jnp.zeros((H, WNC), jnp.float32)
            for kh in range(3):
                r0 = off + kh
                for kw in range(3):
                    acc = acc + planes[kw][r0:r0 + H, :]
            return acc * rcnt_ref[...]       # count_include_pad=False

        def batchnorm(val, w_scale):
            """w_scale * BatchNorm2d(affine=False), training-mode batch stats."""
            both = jnp.concatenate([val, val * val], axis=0)            # (2H, WNC)
            s = jnp.dot(both, sel, preferred_element_type=jnp.float32)  # (2H, C)
            mean = jnp.sum(s[:H], axis=0, keepdims=True) * inv_nhw      # (1, C)
            ex2 = jnp.sum(s[H:], axis=0, keepdims=True) * inv_nhw       # (1, C)
            var = ex2 - mean * mean
            scale = jax.lax.rsqrt(var + _EPS) * w_scale                 # (1, C)
            scale_l = jnp.dot(scale, selT,
                              preferred_element_type=jnp.float32)       # (1, WNC)
            bias_l = jnp.dot(mean * scale, selT,
                             preferred_element_type=jnp.float32)        # (1, WNC)
            return val * scale_l - bias_l

        # ---------- branch loop, weighted sum fused in-kernel ----------------
        acc_out = jnp.zeros((H, WNC), jnp.float32)
        pidx = 0
        for i, (prim, meta) in enumerate(ops_meta):
            prefs = param_refs[pidx:pidx + meta["n_refs"]]
            pidx += meta["n_refs"]
            w = w_ref[i]
            if prim == "none":                       # Zero op: contributes w*0
                continue
            elif prim == "skip_connect":             # Identity (p == 0)
                acc_out = acc_out + w * x
            elif prim == "max_pool_3x3":
                set_padbuf(_NEG_INF, "x", x)
                acc_out = acc_out + batchnorm(maxpool3(), w)
            elif prim == "avg_pool_3x3":
                set_padbuf(0.0, "x", x)
                acc_out = acc_out + batchnorm(avgpool3(), w)
            elif prim.startswith("sep_conv"):
                K, pad = meta["K"], meta["pad"]
                dw1, pw1, dw2, pw2 = prefs
                h1 = batchnorm(pwconv(dwconv(relu_pad_ref(), dw1, K, 1, pad),
                                      pw1), 1.0)
                set_padbuf(0.0, "relu_h1_" + prim, jnp.maximum(h1, 0.0))
                y = pwconv(dwconv(padbuf, dw2, K, 1, pad), pw2)
                acc_out = acc_out + batchnorm(y, w)
            elif prim.startswith("dil_conv"):
                K, pad = meta["K"], meta["pad"]
                dw, pw = prefs
                y = pwconv(dwconv(relu_pad_ref(), dw, K, 2, pad), pw)
                acc_out = acc_out + batchnorm(y, w)
            else:
                raise ValueError(prim)

        out_ref[...] = acc_out

    return kernel


# --------------------------- MixedOp wrapper ----------------------------------

class MixedOpPallas:
    """Pallas re-implementation of MixedOp.forward (stride=1, p=0)."""

    def __init__(self, C, stride, switch, p, key):
        assert stride == 1, "only stride=1 supported"
        # TODO(synk): stride=2 path (FactorizedReduce skip_connect, strided
        # pools/convs) not implemented.
        assert p == 0, "dropout on skip_connect (p>0) not implemented"
        # TODO(synk): Dropout after Identity when p > 0.
        self.C, self.stride, self.p = C, stride, p
        self.ops = []
        for i, on in enumerate(switch):
            if not on:
                continue
            prim = PRIMITIVES[i]
            params = {}
            if prim.startswith("sep_conv"):
                K = 3 if "3x3" in prim else 5
                key, k0, k1, k2, k3 = jax.random.split(key, 5)
                params = dict(
                    dw1=0.1 * jax.random.normal(k0, (K, K, C), jnp.float32),
                    pw1=0.1 * jax.random.normal(k1, (C, C), jnp.float32),
                    dw2=0.1 * jax.random.normal(k2, (K, K, C), jnp.float32),
                    pw2=0.1 * jax.random.normal(k3, (C, C), jnp.float32),
                    K=K, pad=(K - 1) // 2)
            elif prim.startswith("dil_conv"):
                K = 3 if "3x3" in prim else 5
                key, k0, k1 = jax.random.split(key, 3)
                params = dict(
                    dw=0.1 * jax.random.normal(k0, (K, K, C), jnp.float32),
                    pw=0.1 * jax.random.normal(k1, (C, C), jnp.float32),
                    K=K, pad=K - 1)              # dilation=2 "same" padding
            self.ops.append((prim, params))
        self._built = None                       # cache keyed by (N, H, W)

    # -------- build fused-kernel callable + layout constants for a shape -----
    def _build(self, N, H, W):
        C = self.C
        NC = N * C
        WNC = W * NC
        HP = H + 2 * _PMAX
        WP_LANES = (W + 2 * _PMAX) * NC

        # Tiny shared layout constants (lane index = w*N*C + n*C + c).
        sel = jnp.tile(jnp.eye(C, dtype=jnp.float32), (W * N, 1))   # (WNC, C)
        selT = jnp.transpose(sel)                                   # (C, WNC)

        # Reciprocal valid-count plane for avg_pool (count_include_pad=False).
        ih, iw = jnp.arange(H), jnp.arange(W)
        cnt_h = jnp.minimum(ih + 1, H - 1) - jnp.maximum(ih - 1, 0) + 1
        cnt_w = jnp.minimum(iw + 1, W - 1) - jnp.maximum(iw - 1, 0) + 1
        rcnt = 1.0 / (cnt_h[:, None] * cnt_w[None, :]).astype(jnp.float32)
        rcnt = jnp.repeat(rcnt, NC, axis=1)                         # (H, WNC)

        eye_wn = jnp.eye(W * N, dtype=jnp.float32)

        def dw_tiled(dw):                        # (K, K, C) -> (K*K, WNC)
            K = dw.shape[0]
            return jnp.tile(dw.reshape(K * K, C), (1, W * N))

        def pw_blockdiag(pw):                    # (C, C) -> (WNC, WNC)
            # TODO(synk): don't materialize the kron at realistic DARTS sizes
            # (W-tiled (C,C) contractions instead) to respect v7x's 64 MiB VMEM.
            return jnp.kron(eye_wn, pw)

        ops_meta, extra = [], []
        for prim, pm in self.ops:
            if prim.startswith("sep_conv"):
                extra += [dw_tiled(pm["dw1"]), pw_blockdiag(pm["pw1"]),
                          dw_tiled(pm["dw2"]), pw_blockdiag(pm["pw2"])]
                ops_meta.append((prim, dict(K=pm["K"], pad=pm["pad"], n_refs=4)))
            elif prim.startswith("dil_conv"):
                extra += [dw_tiled(pm["dw"]), pw_blockdiag(pm["pw"])]
                ops_meta.append((prim, dict(K=pm["K"], pad=pm["pad"], n_refs=2)))
            else:
                ops_meta.append((prim, dict(n_refs=0)))
        extra = tuple(extra)

        kernel = _make_mixed_op_kernel(ops_meta, N, H, W, C)

        vmem = pl.BlockSpec(memory_space=pltpu.MemorySpace.VMEM)
        smem = pl.BlockSpec(memory_space=pltpu.MemorySpace.SMEM)
        call = pl.pallas_call(
            kernel,
            out_shape=jax.ShapeDtypeStruct((H, WNC), jnp.float32),
            in_specs=[smem] + [vmem] * (4 + len(extra)),
            out_specs=vmem,
            scratch_shapes=[pltpu.VMEM((HP, WP_LANES), jnp.float32),   # relu(x) pad
                            pltpu.VMEM((HP, WP_LANES), jnp.float32)],  # general pad
        )

        def forward(x_nchw, weights):
            # NCHW -> lane-dense (H, W*N*C).
            xl = jnp.transpose(x_nchw.astype(jnp.float32), (2, 3, 0, 1))
            xl = xl.reshape(H, WNC)
            out = call(weights.astype(jnp.float32), xl, rcnt, sel, selT, *extra)
            # (H, W*N*C) -> NCHW.
            return jnp.transpose(out.reshape(H, W, N, C), (2, 3, 0, 1))

        return dict(shape=(N, H, W), fn=jax.jit(forward))

    def __call__(self, x_nchw, weights):
        N, C, H, W = x_nchw.shape
        assert C == self.C
        if self._built is None or self._built["shape"] != (N, H, W):
            self._built = self._build(N, H, W)
        return self._built["fn"](x_nchw, weights)


# --------------------------- demo ---------------------------------------------

if __name__ == "__main__":
    key = jax.random.PRNGKey(0)
    k_x, k_a, k_p = jax.random.split(key, 3)

    N, C, H, W = 2, 4, 16, 16                                 # x: NCHW
    x = jax.random.normal(k_x, (N, C, H, W), jnp.float32)

    switch = [True] * len(PRIMITIVES)
    alphas = jax.random.normal(k_a, (sum(switch),), jnp.float32)
    weights = jax.nn.softmax(alphas)                          # architecture weights

    mixed_op = MixedOpPallas(C=C, stride=1, switch=switch, p=0.0, key=k_p)
    out = mixed_op(x, weights)
    jax.block_until_ready(out)

    assert out.shape == (N, C, H, W), out.shape
    assert jnp.isfinite(out).all()
    print("KERNEL_OK")
</pallas_src>

<mosaic_0001>
module attributes {stable_mosaic.version = 11 : i64} {
  func.func @kernel(%arg0: memref<8xf32, #tpu.memory_space<smem>>, %arg1: memref<16x128xf32, #tpu.memory_space<vmem>>, %arg2: memref<16x128xf32, #tpu.memory_space<vmem>>, %arg3: memref<128x4xf32, #tpu.memory_space<vmem>>, %arg4: memref<4x128xf32, #tpu.memory_space<vmem>>, %arg5: memref<9x128xf32, #tpu.memory_space<vmem>>, %arg6: memref<128x128xf32, #tpu.memory_space<vmem>>, %arg7: memref<9x128xf32, #tpu.memory_space<vmem>>, %arg8: memref<128x128xf32, #tpu.memory_space<vmem>>, %arg9: memref<25x128xf32, #tpu.memory_space<vmem>>, %arg10: memref<128x128xf32, #tpu.memory_space<vmem>>, %arg11: memref<25x128xf32, #tpu.memory_space<vmem>>, %arg12: memref<128x128xf32, #tpu.memory_space<vmem>>, %arg13: memref<9x128xf32, #tpu.memory_space<vmem>>, %arg14: memref<128x128xf32, #tpu.memory_space<vmem>>, %arg15: memref<25x128xf32, #tpu.memory_space<vmem>>, %arg16: memref<128x128xf32, #tpu.memory_space<vmem>>, %arg17: memref<16x128xf32, #tpu.memory_space<vmem>>, %arg18: memref<24x192xf32, #tpu.memory_space<vmem>>, %arg19: memref<24x192xf32, #tpu.memory_space<vmem>>) attributes {dimension_semantics = [], scalar_prefetch = 0 : i64, scratch_operands = 2 : i64, tpu.core_type = #tpu.core_type<tc>} {
    %c0 = arith.constant 0 : index
    %c0_0 = arith.constant 0 : index
    %0 = vector.load %arg1[%c0, %c0_0] : memref<16x128xf32, #tpu.memory_space<vmem>>, vector<16x128xf32>
    %c0_1 = arith.constant 0 : index
    %c0_2 = arith.constant 0 : index
    %1 = vector.load %arg3[%c0_1, %c0_2] : memref<128x4xf32, #tpu.memory_space<vmem>>, vector<128x4xf32>
    %c0_3 = arith.constant 0 : index
    %c0_4 = arith.constant 0 : index
    %2 = vector.load %arg4[%c0_3, %c0_4] : memref<4x128xf32, #tpu.memory_space<vmem>>, vector<4x128xf32>
    %cst = arith.constant 0.000000e+00 : f32
    %3 = vector.broadcast %cst : f32 to vector<16x128xf32>
    %c1 = arith.constant 1 : index
    %4 = memref.load %arg0[%c1] : memref<8xf32, #tpu.memory_space<smem>>
    %cst_5 = arith.constant 0xFF800000 : f32
    %5 = vector.broadcast %cst_5 : f32 to vector<4x192xf32>
    %cst_6 = arith.constant 0xFF800000 : f32
    %6 = vector.broadcast %cst_6 : f32 to vector<16x32xf32>
    %c0_7 = arith.constant 0 : index
    %c0_8 = arith.constant 0 : index
    %7 = vector.load %arg19[%c0_7, %c0_8] : memref<24x192xf32, #tpu.memory_space<vmem>>, vector<4x192xf32>
    tpu.vector_store %arg19[%c0_7, %c0_8], %5 {strides = array<i32>} : memref<24x192xf32, #tpu.memory_space<vmem>>, vector<4x192xf32>,
    %c20 = arith.constant 20 : index
    %c0_9 = arith.constant 0 : index
    %8 = vector.load %arg19[%c20, %c0_9] : memref<24x192xf32, #tpu.memory_space<vmem>>, vector<4x192xf32>
    tpu.vector_store %arg19[%c20, %c0_9], %5 {strides = array<i32>} : memref<24x192xf32, #tpu.memory_space<vmem>>, vector<4x192xf32>,
    %c4 = arith.constant 4 : index
    %c0_10 = arith.constant 0 : index
    %9 = vector.load %arg19[%c4, %c0_10] : memref<24x192xf32, #tpu.memory_space<vmem>>, vector<16x32xf32>
    tpu.vector_store %arg19[%c4, %c0_10], %6 {strides = array<i32>} : memref<24x192xf32, #tpu.memory_space<vmem>>, vector<16x32xf32>,
    %c4_11 = arith.constant 4 : index
    %c160 = arith.constant 160 : index
    %10 = vector.load %arg19[%c4_11, %c160] : memref<24x192xf32, #tpu.memory_space<vmem>>, vector<16x32xf32>
    tpu.vector_store %arg19[%c4_11, %c160], %6 {strides = array<i32>} : memref<24x192xf32, #tpu.memory_space<vmem>>, vector<16x32xf32>,
    %c4_12 = arith.constant 4 : index
    %c32 = arith.constant 32 : index
    %11 = vector.load %arg19[%c4_12, %c32] : memref<24x192xf32, #tpu.memory_space<vmem>>, vector<16x128xf32>
    tpu.vector_store %arg19[%c4_12, %c32], %0 {strides = array<i32>} : memref<24x192xf32, #tpu.memory_space<vmem>>, vector<16x128xf32>,
    %c0_13 = arith.constant 0 : index
    %c24 = arith.constant 24 : index
    %12 = vector.load %arg19[%c0_13, %c24] : memref<24x192xf32, #tpu.memory_space<vmem>>, vector<24x128xf32>
    %c0_14 = arith.constant 0 : index
    %c32_15 = arith.constant 32 : index
    %13 = vector.load %arg19[%c0_14, %c32_15] : memref<24x192xf32, #tpu.memory_space<vmem>>, vector<24x128xf32>
    %c0_16 = arith.constant 0 : index
    %c40 = arith.constant 40 : index
    %14 = vector.load %arg19[%c0_16, %c40] : memref<24x192xf32, #tpu.memory_space<vmem>>, vector<24x128xf32>
    %cst_17 = arith.constant 0xFF800000 : f32
    %15 = vector.broadcast %cst_17 : f32 to vector<16x128xf32>
    %16 = vector.extract_strided_slice %12 {offsets = [3, 0], sizes = [16, 128], strides = [1, 1]} : vector<24x128xf32> to vector<16x128xf32>
    %17 = arith.maximumf %15, %16 : vector<16x128xf32>
    %18 = vector.extract_strided_slice %13 {offsets = [3, 0], sizes = [16, 128], strides = [1, 1]} : vector<24x128xf32> to vector<16x128xf32>
    %19 = arith.maximumf %17, %18 : vector<16x128xf32>
    %20 = vector.extract_strided_slice %14 {offsets = [3, 0], sizes = [16, 128], strides = [1, 1]} : vector<24x128xf32> to vector<16x128xf32>
    %21 = arith.maximumf %19, %20 : vector<16x128xf32>
    %22 = vector.extract_strided_slice %12 {offsets = [4, 0], sizes = [16, 128], strides = [1, 1]} : vector<24x128xf32> to vector<16x128xf32>
    %23 = arith.maximumf %21, %22 : vector<16x128xf32>
    %24 = vector.extract_strided_slice %13 {offsets = [4, 0], sizes = [16, 128], strides = [1, 1]} : vector<24x128xf32> to vector<16x128xf32>
    %25 = arith.maximumf %23, %24 : vector<16x128xf32>
    %26 = vector.extract_strided_slice %14 {offsets = [4, 0], sizes = [16, 128], strides = [1, 1]} : vector<24x128xf32> to vector<16x128xf32>
    %27 = arith.maximumf %25, %26 : vector<16x128xf32>
    %28 = vector.extract_strided_slice %12 {offsets = [5, 0], sizes = [16, 128], strides = [1, 1]} : vector<24x128xf32> to vector<16x128xf32>
    %29 = arith.maximumf %27, %28 : vector<16x128xf32>
    %30 = vector.extract_strided_slice %13 {offsets = [5, 0], sizes = [16, 128], strides = [1, 1]} : vector<24x128xf32> to vector<16x128xf32>
    %31 = arith.maximumf %29, %30 : vector<16x128xf32>
    %32 = vector.extract_strided_slice %14 {offsets = [5, 0], sizes = [16, 128], strides = [1, 1]} : vector<24x128xf32> to vector<16x128xf32>
    %33 = arith.maximumf %31, %32 : vector<16x128xf32>
    %34 = arith.mulf %33, %33 : vector<16x128xf32>
    %35 = tpu.concatenate %33, %34 in 0 : vector<16x128xf32>, vector<16x128xf32> -> vector<32x128xf32>
    %cst_18 = arith.constant dense<0.000000e+00> : vector<32x4xf32>
    %36 = tpu.matmul %35, %1, %cst_18 {dimension_numbers = #tpu.dot_dimension_numbers<[1], [0], [0], [1], [0, 0, 1, 1], [], []>} : vector<32x128xf32>, vector<128x4xf32>, vector<32x4xf32> -> vector<32x4xf32>
    %37 = vector.extract_strided_slice %36 {offsets = [0, 0], sizes = [16, 4], strides = [1, 1]} : vector<32x4xf32> to vector<16x4xf32>
    %cst_19 = arith.constant dense<0.000000e+00> : vector<4xf32>
    %38 = vector.multi_reduction <add>, %37, %cst_19 [0] : vector<16x4xf32> to vector<4xf32>
    %39 = vector.shape_cast %38 : vector<4xf32> to vector<1x4xf32>
    %cst_20 = arith.constant 0.001953125 : f32
    %40 = vector.broadcast %cst_20 : f32 to vector<1x4xf32>
    %41 = arith.mulf %39, %40 : vector<1x4xf32>
    %42 = vector.extract_strided_slice %36 {offsets = [16, 0], sizes = [16, 4], strides = [1, 1]} : vector<32x4xf32> to vector<16x4xf32>
    %cst_21 = arith.constant dense<0.000000e+00> : vector<4xf32>
    %43 = vector.multi_reduction <add>, %42, %cst_21 [0] : vector<16x4xf32> to vector<4xf32>
    %44 = vector.shape_cast %43 : vector<4xf32> to vector<1x4xf32>
    %cst_22 = arith.constant 0.001953125 : f32
    %45 = vector.broadcast %cst_22 : f32 to vector<1x4xf32>
    %46 = arith.mulf %44, %45 : vector<1x4xf32>
    %47 = arith.mulf %41, %41 : vector<1x4xf32>
    %48 = arith.subf %46, %47 : vector<1x4xf32>
    %cst_23 = arith.constant 9.99999974E-6 : f32
    %49 = vector.broadcast %cst_23 : f32 to vector<1x4xf32>
    %50 = arith.addf %48, %49 : vector<1x4xf32>
    %51 = math.rsqrt %50 : vector<1x4xf32>
    %52 = vector.broadcast %4 : f32 to vector<1x4xf32>
    %53 = arith.mulf %51, %52 : vector<1x4xf32>
    %cst_24 = arith.constant dense<0.000000e+00> : vector<1x128xf32>
    %54 = tpu.matmul %53, %2, %cst_24 {dimension_numbers = #tpu.dot_dimension_numbers<[1], [0], [0], [1], [0, 0, 1, 1], [], []>} : vector<1x4xf32>, vector<4x128xf32>, vector<1x128xf32> -> vector<1x128xf32>
    %55 = arith.mulf %41, %53 : vector<1x4xf32>
    %cst_25 = arith.constant dense<0.000000e+00> : vector<1x128xf32>
    %56 = tpu.matmul %55, %2, %cst_25 {dimension_numbers = #tpu.dot_dimension_numbers<[1], [0], [0], [1], [0, 0, 1, 1], [], []>} : vector<1x4xf32>, vector<4x128xf32>, vector<1x128xf32> -> vector<1x128xf32>
    %57 = vector.broadcast %54 : vector<1x128xf32> to vector<16x128xf32>
    %58 = arith.mulf %33, %57 : vector<16x128xf32>
    %59 = vector.broadcast %56 : vector<1x128xf32> to vector<16x128xf32>
    %60 = arith.subf %58, %59 : vector<16x128xf32>
    %61 = arith.addf %3, %60 : vector<16x128xf32>
    %c2 = arith.constant 2 : index
    %62 = memref.load %arg0[%c2] : memref<8xf32, #tpu.memory_space<smem>>
    %cst_26 = arith.constant 0.000000e+00 : f32
    %63 = vector.broadcast %cst_26 : f32 to vector<4x192xf32>
    %cst_27 = arith.constant 0.000000e+00 : f32
    %64 = vector.broadcast %cst_27 : f32 to vector<16x32xf32>
    %c0_28 = arith.constant 0 : index
    %c0_29 = arith.constant 0 : index
    %65 = vector.load %arg19[%c0_28, %c0_29] : memref<24x192xf32, #tpu.memory_space<vmem>>, vector<4x192xf32>
    tpu.vector_store %arg19[%c0_28, %c0_29], %63 {strides = array<i32>} : memref<24x192xf32, #tpu.memory_space<vmem>>, vector<4x192xf32>,
    %c20_30 = arith.constant 20 : index
    %c0_31 = arith.constant 0 : index
    %66 = vector.load %arg19[%c20_30, %c0_31] : memref<24x192xf32, #tpu.memory_space<vmem>>, vector<4x192xf32>
    tpu.vector_store %arg19[%c20_30, %c0_31], %63 {strides = array<i32>} : memref<24x192xf32, #tpu.memory_space<vmem>>, vector<4x192xf32>,
    %c4_32 = arith.constant 4 : index
    %c0_33 = arith.constant 0 : index
    %67 = vector.load %arg19[%c4_32, %c0_33] : memref<24x192xf32, #tpu.memory_space<vmem>>, vector<16x32xf32>
    tpu.vector_store %arg19[%c4_32, %c0_33], %64 {strides = array<i32>} : memref<24x192xf32, #tpu.memory_space<vmem>>, vector<16x32xf32>,
    %c4_34 = arith.constant 4 : index
    %c160_35 = arith.constant 160 : index
    %68 = vector.load %arg19[%c4_34, %c160_35] : memref<24x192xf32, #tpu.memory_space<vmem>>, vector<16x32xf32>
    tpu.vector_store %arg19[%c4_34, %c160_35], %64 {strides = array<i32>} : memref<24x192xf32, #tpu.memory_space<vmem>>, vector<16x32xf32>,
    %c0_36 = arith.constant 0 : index
    %c24_37 = arith.constant 24 : index
    %69 = vector.load %arg19[%c0_36, %c24_37] : memref<24x192xf32, #tpu.memory_space<vmem>>, vector<24x128xf32>
    %c0_38 = arith.constant 0 : index
    %c32_39 = arith.constant 32 : index
    %70 = vector.load %arg19[%c0_38, %c32_39] : memref<24x192xf32, #tpu.memory_space<vmem>>, vector<24x128xf32>
    %c0_40 = arith.constant 0 : index
    %c40_41 = arith.constant 40 : index
    %71 = vector.load %arg19[%c0_40, %c40_41] : memref<24x192xf32, #tpu.memory_space<vmem>>, vector<24x128xf32>
    %cst_42 = arith.constant 0.000000e+00 : f32
    %72 = vector.broadcast %cst_42 : f32 to vector<16x128xf32>
    %73 = vector.extract_strided_slice %69 {offsets = [3, 0], sizes = [16, 128], strides = [1, 1]} : vector<24x128xf32> to vector<16x128xf32>
    %74 = arith.addf %72, %73 : vector<16x128xf32>
    %75 = vector.extract_strided_slice %70 {offsets = [3, 0], sizes = [16, 128], strides = [1, 1]} : vector<24x128xf32> to vector<16x128xf32>
    %76 = arith.addf %74, %75 : vector<16x128xf32>
    %77 = vector.extract_strided_slice %71 {offsets = [3, 0], sizes = [16, 128], strides = [1, 1]} : vector<24x128xf32> to vector<16x128xf32>
    %78 = arith.addf %76, %77 : vector<16x128xf32>
    %79 = vector.extract_strided_slice %69 {offsets = [4, 0], sizes = [16, 128], strides = [1, 1]} : vector<24x128xf32> to vector<16x128xf32>
    %80 = arith.addf %78, %79 : vector<16x128xf32>
    %81 = vector.extract_strided_slice %70 {offsets = [4, 0], sizes = [16, 128], strides = [1, 1]} : vector<24x128xf32> to vector<16x128xf32>
    %82 = arith.addf %80, %81 : vector<16x128xf32>
    %83 = vector.extract_strided_slice %71 {offsets = [4, 0], sizes = [16, 128], strides = [1, 1]} : vector<24x128xf32> to vector<16x128xf32>
    %84 = arith.addf %82, %83 : vector<16x128xf32>
    %85 = vector.extract_strided_slice %69 {offsets = [5, 0], sizes = [16, 128], strides = [1, 1]} : vector<24x128xf32> to vector<16x128xf32>
    %86 = arith.addf %84, %85 : vector<16x128xf32>
    %87 = vector.extract_strided_slice %70 {offsets = [5, 0], sizes = [16, 128], strides = [1, 1]} : vector<24x128xf32> to vector<16x128xf32>
    %88 = arith.addf %86, %87 : vector<16x128xf32>
    %89 = vector.extract_strided_slice %71 {offsets = [5, 0], sizes = [16, 128], strides = [1, 1]} : vector<24x128xf32> to vector<16x128xf32>
    %90 = arith.addf %88, %89 : vector<16x128xf32>
    %c0_43 = arith.constant 0 : index
    %c0_44 = arith.constant 0 : index
    %91 = vector.load %arg2[%c0_43, %c0_44] : memref<16x128xf32, #tpu.memory_space<vmem>>, vector<16x128xf32>
    %92 = arith.mulf %90, %91 : vector<16x128xf32>
    %93 = arith.mulf %92, %92 : vector<16x128xf32>
    %94 = tpu.concatenate %92, %93 in 0 : vector<16x128xf32>, vector<16x128xf32> -> vector<32x128xf32>
    %cst_45 = arith.constant dense<0.000000e+00> : vector<32x4xf32>
    %95 = tpu.matmul %94, %1, %cst_45 {dimension_numbers = #tpu.dot_dimension_numbers<[1], [0], [0], [1], [0, 0, 1, 1], [], []>} : vector<32x128xf32>, vector<128x4xf32>, vector<32x4xf32> -> vector<32x4xf32>
    %96 = vector.extract_strided_slice %95 {offsets = [0, 0], sizes = [16, 4], strides = [1, 1]} : vector<32x4xf32> to vector<16x4xf32>
    %cst_46 = arith.constant dense<0.000000e+00> : vector<4xf32>
    %97 = vector.multi_reduction <add>, %96, %cst_46 [0] : vector<16x4xf32> to vector<4xf32>
    %98 = vector.shape_cast %97 : vector<4xf32> to vector<1x4xf32>
    %cst_47 = arith.constant 0.001953125 : f32
    %99 = vector.broadcast %cst_47 : f32 to vector<1x4xf32>
    %100 = arith.mulf %98, %99 : vector<1x4xf32>
    %101 = vector.extract_strided_slice %95 {offsets = [16, 0], sizes = [16, 4], strides = [1, 1]} : vector<32x4xf32> to vector<16x4xf32>
    %cst_48 = arith.constant dense<0.000000e+00> : vector<4xf32>
    %102 = vector.multi_reduction <add>, %101, %cst_48 [0] : vector<16x4xf32> to vector<4xf32>
    %103 = vector.shape_cast %102 : vector<4xf32> to vector<1x4xf32>
    %cst_49 = arith.constant 0.001953125 : f32
    %104 = vector.broadcast %cst_49 : f32 to vector<1x4xf32>
    %105 = arith.mulf %103, %104 : vector<1x4xf32>
    %106 = arith.mulf %100, %100 : vector<1x4xf32>
    %107 = arith.subf %105, %106 : vector<1x4xf32>
    %cst_50 = arith.constant 9.99999974E-6 : f32
    %108 = vector.broadcast %cst_50 : f32 to vector<1x4xf32>
    %109 = arith.addf %107, %108 : vector<1x4xf32>
    %110 = math.rsqrt %109 : vector<1x4xf32>
    %111 = vector.broadcast %62 : f32 to vector<1x4xf32>
    %112 = arith.mulf %110, %111 : vector<1x4xf32>
    %cst_51 = arith.constant dense<0.000000e+00> : vector<1x128xf32>
    %113 = tpu.matmul %112, %2, %cst_51 {dimension_numbers = #tpu.dot_dimension_numbers<[1], [0], [0], [1], [0, 0, 1, 1], [], []>} : vector<1x4xf32>, vector<4x128xf32>, vector<1x128xf32> -> vector<1x128xf32>
    %114 = arith.mulf %100, %112 : vector<1x4xf32>
    %cst_52 = arith.constant dense<0.000000e+00> : vector<1x128xf32>
    %115 = tpu.matmul %114, %2, %cst_52 {dimension_numbers = #tpu.dot_dimension_numbers<[1], [0], [0], [1], [0, 0, 1, 1], [], []>} : vector<1x4xf32>, vector<4x128xf32>, vector<1x128xf32> -> vector<1x128xf32>
    %116 = vector.broadcast %113 : vector<1x128xf32> to vector<16x128xf32>
    %117 = arith.mulf %92, %116 : vector<16x128xf32>
    %118 = vector.broadcast %115 : vector<1x128xf32> to vector<16x128xf32>
    %119 = arith.subf %117, %118 : vector<16x128xf32>
    %120 = arith.addf %61, %119 : vector<16x128xf32>
    %c3 = arith.constant 3 : index
    %121 = memref.load %arg0[%c3] : memref<8xf32, #tpu.memory_space<smem>>
    %122 = vector.broadcast %121 : f32 to vector<16x128xf32>
    %123 = arith.mulf %122, %0 : vector<16x128xf32>
    %124 = arith.addf %120, %123 : vector<16x128xf32>
    %c4_53 = arith.constant 4 : index
    %125 = memref.load %arg0[%c4_53] : memref<8xf32, #tpu.memory_space<smem>>
    %cst_54 = arith.constant 0.000000e+00 : f32
    %126 = vector.broadcast %cst_54 : f32 to vector<4x192xf32>
    %cst_55 = arith.constant 0.000000e+00 : f32
    %127 = vector.broadcast %cst_55 : f32 to vector<16x32xf32>
    %c0_56 = arith.constant 0 : index
    %c0_57 = arith.constant 0 : index
    %128 = vector.load %arg18[%c0_56, %c0_57] : memref<24x192xf32, #tpu.memory_space<vmem>>, vector<4x192xf32>
    tpu.vector_store %arg18[%c0_56, %c0_57], %126 {strides = array<i32>} : memref<24x192xf32, #tpu.memory_space<vmem>>, vector<4x192xf32>,
    %c20_58 = arith.constant 20 : index
    %c0_59 = arith.constant 0 : index
    %129 = vector.load %arg18[%c20_58, %c0_59] : memref<24x192xf32, #tpu.memory_space<vmem>>, vector<4x192xf32>
    tpu.vector_store %arg18[%c20_58, %c0_59], %126 {strides = array<i32>} : memref<24x192xf32, #tpu.memory_space<vmem>>, vector<4x192xf32>,
    %c4_60 = arith.constant 4 : index
    %c0_61 = arith.constant 0 : index
    %130 = vector.load %arg18[%c4_60, %c0_61] : memref<24x192xf32, #tpu.memory_space<vmem>>, vector<16x32xf32>
    tpu.vector_store %arg18[%c4_60, %c0_61], %127 {strides = array<i32>} : memref<24x192xf32, #tpu.memory_space<vmem>>, vector<16x32xf32>,
    %c4_62 = arith.constant 4 : index
    %c160_63 = arith.constant 160 : index
    %131 = vector.load %arg18[%c4_62, %c160_63] : memref<24x192xf32, #tpu.memory_space<vmem>>, vector<16x32xf32>
    tpu.vector_store %arg18[%c4_62, %c160_63], %127 {strides = array<i32>} : memref<24x192xf32, #tpu.memory_space<vmem>>, vector<16x32xf32>,
    %cst_64 = arith.constant 0.000000e+00 : f32
    %132 = vector.broadcast %cst_64 : f32 to vector<16x128xf32>
    %133 = arith.maximumf %0, %132 : vector<16x128xf32>
    %c4_65 = arith.constant 4 : index
    %c32_66 = arith.constant 32 : index
    %134 = vector.load %arg18[%c4_65, %c32_66] : memref<24x192xf32, #tpu.memory_space<vmem>>, vector<16x128xf32>
    tpu.vector_store %arg18[%c4_65, %c32_66], %133 {strides = array<i32>} : memref<24x192xf32, #tpu.memory_space<vmem>>, vector<16x128xf32>,
    %c0_67 = arith.constant 0 : index
    %c24_68 = arith.constant 24 : index
    %135 = vector.load %arg18[%c0_67, %c24_68] : memref<24x192xf32, #tpu.memory_space<vmem>>, vector<24x128xf32>
    %c0_69 = arith.constant 0 : index
    %c32_70 = arith.constant 32 : index
    %136 = vector.load %arg18[%c0_69, %c32_70] : memref<24x192xf32, #tpu.memory_space<vmem>>, vector<24x128xf32>
    %c0_71 = arith.constant 0 : index
    %c40_72 = arith.constant 40 : index
    %137 = vector.load %arg18[%c0_71, %c40_72] : memref<24x192xf32, #tpu.memory_space<vmem>>, vector<24x128xf32>
    %cst_73 = arith.constant 0.000000e+00 : f32
    %138 = vector.broadcast %cst_73 : f32 to vector<16x128xf32>
    %139 = vector.extract_strided_slice %135 {offsets = [3, 0], sizes = [16, 128], strides = [1, 1]} : vector<24x128xf32> to vector<16x128xf32>
    %c0_74 = arith.constant 0 : index
    %c0_75 = arith.constant 0 : index
    %140 = vector.load %arg5[%c0_74, %c0_75] : memref<9x128xf32, #tpu.memory_space<vmem>>, vector<1x128xf32>
    %141 = vector.broadcast %140 : vector<1x128xf32> to vector<16x128xf32>
    %142 = arith.mulf %139, %141 : vector<16x128xf32>
    %143 = arith.addf %138, %142 : vector<16x128xf32>
    %144 = vector.extract_strided_slice %136 {offsets = [3, 0], sizes = [16, 128], strides = [1, 1]} : vector<24x128xf32> to vector<16x128xf32>
    %c1_76 = arith.constant 1 : index
    %c0_77 = arith.constant 0 : index
    %145 = vector.load %arg5[%c1_76, %c0_77] : memref<9x128xf32, #tpu.memory_space<vmem>>, vector<1x128xf32>
    %146 = vector.broadcast %145 : vector<1x128xf32> to vector<16x128xf32>
    %147 = arith.mulf %144, %146 : vector<16x128xf32>
    %148 = arith.addf %143, %147 : vector<16x128xf32>
    %149 = vector.extract_strided_slice %137 {offsets = [3, 0], sizes = [16, 128], strides = [1, 1]} : vector<24x128xf32> to vector<16x128xf32>
    %c2_78 = arith.constant 2 : index
    %c0_79 = arith.constant 0 : index
    %150 = vector.load %arg5[%c2_78, %c0_79] : memref<9x128xf32, #tpu.memory_space<vmem>>, vector<1x128xf32>
    %151 = vector.broadcast %150 : vector<1x128xf32> to vector<16x128xf32>
    %152 = arith.mulf %149, %151 : vector<16x128xf32>
    %153 = arith.addf %148, %152 : vector<16x128xf32>
    %154 = vector.extract_strided_slice %135 {offsets = [4, 0], sizes = [16, 128], strides = [1, 1]} : vector<24x128xf32> to vector<16x128xf32>
    %c3_80 = arith.constant 3 : index
    %c0_81 = arith.constant 0 : index
    %155 = vector.load %arg5[%c3_80, %c0_81] : memref<9x128xf32, #tpu.memory_space<vmem>>, vector<1x128xf32>
    %156 = vector.broadcast %155 : vector<1x128xf32> to vector<16x128xf32>
    %157 = arith.mulf %154, %156 : vector<16x128xf32>
    %158 = arith.addf %153, %157 : vector<16x128xf32>
    %159 = vector.extract_strided_slice %136 {offsets = [4, 0], sizes = [16, 128], strides = [1, 1]} : vector<24x128xf32> to vector<16x128xf32>
    %c4_82 = arith.constant 4 : index
    %c0_83 = arith.constant 0 : index
    %160 = vector.load %arg5[%c4_82, %c0_83] : memref<9x128xf32, #tpu.memory_space<vmem>>, vector<1x128xf32>
    %161 = vector.broadcast %160 : vector<1x128xf32> to vector<16x128xf32>
    %162 = arith.mulf %159, %161 : vector<16x128xf32>
    %163 = arith.addf %158, %162 : vector<16x128xf32>
    %164 = vector.extract_strided_slice %137 {offsets = [4, 0], sizes = [16, 128], strides = [1, 1]} : vector<24x128xf32> to vector<16x128xf32>
    %c5 = arith.constant 5 : index
    %c0_84 = arith.constant 0 : index
    %165 = vector.load %arg5[%c5, %c0_84] : memref<9x128xf32, #tpu.memory_space<vmem>>, vector<1x128xf32>
    %166 = vector.broadcast %165 : vector<1x128xf32> to vector<16x128xf32>
    %167 = arith.mulf %164, %166 : vector<16x128xf32>
    %168 = arith.addf %163, %167 : vector<16x128xf32>
    %169 = vector.extract_strided_slice %135 {offsets = [5, 0], sizes = [16, 128], strides = [1, 1]} : vector<24x128xf32> to vector<16x128xf32>
    %c6 = arith.constant 6 : index
    %c0_85 = arith.constant 0 : index
    %170 = vector.load %arg5[%c6, %c0_85] : memref<9x128xf32, #tpu.memory_space<vmem>>, vector<1x128xf32>
    %171 = vector.broadcast %170 : vector<1x128xf32> to vector<16x128xf32>
    %172 = arith.mulf %169, %171 : vector<16x128xf32>
    %173 = arith.addf %168, %172 : vector<16x128xf32>
    %174 = vector.extract_strided_slice %136 {offsets = [5, 0], sizes = [16, 128], strides = [1, 1]} : vector<24x128xf32> to vector<16x128xf32>
    %c7 = arith.constant 7 : index
    %c0_86 = arith.constant 0 : index
    %175 = vector.load %arg5[%c7, %c0_86] : memref<9x128xf32, #tpu.memory_space<vmem>>, vector<1x128xf32>
    %176 = vector.broadcast %175 : vector<1x128xf32> to vector<16x128xf32>
    %177 = arith.mulf %174, %176 : vector<16x128xf32>
    %178 = arith.addf %173, %177 : vector<16x128xf32>
    %179 = vector.extract_strided_slice %137 {offsets = [5, 0], sizes = [16, 128], strides = [1, 1]} : vector<24x128xf32> to vector<16x128xf32>
    %c8 = arith.constant 8 : index
    %c0_87 = arith.constant 0 : index
    %180 = vector.load %arg5[%c8, %c0_87] : memref<9x128xf32, #tpu.memory_space<vmem>>, vector<1x128xf32>
    %181 = vector.broadcast %180 : vector<1x128xf32> to vector<16x128xf32>
    %182 = arith.mulf %179, %181 : vector<16x128xf32>
    %183 = arith.addf %178, %182 : vector<16x128xf32>
    %c0_88 = arith.constant 0 : index
    %c0_89 = arith.constant 0 : index
    %184 = vector.load %arg6[%c0_88, %c0_89] : memref<128x128xf32, #tpu.memory_space<vmem>>, vector<128x128xf32>
    %cst_90 = arith.constant dense<0.000000e+00> : vector<16x128xf32>
    %185 = tpu.matmul %183, %184, %cst_90 {dimension_numbers = #tpu.dot_dimension_numbers<[1], [0], [0], [1], [0, 0, 1, 1], [], []>} : vector<16x128xf32>, vector<128x128xf32>, vector<16x128xf32> -> vector<16x128xf32>
    %186 = arith.mulf %185, %185 : vector<16x128xf32>
    %187 = tpu.concatenate %185, %186 in 0 : vector<16x128xf32>, vector<16x128xf32> -> vector<32x128xf32>
    %cst_91 = arith.constant dense<0.000000e+00> : vector<32x4xf32>
    %188 = tpu.matmul %187, %1, %cst_91 {dimension_numbers = #tpu.dot_dimension_numbers<[1], [0], [0], [1], [0, 0, 1, 1], [], []>} : vector<32x128xf32>, vector<128x4xf32>, vector<32x4xf32> -> vector<32x4xf32>
    %189 = vector.extract_strided_slice %188 {offsets = [0, 0], sizes = [16, 4], strides = [1, 1]} : vector<32x4xf32> to vector<16x4xf32>
    %cst_92 = arith.constant dense<0.000000e+00> : vector<4xf32>
    %190 = vector.multi_reduction <add>, %189, %cst_92 [0] : vector<16x4xf32> to vector<4xf32>
    %191 = vector.shape_cast %190 : vector<4xf32> to vector<1x4xf32>
    %cst_93 = arith.constant 0.001953125 : f32
    %192 = vector.broadcast %cst_93 : f32 to vector<1x4xf32>
    %193 = arith.mulf %191, %192 : vector<1x4xf32>
    %194 = vector.extract_strided_slice %188 {offsets = [16, 0], sizes = [16, 4], strides = [1, 1]} : vector<32x4xf32> to vector<16x4xf32>
    %cst_94 = arith.constant dense<0.000000e+00> : vector<4xf32>
    %195 = vector.multi_reduction <add>, %194, %cst_94 [0] : vector<16x4xf32> to vector<4xf32>
    %196 = vector.shape_cast %195 : vector<4xf32> to vector<1x4xf32>
    %cst_95 = arith.constant 0.001953125 : f32
    %197 = vector.broadcast %cst_95 : f32 to vector<1x4xf32>
    %198 = arith.mulf %196, %197 : vector<1x4xf32>
    %199 = arith.mulf %193, %193 : vector<1x4xf32>
    %200 = arith.subf %198, %199 : vector<1x4xf32>
    %cst_96 = arith.constant 9.99999974E-6 : f32
    %201 = vector.broadcast %cst_96 : f32 to vector<1x4xf32>
    %202 = arith.addf %200, %201 : vector<1x4xf32>
    %203 = math.rsqrt %202 : vector<1x4xf32>
    %cst_97 = arith.constant 1.000000e+00 : f32
    %204 = vector.broadcast %cst_97 : f32 to vector<1x4xf32>
    %205 = arith.mulf %203, %204 : vector<1x4xf32>
    %cst_98 = arith.constant dense<0.000000e+00> : vector<1x128xf32>
    %206 = tpu.matmul %205, %2, %cst_98 {dimension_numbers = #tpu.dot_dimension_numbers<[1], [0], [0], [1], [0, 0, 1, 1], [], []>} : vector<1x4xf32>, vector<4x128xf32>, vector<1x128xf32> -> vector<1x128xf32>
    %207 = arith.mulf %193, %205 : vector<1x4xf32>
    %cst_99 = arith.constant dense<0.000000e+00> : vector<1x128xf32>
    %208 = tpu.matmul %207, %2, %cst_99 {dimension_numbers = #tpu.dot_dimension_numbers<[1], [0], [0], [1], [0, 0, 1, 1], [], []>} : vector<1x4xf32>, vector<4x128xf32>, vector<1x128xf32> -> vector<1x128xf32>
    %209 = vector.broadcast %206 : vector<1x128xf32> to vector<16x128xf32>
    %210 = arith.mulf %185, %209 : vector<16x128xf32>
    %211 = vector.broadcast %208 : vector<1x128xf32> to vector<16x128xf32>
    %212 = arith.subf %210, %211 : vector<16x128xf32>
    %cst_100 = arith.constant 0.000000e+00 : f32
    %213 = vector.broadcast %cst_100 : f32 to vector<16x128xf32>
    %214 = arith.maximumf %212, %213 : vector<16x128xf32>
    %c4_101 = arith.constant 4 : index
    %c32_102 = arith.constant 32 : index
    %215 = vector.load %arg19[%c4_101, %c32_102] : memref<24x192xf32, #tpu.memory_space<vmem>>, vector<16x128xf32>
    tpu.vector_store %arg19[%c4_101, %c32_102], %214 {strides = array<i32>} : memref<24x192xf32, #tpu.memory_space<vmem>>, vector<16x128xf32>,
    %c0_103 = arith.constant 0 : index
    %c24_104 = arith.constant 24 : index
    %216 = vector.load %arg19[%c0_103, %c24_104] : memref<24x192xf32, #tpu.memory_space<vmem>>, vector<24x128xf32>
    %c0_105 = arith.constant 0 : index
    %c32_106 = arith.constant 32 : index
    %217 = vector.load %arg19[%c0_105, %c32_106] : memref<24x192xf32, #tpu.memory_space<vmem>>, vector<24x128xf32>
    %c0_107 = arith.constant 0 : index
    %c40_108 = arith.constant 40 : index
    %218 = vector.load %arg19[%c0_107, %c40_108] : memref<24x192xf32, #tpu.memory_space<vmem>>, vector<24x128xf32>
    %cst_109 = arith.constant 0.000000e+00 : f32
    %219 = vector.broadcast %cst_109 : f32 to vector<16x128xf32>
    %220 = vector.extract_strided_slice %216 {offsets = [3, 0], sizes = [16, 128], strides = [1, 1]} : vector<24x128xf32> to vector<16x128xf32>
    %c0_110 = arith.constant 0 : index
    %c0_111 = arith.constant 0 : index
    %221 = vector.load %arg7[%c0_110, %c0_111] : memref<9x128xf32, #tpu.memory_space<vmem>>, vector<1x128xf32>
    %222 = vector.broadcast %221 : vector<1x128xf32> to vector<16x128xf32>
    %223 = arith.mulf %220, %222 : vector<16x128xf32>
    %224 = arith.addf %219, %223 : vector<16x128xf32>
    %225 = vector.extract_strided_slice %217 {offsets = [3, 0], sizes = [16, 128], strides = [1, 1]} : vector<24x128xf32> to vector<16x128xf32>
    %c1_112 = arith.constant 1 : index
    %c0_113 = arith.constant 0 : index
    %226 = vector.load %arg7[%c1_112, %c0_113] : memref<9x128xf32, #tpu.memory_space<vmem>>, vector<1x128xf32>
    %227 = vector.broadcast %226 : vector<1x128xf32> to vector<16x128xf32>
    %228 = arith.mulf %225, %227 : vector<16x128xf32>
    %229 = arith.addf %224, %228 : vector<16x128xf32>
    %230 = vector.extract_strided_slice %218 {offsets = [3, 0], sizes = [16, 128], strides = [1, 1]} : vector<24x128xf32> to vector<16x128xf32>
    %c2_114 = arith.constant 2 : index
    %c0_115 = arith.constant 0 : index
    %231 = vector.load %arg7[%c2_114, %c0_115] : memref<9x128xf32, #tpu.memory_space<vmem>>, vector<1x128xf32>
    %232 = vector.broadcast %231 : vector<1x128xf32> to vector<16x128xf32>
    %233 = arith.mulf %230, %232 : vector<16x128xf32>
    %234 = arith.addf %229, %233 : vector<16x128xf32>
    %235 = vector.extract_strided_slice %216 {offsets = [4, 0], sizes = [16, 128], strides = [1, 1]} : vector<24x128xf32> to vector<16x128xf32>
    %c3_116 = arith.constant 3 : index
    %c0_117 = arith.constant 0 : index
    %236 = vector.load %arg7[%c3_116, %c0_117] : memref<9x128xf32, #tpu.memory_space<vmem>>, vector<1x128xf32>
    %237 = vector.broadcast %236 : vector<1x128xf32> to vector<16x128xf32>
    %238 = arith.mulf %235, %237 : vector<16x128xf32>
    %239 = arith.addf %234, %238 : vector<16x128xf32>
    %240 = vector.extract_strided_slice %217 {offsets = [4, 0], sizes = [16, 128], strides = [1, 1]} : vector<24x128xf32> to vector<16x128xf32>
    %c4_118 = arith.constant 4 : index
    %c0_119 = arith.constant 0 : index
    %241 = vector.load %arg7[%c4_118, %c0_119] : memref<9x128xf32, #tpu.memory_space<vmem>>, vector<1x128xf32>
    %242 = vector.broadcast %241 : vector<1x128xf32> to vector<16x128xf32>
    %243 = arith.mulf %240, %242 : vector<16x128xf32>
    %244 = arith.addf %239, %243 : vector<16x128xf32>
    %245 = vector.extract_strided_slice %218 {offsets = [4, 0], sizes = [16, 128], strides = [1, 1]} : vector<24x128xf32> to vector<16x128xf32>
    %c5_120 = arith.constant 5 : index
    %c0_121 = arith.constant 0 : index
    %246 = vector.load %arg7[%c5_120, %c0_121] : memref<9x128xf32, #tpu.memory_space<vmem>>, vector<1x128xf32>
    %247 = vector.broadcast %246 : vector<1x128xf32> to vector<16x128xf32>
    %248 = arith.mulf %245, %247 : vector<16x128xf32>
    %249 = arith.addf %244, %248 : vector<16x128xf32>
    %250 = vector.extract_strided_slice %216 {offsets = [5, 0], sizes = [16, 128], strides = [1, 1]} : vector<24x128xf32> to vector<16x128xf32>
    %c6_122 = arith.constant 6 : index
    %c0_123 = arith.constant 0 : index
    %251 = vector.load %arg7[%c6_122, %c0_123] : memref<9x128xf32, #tpu.memory_space<vmem>>, vector<1x128xf32>
    %252 = vector.broadcast %251 : vector<1x128xf32> to vector<16x128xf32>
    %253 = arith.mulf %250, %252 : vector<16x128xf32>
    %254 = arith.addf %249, %253 : vector<16x128xf32>
    %255 = vector.extract_strided_slice %217 {offsets = [5, 0], sizes = [16, 128], strides = [1, 1]} : vector<24x128xf32> to vector<16x128xf32>
    %c7_124 = arith.constant 7 : index
    %c0_125 = arith.constant 0 : index
    %256 = vector.load %arg7[%c7_124, %c0_125] : memref<9x128xf32, #tpu.memory_space<vmem>>, vector<1x128xf32>
    %257 = vector.broadcast %256 : vector<1x128xf32> to vector<16x128xf32>
    %258 = arith.mulf %255, %257 : vector<16x128xf32>
    %259 = arith.addf %254, %258 : vector<16x128xf32>
    %260 = vector.extract_strided_slice %218 {offsets = [5, 0], sizes = [16, 128], strides = [1, 1]} : vector<24x128xf32> to vector<16x128xf32>
    %c8_126 = arith.constant 8 : index
    %c0_127 = arith.constant 0 : index
    %261 = vector.load %arg7[%c8_126, %c0_127] : memref<9x128xf32, #tpu.memory_space<vmem>>, vector<1x128xf32>
    %262 = vector.broadcast %261 : vector<1x128xf32> to vector<16x128xf32>
    %263 = arith.mulf %260, %262 : vector<16x128xf32>
    %264 = arith.addf %259, %263 : vector<16x128xf32>
    %c0_128 = arith.constant 0 : index
    %c0_129 = arith.constant 0 : index
    %265 = vector.load %arg8[%c0_128, %c0_129] : memref<128x128xf32, #tpu.memory_space<vmem>>, vector<128x128xf32>
    %cst_130 = arith.constant dense<0.000000e+00> : vector<16x128xf32>
    %266 = tpu.matmul %264, %265, %cst_130 {dimension_numbers = #tpu.dot_dimension_numbers<[1], [0], [0], [1], [0, 0, 1, 1], [], []>} : vector<16x128xf32>, vector<128x128xf32>, vector<16x128xf32> -> vector<16x128xf32>
    %267 = arith.mulf %266, %266 : vector<16x128xf32>
    %268 = tpu.concatenate %266, %267 in 0 : vector<16x128xf32>, vector<16x128xf32> -> vector<32x128xf32>
    %cst_131 = arith.constant dense<0.000000e+00> : vector<32x4xf32>
    %269 = tpu.matmul %268, %1, %cst_131 {dimension_numbers = #tpu.dot_dimension_numbers<[1], [0], [0], [1], [0, 0, 1, 1], [], []>} : vector<32x128xf32>, vector<128x4xf32>, vector<32x4xf32> -> vector<32x4xf32>
    %270 = vector.extract_strided_slice %269 {offsets = [0, 0], sizes = [16, 4], strides = [1, 1]} : vector<32x4xf32> to vector<16x4xf32>
    %cst_132 = arith.constant dense<0.000000e+00> : vector<4xf32>
    %271 = vector.multi_reduction <add>, %270, %cst_132 [0] : vector<16x4xf32> to vector<4xf32>
    %272 = vector.shape_cast %271 : vector<4xf32> to vector<1x4xf32>
    %cst_133 = arith.constant 0.001953125 : f32
    %273 = vector.broadcast %cst_133 : f32 to vector<1x4xf32>
    %274 = arith.mulf %272, %273 : vector<1x4xf32>
    %275 = vector.extract_strided_slice %269 {offsets = [16, 0], sizes = [16, 4], strides = [1, 1]} : vector<32x4xf32> to vector<16x4xf32>
    %cst_134 = arith.constant dense<0.000000e+00> : vector<4xf32>
    %276 = vector.multi_reduction <add>, %275, %cst_134 [0] : vector<16x4xf32> to vector<4xf32>
    %277 = vector.shape_cast %276 : vector<4xf32> to vector<1x4xf32>
    %cst_135 = arith.constant 0.001953125 : f32
    %278 = vector.broadcast %cst_135 : f32 to vector<1x4xf32>
    %279 = arith.mulf %277, %278 : vector<1x4xf32>
    %280 = arith.mulf %274, %274 : vector<1x4xf32>
    %281 = arith.subf %279, %280 : vector<1x4xf32>
    %cst_136 = arith.constant 9.99999974E-6 : f32
    %282 = vector.broadcast %cst_136 : f32 to vector<1x4xf32>
    %283 = arith.addf %281, %282 : vector<1x4xf32>
    %284 = math.rsqrt %283 : vector<1x4xf32>
    %285 = vector.broadcast %125 : f32 to vector<1x4xf32>
    %286 = arith.mulf %284, %285 : vector<1x4xf32>
    %cst_137 = arith.constant dense<0.000000e+00> : vector<1x128xf32>
    %287 = tpu.matmul %286, %2, %cst_137 {dimension_numbers = #tpu.dot_dimension_numbers<[1], [0], [0], [1], [0, 0, 1, 1], [], []>} : vector<1x4xf32>, vector<4x128xf32>, vector<1x128xf32> -> vector<1x128xf32>
    %288 = arith.mulf %274, %286 : vector<1x4xf32>
    %cst_138 = arith.constant dense<0.000000e+00> : vector<1x128xf32>
    %289 = tpu.matmul %288, %2, %cst_138 {dimension_numbers = #tpu.dot_dimension_numbers<[1], [0], [0], [1], [0, 0, 1, 1], [], []>} : vector<1x4xf32>, vector<4x128xf32>, vector<1x128xf32> -> vector<1x128xf32>
    %290 = vector.broadcast %287 : vector<1x128xf32> to vector<16x128xf32>
    %291 = arith.mulf %266, %290 : vector<16x128xf32>
    %292 = vector.broadcast %289 : vector<1x128xf32> to vector<16x128xf32>
    %293 = arith.subf %291, %292 : vector<16x128xf32>
    %294 = arith.addf %124, %293 : vector<16x128xf32>
    %c5_139 = arith.constant 5 : index
    %295 = memref.load %arg0[%c5_139] : memref<8xf32, #tpu.memory_space<smem>>
    %c0_140 = arith.constant 0 : index
    %c16 = arith.constant 16 : index
    %296 = vector.load %arg18[%c0_140, %c16] : memref<24x192xf32, #tpu.memory_space<vmem>>, vector<24x128xf32>
    %c0_141 = arith.constant 0 : index
    %c24_142 = arith.constant 24 : index
    %297 = vector.load %arg18[%c0_141, %c24_142] : memref<24x192xf32, #tpu.memory_space<vmem>>, vector<24x128xf32>
    %c0_143 = arith.constant 0 : index
    %c32_144 = arith.constant 32 : index
    %298 = vector.load %arg18[%c0_143, %c32_144] : memref<24x192xf32, #tpu.memory_space<vmem>>, vector<24x128xf32>
    %c0_145 = arith.constant 0 : index
    %c40_146 = arith.constant 40 : index
    %299 = vector.load %arg18[%c0_145, %c40_146] : memref<24x192xf32, #tpu.memory_space<vmem>>, vector<24x128xf32>
    %c0_147 = arith.constant 0 : index
    %c48 = arith.constant 48 : index
    %300 = vector.load %arg18[%c0_147, %c48] : memref<24x192xf32, #tpu.memory_space<vmem>>, vector<24x128xf32>
    %cst_148 = arith.constant 0.000000e+00 : f32
    %301 = vector.broadcast %cst_148 : f32 to vector<16x128xf32>
    %302 = vector.extract_strided_slice %296 {offsets = [2, 0], sizes = [16, 128], strides = [1, 1]} : vector<24x128xf32> to vector<16x128xf32>
    %c0_149 = arith.constant 0 : index
    %c0_150 = arith.constant 0 : index
    %303 = vector.load %arg9[%c0_149, %c0_150] : memref<25x128xf32, #tpu.memory_space<vmem>>, vector<1x128xf32>
    %304 = vector.broadcast %303 : vector<1x128xf32> to vector<16x128xf32>
    %305 = arith.mulf %302, %304 : vector<16x128xf32>
    %306 = arith.addf %301, %305 : vector<16x128xf32>
    %307 = vector.extract_strided_slice %297 {offsets = [2, 0], sizes = [16, 128], strides = [1, 1]} : vector<24x128xf32> to vector<16x128xf32>
    %c1_151 = arith.constant 1 : index
    %c0_152 = arith.constant 0 : index
    %308 = vector.load %arg9[%c1_151, %c0_152] : memref<25x128xf32, #tpu.memory_space<vmem>>, vector<1x128xf32>
    %309 = vector.broadcast %308 : vector<1x128xf32> to vector<16x128xf32>
    %310 = arith.mulf %307, %309 : vector<16x128xf32>
    %311 = arith.addf %306, %310 : vector<16x128xf32>
    %312 = vector.extract_strided_slice %298 {offsets = [2, 0], sizes = [16, 128], strides = [1, 1]} : vector<24x128xf32> to vector<16x128xf32>
    %c2_153 = arith.constant 2 : index
    %c0_154 = arith.constant 0 : index
    %313 = vector.load %arg9[%c2_153, %c0_154] : memref<25x128xf32, #tpu.memory_space<vmem>>, vector<1x128xf32>
    %314 = vector.broadcast %313 : vector<1x128xf32> to vector<16x128xf32>
    %315 = arith.mulf %312, %314 : vector<16x128xf32>
    %316 = arith.addf %311, %315 : vector<16x128xf32>
    %317 = vector.extract_strided_slice %299 {offsets = [2, 0], sizes = [16, 128], strides = [1, 1]} : vector<24x128xf32> to vector<16x128xf32>
    %c3_155 = arith.constant 3 : index
    %c0_156 = arith.constant 0 : index
    %318 = vector.load %arg9[%c3_155, %c0_156] : memref<25x128xf32, #tpu.memory_space<vmem>>, vector<1x128xf32>
    %319 = vector.broadcast %318 : vector<1x128xf32> to vector<16x128xf32>
    %320 = arith.mulf %317, %319 : vector<16x128xf32>
    %321 = arith.addf %316, %320 : vector<16x128xf32>
    %322 = vector.extract_strided_slice %300 {offsets = [2, 0], sizes = [16, 128], strides = [1, 1]} : vector<24x128xf32> to vector<16x128xf32>
    %c4_157 = arith.constant 4 : index
    %c0_158 = arith.constant 0 : index
    %323 = vector.load %arg9[%c4_157, %c0_158] : memref<25x128xf32, #tpu.memory_space<vmem>>, vector<1x128xf32>
    %324 = vector.broadcast %323 : vector<1x128xf32> to vector<16x128xf32>
    %325 = arith.mulf %322, %324 : vector<16x128xf32>
    %326 = arith.addf %321, %325 : vector<16x128xf32>
    %327 = vector.extract_strided_slice %296 {offsets = [3, 0], sizes = [16, 128], strides = [1, 1]} : vector<24x128xf32> to vector<16x128xf32>
    %c5_159 = arith.constant 5 : index
    %c0_160 = arith.constant 0 : index
    %328 = vector.load %arg9[%c5_159, %c0_160] : memref<25x128xf32, #tpu.memory_space<vmem>>, vector<1x128xf32>
    %329 = vector.broadcast %328 : vector<1x128xf32> to vector<16x128xf32>
    %330 = arith.mulf %327, %329 : vector<16x128xf32>
    %331 = arith.addf %326, %330 : vector<16x128xf32>
    %332 = vector.extract_strided_slice %297 {offsets = [3, 0], sizes = [16, 128], strides = [1, 1]} : vector<24x128xf32> to vector<16x128xf32>
    %c6_161 = arith.constant 6 : index
    %c0_162 = arith.constant 0 : index
    %333 = vector.load %arg9[%c6_161, %c0_162] : memref<25x128xf32, #tpu.memory_space<vmem>>, vector<1x128xf32>
    %334 = vector.broadcast %333 : vector<1x128xf32> to vector<16x128xf32>
    %335 = arith.mulf %332, %334 : vector<16x128xf32>
    %336 = arith.addf %331, %335 : vector<16x128xf32>
    %337 = vector.extract_strided_slice %298 {offsets = [3, 0], sizes = [16, 128], strides = [1, 1]} : vector<24x128xf32> to vector<16x128xf32>
    %c7_163 = arith.constant 7 : index
    %c0_164 = arith.constant 0 : index
    %338 = vector.load %arg9[%c7_163, %c0_164] : memref<25x128xf32, #tpu.memory_space<vmem>>, vector<1x128xf32>
    %339 = vector.broadcast %338 : vector<1x128xf32> to vector<16x128xf32>
    %340 = arith.mulf %337, %339 : vector<16x128xf32>
    %341 = arith.addf %336, %340 : vector<16x128xf32>
    %342 = vector.extract_strided_slice %299 {offsets = [3, 0], sizes = [16, 128], strides = [1, 1]} : vector<24x128xf32> to vector<16x128xf32>
    %c8_165 = arith.constant 8 : index
    %c0_166 = arith.constant 0 : index
    %343 = vector.load %arg9[%c8_165, %c0_166] : memref<25x128xf32, #tpu.memory_space<vmem>>, vector<1x128xf32>
    %344 = vector.broadcast %343 : vector<1x128xf32> to vector<16x128xf32>
    %345 = arith.mulf %342, %344 : vector<16x128xf32>
    %346 = arith.addf %341, %345 : vector<16x128xf32>
    %347 = vector.extract_strided_slice %300 {offsets = [3, 0], sizes = [16, 128], strides = [1, 1]} : vector<24x128xf32> to vector<16x128xf32>
    %c9 = arith.constant 9 : index
    %c0_167 = arith.constant 0 : index
    %348 = vector.load %arg9[%c9, %c0_167] : memref<25x128xf32, #tpu.memory_space<vmem>>, vector<1x128xf32>
    %349 = vector.broadcast %348 : vector<1x128xf32> to vector<16x128xf32>
    %350 = arith.mulf %347, %349 : vector<16x128xf32>
    %351 = arith.addf %346, %350 : vector<16x128xf32>
    %352 = vector.extract_strided_slice %296 {offsets = [4, 0], sizes = [16, 128], strides = [1, 1]} : vector<24x128xf32> to vector<16x128xf32>
    %c10 = arith.constant 10 : index
    %c0_168 = arith.constant 0 : index
    %353 = vector.load %arg9[%c10, %c0_168] : memref<25x128xf32, #tpu.memory_space<vmem>>, vector<1x128xf32>
    %354 = vector.broadcast %353 : vector<1x128xf32> to vector<16x128xf32>
    %355 = arith.mulf %352, %354 : vector<16x128xf32>
    %356 = arith.addf %351, %355 : vector<16x128xf32>
    %357 = vector.extract_strided_slice %297 {offsets = [4, 0], sizes = [16, 128], strides = [1, 1]} : vector<24x128xf32> to vector<16x128xf32>
    %c11 = arith.constant 11 : index
    %c0_169 = arith.constant 0 : index
    %358 = vector.load %arg9[%c11, %c0_169] : memref<25x128xf32, #tpu.memory_space<vmem>>, vector<1x128xf32>
    %359 = vector.broadcast %358 : vector<1x128xf32> to vector<16x128xf32>
    %360 = arith.mulf %357, %359 : vector<16x128xf32>
    %361 = arith.addf %356, %360 : vector<16x128xf32>
    %362 = vector.extract_strided_slice %298 {offsets = [4, 0], sizes = [16, 128], strides = [1, 1]} : vector<24x128xf32> to vector<16x128xf32>
    %c12 = arith.constant 12 : index
    %c0_170 = arith.constant 0 : index
    %363 = vector.load %arg9[%c12, %c0_170] : memref<25x128xf32, #tpu.memory_space<vmem>>, vector<1x128xf32>
    %364 = vector.broadcast %363 : vector<1x128xf32> to vector<16x128xf32>
    %365 = arith.mulf %362, %364 : vector<16x128xf32>
    %366 = arith.addf %361, %365 : vector<16x128xf32>
    %367 = vector.extract_strided_slice %299 {offsets = [4, 0], sizes = [16, 128], strides = [1, 1]} : vector<24x128xf32> to vector<16x128xf32>
    %c13 = arith.constant 13 : index
    %c0_171 = arith.constant 0 : index
    %368 = vector.load %arg9[%c13, %c0_171] : memref<25x128xf32, #tpu.memory_space<vmem>>, vector<1x128xf32>
    %369 = vector.broadcast %368 : vector<1x128xf32> to vector<16x128xf32>
    %370 = arith.mulf %367, %369 : vector<16x128xf32>
    %371 = arith.addf %366, %370 : vector<16x128xf32>
    %372 = vector.extract_strided_slice %300 {offsets = [4, 0], sizes = [16, 128], strides = [1, 1]} : vector<24x128xf32> to vector<16x128xf32>
    %c14 = arith.constant 14 : index
    %c0_172 = arith.constant 0 : index
    %373 = vector.load %arg9[%c14, %c0_172] : memref<25x128xf32, #tpu.memory_space<vmem>>, vector<1x128xf32>
    %374 = vector.broadcast %373 : vector<1x128xf32> to vector<16x128xf32>
    %375 = arith.mulf %372, %374 : vector<16x128xf32>
    %376 = arith.addf %371, %375 : vector<16x128xf32>
    %377 = vector.extract_strided_slice %296 {offsets = [5, 0], sizes = [16, 128], strides = [1, 1]} : vector<24x128xf32> to vector<16x128xf32>
    %c15 = arith.constant 15 : index
    %c0_173 = arith.constant 0 : index
    %378 = vector.load %arg9[%c15, %c0_173] : memref<25x128xf32, #tpu.memory_space<vmem>>, vector<1x128xf32>
    %379 = vector.broadcast %378 : vector<1x128xf32> to vector<16x128xf32>
    %380 = arith.mulf %377, %379 : vector<16x128xf32>
    %381 = arith.addf %376, %380 : vector<16x128xf32>
    %382 = vector.extract_strided_slice %297 {offsets = [5, 0], sizes = [16, 128], strides = [1, 1]} : vector<24x128xf32> to vector<16x128xf32>
    %c16_174 = arith.constant 16 : index
    %c0_175 = arith.constant 0 : index
    %383 = vector.load %arg9[%c16_174, %c0_175] : memref<25x128xf32, #tpu.memory_space<vmem>>, vector<1x128xf32>
    %384 = vector.broadcast %383 : vector<1x128xf32> to vector<16x128xf32>
    %385 = arith.mulf %382, %384 : vector<16x128xf32>
    %386 = arith.addf %381, %385 : vector<16x128xf32>
    %387 = vector.extract_strided_slice %298 {offsets = [5, 0], sizes = [16, 128], strides = [1, 1]} : vector<24x128xf32> to vector<16x128xf32>
    %c17 = arith.constant 17 : index
    %c0_176 = arith.constant 0 : index
    %388 = vector.load %arg9[%c17, %c0_176] : memref<25x128xf32, #tpu.memory_space<vmem>>, vector<1x128xf32>
    %389 = vector.broadcast %388 : vector<1x128xf32> to vector<16x128xf32>
    %390 = arith.mulf %387, %389 : vector<16x128xf32>
    %391 = arith.addf %386, %390 : vector<16x128xf32>
    %392 = vector.extract_strided_slice %299 {offsets = [5, 0], sizes = [16, 128], strides = [1, 1]} : vector<24x128xf32> to vector<16x128xf32>
    %c18 = arith.constant 18 : index
    %c0_177 = arith.constant 0 : index
    %393 = vector.load %arg9[%c18, %c0_177] : memref<25x128xf32, #tpu.memory_space<vmem>>, vector<1x128xf32>
    %394 = vector.broadcast %393 : vector<1x128xf32> to vector<16x128xf32>
    %395 = arith.mulf %392, %394 : vector<16x128xf32>
    %396 = arith.addf %391, %395 : vector<16x128xf32>
    %397 = vector.extract_strided_slice %300 {offsets = [5, 0], sizes = [16, 128], strides = [1, 1]} : vector<24x128xf32> to vector<16x128xf32>
    %c19 = arith.constant 19 : index
    %c0_178 = arith.constant 0 : index
    %398 = vector.load %arg9[%c19, %c0_178] : memref<25x128xf32, #tpu.memory_space<vmem>>, vector<1x128xf32>
    %399 = vector.broadcast %398 : vector<1x128xf32> to vector<16x128xf32>
    %400 = arith.mulf %397, %399 : vector<16x128xf32>
    %401 = arith.addf %396, %400 : vector<16x128xf32>
    %402 = vector.extract_strided_slice %296 {offsets = [6, 0], sizes = [16, 128], strides = [1, 1]} : vector<24x128xf32> to vector<16x128xf32>
    %c20_179 = arith.constant 20 : index
    %c0_180 = arith.constant 0 : index
    %403 = vector.load %arg9[%c20_179, %c0_180] : memref<25x128xf32, #tpu.memory_space<vmem>>, vector<1x128xf32>
    %404 = vector.broadcast %403 : vector<1x128xf32> to vector<16x128xf32>
    %405 = arith.mulf %402, %404 : vector<16x128xf32>
    %406 = arith.addf %401, %405 : vector<16x128xf32>
    %407 = vector.extract_strided_slice %297 {offsets = [6, 0], sizes = [16, 128], strides = [1, 1]} : vector<24x128xf32> to vector<16x128xf32>
    %c21 = arith.constant 21 : index
    %c0_181 = arith.constant 0 : index
    %408 = vector.load %arg9[%c21, %c0_181] : memref<25x128xf32, #tpu.memory_space<vmem>>, vector<1x128xf32>
    %409 = vector.broadcast %408 : vector<1x128xf32> to vector<16x128xf32>
    %410 = arith.mulf %407, %409 : vector<16x128xf32>
    %411 = arith.addf %406, %410 : vector<16x128xf32>
    %412 = vector.extract_strided_slice %298 {offsets = [6, 0], sizes = [16, 128], strides = [1, 1]} : vector<24x128xf32> to vector<16x128xf32>
    %c22 = arith.constant 22 : index
    %c0_182 = arith.constant 0 : index
    %413 = vector.load %arg9[%c22, %c0_182] : memref<25x128xf32, #tpu.memory_space<vmem>>, vector<1x128xf32>
    %414 = vector.broadcast %413 : vector<1x128xf32> to vector<16x128xf32>
    %415 = arith.mulf %412, %414 : vector<16x128xf32>
    %416 = arith.addf %411, %415 : vector<16x128xf32>
    %417 = vector.extract_strided_slice %299 {offsets = [6, 0], sizes = [16, 128], strides = [1, 1]} : vector<24x128xf32> to vector<16x128xf32>
    %c23 = arith.constant 23 : index
    %c0_183 = arith.constant 0 : index
    %418 = vector.load %arg9[%c23, %c0_183] : memref<25x128xf32, #tpu.memory_space<vmem>>, vector<1x128xf32>
    %419 = vector.broadcast %418 : vector<1x128xf32> to vector<16x128xf32>
    %420 = arith.mulf %417, %419 : vector<16x128xf32>
    %421 = arith.addf %416, %420 : vector<16x128xf32>
    %422 = vector.extract_strided_slice %300 {offsets = [6, 0], sizes = [16, 128], strides = [1, 1]} : vector<24x128xf32> to vector<16x128xf32>
    %c24_184 = arith.constant 24 : index
    %c0_185 = arith.constant 0 : index
    %423 = vector.load %arg9[%c24_184, %c0_185] : memref<25x128xf32, #tpu.memory_space<vmem>>, vector<1x128xf32>
    %424 = vector.broadcast %423 : vector<1x128xf32> to vector<16x128xf32>
    %425 = arith.mulf %422, %424 : vector<16x128xf32>
    %426 = arith.addf %421, %425 : vector<16x128xf32>
    %c0_186 = arith.constant 0 : index
    %c0_187 = arith.constant 0 : index
    %427 = vector.load %arg10[%c0_186, %c0_187] : memref<128x128xf32, #tpu.memory_space<vmem>>, vector<128x128xf32>
    %cst_188 = arith.constant dense<0.000000e+00> : vector<16x128xf32>
    %428 = tpu.matmul %426, %427, %cst_188 {dimension_numbers = #tpu.dot_dimension_numbers<[1], [0], [0], [1], [0, 0, 1, 1], [], []>} : vector<16x128xf32>, vector<128x128xf32>, vector<16x128xf32> -> vector<16x128xf32>
    %429 = arith.mulf %428, %428 : vector<16x128xf32>
    %430 = tpu.concatenate %428, %429 in 0 : vector<16x128xf32>, vector<16x128xf32> -> vector<32x128xf32>
    %cst_189 = arith.constant dense<0.000000e+00> : vector<32x4xf32>
    %431 = tpu.matmul %430, %1, %cst_189 {dimension_numbers = #tpu.dot_dimension_numbers<[1], [0], [0], [1], [0, 0, 1, 1], [], []>} : vector<32x128xf32>, vector<128x4xf32>, vector<32x4xf32> -> vector<32x4xf32>
    %432 = vector.extract_strided_slice %431 {offsets = [0, 0], sizes = [16, 4], strides = [1, 1]} : vector<32x4xf32> to vector<16x4xf32>
    %cst_190 = arith.constant dense<0.000000e+00> : vector<4xf32>
    %433 = vector.multi_reduction <add>, %432, %cst_190 [0] : vector<16x4xf32> to vector<4xf32>
    %434 = vector.shape_cast %433 : vector<4xf32> to vector<1x4xf32>
    %cst_191 = arith.constant 0.001953125 : f32
    %435 = vector.broadcast %cst_191 : f32 to vector<1x4xf32>
    %436 = arith.mulf %434, %435 : vector<1x4xf32>
    %437 = vector.extract_strided_slice %431 {offsets = [16, 0], sizes = [16, 4], strides = [1, 1]} : vector<32x4xf32> to vector<16x4xf32>
    %cst_192 = arith.constant dense<0.000000e+00> : vector<4xf32>
    %438 = vector.multi_reduction <add>, %437, %cst_192 [0] : vector<16x4xf32> to vector<4xf32>
    %439 = vector.shape_cast %438 : vector<4xf32> to vector<1x4xf32>
    %cst_193 = arith.constant 0.001953125 : f32
    %440 = vector.broadcast %cst_193 : f32 to vector<1x4xf32>
    %441 = arith.mulf %439, %440 : vector<1x4xf32>
    %442 = arith.mulf %436, %436 : vector<1x4xf32>
    %443 = arith.subf %441, %442 : vector<1x4xf32>
    %cst_194 = arith.constant 9.99999974E-6 : f32
    %444 = vector.broadcast %cst_194 : f32 to vector<1x4xf32>
    %445 = arith.addf %443, %444 : vector<1x4xf32>
    %446 = math.rsqrt %445 : vector<1x4xf32>
    %cst_195 = arith.constant 1.000000e+00 : f32
    %447 = vector.broadcast %cst_195 : f32 to vector<1x4xf32>
    %448 = arith.mulf %446, %447 : vector<1x4xf32>
    %cst_196 = arith.constant dense<0.000000e+00> : vector<1x128xf32>
    %449 = tpu.matmul %448, %2, %cst_196 {dimension_numbers = #tpu.dot_dimension_numbers<[1], [0], [0], [1], [0, 0, 1, 1], [], []>} : vector<1x4xf32>, vector<4x128xf32>, vector<1x128xf32> -> vector<1x128xf32>
    %450 = arith.mulf %436, %448 : vector<1x4xf32>
    %cst_197 = arith.constant dense<0.000000e+00> : vector<1x128xf32>
    %451 = tpu.matmul %450, %2, %cst_197 {dimension_numbers = #tpu.dot_dimension_numbers<[1], [0], [0], [1], [0, 0, 1, 1], [], []>} : vector<1x4xf32>, vector<4x128xf32>, vector<1x128xf32> -> vector<1x128xf32>
    %452 = vector.broadcast %449 : vector<1x128xf32> to vector<16x128xf32>
    %453 = arith.mulf %428, %452 : vector<16x128xf32>
    %454 = vector.broadcast %451 : vector<1x128xf32> to vector<16x128xf32>
    %455 = arith.subf %453, %454 : vector<16x128xf32>
    %cst_198 = arith.constant 0.000000e+00 : f32
    %456 = vector.broadcast %cst_198 : f32 to vector<16x128xf32>
    %457 = arith.maximumf %455, %456 : vector<16x128xf32>
    %c4_199 = arith.constant 4 : index
    %c32_200 = arith.constant 32 : index
    %458 = vector.load %arg19[%c4_199, %c32_200] : memref<24x192xf32, #tpu.memory_space<vmem>>, vector<16x128xf32>
    tpu.vector_store %arg19[%c4_199, %c32_200], %457 {strides = array<i32>} : memref<24x192xf32, #tpu.memory_space<vmem>>, vector<16x128xf32>,
    %c0_201 = arith.constant 0 : index
    %c16_202 = arith.constant 16 : index
    %459 = vector.load %arg19[%c0_201, %c16_202] : memref<24x192xf32, #tpu.memory_space<vmem>>, vector<24x128xf32>
    %c0_203 = arith.constant 0 : index
    %c24_204 = arith.constant 24 : index
    %460 = vector.load %arg19[%c0_203, %c24_204] : memref<24x192xf32, #tpu.memory_space<vmem>>, vector<24x128xf32>
    %c0_205 = arith.constant 0 : index
    %c32_206 = arith.constant 32 : index
    %461 = vector.load %arg19[%c0_205, %c32_206] : memref<24x192xf32, #tpu.memory_space<vmem>>, vector<24x128xf32>
    %c0_207 = arith.constant 0 : index
    %c40_208 = arith.constant 40 : index
    %462 = vector.load %arg19[%c0_207, %c40_208] : memref<24x192xf32, #tpu.memory_space<vmem>>, vector<24x128xf32>
    %c0_209 = arith.constant 0 : index
    %c48_210 = arith.constant 48 : index
    %463 = vector.load %arg19[%c0_209, %c48_210] : memref<24x192xf32, #tpu.memory_space<vmem>>, vector<24x128xf32>
    %cst_211 = arith.constant 0.000000e+00 : f32
    %464 = vector.broadcast %cst_211 : f32 to vector<16x128xf32>
    %465 = vector.extract_strided_slice %459 {offsets = [2, 0], sizes = [16, 128], strides = [1, 1]} : vector<24x128xf32> to vector<16x128xf32>
    %c0_212 = arith.constant 0 : index
    %c0_213 = arith.constant 0 : index
    %466 = vector.load %arg11[%c0_212, %c0_213] : memref<25x128xf32, #tpu.memory_space<vmem>>, vector<1x128xf32>
    %467 = vector.broadcast %466 : vector<1x128xf32> to vector<16x128xf32>
    %468 = arith.mulf %465, %467 : vector<16x128xf32>
    %469 = arith.addf %464, %468 : vector<16x128xf32>
    %470 = vector.extract_strided_slice %460 {offsets = [2, 0], sizes = [16, 128], strides = [1, 1]} : vector<24x128xf32> to vector<16x128xf32>
    %c1_214 = arith.constant 1 : index
    %c0_215 = arith.constant 0 : index
    %471 = vector.load %arg11[%c1_214, %c0_215] : memref<25x128xf32, #tpu.memory_space<vmem>>, vector<1x128xf32>
    %472 = vector.broadcast %471 : vector<1x128xf32> to vector<16x128xf32>
    %473 = arith.mulf %470, %472 : vector<16x128xf32>
    %474 = arith.addf %469, %473 : vector<16x128xf32>
    %475 = vector.extract_strided_slice %461 {offsets = [2, 0], sizes = [16, 128], strides = [1, 1]} : vector<24x128xf32> to vector<16x128xf32>
    %c2_216 = arith.constant 2 : index
    %c0_217 = arith.constant 0 : index
    %476 = vector.load %arg11[%c2_216, %c0_217] : memref<25x128xf32, #tpu.memory_space<vmem>>, vector<1x128xf32>
    %477 = vector.broadcast %476 : vector<1x128xf32> to vector<16x128xf32>
    %478 = arith.mulf %475, %477 : vector<16x128xf32>
    %479 = arith.addf %474, %478 : vector<16x128xf32>
    %480 = vector.extract_strided_slice %462 {offsets = [2, 0], sizes = [16, 128], strides = [1, 1]} : vector<24x128xf32> to vector<16x128xf32>
    %c3_218 = arith.constant 3 : index
    %c0_219 = arith.constant 0 : index
    %481 = vector.load %arg11[%c3_218, %c0_219] : memref<25x128xf32, #tpu.memory_space<vmem>>, vector<1x128xf32>
    %482 = vector.broadcast %481 : vector<1x128xf32> to vector<16x128xf32>
    %483 = arith.mulf %480, %482 : vector<16x128xf32>
    %484 = arith.addf %479, %483 : vector<16x128xf32>
    %485 = vector.extract_strided_slice %463 {offsets = [2, 0], sizes = [16, 128], strides = [1, 1]} : vector<24x128xf32> to vector<16x128xf32>
    %c4_220 = arith.constant 4 : index
    %c0_221 = arith.constant 0 : index
    %486 = vector.load %arg11[%c4_220, %c0_221] : memref<25x128xf32, #tpu.memory_space<vmem>>, vector<1x128xf32>
    %487 = vector.broadcast %486 : vector<1x128xf32> to vector<16x128xf32>
    %488 = arith.mulf %485, %487 : vector<16x128xf32>
    %489 = arith.addf %484, %488 : vector<16x128xf32>
    %490 = vector.extract_strided_slice %459 {offsets = [3, 0], sizes = [16, 128], strides = [1, 1]} : vector<24x128xf32> to vector<16x128xf32>
    %c5_222 = arith.constant 5 : index
    %c0_223 = arith.constant 0 : index
    %491 = vector.load %arg11[%c5_222, %c0_223] : memref<25x128xf32, #tpu.memory_space<vmem>>, vector<1x128xf32>
    %492 = vector.broadcast %491 : vector<1x128xf32> to vector<16x128xf32>
    %493 = arith.mulf %490, %492 : vector<16x128xf32>
    %494 = arith.addf %489, %493 : vector<16x128xf32>
    %495 = vector.extract_strided_slice %460 {offsets = [3, 0], sizes = [16, 128], strides = [1, 1]} : vector<24x128xf32> to vector<16x128xf32>
    %c6_224 = arith.constant 6 : index
    %c0_225 = arith.constant 0 : index
    %496 = vector.load %arg11[%c6_224, %c0_225] : memref<25x128xf32, #tpu.memory_space<vmem>>, vector<1x128xf32>
    %497 = vector.broadcast %496 : vector<1x128xf32> to vector<16x128xf32>
    %498 = arith.mulf %495, %497 : vector<16x128xf32>
    %499 = arith.addf %494, %498 : vector<16x128xf32>
    %500 = vector.extract_strided_slice %461 {offsets = [3, 0], sizes = [16, 128], strides = [1, 1]} : vector<24x128xf32> to vector<16x128xf32>
    %c7_226 = arith.constant 7 : index
    %c0_227 = arith.constant 0 : index
    %501 = vector.load %arg11[%c7_226, %c0_227] : memref<25x128xf32, #tpu.memory_space<vmem>>, vector<1x128xf32>
    %502 = vector.broadcast %501 : vector<1x128xf32> to vector<16x128xf32>
    %503 = arith.mulf %500, %502 : vector<16x128xf32>
    %504 = arith.addf %499, %503 : vector<16x128xf32>
    %505 = vector.extract_strided_slice %462 {offsets = [3, 0], sizes = [16, 128], strides = [1, 1]} : vector<24x128xf32> to vector<16x128xf32>
    %c8_228 = arith.constant 8 : index
    %c0_229 = arith.constant 0 : index
    %506 = vector.load %arg11[%c8_228, %c0_229] : memref<25x128xf32, #tpu.memory_space<vmem>>, vector<1x128xf32>
    %507 = vector.broadcast %506 : vector<1x128xf32> to vector<16x128xf32>
    %508 = arith.mulf %505, %507 : vector<16x128xf32>
    %509 = arith.addf %504, %508 : vector<16x128xf32>
    %510 = vector.extract_strided_slice %463 {offsets = [3, 0], sizes = [16, 128], strides = [1, 1]} : vector<24x128xf32> to vector<16x128xf32>
    %c9_230 = arith.constant 9 : index
    %c0_231 = arith.constant 0 : index
    %511 = vector.load %arg11[%c9_230, %c0_231] : memref<25x128xf32, #tpu.memory_space<vmem>>, vector<1x128xf32>
    %512 = vector.broadcast %511 : vector<1x128xf32> to vector<16x128xf32>
    %513 = arith.mulf %510, %512 : vector<16x128xf32>
    %514 = arith.addf %509, %513 : vector<16x128xf32>
    %515 = vector.extract_strided_slice %459 {offsets = [4, 0], sizes = [16, 128], strides = [1, 1]} : vector<24x128xf32> to vector<16x128xf32>
    %c10_232 = arith.constant 10 : index
    %c0_233 = arith.constant 0 : index
    %516 = vector.load %arg11[%c10_232, %c0_233] : memref<25x128xf32, #tpu.memory_space<vmem>>, vector<1x128xf32>
    %517 = vector.broadcast %516 : vector<1x128xf32> to vector<16x128xf32>
    %518 = arith.mulf %515, %517 : vector<16x128xf32>
    %519 = arith.addf %514, %518 : vector<16x128xf32>
    %520 = vector.extract_strided_slice %460 {offsets = [4, 0], sizes = [16, 128], strides = [1, 1]} : vector<24x128xf32> to vector<16x128xf32>
    %c11_234 = arith.constant 11 : index
    %c0_235 = arith.constant 0 : index
    %521 = vector.load %arg11[%c11_234, %c0_235] : memref<25x128xf32, #tpu.memory_space<vmem>>, vector<1x128xf32>
    %522 = vector.broadcast %521 : vector<1x128xf32> to vector<16x128xf32>
    %523 = arith.mulf %520, %522 : vector<16x128xf32>
    %524 = arith.addf %519, %523 : vector<16x128xf32>
    %525 = vector.extract_strided_slice %461 {offsets = [4, 0], sizes = [16, 128], strides = [1, 1]} : vector<24x128xf32> to vector<16x128xf32>
    %c12_236 = arith.constant 12 : index
    %c0_237 = arith.constant 0 : index
    %526 = vector.load %arg11[%c12_236, %c0_237] : memref<25x128xf32, #tpu.memory_space<vmem>>, vector<1x128xf32>
    %527 = vector.broadcast %526 : vector<1x128xf32> to vector<16x128xf32>
    %528 = arith.mulf %525, %527 : vector<16x128xf32>
    %529 = arith.addf %524, %528 : vector<16x128xf32>
    %530 = vector.extract_strided_slice %462 {offsets = [4, 0], sizes = [16, 128], strides = [1, 1]} : vector<24x128xf32> to vector<16x128xf32>
    %c13_238 = arith.constant 13 : index
    %c0_239 = arith.constant 0 : index
    %531 = vector.load %arg11[%c13_238, %c0_239] : memref<25x128xf32, #tpu.memory_space<vmem>>, vector<1x128xf32>
    %532 = vector.broadcast %531 : vector<1x128xf32> to vector<16x128xf32>
    %533 = arith.mulf %530, %532 : vector<16x128xf32>
    %534 = arith.addf %529, %533 : vector<16x128xf32>
    %535 = vector.extract_strided_slice %463 {offsets = [4, 0], sizes = [16, 128], strides = [1, 1]} : vector<24x128xf32> to vector<16x128xf32>
    %c14_240 = arith.constant 14 : index
    %c0_241 = arith.constant 0 : index
    %536 = vector.load %arg11[%c14_240, %c0_241] : memref<25x128xf32, #tpu.memory_space<vmem>>, vector<1x128xf32>
    %537 = vector.broadcast %536 : vector<1x128xf32> to vector<16x128xf32>
    %538 = arith.mulf %535, %537 : vector<16x128xf32>
    %539 = arith.addf %534, %538 : vector<16x128xf32>
    %540 = vector.extract_strided_slice %459 {offsets = [5, 0], sizes = [16, 128], strides = [1, 1]} : vector<24x128xf32> to vector<16x128xf32>
    %c15_242 = arith.constant 15 : index
    %c0_243 = arith.constant 0 : index
    %541 = vector.load %arg11[%c15_242, %c0_243] : memref<25x128xf32, #tpu.memory_space<vmem>>, vector<1x128xf32>
    %542 = vector.broadcast %541 : vector<1x128xf32> to vector<16x128xf32>
    %543 = arith.mulf %540, %542 : vector<16x128xf32>
    %544 = arith.addf %539, %543 : vector<16x128xf32>
    %545 = vector.extract_strided_slice %460 {offsets = [5, 0], sizes = [16, 128], strides = [1, 1]} : vector<24x128xf32> to vector<16x128xf32>
    %c16_244 = arith.constant 16 : index
    %c0_245 = arith.constant 0 : index
    %546 = vector.load %arg11[%c16_244, %c0_245] : memref<25x128xf32, #tpu.memory_space<vmem>>, vector<1x128xf32>
    %547 = vector.broadcast %546 : vector<1x128xf32> to vector<16x128xf32>
    %548 = arith.mulf %545, %547 : vector<16x128xf32>
    %549 = arith.addf %544, %548 : vector<16x128xf32>
    %550 = vector.extract_strided_slice %461 {offsets = [5, 0], sizes = [16, 128], strides = [1, 1]} : vector<24x128xf32> to vector<16x128xf32>
    %c17_246 = arith.constant 17 : index
    %c0_247 = arith.constant 0 : index
    %551 = vector.load %arg11[%c17_246, %c0_247] : memref<25x128xf32, #tpu.memory_space<vmem>>, vector<1x128xf32>
    %552 = vector.broadcast %551 : vector<1x128xf32> to vector<16x128xf32>
    %553 = arith.mulf %550, %552 : vector<16x128xf32>
    %554 = arith.addf %549, %553 : vector<16x128xf32>
    %555 = vector.extract_strided_slice %462 {offsets = [5, 0], sizes = [16, 128], strides = [1, 1]} : vector<24x128xf32> to vector<16x128xf32>
    %c18_248 = arith.constant 18 : index
    %c0_249 = arith.constant 0 : index
    %556 = vector.load %arg11[%c18_248, %c0_249] : memref<25x128xf32, #tpu.memory_space<vmem>>, vector<1x128xf32>
    %557 = vector.broadcast %556 : vector<1x128xf32> to vector<16x128xf32>
    %558 = arith.mulf %555, %557 : vector<16x128xf32>
    %559 = arith.addf %554, %558 : vector<16x128xf32>
    %560 = vector.extract_strided_slice %463 {offsets = [5, 0], sizes = [16, 128], strides = [1, 1]} : vector<24x128xf32> to vector<16x128xf32>
    %c19_250 = arith.constant 19 : index
    %c0_251 = arith.constant 0 : index
    %561 = vector.load %arg11[%c19_250, %c0_251] : memref<25x128xf32, #tpu.memory_space<vmem>>, vector<1x128xf32>
    %562 = vector.broadcast %561 : vector<1x128xf32> to vector<16x128xf32>
    %563 = arith.mulf %560, %562 : vector<16x128xf32>
    %564 = arith.addf %559, %563 : vector<16x128xf32>
    %565 = vector.extract_strided_slice %459 {offsets = [6, 0], sizes = [16, 128], strides = [1, 1]} : vector<24x128xf32> to vector<16x128xf32>
    %c20_252 = arith.constant 20 : index
    %c0_253 = arith.constant 0 : index
    %566 = vector.load %arg11[%c20_252, %c0_253] : memref<25x128xf32, #tpu.memory_space<vmem>>, vector<1x128xf32>
    %567 = vector.broadcast %566 : vector<1x128xf32> to vector<16x128xf32>
    %568 = arith.mulf %565, %567 : vector<16x128xf32>
    %569 = arith.addf %564, %568 : vector<16x128xf32>
    %570 = vector.extract_strided_slice %460 {offsets = [6, 0], sizes = [16, 128], strides = [1, 1]} : vector<24x128xf32> to vector<16x128xf32>
    %c21_254 = arith.constant 21 : index
    %c0_255 = arith.constant 0 : index
    %571 = vector.load %arg11[%c21_254, %c0_255] : memref<25x128xf32, #tpu.memory_space<vmem>>, vector<1x128xf32>
    %572 = vector.broadcast %571 : vector<1x128xf32> to vector<16x128xf32>
    %573 = arith.mulf %570, %572 : vector<16x128xf32>
    %574 = arith.addf %569, %573 : vector<16x128xf32>
    %575 = vector.extract_strided_slice %461 {offsets = [6, 0], sizes = [16, 128], strides = [1, 1]} : vector<24x128xf32> to vector<16x128xf32>
    %c22_256 = arith.constant 22 : index
    %c0_257 = arith.constant 0 : index
    %576 = vector.load %arg11[%c22_256, %c0_257] : memref<25x128xf32, #tpu.memory_space<vmem>>, vector<1x128xf32>
    %577 = vector.broadcast %576 : vector<1x128xf32> to vector<16x128xf32>
    %578 = arith.mulf %575, %577 : vector<16x128xf32>
    %579 = arith.addf %574, %578 : vector<16x128xf32>
    %580 = vector.extract_strided_slice %462 {offsets = [6, 0], sizes = [16, 128], strides = [1, 1]} : vector<24x128xf32> to vector<16x128xf32>
    %c23_258 = arith.constant 23 : index
    %c0_259 = arith.constant 0 : index
    %581 = vector.load %arg11[%c23_258, %c0_259] : memref<25x128xf32, #tpu.memory_space<vmem>>, vector<1x128xf32>
    %582 = vector.broadcast %581 : vector<1x128xf32> to vector<16x128xf32>
    %583 = arith.mulf %580, %582 : vector<16x128xf32>
    %584 = arith.addf %579, %583 : vector<16x128xf32>
    %585 = vector.extract_strided_slice %463 {offsets = [6, 0], sizes = [16, 128], strides = [1, 1]} : vector<24x128xf32> to vector<16x128xf32>
    %c24_260 = arith.constant 24 : index
    %c0_261 = arith.constant 0 : index
    %586 = vector.load %arg11[%c24_260, %c0_261] : memref<25x128xf32, #tpu.memory_space<vmem>>, vector<1x128xf32>
    %587 = vector.broadcast %586 : vector<1x128xf32> to vector<16x128xf32>
    %588 = arith.mulf %585, %587 : vector<16x128xf32>
    %589 = arith.addf %584, %588 : vector<16x128xf32>
    %c0_262 = arith.constant 0 : index
    %c0_263 = arith.constant 0 : index
    %590 = vector.load %arg12[%c0_262, %c0_263] : memref<128x128xf32, #tpu.memory_space<vmem>>, vector<128x128xf32>
    %cst_264 = arith.constant dense<0.000000e+00> : vector<16x128xf32>
    %591 = tpu.matmul %589, %590, %cst_264 {dimension_numbers = #tpu.dot_dimension_numbers<[1], [0], [0], [1], [0, 0, 1, 1], [], []>} : vector<16x128xf32>, vector<128x128xf32>, vector<16x128xf32> -> vector<16x128xf32>
    %592 = arith.mulf %591, %591 : vector<16x128xf32>
    %593 = tpu.concatenate %591, %592 in 0 : vector<16x128xf32>, vector<16x128xf32> -> vector<32x128xf32>
    %cst_265 = arith.constant dense<0.000000e+00> : vector<32x4xf32>
    %594 = tpu.matmul %593, %1, %cst_265 {dimension_numbers = #tpu.dot_dimension_numbers<[1], [0], [0], [1], [0, 0, 1, 1], [], []>} : vector<32x128xf32>, vector<128x4xf32>, vector<32x4xf32> -> vector<32x4xf32>
    %595 = vector.extract_strided_slice %594 {offsets = [0, 0], sizes = [16, 4], strides = [1, 1]} : vector<32x4xf32> to vector<16x4xf32>
    %cst_266 = arith.constant dense<0.000000e+00> : vector<4xf32>
    %596 = vector.multi_reduction <add>, %595, %cst_266 [0] : vector<16x4xf32> to vector<4xf32>
    %597 = vector.shape_cast %596 : vector<4xf32> to vector<1x4xf32>
    %cst_267 = arith.constant 0.001953125 : f32
    %598 = vector.broadcast %cst_267 : f32 to vector<1x4xf32>
    %599 = arith.mulf %597, %598 : vector<1x4xf32>
    %600 = vector.extract_strided_slice %594 {offsets = [16, 0], sizes = [16, 4], strides = [1, 1]} : vector<32x4xf32> to vector<16x4xf32>
    %cst_268 = arith.constant dense<0.000000e+00> : vector<4xf32>
    %601 = vector.multi_reduction <add>, %600, %cst_268 [0] : vector<16x4xf32> to vector<4xf32>
    %602 = vector.shape_cast %601 : vector<4xf32> to vector<1x4xf32>
    %cst_269 = arith.constant 0.001953125 : f32
    %603 = vector.broadcast %cst_269 : f32 to vector<1x4xf32>
    %604 = arith.mulf %602, %603 : vector<1x4xf32>
    %605 = arith.mulf %599, %599 : vector<1x4xf32>
    %606 = arith.subf %604, %605 : vector<1x4xf32>
    %cst_270 = arith.constant 9.99999974E-6 : f32
    %607 = vector.broadcast %cst_270 : f32 to vector<1x4xf32>
    %608 = arith.addf %606, %607 : vector<1x4xf32>
    %609 = math.rsqrt %608 : vector<1x4xf32>
    %610 = vector.broadcast %295 : f32 to vector<1x4xf32>
    %611 = arith.mulf %609, %610 : vector<1x4xf32>
    %cst_271 = arith.constant dense<0.000000e+00> : vector<1x128xf32>
    %612 = tpu.matmul %611, %2, %cst_271 {dimension_numbers = #tpu.dot_dimension_numbers<[1], [0], [0], [1], [0, 0, 1, 1], [], []>} : vector<1x4xf32>, vector<4x128xf32>, vector<1x128xf32> -> vector<1x128xf32>
    %613 = arith.mulf %599, %611 : vector<1x4xf32>
    %cst_272 = arith.constant dense<0.000000e+00> : vector<1x128xf32>
    %614 = tpu.matmul %613, %2, %cst_272 {dimension_numbers = #tpu.dot_dimension_numbers<[1], [0], [0], [1], [0, 0, 1, 1], [], []>} : vector<1x4xf32>, vector<4x128xf32>, vector<1x128xf32> -> vector<1x128xf32>
    %615 = vector.broadcast %612 : vector<1x128xf32> to vector<16x128xf32>
    %616 = arith.mulf %591, %615 : vector<16x128xf32>
    %617 = vector.broadcast %614 : vector<1x128xf32> to vector<16x128xf32>
    %618 = arith.subf %616, %617 : vector<16x128xf32>
    %619 = arith.addf %294, %618 : vector<16x128xf32>
    %c6_273 = arith.constant 6 : index
    %620 = memref.load %arg0[%c6_273] : memref<8xf32, #tpu.memory_space<smem>>
    %c0_274 = arith.constant 0 : index
    %c16_275 = arith.constant 16 : index
    %621 = vector.load %arg18[%c0_274, %c16_275] : memref<24x192xf32, #tpu.memory_space<vmem>>, vector<24x128xf32>
    %c0_276 = arith.constant 0 : index
    %c32_277 = arith.constant 32 : index
    %622 = vector.load %arg18[%c0_276, %c32_277] : memref<24x192xf32, #tpu.memory_space<vmem>>, vector<24x128xf32>
    %c0_278 = arith.constant 0 : index
    %c48_279 = arith.constant 48 : index
    %623 = vector.load %arg18[%c0_278, %c48_279] : memref<24x192xf32, #tpu.memory_space<vmem>>, vector<24x128xf32>
    %cst_280 = arith.constant 0.000000e+00 : f32
    %624 = vector.broadcast %cst_280 : f32 to vector<16x128xf32>
    %625 = vector.extract_strided_slice %621 {offsets = [2, 0], sizes = [16, 128], strides = [1, 1]} : vector<24x128xf32> to vector<16x128xf32>
    %c0_281 = arith.constant 0 : index
    %c0_282 = arith.constant 0 : index
    %626 = vector.load %arg13[%c0_281, %c0_282] : memref<9x128xf32, #tpu.memory_space<vmem>>, vector<1x128xf32>
    %627 = vector.broadcast %626 : vector<1x128xf32> to vector<16x128xf32>
    %628 = arith.mulf %625, %627 : vector<16x128xf32>
    %629 = arith.addf %624, %628 : vector<16x128xf32>
    %630 = vector.extract_strided_slice %622 {offsets = [2, 0], sizes = [16, 128], strides = [1, 1]} : vector<24x128xf32> to vector<16x128xf32>
    %c1_283 = arith.constant 1 : index
    %c0_284 = arith.constant 0 : index
    %631 = vector.load %arg13[%c1_283, %c0_284] : memref<9x128xf32, #tpu.memory_space<vmem>>, vector<1x128xf32>
    %632 = vector.broadcast %631 : vector<1x128xf32> to vector<16x128xf32>
    %633 = arith.mulf %630, %632 : vector<16x128xf32>
    %634 = arith.addf %629, %633 : vector<16x128xf32>
    %635 = vector.extract_strided_slice %623 {offsets = [2, 0], sizes = [16, 128], strides = [1, 1]} : vector<24x128xf32> to vector<16x128xf32>
    %c2_285 = arith.constant 2 : index
    %c0_286 = arith.constant 0 : index
    %636 = vector.load %arg13[%c2_285, %c0_286] : memref<9x128xf32, #tpu.memory_space<vmem>>, vector<1x128xf32>
    %637 = vector.broadcast %636 : vector<1x128xf32> to vector<16x128xf32>
    %638 = arith.mulf %635, %637 : vector<16x128xf32>
    %639 = arith.addf %634, %638 : vector<16x128xf32>
    %640 = vector.extract_strided_slice %621 {offsets = [4, 0], sizes = [16, 128], strides = [1, 1]} : vector<24x128xf32> to vector<16x128xf32>
    %c3_287 = arith.constant 3 : index
    %c0_288 = arith.constant 0 : index
    %641 = vector.load %arg13[%c3_287, %c0_288] : memref<9x128xf32, #tpu.memory_space<vmem>>, vector<1x128xf32>
    %642 = vector.broadcast %641 : vector<1x128xf32> to vector<16x128xf32>
    %643 = arith.mulf %640, %642 : vector<16x128xf32>
    %644 = arith.addf %639, %643 : vector<16x128xf32>
    %645 = vector.extract_strided_slice %622 {offsets = [4, 0], sizes = [16, 128], strides = [1, 1]} : vector<24x128xf32> to vector<16x128xf32>
    %c4_289 = arith.constant 4 : index
    %c0_290 = arith.constant 0 : index
    %646 = vector.load %arg13[%c4_289, %c0_290] : memref<9x128xf32, #tpu.memory_space<vmem>>, vector<1x128xf32>
    %647 = vector.broadcast %646 : vector<1x128xf32> to vector<16x128xf32>
    %648 = arith.mulf %645, %647 : vector<16x128xf32>
    %649 = arith.addf %644, %648 : vector<16x128xf32>
    %650 = vector.extract_strided_slice %623 {offsets = [4, 0], sizes = [16, 128], strides = [1, 1]} : vector<24x128xf32> to vector<16x128xf32>
    %c5_291 = arith.constant 5 : index
    %c0_292 = arith.constant 0 : index
    %651 = vector.load %arg13[%c5_291, %c0_292] : memref<9x128xf32, #tpu.memory_space<vmem>>, vector<1x128xf32>
    %652 = vector.broadcast %651 : vector<1x128xf32> to vector<16x128xf32>
    %653 = arith.mulf %650, %652 : vector<16x128xf32>
    %654 = arith.addf %649, %653 : vector<16x128xf32>
    %655 = vector.extract_strided_slice %621 {offsets = [6, 0], sizes = [16, 128], strides = [1, 1]} : vector<24x128xf32> to vector<16x128xf32>
    %c6_293 = arith.constant 6 : index
    %c0_294 = arith.constant 0 : index
    %656 = vector.load %arg13[%c6_293, %c0_294] : memref<9x128xf32, #tpu.memory_space<vmem>>, vector<1x128xf32>
    %657 = vector.broadcast %656 : vector<1x128xf32> to vector<16x128xf32>
    %658 = arith.mulf %655, %657 : vector<16x128xf32>
    %659 = arith.addf %654, %658 : vector<16x128xf32>
    %660 = vector.extract_strided_slice %622 {offsets = [6, 0], sizes = [16, 128], strides = [1, 1]} : vector<24x128xf32> to vector<16x128xf32>
    %c7_295 = arith.constant 7 : index
    %c0_296 = arith.constant 0 : index
    %661 = vector.load %arg13[%c7_295, %c0_296] : memref<9x128xf32, #tpu.memory_space<vmem>>, vector<1x128xf32>
    %662 = vector.broadcast %661 : vector<1x128xf32> to vector<16x128xf32>
    %663 = arith.mulf %660, %662 : vector<16x128xf32>
    %664 = arith.addf %659, %663 : vector<16x128xf32>
    %665 = vector.extract_strided_slice %623 {offsets = [6, 0], sizes = [16, 128], strides = [1, 1]} : vector<24x128xf32> to vector<16x128xf32>
    %c8_297 = arith.constant 8 : index
    %c0_298 = arith.constant 0 : index
    %666 = vector.load %arg13[%c8_297, %c0_298] : memref<9x128xf32, #tpu.memory_space<vmem>>, vector<1x128xf32>
    %667 = vector.broadcast %666 : vector<1x128xf32> to vector<16x128xf32>
    %668 = arith.mulf %665, %667 : vector<16x128xf32>
    %669 = arith.addf %664, %668 : vector<16x128xf32>
    %c0_299 = arith.constant 0 : index
    %c0_300 = arith.constant 0 : index
    %670 = vector.load %arg14[%c0_299, %c0_300] : memref<128x128xf32, #tpu.memory_space<vmem>>, vector<128x128xf32>
    %cst_301 = arith.constant dense<0.000000e+00> : vector<16x128xf32>
    %671 = tpu.matmul %669, %670, %cst_301 {dimension_numbers = #tpu.dot_dimension_numbers<[1], [0], [0], [1], [0, 0, 1, 1], [], []>} : vector<16x128xf32>, vector<128x128xf32>, vector<16x128xf32> -> vector<16x128xf32>
    %672 = arith.mulf %671, %671 : vector<16x128xf32>
    %673 = tpu.concatenate %671, %672 in 0 : vector<16x128xf32>, vector<16x128xf32> -> vector<32x128xf32>
    %cst_302 = arith.constant dense<0.000000e+00> : vector<32x4xf32>
    %674 = tpu.matmul %673, %1, %cst_302 {dimension_numbers = #tpu.dot_dimension_numbers<[1], [0], [0], [1], [0, 0, 1, 1], [], []>} : vector<32x128xf32>, vector<128x4xf32>, vector<32x4xf32> -> vector<32x4xf32>
    %675 = vector.extract_strided_slice %674 {offsets = [0, 0], sizes = [16, 4], strides = [1, 1]} : vector<32x4xf32> to vector<16x4xf32>
    %cst_303 = arith.constant dense<0.000000e+00> : vector<4xf32>
    %676 = vector.multi_reduction <add>, %675, %cst_303 [0] : vector<16x4xf32> to vector<4xf32>
    %677 = vector.shape_cast %676 : vector<4xf32> to vector<1x4xf32>
    %cst_304 = arith.constant 0.001953125 : f32
    %678 = vector.broadcast %cst_304 : f32 to vector<1x4xf32>
    %679 = arith.mulf %677, %678 : vector<1x4xf32>
    %680 = vector.extract_strided_slice %674 {offsets = [16, 0], sizes = [16, 4], strides = [1, 1]} : vector<32x4xf32> to vector<16x4xf32>
    %cst_305 = arith.constant dense<0.000000e+00> : vector<4xf32>
    %681 = vector.multi_reduction <add>, %680, %cst_305 [0] : vector<16x4xf32> to vector<4xf32>
    %682 = vector.shape_cast %681 : vector<4xf32> to vector<1x4xf32>
    %cst_306 = arith.constant 0.001953125 : f32
    %683 = vector.broadcast %cst_306 : f32 to vector<1x4xf32>
    %684 = arith.mulf %682, %683 : vector<1x4xf32>
    %685 = arith.mulf %679, %679 : vector<1x4xf32>
    %686 = arith.subf %684, %685 : vector<1x4xf32>
    %cst_307 = arith.constant 9.99999974E-6 : f32
    %687 = vector.broadcast %cst_307 : f32 to vector<1x4xf32>
    %688 = arith.addf %686, %687 : vector<1x4xf32>
    %689 = math.rsqrt %688 : vector<1x4xf32>
    %690 = vector.broadcast %620 : f32 to vector<1x4xf32>
    %691 = arith.mulf %689, %690 : vector<1x4xf32>
    %cst_308 = arith.constant dense<0.000000e+00> : vector<1x128xf32>
    %692 = tpu.matmul %691, %2, %cst_308 {dimension_numbers = #tpu.dot_dimension_numbers<[1], [0], [0], [1], [0, 0, 1, 1], [], []>} : vector<1x4xf32>, vector<4x128xf32>, vector<1x128xf32> -> vector<1x128xf32>
    %693 = arith.mulf %679, %691 : vector<1x4xf32>
    %cst_309 = arith.constant dense<0.000000e+00> : vector<1x128xf32>
    %694 = tpu.matmul %693, %2, %cst_309 {dimension_numbers = #tpu.dot_dimension_numbers<[1], [0], [0], [1], [0, 0, 1, 1], [], []>} : vector<1x4xf32>, vector<4x128xf32>, vector<1x128xf32> -> vector<1x128xf32>
    %695 = vector.broadcast %692 : vector<1x128xf32> to vector<16x128xf32>
    %696 = arith.mulf %671, %695 : vector<16x128xf32>
    %697 = vector.broadcast %694 : vector<1x128xf32> to vector<16x128xf32>
    %698 = arith.subf %696, %697 : vector<16x128xf32>
    %699 = arith.addf %619, %698 : vector<16x128xf32>
    %c7_310 = arith.constant 7 : index
    %700 = memref.load %arg0[%c7_310] : memref<8xf32, #tpu.memory_space<smem>>
    %c0_311 = arith.constant 0 : index
    %c0_312 = arith.constant 0 : index
    %701 = vector.load %arg18[%c0_311, %c0_312] : memref<24x192xf32, #tpu.memory_space<vmem>>, vector<24x128xf32>
    %c0_313 = arith.constant 0 : index
    %c16_314 = arith.constant 16 : index
    %702 = vector.load %arg18[%c0_313, %c16_314] : memref<24x192xf32, #tpu.memory_space<vmem>>, vector<24x128xf32>
    %c0_315 = arith.constant 0 : index
    %c32_316 = arith.constant 32 : index
    %703 = vector.load %arg18[%c0_315, %c32_316] : memref<24x192xf32, #tpu.memory_space<vmem>>, vector<24x128xf32>
    %c0_317 = arith.constant 0 : index
    %c48_318 = arith.constant 48 : index
    %704 = vector.load %arg18[%c0_317, %c48_318] : memref<24x192xf32, #tpu.memory_space<vmem>>, vector<24x128xf32>
    %c0_319 = arith.constant 0 : index
    %c64 = arith.constant 64 : index
    %705 = vector.load %arg18[%c0_319, %c64] : memref<24x192xf32, #tpu.memory_space<vmem>>, vector<24x128xf32>
    %cst_320 = arith.constant 0.000000e+00 : f32
    %706 = vector.broadcast %cst_320 : f32 to vector<16x128xf32>
    %707 = vector.extract_strided_slice %701 {offsets = [0, 0], sizes = [16, 128], strides = [1, 1]} : vector<24x128xf32> to vector<16x128xf32>
    %c0_321 = arith.constant 0 : index
    %c0_322 = arith.constant 0 : index
    %708 = vector.load %arg15[%c0_321, %c0_322] : memref<25x128xf32, #tpu.memory_space<vmem>>, vector<1x128xf32>
    %709 = vector.broadcast %708 : vector<1x128xf32> to vector<16x128xf32>
    %710 = arith.mulf %707, %709 : vector<16x128xf32>
    %711 = arith.addf %706, %710 : vector<16x128xf32>
    %712 = vector.extract_strided_slice %702 {offsets = [0, 0], sizes = [16, 128], strides = [1, 1]} : vector<24x128xf32> to vector<16x128xf32>
    %c1_323 = arith.constant 1 : index
    %c0_324 = arith.constant 0 : index
    %713 = vector.load %arg15[%c1_323, %c0_324] : memref<25x128xf32, #tpu.memory_space<vmem>>, vector<1x128xf32>
    %714 = vector.broadcast %713 : vector<1x128xf32> to vector<16x128xf32>
    %715 = arith.mulf %712, %714 : vector<16x128xf32>
    %716 = arith.addf %711, %715 : vector<16x128xf32>
    %717 = vector.extract_strided_slice %703 {offsets = [0, 0], sizes = [16, 128], strides = [1, 1]} : vector<24x128xf32> to vector<16x128xf32>
    %c2_325 = arith.constant 2 : index
    %c0_326 = arith.constant 0 : index
    %718 = vector.load %arg15[%c2_325, %c0_326] : memref<25x128xf32, #tpu.memory_space<vmem>>, vector<1x128xf32>
    %719 = vector.broadcast %718 : vector<1x128xf32> to vector<16x128xf32>
    %720 = arith.mulf %717, %719 : vector<16x128xf32>
    %721 = arith.addf %716, %720 : vector<16x128xf32>
    %722 = vector.extract_strided_slice %704 {offsets = [0, 0], sizes = [16, 128], strides = [1, 1]} : vector<24x128xf32> to vector<16x128xf32>
    %c3_327 = arith.constant 3 : index
    %c0_328 = arith.constant 0 : index
    %723 = vector.load %arg15[%c3_327, %c0_328] : memref<25x128xf32, #tpu.memory_space<vmem>>, vector<1x128xf32>
    %724 = vector.broadcast %723 : vector<1x128xf32> to vector<16x128xf32>
    %725 = arith.mulf %722, %724 : vector<16x128xf32>
    %726 = arith.addf %721, %725 : vector<16x128xf32>
    %727 = vector.extract_strided_slice %705 {offsets = [0, 0], sizes = [16, 128], strides = [1, 1]} : vector<24x128xf32> to vector<16x128xf32>
    %c4_329 = arith.constant 4 : index
    %c0_330 = arith.constant 0 : index
    %728 = vector.load %arg15[%c4_329, %c0_330] : memref<25x128xf32, #tpu.memory_space<vmem>>, vector<1x128xf32>
    %729 = vector.broadcast %728 : vector<1x128xf32> to vector<16x128xf32>
    %730 = arith.mulf %727, %729 : vector<16x128xf32>
    %731 = arith.addf %726, %730 : vector<16x128xf32>
    %732 = vector.extract_strided_slice %701 {offsets = [2, 0], sizes = [16, 128], strides = [1, 1]} : vector<24x128xf32> to vector<16x128xf32>
    %c5_331 = arith.constant 5 : index
    %c0_332 = arith.constant 0 : index
    %733 = vector.load %arg15[%c5_331, %c0_332] : memref<25x128xf32, #tpu.memory_space<vmem>>, vector<1x128xf32>
    %734 = vector.broadcast %733 : vector<1x128xf32> to vector<16x128xf32>
    %735 = arith.mulf %732, %734 : vector<16x128xf32>
    %736 = arith.addf %731, %735 : vector<16x128xf32>
    %737 = vector.extract_strided_slice %702 {offsets = [2, 0], sizes = [16, 128], strides = [1, 1]} : vector<24x128xf32> to vector<16x128xf32>
    %c6_333 = arith.constant 6 : index
    %c0_334 = arith.constant 0 : index
    %738 = vector.load %arg15[%c6_333, %c0_334] : memref<25x128xf32, #tpu.memory_space<vmem>>, vector<1x128xf32>
    %739 = vector.broadcast %738 : vector<1x128xf32> to vector<16x128xf32>
    %740 = arith.mulf %737, %739 : vector<16x128xf32>
    %741 = arith.addf %736, %740 : vector<16x128xf32>
    %742 = vector.extract_strided_slice %703 {offsets = [2, 0], sizes = [16, 128], strides = [1, 1]} : vector<24x128xf32> to vector<16x128xf32>
    %c7_335 = arith.constant 7 : index
    %c0_336 = arith.constant 0 : index
    %743 = vector.load %arg15[%c7_335, %c0_336] : memref<25x128xf32, #tpu.memory_space<vmem>>, vector<1x128xf32>
    %744 = vector.broadcast %743 : vector<1x128xf32> to vector<16x128xf32>
    %745 = arith.mulf %742, %744 : vector<16x128xf32>
    %746 = arith.addf %741, %745 : vector<16x128xf32>
    %747 = vector.extract_strided_slice %704 {offsets = [2, 0], sizes = [16, 128], strides = [1, 1]} : vector<24x128xf32> to vector<16x128xf32>
    %c8_337 = arith.constant 8 : index
    %c0_338 = arith.constant 0 : index
    %748 = vector.load %arg15[%c8_337, %c0_338] : memref<25x128xf32, #tpu.memory_space<vmem>>, vector<1x128xf32>
    %749 = vector.broadcast %748 : vector<1x128xf32> to vector<16x128xf32>
    %750 = arith.mulf %747, %749 : vector<16x128xf32>
    %751 = arith.addf %746, %750 : vector<16x128xf32>
    %752 = vector.extract_strided_slice %705 {offsets = [2, 0], sizes = [16, 128], strides = [1, 1]} : vector<24x128xf32> to vector<16x128xf32>
    %c9_339 = arith.constant 9 : index
    %c0_340 = arith.constant 0 : index
    %753 = vector.load %arg15[%c9_339, %c0_340] : memref<25x128xf32, #tpu.memory_space<vmem>>, vector<1x128xf32>
    %754 = vector.broadcast %753 : vector<1x128xf32> to vector<16x128xf32>
    %755 = arith.mulf %752, %754 : vector<16x128xf32>
    %756 = arith.addf %751, %755 : vector<16x128xf32>
    %757 = vector.extract_strided_slice %701 {offsets = [4, 0], sizes = [16, 128], strides = [1, 1]} : vector<24x128xf32> to vector<16x128xf32>
    %c10_341 = arith.constant 10 : index
    %c0_342 = arith.constant 0 : index
    %758 = vector.load %arg15[%c10_341, %c0_342] : memref<25x128xf32, #tpu.memory_space<vmem>>, vector<1x128xf32>
    %759 = vector.broadcast %758 : vector<1x128xf32> to vector<16x128xf32>
    %760 = arith.mulf %757, %759 : vector<16x128xf32>
    %761 = arith.addf %756, %760 : vector<16x128xf32>
    %762 = vector.extract_strided_slice %702 {offsets = [4, 0], sizes = [16, 128], strides = [1, 1]} : vector<24x128xf32> to vector<16x128xf32>
    %c11_343 = arith.constant 11 : index
    %c0_344 = arith.constant 0 : index
    %763 = vector.load %arg15[%c11_343, %c0_344] : memref<25x128xf32, #tpu.memory_space<vmem>>, vector<1x128xf32>
    %764 = vector.broadcast %763 : vector<1x128xf32> to vector<16x128xf32>
    %765 = arith.mulf %762, %764 : vector<16x128xf32>
    %766 = arith.addf %761, %765 : vector<16x128xf32>
    %767 = vector.extract_strided_slice %703 {offsets = [4, 0], sizes = [16, 128], strides = [1, 1]} : vector<24x128xf32> to vector<16x128xf32>
    %c12_345 = arith.constant 12 : index
    %c0_346 = arith.constant 0 : index
    %768 = vector.load %arg15[%c12_345, %c0_346] : memref<25x128xf32, #tpu.memory_space<vmem>>, vector<1x128xf32>
    %769 = vector.broadcast %768 : vector<1x128xf32> to vector<16x128xf32>
    %770 = arith.mulf %767, %769 : vector<16x128xf32>
    %771 = arith.addf %766, %770 : vector<16x128xf32>
    %772 = vector.extract_strided_slice %704 {offsets = [4, 0], sizes = [16, 128], strides = [1, 1]} : vector<24x128xf32> to vector<16x128xf32>
    %c13_347 = arith.constant 13 : index
    %c0_348 = arith.constant 0 : index
    %773 = vector.load %arg15[%c13_347, %c0_348] : memref<25x128xf32, #tpu.memory_space<vmem>>, vector<1x128xf32>
    %774 = vector.broadcast %773 : vector<1x128xf32> to vector<16x128xf32>
    %775 = arith.mulf %772, %774 : vector<16x128xf32>
    %776 = arith.addf %771, %775 : vector<16x128xf32>
    %777 = vector.extract_strided_slice %705 {offsets = [4, 0], sizes = [16, 128], strides = [1, 1]} : vector<24x128xf32> to vector<16x128xf32>
    %c14_349 = arith.constant 14 : index
    %c0_350 = arith.constant 0 : index
    %778 = vector.load %arg15[%c14_349, %c0_350] : memref<25x128xf32, #tpu.memory_space<vmem>>, vector<1x128xf32>
    %779 = vector.broadcast %778 : vector<1x128xf32> to vector<16x128xf32>
    %780 = arith.mulf %777, %779 : vector<16x128xf32>
    %781 = arith.addf %776, %780 : vector<16x128xf32>
    %782 = vector.extract_strided_slice %701 {offsets = [6, 0], sizes = [16, 128], strides = [1, 1]} : vector<24x128xf32> to vector<16x128xf32>
    %c15_351 = arith.constant 15 : index
    %c0_352 = arith.constant 0 : index
    %783 = vector.load %arg15[%c15_351, %c0_352] : memref<25x128xf32, #tpu.memory_space<vmem>>, vector<1x128xf32>
    %784 = vector.broadcast %783 : vector<1x128xf32> to vector<16x128xf32>
    %785 = arith.mulf %782, %784 : vector<16x128xf32>
    %786 = arith.addf %781, %785 : vector<16x128xf32>
    %787 = vector.extract_strided_slice %702 {offsets = [6, 0], sizes = [16, 128], strides = [1, 1]} : vector<24x128xf32> to vector<16x128xf32>
    %c16_353 = arith.constant 16 : index
    %c0_354 = arith.constant 0 : index
    %788 = vector.load %arg15[%c16_353, %c0_354] : memref<25x128xf32, #tpu.memory_space<vmem>>, vector<1x128xf32>
    %789 = vector.broadcast %788 : vector<1x128xf32> to vector<16x128xf32>
    %790 = arith.mulf %787, %789 : vector<16x128xf32>
    %791 = arith.addf %786, %790 : vector<16x128xf32>
    %792 = vector.extract_strided_slice %703 {offsets = [6, 0], sizes = [16, 128], strides = [1, 1]} : vector<24x128xf32> to vector<16x128xf32>
    %c17_355 = arith.constant 17 : index
    %c0_356 = arith.constant 0 : index
    %793 = vector.load %arg15[%c17_355, %c0_356] : memref<25x128xf32, #tpu.memory_space<vmem>>, vector<1x128xf32>
    %794 = vector.broadcast %793 : vector<1x128xf32> to vector<16x128xf32>
    %795 = arith.mulf %792, %794 : vector<16x128xf32>
    %796 = arith.addf %791, %795 : vector<16x128xf32>
    %797 = vector.extract_strided_slice %704 {offsets = [6, 0], sizes = [16, 128], strides = [1, 1]} : vector<24x128xf32> to vector<16x128xf32>
    %c18_357 = arith.constant 18 : index
    %c0_358 = arith.constant 0 : index
    %798 = vector.load %arg15[%c18_357, %c0_358] : memref<25x128xf32, #tpu.memory_space<vmem>>, vector<1x128xf32>
    %799 = vector.broadcast %798 : vector<1x128xf32> to vector<16x128xf32>
    %800 = arith.mulf %797, %799 : vector<16x128xf32>
    %801 = arith.addf %796, %800 : vector<16x128xf32>
    %802 = vector.extract_strided_slice %705 {offsets = [6, 0], sizes = [16, 128], strides = [1, 1]} : vector<24x128xf32> to vector<16x128xf32>
    %c19_359 = arith.constant 19 : index
    %c0_360 = arith.constant 0 : index
    %803 = vector.load %arg15[%c19_359, %c0_360] : memref<25x128xf32, #tpu.memory_space<vmem>>, vector<1x128xf32>
    %804 = vector.broadcast %803 : vector<1x128xf32> to vector<16x128xf32>
    %805 = arith.mulf %802, %804 : vector<16x128xf32>
    %806 = arith.addf %801, %805 : vector<16x128xf32>
    %807 = vector.extract_strided_slice %701 {offsets = [8, 0], sizes = [16, 128], strides = [1, 1]} : vector<24x128xf32> to vector<16x128xf32>
    %c20_361 = arith.constant 20 : index
    %c0_362 = arith.constant 0 : index
    %808 = vector.load %arg15[%c20_361, %c0_362] : memref<25x128xf32, #tpu.memory_space<vmem>>, vector<1x128xf32>
    %809 = vector.broadcast %808 : vector<1x128xf32> to vector<16x128xf32>
    %810 = arith.mulf %807, %809 : vector<16x128xf32>
    %811 = arith.addf %806, %810 : vector<16x128xf32>
    %812 = vector.extract_strided_slice %702 {offsets = [8, 0], sizes = [16, 128], strides = [1, 1]} : vector<24x128xf32> to vector<16x128xf32>
    %c21_363 = arith.constant 21 : index
    %c0_364 = arith.constant 0 : index
    %813 = vector.load %arg15[%c21_363, %c0_364] : memref<25x128xf32, #tpu.memory_space<vmem>>, vector<1x128xf32>
    %814 = vector.broadcast %813 : vector<1x128xf32> to vector<16x128xf32>
    %815 = arith.mulf %812, %814 : vector<16x128xf32>
    %816 = arith.addf %811, %815 : vector<16x128xf32>
    %817 = vector.extract_strided_slice %703 {offsets = [8, 0], sizes = [16, 128], strides = [1, 1]} : vector<24x128xf32> to vector<16x128xf32>
    %c22_365 = arith.constant 22 : index
    %c0_366 = arith.constant 0 : index
    %818 = vector.load %arg15[%c22_365, %c0_366] : memref<25x128xf32, #tpu.memory_space<vmem>>, vector<1x128xf32>
    %819 = vector.broadcast %818 : vector<1x128xf32> to vector<16x128xf32>
    %820 = arith.mulf %817, %819 : vector<16x128xf32>
    %821 = arith.addf %816, %820 : vector<16x128xf32>
    %822 = vector.extract_strided_slice %704 {offsets = [8, 0], sizes = [16, 128], strides = [1, 1]} : vector<24x128xf32> to vector<16x128xf32>
    %c23_367 = arith.constant 23 : index
    %c0_368 = arith.constant 0 : index
    %823 = vector.load %arg15[%c23_367, %c0_368] : memref<25x128xf32, #tpu.memory_space<vmem>>, vector<1x128xf32>
    %824 = vector.broadcast %823 : vector<1x128xf32> to vector<16x128xf32>
    %825 = arith.mulf %822, %824 : vector<16x128xf32>
    %826 = arith.addf %821, %825 : vector<16x128xf32>
    %827 = vector.extract_strided_slice %705 {offsets = [8, 0], sizes = [16, 128], strides = [1, 1]} : vector<24x128xf32> to vector<16x128xf32>
    %c24_369 = arith.constant 24 : index
    %c0_370 = arith.constant 0 : index
    %828 = vector.load %arg15[%c24_369, %c0_370] : memref<25x128xf32, #tpu.memory_space<vmem>>, vector<1x128xf32>
    %829 = vector.broadcast %828 : vector<1x128xf32> to vector<16x128xf32>
    %830 = arith.mulf %827, %829 : vector<16x128xf32>
    %831 = arith.addf %826, %830 : vector<16x128xf32>
    %c0_371 = arith.constant 0 : index
    %c0_372 = arith.constant 0 : index
    %832 = vector.load %arg16[%c0_371, %c0_372] : memref<128x128xf32, #tpu.memory_space<vmem>>, vector<128x128xf32>
    %cst_373 = arith.constant dense<0.000000e+00> : vector<16x128xf32>
    %833 = tpu.matmul %831, %832, %cst_373 {dimension_numbers = #tpu.dot_dimension_numbers<[1], [0], [0], [1], [0, 0, 1, 1], [], []>} : vector<16x128xf32>, vector<128x128xf32>, vector<16x128xf32> -> vector<16x128xf32>
    %834 = arith.mulf %833, %833 : vector<16x128xf32>
    %835 = tpu.concatenate %833, %834 in 0 : vector<16x128xf32>, vector<16x128xf32> -> vector<32x128xf32>
    %cst_374 = arith.constant dense<0.000000e+00> : vector<32x4xf32>
    %836 = tpu.matmul %835, %1, %cst_374 {dimension_numbers = #tpu.dot_dimension_numbers<[1], [0], [0], [1], [0, 0, 1, 1], [], []>} : vector<32x128xf32>, vector<128x4xf32>, vector<32x4xf32> -> vector<32x4xf32>
    %837 = vector.extract_strided_slice %836 {offsets = [0, 0], sizes = [16, 4], strides = [1, 1]} : vector<32x4xf32> to vector<16x4xf32>
    %cst_375 = arith.constant dense<0.000000e+00> : vector<4xf32>
    %838 = vector.multi_reduction <add>, %837, %cst_375 [0] : vector<16x4xf32> to vector<4xf32>
    %839 = vector.shape_cast %838 : vector<4xf32> to vector<1x4xf32>
    %cst_376 = arith.constant 0.001953125 : f32
    %840 = vector.broadcast %cst_376 : f32 to vector<1x4xf32>
    %841 = arith.mulf %839, %840 : vector<1x4xf32>
    %842 = vector.extract_strided_slice %836 {offsets = [16, 0], sizes = [16, 4], strides = [1, 1]} : vector<32x4xf32> to vector<16x4xf32>
    %cst_377 = arith.constant dense<0.000000e+00> : vector<4xf32>
    %843 = vector.multi_reduction <add>, %842, %cst_377 [0] : vector<16x4xf32> to vector<4xf32>
    %844 = vector.shape_cast %843 : vector<4xf32> to vector<1x4xf32>
    %cst_378 = arith.constant 0.001953125 : f32
    %845 = vector.broadcast %cst_378 : f32 to vector<1x4xf32>
    %846 = arith.mulf %844, %845 : vector<1x4xf32>
    %847 = arith.mulf %841, %841 : vector<1x4xf32>
    %848 = arith.subf %846, %847 : vector<1x4xf32>
    %cst_379 = arith.constant 9.99999974E-6 : f32
    %849 = vector.broadcast %cst_379 : f32 to vector<1x4xf32>
    %850 = arith.addf %848, %849 : vector<1x4xf32>
    %851 = math.rsqrt %850 : vector<1x4xf32>
    %852 = vector.broadcast %700 : f32 to vector<1x4xf32>
    %853 = arith.mulf %851, %852 : vector<1x4xf32>
    %cst_380 = arith.constant dense<0.000000e+00> : vector<1x128xf32>
    %854 = tpu.matmul %853, %2, %cst_380 {dimension_numbers = #tpu.dot_dimension_numbers<[1], [0], [0], [1], [0, 0, 1, 1], [], []>} : vector<1x4xf32>, vector<4x128xf32>, vector<1x128xf32> -> vector<1x128xf32>
    %855 = arith.mulf %841, %853 : vector<1x4xf32>
    %cst_381 = arith.constant dense<0.000000e+00> : vector<1x128xf32>
    %856 = tpu.matmul %855, %2, %cst_381 {dimension_numbers = #tpu.dot_dimension_numbers<[1], [0], [0], [1], [0, 0, 1, 1], [], []>} : vector<1x4xf32>, vector<4x128xf32>, vector<1x128xf32> -> vector<1x128xf32>
    %857 = vector.broadcast %854 : vector<1x128xf32> to vector<16x128xf32>
    %858 = arith.mulf %833, %857 : vector<16x128xf32>
    %859 = vector.broadcast %856 : vector<1x128xf32> to vector<16x128xf32>
    %860 = arith.subf %858, %859 : vector<16x128xf32>
    %861 = arith.addf %699, %860 : vector<16x128xf32>
    %c0_382 = arith.constant 0 : index
    %c0_383 = arith.constant 0 : index
    %862 = vector.load %arg17[%c0_382, %c0_383] : memref<16x128xf32, #tpu.memory_space<vmem>>, vector<16x128xf32>
    tpu.vector_store %arg17[%c0_382, %c0_383], %861 {strides = array<i32>} : memref<16x128xf32, #tpu.memory_space<vmem>>, vector<16x128xf32>,
    return
  }
}

</mosaic_0001>

<bundles_post_ra>
// kernel: forward.1
= control target key start
LH: loop header
LB: loop body
LE: loop exit
PB: predicated region body
PF: predicated region fallthrough
CT: control target
= control target key end

     0   :  { %s16111_s0 = inlined_call_operand.vmem [shape: f32[8], index: 0, kind: input, shape index: {}]   ;;  %s16112_s1 = inlined_call_operand.vmem [shape: f32[16,128], index: 1, kind: input, shape index: {}]   ;;  %s16113_s2 = inlined_call_operand.hbm [shape: f32[16,128], index: 2, kind: input, shape index: {}]   ;;  %s16114_s3 = inlined_call_operand.hbm [shape: f32[128,4], index: 3, kind: input, shape index: {}]   ;;  %s16115_s4 = inlined_call_operand.hbm [shape: f32[4,128], index: 4, kind: input, shape index: {}]   ;;  %s16116_s5 = inlined_call_operand.hbm [shape: f32[9,128], index: 5, kind: input, shape index: {}]   ;;  %s16117_s6 = inlined_call_operand.hbm [shape: f32[128,128], index: 6, kind: input, shape index: {}]   ;;  %s16118_s7 = inlined_call_operand.hbm [shape: f32[9,128], index: 7, kind: input, shape index: {}]   ;;  %s16119_s8 = inlined_call_operand.hbm [shape: f32[128,128], index: 8, kind: input, shape index: {}]   ;;  %s16120_s9 = inlined_call_operand.hbm [shape: f32[25,128], index: 9, kind: input, shape index: {}]   ;;  %s16121_s10 = inlined_call_operand.hbm [shape: f32[128,128], index: 10, kind: input, shape index: {}]   ;;  %s16122_s11 = inlined_call_operand.vmem [shape: f32[25,128], index: 11, kind: input, shape index: {}]   ;;  %s16123_s12 = inlined_call_operand.vmem [shape: f32[128,128], index: 12, kind: input, shape index: {}]   ;;  %s16124_s13 = inlined_call_operand.hbm [shape: f32[9,128], index: 13, kind: input, shape index: {}]   ;;  %s16125_s14 = inlined_call_operand.vmem [shape: f32[128,128], index: 14, kind: input, shape index: {}]   ;;  %s16126_s15 = inlined_call_operand.vmem [shape: f32[25,128], index: 15, kind: input, shape index: {}]   ;;  %s16127_s16 = inlined_call_operand.vmem [shape: f32[128,128], index: 16, kind: input, shape index: {}]   ;;  %s16128_s17 = inlined_call_operand.vmem [shape: f32[16,128], index: 17, kind: output, shape index: {}]  }
   0x1   :  { %16282 = sst [smem:[#allocation117_spill]] %s16111_s0 }
   0x2   :  { %16283 = sst [smem:[#allocation118_spill]] %s16112_s1 }
   0x3   :  { %22 = vsyncpa [#allocation6], 0 }
   0x4   :  { %23 = vsyncpa [#allocation5], 0 }
   0x5   :  { %24 = vsyncpa [#allocation9], 0 }
   0x6   :  { %25 = vsyncpa [#allocation12], 0 }
   0x7   :  { %26 = vsyncpa [#allocation15], 0 }
   0x8   :  { %27 = vsyncpa [#allocation18], 0 }
   0x9   :  { %28 = vsyncpa [#allocation21], 0  ;;  %s10727_s24 = smov [#allocation8]   ;;  %s10728_s26 = smov [#allocation11]  }
   0xa   :  { %s58_s25 = sshll.u32 %s10727_s24, 4  ;;  %s80_s27 = sshll.u32 %s10728_s26, 4  ;;  %s59_s25 = int_to_ptr.vmem [resolvable:$true] %s58_s25  ;;  %s10844_s27 = int_to_ptr.vmem [resolvable:$true] %s80_s27 }
   0xb   :  { %s10481_s0 = scalar_lea.hbm %s16114_s3, 2048 }
   0xc   :  { %p10482_p0 = scmp.ne.s32.totalorder %s16114_s3, %s10481_s0  ;;  %p10485_p1 = scmp.lt.u32.totalorder %s10481_s0, %s16114_s3 }
   0xe   :  { %p10487_p2 = pnand %p10485_p1, %p10482_p0 }
  0x10   :  { %10490 = shalt.err (!%p10487_p2)
}
  0x11   :  { %s10491_s20 = scalar_lea.vmem %s59_s25, 2048  ;;  %p10496_p4 = scmp.lt.s32.totalorder %s59_s25, %s59_s25 }
  0x12   :  { %p10492_p3 = scmp.ne.s32.totalorder %s59_s25, %s10491_s20  ;;  %p10497_p5 = scmp.lt.s32.totalorder %s10491_s20, %s10491_s20 }
  0x14   :  { %p10498_p6 = por %p10497_p5, %p10496_p4 }
  0x16   :  { %p10499_p7 = pnand %p10498_p6, %p10492_p3 }
  0x18   :  { %10502 = shalt.err (!%p10499_p7)
}
  0x19   :  { %s10729_s21 = smov 128   ;;  %s10730_s22 = smov 8  }
  0x1a   :  { %64 = dma.hbm_to_vmem [thread:$0]  %s16114_s3, 2048, %s59_s25, [#allocation9], %s10729_s21, %s10729_s21, %s10730_s22  }
  0x1b   :  { %s10503_s29 = scalar_lea.hbm %s16116_s5, 256 }
  0x1c   :  { %p10504_p8 = scmp.ne.s32.totalorder %s16116_s5, %s10503_s29  ;;  %p10507_p9 = scmp.lt.u32.totalorder %s10503_s29, %s16116_s5 }
  0x1e   :  { %p10509_p10 = pnand %p10507_p9, %p10504_p8 }
  0x20   :  { %10512 = shalt.err (!%p10509_p10)
}
  0x21   :  { %s10513_s1 = scalar_lea.vmem %s10844_s27, 256  ;;  %p10518_p12 = scmp.lt.s32.totalorder %s10844_s27, %s10844_s27 }
  0x22   :  { %p10514_p11 = scmp.ne.s32.totalorder %s10844_s27, %s10513_s1  ;;  %p10519_p13 = scmp.lt.s32.totalorder %s10513_s1, %s10513_s1 }
  0x24   :  { %p10520_p0 = por %p10519_p13, %p10518_p12 }
  0x26   :  { %p10521_p1 = pnand %p10520_p0, %p10514_p11 }
  0x28   :  { %10524 = shalt.err (!%p10521_p1)
}
  0x29   :  { %86 = dma.hbm_to_vmem [thread:$0]  %s16116_s5, 256, %s10844_s27, [#allocation12], %s10729_s21, %s10729_s21, %s10730_s22  }
  0x2a   :  { %s10731_s20 = smov [#allocation14]   ;;  %s10732_s24 = smov [#allocation17]  }
  0x2b   :  { %s104_s23 = sshll.u32 %s10731_s20, 4  ;;  %s128_s26 = sshll.u32 %s10732_s24, 4  ;;  %s105_s23 = int_to_ptr.vmem [resolvable:$true] %s104_s23  ;;  %s10881_s26 = int_to_ptr.vmem [resolvable:$true] %s128_s26 }
  0x2c   :  { %s10525_s0 = scalar_lea.hbm %s16118_s7, 256 }
  0x2d   :  { %p10526_p2 = scmp.ne.s32.totalorder %s16118_s7, %s10525_s0  ;;  %p10529_p3 = scmp.lt.u32.totalorder %s10525_s0, %s16118_s7 }
  0x2f   :  { %p10531_p4 = pnand %p10529_p3, %p10526_p2 }
  0x31   :  { %10534 = shalt.err (!%p10531_p4)
}
  0x32   :  { %s10535_s5 = scalar_lea.vmem %s105_s23, 256  ;;  %p10540_p6 = scmp.lt.s32.totalorder %s105_s23, %s105_s23 }
  0x33   :  { %p10536_p5 = scmp.ne.s32.totalorder %s105_s23, %s10535_s5  ;;  %p10541_p7 = scmp.lt.s32.totalorder %s10535_s5, %s10535_s5 }
  0x35   :  { %p10542_p8 = por %p10541_p7, %p10540_p6 }
  0x37   :  { %p10543_p9 = pnand %p10542_p8, %p10536_p5 }
  0x39   :  { %10546 = shalt.err (!%p10543_p9)
}
  0x3a   :  { %110 = dma.hbm_to_vmem [thread:$0]  %s16118_s7, 256, %s105_s23, [#allocation15], %s10729_s21, %s10729_s21, %s10730_s22  }
  0x3b   :  { %s10547_s24 = scalar_lea.hbm %s16120_s9, 512 }
  0x3c   :  { %p10548_p10 = scmp.ne.s32.totalorder %s16120_s9, %s10547_s24  ;;  %p10551_p11 = scmp.lt.u32.totalorder %s10547_s24, %s16120_s9 }
  0x3e   :  { %p10553_p12 = pnand %p10551_p11, %p10548_p10 }
  0x40   :  { %10556 = shalt.err (!%p10553_p12)
}
  0x41   :  { %s10557_s18 = scalar_lea.vmem %s10881_s26, 512  ;;  %p10562_p0 = scmp.lt.s32.totalorder %s10881_s26, %s10881_s26 }
  0x42   :  { %p10558_p13 = scmp.ne.s32.totalorder %s10881_s26, %s10557_s18  ;;  %p10563_p1 = scmp.lt.s32.totalorder %s10557_s18, %s10557_s18 }
  0x44   :  { %p10564_p2 = por %p10563_p1, %p10562_p0 }
  0x46   :  { %p10565_p3 = pnand %p10564_p2, %p10558_p13 }
  0x48   :  { %10568 = shalt.err (!%p10565_p3)
}
  0x49   :  { %134 = dma.hbm_to_vmem [thread:$0]  %s16120_s9, 512, %s10881_s26, [#allocation18], %s10729_s21, %s10729_s21, %s10730_s22  }
  0x4a   :  { %s16284_s5 = sld [smem:[#allocation117_spill]] }
  0x50   :  { %s35_s27 = sshll.u32 %s16284_s5, 4  ;;  %s36_s27 = int_to_ptr.vmem [resolvable:$true] %s35_s27 }
  0x51   :  { %s10569_s3 = scalar_lea.vmem %s36_s27, 16  ;;  %p10574_p5 = scmp.lt.s32.totalorder %s36_s27, %s36_s27 }
  0x52   :  { %p10570_p4 = scmp.ne.s32.totalorder %s36_s27, %s10569_s3  ;;  %p10575_p6 = scmp.lt.s32.totalorder %s10569_s3, %s10569_s3 }
  0x54   :  { %p10576_p7 = por %p10575_p6, %p10574_p5 }
  0x56   :  { %p10577_p8 = pnand %p10576_p7, %p10570_p4 }
  0x58   :  { %10580 = shalt.err (!%p10577_p8)
}
  0x59   :  { %s10733_s25 = smov [#allocation4]   ;;  %s10734_s20 = smov [#allocation7]  }
  0x5a   :  { %38 = dma.vmem_to_smem %s36_s27, 16, %s10733_s25, [#allocation6]  }
  0x5b   :  { %s46_s24 = sshll.u32 %s10734_s20, 4  ;;  %s10735_s28 = smov [#allocation10]   ;;  %s47_s24 = int_to_ptr.vmem [resolvable:$true] %s46_s24 }
  0x5c   :  { %s71_s29 = sshll.u32 %s10735_s28, 4  ;;  %s10581_s0 = scalar_lea.hbm %s16113_s2, 256  ;;  %s72_s29 = int_to_ptr.vmem [resolvable:$true] %s71_s29 }
  0x5d   :  { %p10582_p9 = scmp.ne.s32.totalorder %s16113_s2, %s10581_s0  ;;  %p10585_p10 = scmp.lt.u32.totalorder %s10581_s0, %s16113_s2 }
  0x5f   :  { %p10587_p11 = pnand %p10585_p10, %p10582_p9 }
  0x61   :  { %10590 = shalt.err (!%p10587_p11)
}
  0x62   :  { %s10591_s19 = scalar_lea.vmem %s47_s24, 256  ;;  %p10596_p13 = scmp.lt.s32.totalorder %s47_s24, %s47_s24 }
  0x63   :  { %p10592_p12 = scmp.ne.s32.totalorder %s47_s24, %s10591_s19  ;;  %p10597_p0 = scmp.lt.s32.totalorder %s10591_s19, %s10591_s19 }
  0x65   :  { %p10598_p1 = por %p10597_p0, %p10596_p13 }
  0x67   :  { %p10599_p2 = pnand %p10598_p1, %p10592_p12 }
  0x69   :  { %10602 = shalt.err (!%p10599_p2)
}
  0x6a   :  { %52 = dma.hbm_to_vmem [thread:$0]  %s16113_s2, 256, %s47_s24, [#allocation5], %s10729_s21, %s10729_s21, %s10730_s22  }
  0x6b   :  { %s10603_s25 = scalar_lea.hbm %s16115_s4, 64 }
  0x6c   :  { %p10604_p3 = scmp.ne.s32.totalorder %s16115_s4, %s10603_s25  ;;  %p10607_p4 = scmp.lt.u32.totalorder %s10603_s25, %s16115_s4 }
  0x6e   :  { %p10609_p5 = pnand %p10607_p4, %p10604_p3 }
  0x70   :  { %10612 = shalt.err (!%p10609_p5)
}
  0x71   :  { %s10613_s0 = scalar_lea.vmem %s72_s29, 64  ;;  %p10618_p7 = scmp.lt.s32.totalorder %s72_s29, %s72_s29 }
  0x72   :  { %p10614_p6 = scmp.ne.s32.totalorder %s72_s29, %s10613_s0  ;;  %p10619_p8 = scmp.lt.s32.totalorder %s10613_s0, %s10613_s0 }
  0x74   :  { %p10620_p9 = por %p10619_p8, %p10618_p7 }
  0x76   :  { %p10621_p10 = pnand %p10620_p9, %p10614_p6 }
  0x78   :  { %10624 = shalt.err (!%p10621_p10)
}
  0x79   :  { %74 = dma.hbm_to_vmem [thread:$0]  %s16115_s4, 64, %s72_s29, [#allocation9]  }
  0x7a   :  { %s10736_s30 = smov [#allocation13]   ;;  %s10737_s7 = smov [#allocation16]  }
  0x7b   :  { %s92_s18 = sshll.u32 %s10736_s30, 4  ;;  %s116_s23 = sshll.u32 %s10737_s7, 4  ;;  %s93_s18 = int_to_ptr.vmem [resolvable:$true] %s92_s18  ;;  %s117_s23 = int_to_ptr.vmem [resolvable:$true] %s116_s23 }
  0x7c   :  { %s10625_s5 = scalar_lea.hbm %s16117_s6, 2048 }
  0x7d   :  { %p10626_p11 = scmp.ne.s32.totalorder %s16117_s6, %s10625_s5  ;;  %p10629_p12 = scmp.lt.u32.totalorder %s10625_s5, %s16117_s6 }
  0x7f   :  { %p10631_p13 = pnand %p10629_p12, %p10626_p11 }
  0x81   :  { %10634 = shalt.err (!%p10631_p13)
}
  0x82   :  { %s10635_s4 = scalar_lea.vmem %s93_s18, 2048  ;;  %p10640_p1 = scmp.lt.s32.totalorder %s93_s18, %s93_s18 }
  0x83   :  { %p10636_p0 = scmp.ne.s32.totalorder %s93_s18, %s10635_s4  ;;  %p10641_p2 = scmp.lt.s32.totalorder %s10635_s4, %s10635_s4 }
  0x85   :  { %p10642_p3 = por %p10641_p2, %p10640_p1 }
  0x87   :  { %p10643_p4 = pnand %p10642_p3, %p10636_p0 }
  0x89   :  { %10646 = shalt.err (!%p10643_p4)
}
  0x8a   :  { %98 = dma.hbm_to_vmem [thread:$0]  %s16117_s6, 2048, %s93_s18, [#allocation12], %s10729_s21, %s10729_s21, %s10730_s22  }
  0x8b   :  { %s10647_s0 = scalar_lea.hbm %s16119_s8, 2048 }
  0x8c   :  { %p10648_p5 = scmp.ne.s32.totalorder %s16119_s8, %s10647_s0  ;;  %p10651_p6 = scmp.lt.u32.totalorder %s10647_s0, %s16119_s8 }
  0x8e   :  { %p10653_p7 = pnand %p10651_p6, %p10648_p5 }
  0x90   :  { %10656 = shalt.err (!%p10653_p7)
}
  0x91   :  { %s10657_s19 = scalar_lea.vmem %s117_s23, 2048  ;;  %p10662_p9 = scmp.lt.s32.totalorder %s117_s23, %s117_s23 }
  0x92   :  { %p10658_p8 = scmp.ne.s32.totalorder %s117_s23, %s10657_s19  ;;  %p10663_p10 = scmp.lt.s32.totalorder %s10657_s19, %s10657_s19 }
  0x94   :  { %p10664_p11 = por %p10663_p10, %p10662_p9 }
  0x96   :  { %p10665_p12 = pnand %p10664_p11, %p10658_p8 }
  0x98   :  { %10668 = shalt.err (!%p10665_p12)
}
  0x99   :  { %122 = dma.hbm_to_vmem [thread:$0]  %s16119_s8, 2048, %s117_s23, [#allocation15], %s10729_s21, %s10729_s21, %s10730_s22  }
  0x9a   :  { %s10738_s1 = smov [#allocation19]   ;;  %s10739_s27 = smov [#allocation20]  }
  0x9b   :  { %s140_s5 = sshll.u32 %s10738_s1, 4  ;;  %s156_s3 = sshll.u32 %s10739_s27, 4  ;;  %s141_s5 = int_to_ptr.vmem [resolvable:$true] %s140_s5  ;;  %s157_s3 = int_to_ptr.vmem [resolvable:$true] %s156_s3 }
  0x9c   :  { %s10669_s4 = scalar_lea.hbm %s16121_s10, 2048 }
  0x9d   :  { %p10670_p13 = scmp.ne.s32.totalorder %s16121_s10, %s10669_s4  ;;  %p10673_p0 = scmp.lt.u32.totalorder %s10669_s4, %s16121_s10 }
  0x9f   :  { %p10675_p1 = pnand %p10673_p0, %p10670_p13 }
  0xa1   :  { %10678 = shalt.err (!%p10675_p1)
}
  0xa2   :  { %s10679_s8 = scalar_lea.vmem %s141_s5, 2048  ;;  %p10684_p3 = scmp.lt.s32.totalorder %s141_s5, %s141_s5 }
  0xa3   :  { %p10680_p2 = scmp.ne.s32.totalorder %s141_s5, %s10679_s8  ;;  %p10685_p4 = scmp.lt.s32.totalorder %s10679_s8, %s10679_s8 }
  0xa5   :  { %p10686_p5 = por %p10685_p4, %p10684_p3 }
  0xa7   :  { %p10687_p6 = pnand %p10686_p5, %p10680_p2 }
  0xa9   :  { %10690 = shalt.err (!%p10687_p6)
}
  0xaa   :  { %146 = dma.hbm_to_vmem [thread:$0]  %s16121_s10, 2048, %s141_s5, [#allocation18], %s10729_s21, %s10729_s21, %s10730_s22  }
  0xab   :  { %s10691_s30 = scalar_lea.hbm %s16124_s13, 256 }
  0xac   :  { %p10692_p7 = scmp.ne.s32.totalorder %s16124_s13, %s10691_s30  ;;  %p10695_p8 = scmp.lt.u32.totalorder %s10691_s30, %s16124_s13 }
  0xae   :  { %p10697_p9 = pnand %p10695_p8, %p10692_p7 }
  0xb0   :  { %10700 = shalt.err (!%p10697_p9)
}
  0xb1   :  { %s10701_s1 = scalar_lea.vmem %s157_s3, 256  ;;  %p10706_p11 = scmp.lt.s32.totalorder %s157_s3, %s157_s3 }
  0xb2   :  { %p10702_p10 = scmp.ne.s32.totalorder %s157_s3, %s10701_s1  ;;  %p10707_p12 = scmp.lt.s32.totalorder %s10701_s1, %s10701_s1 }
  0xb4   :  { %p10708_p13 = por %p10707_p12, %p10706_p11 }
  0xb6   :  { %p10709_p0 = pnand %p10708_p13, %p10702_p10 }
  0xb8   :  { %10712 = shalt.err (!%p10709_p0)
}
  0xb9   :  { %162 = dma.hbm_to_vmem [thread:$0]  %s16124_s13, 256, %s157_s3, [#allocation21], %s10729_s21, %s10729_s21, %s10730_s22  }
  0xba   :  { %10713 = dma.done.wait [#allocation6], 16  }
  0xbb   :  { %10714 = vsyncadd [#allocation6], 4294967280 }
  0xbc   :  { %10715 = dma.done.wait [#allocation5], 256  }
  0xbd   :  { %10716 = vsyncadd [#allocation5], 4294967040 }
  0xbe   :  { %10717 = dma.done.wait [#allocation9], 2112  }
  0xbf   :  { %10718 = vsyncadd [#allocation9], 4294965184 }
  0xc0   :  { %10719 = dma.done.wait [#allocation12], 2304  }
  0xc1   :  { %10720 = vsyncadd [#allocation12], 4294964992 }
  0xc2   :  { %10721 = dma.done.wait [#allocation15], 2304  }
  0xc3   :  { %10722 = vsyncadd [#allocation15], 4294964992 }
  0xc4   :  { %10723 = dma.done.wait [#allocation18], 2560  }
  0xc5   :  { %10724 = vsyncadd [#allocation18], 4294964736 }
  0xc6   :  { %10725 = dma.done.wait [#allocation21], 256  }
  0xc7   :  { %10726 = vsyncadd [#allocation21], 4294967040 }
  0xc8   :  { %202 = sfence }
  0xc9   :  { %s16285_s20 = sld [smem:[#allocation118_spill]]  ;;  %vm243_vm0 = vcmask 1043456   ;;  %v10740_v4 = vmov -inf   ;;  %vm224_vm1 = vcmask 519168   ;;  %vm227_vm2 = vcmask 523268   ;;  %s10741_s22 = smov 32  }
  0xca   :  { %223 = vst [vmem:[#allocation3] sm:$0xf] %v10740_v4  ;;  %226 = vst [vmem:[#allocation3 + $0x20] sm:$0xf0] %v10740_v4  ;;  %vm229_vm3 = vcmask 261124   ;;  %vm235_vm4 = vcmask 523524  }
  0xcb   :  { %225 = vst.msk [vmem:[#allocation3 + $0x8] sm:$0xf] %vm224_vm1, %v10740_v4  ;;  %vm16198_vm5 = vcmask 257024   ;;  %v16130_v6 = vmov 0.0   ;;  %vm239_vm6 = vcmask 519424   ;;  %vm231_vm7 = vcmask 261120  }
  0xcc   :  { %228 = vst.msk [vmem:[#allocation3 + $0x28] sm:$0xf0] %vm227_vm2, %v10740_v4  ;;  %1484 = vst [vmem:[#allocation2] sm:$0xf] %v16130_v6  ;;  %vm237_vm8 = vcmask 523520   ;;  %9308 = vmatprep.subr.mxu1 %v16130_v6  ;;  %vm256_vm9 = vcmask 1047812  }
  0xcd   :  { %230 = vst.msk [vmem:[#allocation3] sm:$0xf0] %vm229_vm3, %v10740_v4  ;;  %1486 = vst [vmem:[#allocation2 + $0x20] sm:$0xf0] %v16130_v6  ;;  %vm262_vm10 = vcmask 1043712   ;;  %vm259_vm11 = vcmask 1047808  }
  0xce   :  { %236 = vst.msk [vmem:[#allocation3 + $0x8] sm:$0xf0] %vm235_vm4, %v10740_v4  ;;  %1491 = vst.msk [vmem:[#allocation2 + $0x8] sm:$0xf0] %vm235_vm4, %v16130_v6  ;;  %s10743_s3 = smov 120   ;;  %s10744_s4 = smov 112  }
  0xcf   :  { %v11011_v0 = vld [vmem:[%s16285_s20] sm:$0xff]  ;;  %v11016_v1 = vld [vmem:[%s16285_s20 + $0x8] sm:$0xff]  ;;  %1485 = vst.msk [vmem:[#allocation2 + $0x8] sm:$0xf] %vm224_vm1, %v16130_v6  ;;  %vm333_vm12 = vcmask 1046528   ;;  %vm410_vm13 = vcmask 1045504  }
  0xd0   :  { %v244_v2 = vrot.slane %v11011_v0, 4  ;;  %v245_v3 = vrot.slane %v11016_v1, 4  ;;  %1487 = vst.msk [vmem:[#allocation2 + $0x28] sm:$0xf0] %vm227_vm2, %v16130_v6  ;;  %v205_v54 = vld [vmem:[#allocation8] sm:$0xff]  ;;  %v206_v55 = vld [vmem:[#allocation8 + $0x8] sm:$0xff] }
  0xd1   :  { %1488 = vst.msk [vmem:[#allocation2] sm:$0xf0] %vm229_vm3, %v16130_v6  ;;  %v11219_v56 = vpack.c.bf16 %v206_v55, %v205_v54  ;;  %v207_v59 = vld [vmem:[#allocation8 + $0x10] sm:$0xff]  ;;  %v208_v60 = vld [vmem:[#allocation8 + $0x18] sm:$0xff]  ;;  %vm289_vm14 = vcmask 982016   ;;  %vm317_vm15 = vcmask 916480  }
  0xd2   :  { %247 = vrot.lane.b32.xlu0 %v244_v2, %s10741_s22  ;;  %251 = vrot.lane.b32.xlu1 %v245_v3, %s10741_s22  ;;  %v246_v5 = vsel %vm243_vm0, %v244_v2, %v245_v3  ;;  %234 = vst.msk [vmem:[#allocation3 + $0x20] sm:$0xf] %vm16198_vm5, %v10740_v4  ;;  %1490 = vst.msk [vmem:[#allocation2 + $0x20] sm:$0xf] %vm16198_vm5, %v16130_v6  ;;  %v11223_v61 = vpack.c.bf16 %v208_v60, %v207_v59  ;;  %v209_v3 = vld [vmem:[#allocation8 + $0x20] sm:$0xff]  ;;  %s10745_s29 = smov 104  }
  0xd3   :  { %240 = vst.msk [vmem:[#allocation3 + $0x28] sm:$0xf] %vm239_vm6, %v10740_v4  ;;  %1493 = vst.msk [vmem:[#allocation2 + $0x28] sm:$0xf] %vm239_vm6, %v16130_v6  ;;  %9865 = vmatprep.subr.bf16.mxu0 %v11219_v56  ;;  %s10746_s28 = smov 40   ;;  %s10747_s9 = smov 24  }
  0xd4   :  { %232 = vst.msk [vmem:[#allocation3 + $0x10] sm:$0xff] %vm231_vm7, %v10740_v4  ;;  %1489 = vst.msk [vmem:[#allocation2 + $0x10] sm:$0xff] %vm231_vm7, %v16130_v6  ;;  %9867 = vmatpush3.bf16.msra.mxu0 %v11219_v56  ;;  %s11905_s26 = sld [smem:[#allocation4 + $0x1]]  ;;  %s8834_s8 = sld [smem:[#allocation4 + $0x2]] }
  0xd5   :  { %238 = vst.msk [vmem:[#allocation3 + $0x18] sm:$0xff] %vm237_vm8, %v10740_v4  ;;  %1492 = vst.msk [vmem:[#allocation2 + $0x18] sm:$0xff] %vm237_vm8, %v16130_v6  ;;  %9869 = vmatprep.subr.bf16.mxu0 %v11223_v61  ;;  %v210_v4 = vld [vmem:[#allocation8 + $0x28] sm:$0xff]  ;;  %s10749_s23 = smov 48   ;;  %s10750_s0 = smov 16  }
  0xd6   :  { %249 = vrot.lane.b32.xlu0 %v246_v5, %s10741_s22  ;;  %16286 = vst [vmem:[#allocation29_spill] sm:$0xff] %v11219_v56  ;;  %16287 = vst [vmem:[#allocation30_spill] sm:$0xff] %v11223_v61  ;;  %v11228_v5 = vpack.c.bf16 %v210_v4, %v209_v3  ;;  %v217_v4 = vld [vmem:[#allocation8 + $0x60] sm:$0xff]  ;;  %s10751_s2 = smov 96   ;;  %s8840_s24 = sld [smem:[#allocation4 + $0x4]] }
  0xd7   :  { %s10752_s13 = smov 64  }
  0xd8   :  { %9871 = vmatpush3.bf16.msra.mxu0 %v11223_v61  ;;  %16288 = vst [vmem:[#allocation31_spill] sm:$0xff] %v11228_v5 }
  0xd9   :  { %9873 = vmatprep.subr.bf16.mxu0 %v11228_v5 }
  0xdc   :  { %9875 = vmatpush3.bf16.msra.mxu0 %v11228_v5 }
 0x144   :  { %v248_v7 = vpop.permute.xlu0 %247  ;;  %v252_v8 = vpop.permute.xlu1 %251 }
 0x145   :  { %257 = vst.msk [vmem:[#allocation3] sm:$0xf0] %vm256_vm9, %v248_v7 }
 0x146   :  { %258 = vst.msk [vmem:[#allocation3 + $0x8] sm:$0xf0] %vm229_vm3, %v248_v7 }
 0x147   :  { %263 = vst.msk [vmem:[#allocation3 + $0x20] sm:$0xf] %vm262_vm10, %v252_v8 }
 0x148   :  { %264 = vst.msk [vmem:[#allocation3 + $0x28] sm:$0xf] %vm16198_vm5, %v252_v8  ;;  %v250_v9 = vpop.permute.xlu0 %249 }
 0x149   :  { %260 = vst.msk [vmem:[#allocation3 + $0x10] sm:$0xff] %vm259_vm11, %v250_v9 }
 0x14a   :  { %261 = vst.msk [vmem:[#allocation3 + $0x18] sm:$0xff] %vm231_vm7, %v250_v9 }
 0x14c   :  { %v11057_v10 = vld [vmem:[#allocation3] sm:$0xff] }
 0x14d   :  { %v11059_v11 = vld [vmem:[#allocation3 + $0x8] sm:$0xff]  ;;  %852 = vst.msk [vmem:[#allocation3] sm:$0xf0] %vm229_vm3, %v16130_v6  ;;  %848 = vst [vmem:[#allocation3] sm:$0xf] %v16130_v6  ;;  %277 = vrot.lane.b32.xlu1 %v11057_v10, %s10743_s3  ;;  %v334_v23 = vrot.slane %v11057_v10, 1 }
 0x14e   :  { %v11061_v12 = vld [vmem:[#allocation3 + $0x20] sm:$0xff]  ;;  %855 = vst.msk [vmem:[#allocation3 + $0x8] sm:$0xf0] %vm235_vm4, %v16130_v6  ;;  %279 = vrot.lane.b32.xlu0 %v11059_v11, %s10743_s3  ;;  %v337_v22 = vrot.slane %v11059_v11, 1  ;;  %v414_v30 = vrot.slane %v11059_v11, 2  ;;  %v411_v31 = vrot.slane %v11057_v10, 2 }
 0x14f   :  { %849 = vst.msk [vmem:[#allocation3 + $0x8] sm:$0xf] %vm224_vm1, %v16130_v6  ;;  %v11070_v13 = vld [vmem:[#allocation3 + $0x28] sm:$0xff]  ;;  %850 = vst [vmem:[#allocation3 + $0x20] sm:$0xf0] %v16130_v6  ;;  %v11115_v17 = vrot.slane %v11061_v12, 1 }
 0x150   :  { %854 = vst.msk [vmem:[#allocation3 + $0x20] sm:$0xf] %vm16198_vm5, %v16130_v6  ;;  %v11083_v14 = vld [vmem:[#allocation3 + $0x10] sm:$0xff]  ;;  %v11112_v16 = vrot.slane %v11070_v13, 1  ;;  %v11126_v18 = vrot.slane %v11070_v13, 2  ;;  %v11129_v19 = vrot.slane %v11061_v12, 2 }
 0x151   :  { %857 = vst.msk [vmem:[#allocation3 + $0x28] sm:$0xf] %vm239_vm6, %v16130_v6  ;;  %v11085_v15 = vld [vmem:[#allocation3 + $0x18] sm:$0xff]  ;;  %285 = vrot.lane.b32.xlu1 %v11061_v12, %s10743_s3  ;;  %v335_v21 = vrot.slane %v11083_v14, 1  ;;  %v412_v29 = vrot.slane %v11083_v14, 2  ;;  %vm499_vm1 = vcmask 1044480  }
 0x152   :  { %851 = vst.msk [vmem:[#allocation3 + $0x28] sm:$0xf0] %vm227_vm2, %v16130_v6  ;;  %287 = vrot.lane.b32.xlu0 %v11070_v13, %s10743_s3  ;;  %v338_v20 = vrot.slane %v11085_v15, 1  ;;  %v415_v28 = vrot.slane %v11085_v15, 2  ;;  %vm16202_vm2 = vcmask 1042432   ;;  %vm542_vm4 = vcmask 850944  }
 0x153   :  { %853 = vst.msk [vmem:[#allocation3 + $0x10] sm:$0xff] %vm231_vm7, %v16130_v6  ;;  %v11143_v25 = vsel %vm333_vm12, %v334_v23, %v335_v21  ;;  %v11155_v27 = vsel %vm333_vm12, %v335_v21, %v11115_v17  ;;  %v11177_v33 = vsel %vm410_vm13, %v411_v31, %v412_v29  ;;  %v11189_v35 = vsel %vm410_vm13, %v412_v29, %v11129_v19  ;;  %v211_v29 = vld [vmem:[#allocation8 + $0x30] sm:$0xff] }
 0x154   :  { %856 = vst.msk [vmem:[#allocation3 + $0x18] sm:$0xff] %vm237_vm8, %v16130_v6  ;;  %v11140_v24 = vsel %vm333_vm12, %v337_v22, %v338_v20  ;;  %v11151_v26 = vsel %vm333_vm12, %v338_v20, %v11112_v16  ;;  %v11174_v32 = vsel %vm410_vm13, %v414_v30, %v415_v28  ;;  %v11185_v34 = vsel %vm410_vm13, %v415_v28, %v11126_v18  ;;  %v212_v30 = vld [vmem:[#allocation8 + $0x38] sm:$0xff] }
 0x155   :  { %305 = vrot.lane.b32.xlu1 %v11057_v10, %s10744_s4  ;;  %vm10748_vm6 = vmmov 0   ;;  %vm636_vm8 = vcmask 31744  }
 0x156   :  { %307 = vrot.lane.b32.xlu0 %v11059_v11, %s10744_s4 }
 0x159   :  { %313 = vrot.lane.b32.xlu1 %v11061_v12, %s10744_s4 }
 0x15a   :  { %315 = vrot.lane.b32.xlu0 %v11070_v13, %s10744_s4 }
 0x15d   :  { %281 = vrot.lane.b32.xlu1 %v11083_v14, %s10743_s3 }
 0x15e   :  { %283 = vrot.lane.b32.xlu0 %v11085_v15, %s10743_s3 }
 0x161   :  { %309 = vrot.lane.b32.xlu1 %v11083_v14, %s10744_s4 }
 0x162   :  { %311 = vrot.lane.b32.xlu0 %v11085_v15, %s10744_s4 }
 0x165   :  { %364 = vrot.lane.b32.xlu1 %v11115_v17, %s10743_s3 }
 0x166   :  { %366 = vrot.lane.b32.xlu0 %v11112_v16, %s10743_s3 }
 0x169   :  { %391 = vrot.lane.b32.xlu1 %v11115_v17, %s10744_s4 }
 0x16a   :  { %393 = vrot.lane.b32.xlu0 %v11112_v16, %s10744_s4 }
 0x16d   :  { %441 = vrot.lane.b32.xlu1 %v11129_v19, %s10743_s3 }
 0x16e   :  { %443 = vrot.lane.b32.xlu0 %v11126_v18, %s10743_s3 }
 0x171   :  { %356 = vrot.lane.b32.xlu1 %v11143_v25, %s10743_s3 }
 0x172   :  { %358 = vrot.lane.b32.xlu0 %v11140_v24, %s10743_s3 }
 0x175   :  { %360 = vrot.lane.b32.xlu1 %v11155_v27, %s10743_s3 }
 0x176   :  { %362 = vrot.lane.b32.xlu0 %v11151_v26, %s10743_s3 }
 0x179   :  { %383 = vrot.lane.b32.xlu1 %v11143_v25, %s10744_s4 }
 0x17a   :  { %385 = vrot.lane.b32.xlu0 %v11140_v24, %s10744_s4 }
 0x17d   :  { %387 = vrot.lane.b32.xlu1 %v11155_v27, %s10744_s4 }
 0x17e   :  { %389 = vrot.lane.b32.xlu0 %v11151_v26, %s10744_s4 }
 0x181   :  { %433 = vrot.lane.b32.xlu1 %v11177_v33, %s10743_s3 }
 0x182   :  { %435 = vrot.lane.b32.xlu0 %v11174_v32, %s10743_s3 }
 0x185   :  { %437 = vrot.lane.b32.xlu1 %v11189_v35, %s10743_s3 }
 0x186   :  { %439 = vrot.lane.b32.xlu0 %v11185_v34, %s10743_s3 }
 0x189   :  { %460 = vrot.lane.b32.xlu1 %v11177_v33, %s10744_s4 }
 0x18a   :  { %462 = vrot.lane.b32.xlu0 %v11174_v32, %s10744_s4 }
 0x18d   :  { %464 = vrot.lane.b32.xlu1 %v11189_v35, %s10744_s4 }
 0x18e   :  { %466 = vrot.lane.b32.xlu0 %v11185_v34, %s10744_s4 }
 0x191   :  { %468 = vrot.lane.b32.xlu1 %v11129_v19, %s10744_s4 }
 0x192   :  { %470 = vrot.lane.b32.xlu0 %v11126_v18, %s10744_s4 }
 0x1bf   :  { %v278_v36 = vpop.permute.xlu1 %277 }
 0x1c0   :  { %v280_v37 = vpop.permute.xlu0 %279 }
 0x1c1   :  { %v290_v2 = vsel %vm289_vm14, %v278_v36, %v280_v37  ;;  %v300_v7 = vmax.f32 %v11059_v11, %v280_v37  ;;  %v11239_v37 = vpack.c.bf16 %v212_v30, %v211_v29 }
 0x1c2   :  { %v299_v9 = vmax.f32 %v11057_v10, %v290_v2 }
 0x1c3   :  { %v286_v38 = vpop.permute.xlu1 %285  ;;  %16289 = vst [vmem:[#allocation32_spill] sm:$0xff] %v11239_v37  ;;  %9877 = vmatprep.subr.bf16.mxu0 %v11239_v37 }
 0x1c4   :  { %v288_v39 = vpop.permute.xlu0 %287  ;;  %9879 = vmatpush3.bf16.msra.mxu0 %v11239_v37 }
 0x1c5   :  { %v292_v23 = vsel %vm289_vm14, %v286_v38, %v288_v39  ;;  %v304_v10 = vmax.f32 %v11070_v13, %v288_v39  ;;  %v213_v13 = vld [vmem:[#allocation8 + $0x40] sm:$0xff]  ;;  %v214_v39 = vld [vmem:[#allocation8 + $0x48] sm:$0xff] }
 0x1c7   :  { %v306_v40 = vpop.permute.xlu1 %305 }
 0x1c8   :  { %v308_v41 = vpop.permute.xlu0 %307 }
 0x1c9   :  { %v318_v8 = vsel %vm317_vm15, %v306_v40, %v308_v41  ;;  %v328_v28 = vmax.f32 %v300_v7, %v308_v41 }
 0x1ca   :  { %v327_v31 = vmax.f32 %v299_v9, %v318_v8 }
 0x1cb   :  { %v314_v42 = vpop.permute.xlu1 %313 }
 0x1cc   :  { %v316_v43 = vpop.permute.xlu0 %315 }
 0x1cd   :  { %v320_v38 = vsel %vm317_vm15, %v314_v42, %v316_v43  ;;  %v332_v59 = vmax.f32 %v304_v10, %v316_v43  ;;  %v215_v42 = vld [vmem:[#allocation8 + $0x50] sm:$0xff] }
 0x1cf   :  { %v282_v44 = vpop.permute.xlu1 %281 }
 0x1d0   :  { %v284_v45 = vpop.permute.xlu0 %283 }
 0x1d1   :  { %v291_v20 = vsel %vm289_vm14, %v282_v44, %v284_v45  ;;  %v302_v11 = vmax.f32 %v11085_v15, %v284_v45  ;;  %v303_v44 = vmax.f32 %v11061_v12, %v292_v23  ;;  %v351_v15 = vmax.f32 %v328_v28, %v11140_v24  ;;  %v218_v24 = vld [vmem:[#allocation8 + $0x68] sm:$0xff] }
 0x1d2   :  { %v301_v40 = vmax.f32 %v11083_v14, %v291_v20  ;;  %v350_v14 = vmax.f32 %v327_v31, %v11143_v25  ;;  %v11250_v12 = vpack.c.bf16 %v214_v39, %v213_v13  ;;  %v355_v25 = vmax.f32 %v332_v59, %v11112_v16  ;;  %v219_v59 = vld [vmem:[#allocation8 + $0x70] sm:$0xff] }
 0x1d3   :  { %v310_v46 = vpop.permute.xlu1 %309 }
 0x1d4   :  { %v312_v47 = vpop.permute.xlu0 %311  ;;  %16290 = vst [vmem:[#allocation33_spill] sm:$0xff] %v11250_v12  ;;  %9881 = vmatprep.subr.bf16.mxu0 %v11250_v12 }
 0x1d5   :  { %v319_v36 = vsel %vm317_vm15, %v310_v46, %v312_v47  ;;  %v330_v41 = vmax.f32 %v302_v11, %v312_v47  ;;  %v216_v46 = vld [vmem:[#allocation8 + $0x58] sm:$0xff]  ;;  %v331_v47 = vmax.f32 %v303_v44, %v320_v38  ;;  %9883 = vmatpush3.bf16.msra.mxu0 %v11250_v12 }
 0x1d6   :  { %v329_v60 = vmax.f32 %v301_v40, %v319_v36  ;;  %v11253_v43 = vpack.c.bf16 %v216_v46, %v215_v42 }
 0x1d7   :  { %v11207_v48 = vpop.permute.xlu1 %364  ;;  %v354_v30 = vmax.f32 %v331_v47, %v11115_v17 }
 0x1d8   :  { %v11209_v49 = vpop.permute.xlu0 %366  ;;  %16291 = vst [vmem:[#allocation34_spill] sm:$0xff] %v11253_v43  ;;  %v352_v20 = vmax.f32 %v329_v60, %v11155_v27  ;;  %9885 = vmatprep.subr.bf16.mxu0 %v11253_v43 }
 0x1d9   :  { %v382_v27 = vmax.f32 %v355_v25, %v11209_v49  ;;  %9887 = vmatpush3.bf16.msra.mxu0 %v11253_v43 }
 0x1db   :  { %v11211_v50 = vpop.permute.xlu1 %391 }
 0x1dc   :  { %v11213_v51 = vpop.permute.xlu0 %393 }
 0x1dd   :  { %v409_v17 = vmax.f32 %v382_v27, %v11213_v51 }
 0x1df   :  { %v11215_v52 = vpop.permute.xlu1 %441 }
 0x1e0   :  { %v11217_v53 = vpop.permute.xlu0 %443 }
 0x1e1   :  { %v447_v42 = vsel %vm289_vm14, %v11215_v52, %v11217_v53 }
 0x1e3   :  { %v357_v57 = vpop.permute.xlu1 %356 }
 0x1e4   :  { %v359_v58 = vpop.permute.xlu0 %358 }
 0x1e5   :  { %v368_v45 = vsel %vm289_vm14, %v357_v57, %v359_v58  ;;  %v378_v2 = vmax.f32 %v351_v15, %v359_v58  ;;  %v353_v57 = vmax.f32 %v330_v41, %v11151_v26  ;;  %v11265_v26 = vpack.c.bf16 %v218_v24, %v217_v4 }
 0x1e6   :  { %v377_v7 = vmax.f32 %v350_v14, %v368_v45 }
 0x1e7   :  { %v361_v62 = vpop.permute.xlu1 %360  ;;  %16292 = vst [vmem:[#allocation35_spill] sm:$0xff] %v11265_v26  ;;  %9889 = vmatprep.subr.bf16.mxu0 %v11265_v26 }
 0x1e8   :  { %v363_v63 = vpop.permute.xlu0 %362  ;;  %9891 = vmatpush3.bf16.msra.mxu0 %v11265_v26 }
 0x1e9   :  { %v369_v23 = vsel %vm289_vm14, %v361_v62, %v363_v63  ;;  %v380_v28 = vmax.f32 %v353_v57, %v363_v63  ;;  %v397_v62 = vsel %vm317_vm15, %v11211_v50, %v11213_v51  ;;  %v432_v51 = vmax.f32 %v409_v17, %v11126_v18 }
 0x1eb   :  { %v384_v21 = vpop.permute.xlu1 %383 }
 0x1ec   :  { %v386_v22 = vpop.permute.xlu0 %385 }
 0x1ed   :  { %v395_v3 = vsel %vm317_vm15, %v384_v21, %v386_v22  ;;  %v405_v58 = vmax.f32 %v378_v2, %v386_v22  ;;  %v370_v21 = vsel %vm289_vm14, %v11207_v48, %v11209_v49  ;;  %v379_v22 = vmax.f32 %v352_v20, %v369_v23 }
 0x1ee   :  { %v404_v29 = vmax.f32 %v377_v7, %v395_v3  ;;  %v381_v63 = vmax.f32 %v354_v30, %v370_v21 }
 0x1ef   :  { %v388_v54 = vpop.permute.xlu1 %387  ;;  %v428_v36 = vmax.f32 %v405_v58, %v11174_v32  ;;  %v220_v32 = vld [vmem:[#allocation8 + $0x78] sm:$0xff] }
 0x1f0   :  { %v390_v55 = vpop.permute.xlu0 %389  ;;  %v427_v49 = vmax.f32 %v404_v29, %v11177_v33  ;;  %v408_v44 = vmax.f32 %v381_v63, %v397_v62  ;;  %v11285_v33 = vpack.c.bf16 %v220_v32, %v219_v59  ;;  %v11338_v59 = vld [vmem:[#allocation3] sm:$0xff] }
 0x1f1   :  { %v396_v16 = vsel %vm317_vm15, %v388_v54, %v390_v55  ;;  %v407_v31 = vmax.f32 %v380_v28, %v390_v55 }
 0x1f2   :  { %v406_v40 = vmax.f32 %v379_v22, %v396_v16  ;;  %16294 = vst [vmem:[#allocation37_spill] sm:$0xff] %v11285_v33  ;;  %9893 = vmatprep.subr.bf16.mxu0 %v11285_v33 }
 0x1f3   :  { %v434_v8 = vpop.permute.xlu1 %433  ;;  %v430_v41 = vmax.f32 %v407_v31, %v11185_v34  ;;  %v431_v34 = vmax.f32 %v408_v44, %v11129_v19  ;;  %9895 = vmatpush3.bf16.msra.mxu0 %v11285_v33  ;;  %v459_v19 = vmax.f32 %v432_v51, %v11217_v53  ;;  %v11351_v51 = vld [vmem:[#allocation3 + $0x20] sm:$0xff] }
 0x1f4   :  { %v436_v9 = vpop.permute.xlu0 %435  ;;  %v429_v13 = vmax.f32 %v406_v40, %v11189_v35  ;;  %9356 = vmatprep.subr.mxu0 %v16130_v6 }
 0x1f5   :  { %v445_v10 = vsel %vm289_vm14, %v434_v8, %v436_v9  ;;  %v455_v50 = vmax.f32 %v428_v36, %v436_v9  ;;  %v458_v52 = vmax.f32 %v431_v34, %v447_v42  ;;  %v11359_v34 = vld [vmem:[#allocation3 + $0x28] sm:$0xff] }
 0x1f6   :  { %v454_v38 = vmax.f32 %v427_v49, %v445_v10 }
 0x1f7   :  { %v438_v11 = vpop.permute.xlu1 %437 }
 0x1f8   :  { %v440_v48 = vpop.permute.xlu0 %439 }
 0x1f9   :  { %v446_v60 = vsel %vm289_vm14, %v438_v11, %v440_v48  ;;  %v457_v14 = vmax.f32 %v430_v41, %v440_v48 }
 0x1fa   :  { %v456_v46 = vmax.f32 %v429_v13, %v446_v60  ;;  %v11343_v60 = vld [vmem:[#allocation3 + $0x10] sm:$0xff]  ;;  %v11353_v13 = vld [vmem:[#allocation3 + $0x18] sm:$0xff] }
 0x1fb   :  { %v461_v54 = vpop.permute.xlu1 %460  ;;  %v931_v42 = vrot.slane %v11343_v60, 1 }
 0x1fc   :  { %v463_v55 = vpop.permute.xlu0 %462 }
 0x1fd   :  { %v472_v15 = vsel %vm317_vm15, %v461_v54, %v463_v55  ;;  %v11282_v45 = vmax.f32 %v455_v50, %v463_v55 }
 0x1fe   :  { %v11289_v39 = vmax.f32 %v454_v38, %v472_v15  ;;  %v11345_v15 = vld [vmem:[#allocation3 + $0x8] sm:$0xff] }
 0x1ff   :  { %16293 = vst [vmem:[#allocation36_spill] sm:$0xff] %v11282_v45  ;;  %v488_v47 = vmul.f32 %v11282_v45, %v11282_v45  ;;  %v465_v2 = vpop.permute.xlu1 %464  ;;  %v503_v7 = vrot.slane %v11282_v45, 3 }
 0x200   :  { %16295 = vst [vmem:[#allocation38_spill] sm:$0xff] %v11289_v39  ;;  %v467_v3 = vpop.permute.xlu0 %466  ;;  %v487_v4 = vmul.f32 %v11289_v39, %v11289_v39  ;;  %v500_v9 = vrot.slane %v11289_v39, 3 }
 0x201   :  { %v473_v18 = vsel %vm317_vm15, %v465_v2, %v467_v3  ;;  %v11299_v35 = vmax.f32 %v457_v14, %v467_v3  ;;  %v519_v25 = vrot.slane %v488_v47, 3  ;;  %v930_v14 = vrot.slane %v11338_v59, 1 }
 0x202   :  { %v11305_v24 = vmax.f32 %v456_v46, %v473_v18  ;;  %v516_v62 = vrot.slane %v487_v4, 3  ;;  %v11379_v47 = vrot.slane %v11351_v51, 1  ;;  %v933_v2 = vrot.slane %v11345_v15, 1 }
 0x203   :  { %16296 = vst [vmem:[#allocation39_spill] sm:$0xff] %v11299_v35  ;;  %v490_v57 = vmul.f32 %v11299_v35, %v11299_v35  ;;  %v504_v8 = vrot.slane %v11299_v35, 3  ;;  %v469_v23 = vpop.permute.xlu1 %468  ;;  %v11376_v46 = vsel %vm333_vm12, %v930_v14, %v931_v42  ;;  %v934_v3 = vrot.slane %v11353_v13, 1 }
 0x204   :  { %16297 = vst [vmem:[#allocation40_spill] sm:$0xff] %v11305_v24  ;;  %v489_v53 = vmul.f32 %v11305_v24, %v11305_v24  ;;  %v501_v20 = vrot.slane %v11305_v24, 3  ;;  %v471_v58 = vpop.permute.xlu0 %470  ;;  %v1494_v18 = vmax.f32 %v11011_v0, 0.0  ;;  %v11391_v4 = vsel %vm333_vm12, %v931_v42, %v11379_v47 }
 0x205   :  { %v520_v21 = vrot.slane %v490_v57, 3  ;;  %v474_v28 = vsel %vm317_vm15, %v469_v23, %v471_v58  ;;  %v11317_v29 = vmax.f32 %v459_v19, %v471_v58  ;;  %v505_v30 = vsel %vm499_vm1, %v503_v7, %v504_v8 }
 0x206   :  { %v11320_v16 = vmax.f32 %v458_v52, %v474_v28  ;;  %v502_v27 = vsel %vm499_vm1, %v500_v9, %v501_v20  ;;  %v517_v22 = vrot.slane %v489_v53, 3  ;;  %v1495_v19 = vmax.f32 %v11016_v1, 0.0 }
 0x207   :  { %16298 = vst [vmem:[#allocation41_spill] sm:$0xff] %v11317_v29  ;;  %v492_v31 = vmul.f32 %v11317_v29, %v11317_v29  ;;  %v508_v11 = vrot.slane %v11317_v29, 3  ;;  %v10339_v48 = vpack.i.bf16 %v505_v30, %v502_v27  ;;  %v521_v17 = vsel %vm499_vm1, %v519_v25, %v520_v21 }
 0x208   :  { %16299 = vst [vmem:[#allocation42_spill] sm:$0xff] %v11320_v16  ;;  %v491_v63 = vmul.f32 %v11320_v16, %v11320_v16  ;;  %v506_v36 = vrot.slane %v11320_v16, 3  ;;  %v518_v10 = vsel %vm499_vm1, %v516_v62, %v517_v22  ;;  %v11394_v52 = vsel %vm333_vm12, %v933_v2, %v934_v3  ;;  %v8842_v62 = vld [vmem:[#allocation11 + $0x1] ss:$0 sm:$0xff] }
 0x209   :  { %v524_v40 = vrot.slane %v492_v31, 3  ;;  %10340 = vrot.lane.b32.xlu1 %v10339_v48, %s10745_s29  ;;  %v509_v49 = vsel %vm499_vm1, %v504_v8, %v508_v11  ;;  %v10349_v38 = vpack.i.bf16 %v521_v17, %v518_v10  ;;  %v11397_v7 = vrot.slane %v11359_v34, 1  ;;  %v1083_v31 = vld [vmem:[#allocation7 + $0x8] sm:$0xff]  ;;  %v8843_v11 = vld [vmem:[#allocation11 + $0x2] ss:$0 sm:$0xff] }
 0x20a   :  { %v507_v44 = vsel %vm499_vm1, %v501_v20, %v506_v36  ;;  %v522_v50 = vrot.slane %v491_v63, 3  ;;  %v1498_v57 = vrot.slane %v1494_v18, 4  ;;  %v1499_v1 = vrot.slane %v1495_v19, 4  ;;  %v8845_v10 = vld [vmem:[#allocation11 + $0x4] ss:$0 sm:$0xff] }
 0x20b   :  { %v10344_v41 = vpack.i.bf16 %v509_v49, %v507_v44  ;;  %v525_v55 = vsel %vm499_vm1, %v520_v21, %v524_v40  ;;  %v11405_v0 = vsel %vm333_vm12, %v934_v3, %v11397_v7  ;;  %v1009_v9 = vrot.slane %v11345_v15, 2  ;;  %v8848_v17 = vld [vmem:[#allocation11 + $0x7] ss:$0 sm:$0xff]  ;;  %v8846_v40 = vld [vmem:[#allocation11 + $0x5] ss:$0 sm:$0xff] }
 0x20c   :  { %v523_v54 = vsel %vm499_vm1, %v517_v22, %v522_v50  ;;  %v1500_v8 = vsel %vm243_vm0, %v1498_v57, %v1499_v1  ;;  %v1010_v25 = vrot.slane %v11353_v13, 2  ;;  %v1006_v53 = vrot.slane %v11338_v59, 2  ;;  %v1082_v22 = vld [vmem:[#allocation7] sm:$0xff]  ;;  %v8841_v49 = vld [vmem:[#allocation11] ss:$0 sm:$0xff] }
 0x20d   :  { %10350 = vrot.lane.b32.xlu1 %v10349_v38, %s10745_s29  ;;  %10345 = vrot.lane.b32.xlu0 %v10344_v41, %s10745_s29  ;;  %v10354_v32 = vpack.i.bf16 %v525_v55, %v523_v54  ;;  %v1007_v20 = vrot.slane %v11343_v60, 2  ;;  %v11440_v21 = vrot.slane %v11359_v34, 2  ;;  %v11443_v28 = vrot.slane %v11351_v51, 2  ;;  %v8849_v44 = vld [vmem:[#allocation11 + $0x8] ss:$0 sm:$0xff] }
 0x20e   :  { %v11434_v23 = vsel %vm410_vm13, %v1009_v9, %v1010_v25  ;;  %v1087_v48 = vrot.slane %v1082_v22, 5  ;;  %v1088_v63 = vrot.slane %v1083_v31, 5 }
 0x20f   :  { %v11437_v58 = vsel %vm410_vm13, %v1006_v53, %v1007_v20  ;;  %16300 = vst [vmem:[#allocation43_spill] sm:$0xff] %v11440_v21  ;;  %16301 = vst [vmem:[#allocation44_spill] sm:$0xff] %v11443_v28  ;;  %v11451_v30 = vsel %vm410_vm13, %v1010_v25, %v11440_v21  ;;  %v11455_v27 = vsel %vm410_vm13, %v1007_v20, %v11443_v28 }
 0x210   :  { %v1089_v36 = vsel %vm16202_vm2, %v1087_v48, %v1088_v63 }
 0x211   :  { %876 = vrot.lane.b32.xlu1 %v11338_v59, %s10743_s3  ;;  %10355 = vrot.lane.b32.xlu0 %v10354_v32, %s10745_s29 }
 0x215   :  { %880 = vrot.lane.b32.xlu1 %v11343_v60, %s10743_s3  ;;  %878 = vrot.lane.b32.xlu0 %v11345_v15, %s10743_s3 }
 0x219   :  { %884 = vrot.lane.b32.xlu1 %v11351_v51, %s10743_s3  ;;  %882 = vrot.lane.b32.xlu0 %v11353_v13, %s10743_s3 }
 0x21d   :  { %903 = vrot.lane.b32.xlu1 %v11338_v59, %s10744_s4  ;;  %886 = vrot.lane.b32.xlu0 %v11359_v34, %s10743_s3 }
 0x221   :  { %907 = vrot.lane.b32.xlu1 %v11343_v60, %s10744_s4  ;;  %905 = vrot.lane.b32.xlu0 %v11345_v15, %s10744_s4 }
 0x225   :  { %911 = vrot.lane.b32.xlu1 %v11351_v51, %s10744_s4  ;;  %909 = vrot.lane.b32.xlu0 %v11353_v13, %s10744_s4 }
 0x229   :  { %952 = vrot.lane.b32.xlu1 %v11376_v46, %s10743_s3  ;;  %913 = vrot.lane.b32.xlu0 %v11359_v34, %s10744_s4 }
 0x22d   :  { %956 = vrot.lane.b32.xlu1 %v11391_v4, %s10743_s3  ;;  %954 = vrot.lane.b32.xlu0 %v11394_v52, %s10743_s3 }
 0x231   :  { %1501 = vrot.lane.b32.xlu1 %v1498_v57, %s10741_s22  ;;  %958 = vrot.lane.b32.xlu0 %v11405_v0, %s10743_s3 }
 0x235   :  { %960 = vrot.lane.b32.xlu1 %v11379_v47, %s10743_s3  ;;  %1503 = vrot.lane.b32.xlu0 %v1500_v8, %s10741_s22 }
 0x239   :  { %1505 = vrot.lane.b32.xlu1 %v1499_v1, %s10741_s22  ;;  %962 = vrot.lane.b32.xlu0 %v11397_v7, %s10743_s3 }
 0x23d   :  { %981 = vrot.lane.b32.xlu1 %v11394_v52, %s10744_s4  ;;  %979 = vrot.lane.b32.xlu0 %v11376_v46, %s10744_s4 }
 0x241   :  { %985 = vrot.lane.b32.xlu1 %v11405_v0, %s10744_s4  ;;  %983 = vrot.lane.b32.xlu0 %v11391_v4, %s10744_s4 }
 0x245   :  { %989 = vrot.lane.b32.xlu1 %v11397_v7, %s10744_s4  ;;  %987 = vrot.lane.b32.xlu0 %v11379_v47, %s10744_s4 }
 0x249   :  { %1030 = vrot.lane.b32.xlu1 %v11434_v23, %s10743_s3  ;;  %1028 = vrot.lane.b32.xlu0 %v11437_v58, %s10743_s3 }
 0x24d   :  { %1034 = vrot.lane.b32.xlu1 %v11451_v30, %s10743_s3  ;;  %1032 = vrot.lane.b32.xlu0 %v11455_v27, %s10743_s3 }
 0x251   :  { %1038 = vrot.lane.b32.xlu1 %v11440_v21, %s10743_s3  ;;  %1036 = vrot.lane.b32.xlu0 %v11443_v28, %s10743_s3 }
 0x255   :  { %1057 = vrot.lane.b32.xlu1 %v11434_v23, %s10744_s4  ;;  %1055 = vrot.lane.b32.xlu0 %v11437_v58, %s10744_s4 }
 0x259   :  { %1061 = vrot.lane.b32.xlu1 %v11451_v30, %s10744_s4  ;;  %1059 = vrot.lane.b32.xlu0 %v11455_v27, %s10744_s4 }
 0x25d   :  { %1063 = vrot.lane.b32.xlu1 %v11443_v28, %s10744_s4  ;;  %1549 = vrot.lane.b32.xlu0 %v8842_v62, %s10741_s22 }
 0x261   :  { %1597 = vrot.lane.b32.xlu1 %v8843_v11, %s10746_s28  ;;  %1065 = vrot.lane.b32.xlu0 %v11440_v21, %s10744_s4 }
 0x265   :  { %1092 = vrot.lane.b32.xlu1 %v1089_v36, %s10747_s9  ;;  %1090 = vrot.lane.b32.xlu0 %v1087_v48, %s10747_s9 }
 0x269   :  { %1094 = vrot.lane.b32.xlu1 %v1088_v63, %s10747_s9  ;;  %1688 = vrot.lane.b32.xlu0 %v8845_v10, %s10741_s22 }
 0x26d   :  { %1847 = vrot.lane.b32.xlu1 %v8848_v17, %s10741_s22  ;;  %1746 = vrot.lane.b32.xlu0 %v8846_v40, %s10746_s28 }
 0x271   :  { %1528 = vrot.lane.b32.xlu1 %v8841_v49, %s10747_s9  ;;  %1905 = vrot.lane.b32.xlu0 %v8849_v44, %s10746_s28 }
 0x27b   :  { %v10341_v50 = vpop.permute.xlu1 %10340 }
 0x27c   :  { %v10343_v38 = vunpack.i.h.bf16 %v10341_v50  ;;  %v10342_v41 = vunpack.i.l.bf16 %v10341_v50 }
 0x27e   :  { %v543_v54 = vsel %vm542_vm4, %v10342_v41, %v10343_v38 }
 0x27f   :  { %9302 = vmatprep.mubr.f32.mxu0 %v543_v54  ;;  %v10351_v55 = vpop.permute.xlu1 %10350  ;;  %v10346_v32 = vpop.permute.xlu0 %10345 }
 0x280   :  { %v10353_v14 = vunpack.i.h.bf16 %v10351_v55  ;;  %v10352_v42 = vunpack.i.l.bf16 %v10351_v55  ;;  %v10348_v2 = vunpack.i.h.bf16 %v10346_v32  ;;  %v10347_v3 = vunpack.i.l.bf16 %v10346_v32 }
 0x282   :  { %v544_v18 = vsel %vm542_vm4, %v10347_v3, %v10348_v2  ;;  %v545_v19 = vsel %vm542_vm4, %v10352_v42, %v10353_v14 }
 0x283   :  { %v11491_v57 = vpop.permute.xlu1 %876  ;;  %9303 = vmatmul.mubr.f32.vlgmr.msra.gmra.mrb[0].mxu0 %v544_v18  ;;  %v10356_v1 = vpop.permute.xlu0 %10355 }
 0x284   :  { %v10358_v8 = vunpack.i.h.bf16 %v10356_v1  ;;  %v10357_v9 = vunpack.i.l.bf16 %v10356_v1  ;;  %9305 = vmatprep.mubr.f32.mxu0 %v545_v19 }
 0x286   :  { %v546_v25 = vsel %vm542_vm4, %v10357_v9, %v10358_v8 }
 0x287   :  { %v11494_v53 = vpop.permute.xlu1 %880  ;;  %v11496_v20 = vpop.permute.xlu0 %878  ;;  %9306 = vmatmul.mubr.f32.gmra.mrb[2].mxu0 %v546_v25 }
 0x28b   :  { %v11498_v62 = vpop.permute.xlu1 %884  ;;  %v11500_v22 = vpop.permute.xlu0 %882 }
 0x28f   :  { %v11502_v31 = vpop.permute.xlu1 %903  ;;  %v11504_v11 = vpop.permute.xlu0 %886 }
 0x293   :  { %v11506_v48 = vpop.permute.xlu1 %907  ;;  %v11508_v63 = vpop.permute.xlu0 %905 }
 0x297   :  { %v11510_v36 = vpop.permute.xlu1 %911  ;;  %v11512_v10 = vpop.permute.xlu0 %909 }
 0x29b   :  { %v11514_v17 = vpop.permute.xlu1 %952  ;;  %v11516_v40 = vpop.permute.xlu0 %913 }
 0x29f   :  { %v11518_v49 = vpop.permute.xlu1 %956  ;;  %v11520_v44 = vpop.permute.xlu0 %954 }
 0x2a3   :  { %v1502_v50 = vpop.permute.xlu1 %1501  ;;  %v11522_v38 = vpop.permute.xlu0 %958 }
 0x2a4   :  { %1510 = vst.msk [vmem:[#allocation2] sm:$0xf0] %vm256_vm9, %v1502_v50 }
 0x2a5   :  { %1511 = vst.msk [vmem:[#allocation2 + $0x8] sm:$0xf0] %vm229_vm3, %v1502_v50 }
 0x2a7   :  { %v11526_v41 = vpop.permute.xlu1 %960  ;;  %v1504_v54 = vpop.permute.xlu0 %1503 }
 0x2a8   :  { %1512 = vst.msk [vmem:[#allocation2 + $0x10] sm:$0xff] %vm259_vm11, %v1504_v54 }
 0x2a9   :  { %1513 = vst.msk [vmem:[#allocation2 + $0x18] sm:$0xff] %vm231_vm7, %v1504_v54 }
 0x2ab   :  { %v1506_v55 = vpop.permute.xlu1 %1505  ;;  %v11530_v32 = vpop.permute.xlu0 %962  ;;  %v11566_v35 = vld [vmem:[#allocation2] sm:$0xff] }
 0x2ac   :  { %1514 = vst.msk [vmem:[#allocation2 + $0x20] sm:$0xf] %vm262_vm10, %v1506_v55  ;;  %v11568_v24 = vld [vmem:[#allocation2 + $0x8] sm:$0xff] }
 0x2ad   :  { %1515 = vst.msk [vmem:[#allocation2 + $0x28] sm:$0xf] %vm16198_vm5, %v1506_v55 }
 0x2af   :  { %v11534_v14 = vpop.permute.xlu1 %981  ;;  %v11536_v42 = vpop.permute.xlu0 %979  ;;  %v11574_v26 = vld [vmem:[#allocation2 + $0x10] sm:$0xff] }
 0x2b0   :  { %v11576_v43 = vld [vmem:[#allocation2 + $0x18] sm:$0xff] }
 0x2b3   :  { %v11538_v2 = vpop.permute.xlu1 %985  ;;  %v11540_v3 = vpop.permute.xlu0 %983  ;;  %v11586_v56 = vld [vmem:[#allocation2 + $0x20] sm:$0xff] }
 0x2b7   :  { %v11542_v18 = vpop.permute.xlu1 %989  ;;  %v11544_v19 = vpop.permute.xlu0 %987 }
 0x2bb   :  { %v11546_v1 = vpop.permute.xlu1 %1030  ;;  %v11548_v8 = vpop.permute.xlu0 %1028 }
 0x2bc   :  { %16302 = vst [vmem:[#allocation45_spill] sm:$0xff] %v11546_v1  ;;  %16303 = vst [vmem:[#allocation46_spill] sm:$0xff] %v11548_v8 }
 0x2bf   :  { %v11550_v9 = vpop.permute.xlu1 %1034  ;;  %v11552_v25 = vpop.permute.xlu0 %1032 }
 0x2c3   :  { %v11554_v50 = vpop.permute.xlu1 %1038  ;;  %v11556_v54 = vpop.permute.xlu0 %1036 }
 0x2c4   :  { %16304 = vst [vmem:[#allocation47_spill] sm:$0xff] %v11554_v50  ;;  %16305 = vst [vmem:[#allocation48_spill] sm:$0xff] %v11556_v54 }
 0x2c7   :  { %v11558_v55 = vpop.permute.xlu1 %1057  ;;  %v11560_v6 = vpop.permute.xlu0 %1055 }
 0x2c8   :  { %16306 = vst [vmem:[#allocation49_spill] sm:$0xff] %v11558_v55  ;;  %16307 = vst [vmem:[#allocation50_spill] sm:$0xff] %v11560_v6 }
 0x2cb   :  { %v11562_v29 = vpop.permute.xlu0 %1059  ;;  %v11564_v16 = vpop.permute.xlu1 %1061 }
 0x2cc   :  { %16308 = vst [vmem:[#allocation51_spill] sm:$0xff] %v11562_v29  ;;  %16309 = vst [vmem:[#allocation52_spill] sm:$0xff] %v11564_v16 }
 0x2cf   :  { %v1550_v45 = vpop.permute.xlu0 %1549  ;;  %v11578_v12 = vpop.permute.xlu1 %1063 }
 0x2d0   :  { %v1553_v39 = vmul.f32 %v11568_v24, %v1550_v45  ;;  %v1552_v33 = vmul.f32 %v11566_v35, %v1550_v45  ;;  %16310 = vst [vmem:[#allocation53_spill] sm:$0xff] %v11578_v12  ;;  %v1555_v5 = vmul.f32 %v11576_v43, %v1550_v45  ;;  %v1554_v61 = vmul.f32 %v11574_v26, %v1550_v45  ;;  %v11593_v12 = vld [vmem:[#allocation2 + $0x28] sm:$0xff] }
 0x2d1   :  { %v1556_v6 = vmul.f32 %v11586_v56, %v1550_v45 }
 0x2d2   :  { %1566 = vrot.lane.b32.xlu1 %v1553_v39, %s10743_s3  ;;  %1564 = vrot.lane.b32.xlu0 %v1552_v33, %s10743_s3  ;;  %v8844_v33 = vld [vmem:[#allocation11 + $0x3] ss:$0 sm:$0xff] }
 0x2d3   :  { %v11580_v37 = vpop.permute.xlu0 %1065  ;;  %v1598_v55 = vpop.permute.xlu1 %1597 }
 0x2d4   :  { %16311 = vst [vmem:[#allocation54_spill] sm:$0xff] %v11580_v37  ;;  %v1600_v37 = vmul.f32 %v11566_v35, %v1598_v55 }
 0x2d6   :  { %1570 = vrot.lane.b32.xlu1 %v1555_v5, %s10743_s3  ;;  %1568 = vrot.lane.b32.xlu0 %v1554_v61, %s10743_s3  ;;  %v1557_v5 = vmul.f32 %v11593_v12, %v1550_v45  ;;  %v1602_v61 = vmul.f32 %v11574_v26, %v1598_v55  ;;  %v888_v45 = vsel %vm289_vm14, %v11491_v57, %v11496_v20 }
 0x2d7   :  { %v11588_v39 = vpop.permute.xlu0 %1090  ;;  %v898_v57 = vadd.f32 %v11496_v20, %v11345_v15  ;;  %v11640_v21 = vpop.permute.xlu1 %1092 }
 0x2d8   :  { %16312 = vst [vmem:[#allocation55_spill] sm:$0xff] %v11588_v39  ;;  %v1601_v39 = vmul.f32 %v11568_v24, %v1598_v55 }
 0x2da   :  { %1572 = vrot.lane.b32.xlu1 %v1556_v6, %s10743_s3  ;;  %1645 = vrot.lane.b32.xlu0 %v8844_v33, %s10747_s9  ;;  %v1603_v33 = vmul.f32 %v11576_v43, %v1598_v55 }
 0x2db   :  { %v1689_v54 = vpop.permute.xlu0 %1688 }
 0x2dc   :  { %v1692_v50 = vmul.f32 %v11568_v24, %v1689_v54  ;;  %v1694_v6 = vmul.f32 %v11576_v43, %v1689_v54  ;;  %v1696_v16 = vmul.f32 %v11593_v12, %v1689_v54  ;;  %v1691_v28 = vmul.f32 %v11566_v35, %v1689_v54 }
 0x2dd   :  { %v1693_v8 = vmul.f32 %v11574_v26, %v1689_v54  ;;  %v11632_v15 = vmul.f32 %v11586_v56, %v1689_v54 }
 0x2de   :  { %1612 = vrot.lane.b32.xlu1 %v1600_v37, %s10744_s4  ;;  %1574 = vrot.lane.b32.xlu0 %v1557_v5, %s10743_s3  ;;  %v1604_v37 = vmul.f32 %v11586_v56, %v1598_v55  ;;  %v1706_v5 = vrot.slane %v1692_v50, 1  ;;  %v1707_v29 = vrot.slane %v1694_v6, 1  ;;  %v889_v50 = vsel %vm289_vm14, %v11494_v53, %v11500_v22 }
 0x2df   :  { %v915_v6 = vsel %vm317_vm15, %v11502_v31, %v11508_v63  ;;  %v11634_v20 = vpop.permute.xlu0 %1746  ;;  %v899_v1 = vadd.f32 %v889_v50, %v11343_v60  ;;  %v900_v31 = vadd.f32 %v11500_v22, %v11353_v13 }
 0x2e0   :  { %v1708_v53 = vsel %vm333_vm12, %v1706_v5, %v1707_v29  ;;  %v1750_v22 = vmul.f32 %v11568_v24, %v11634_v20 }
 0x2e1   :  { %v927_v13 = vadd.f32 %v11512_v10, %v900_v31 }
 0x2e2   :  { %1616 = vrot.lane.b32.xlu1 %v1602_v61, %s10744_s4  ;;  %1614 = vrot.lane.b32.xlu0 %v1601_v39, %s10744_s4  ;;  %v897_v39 = vadd.f32 %v888_v45, %v11338_v59  ;;  %v890_v61 = vsel %vm289_vm14, %v11498_v62, %v11504_v11  ;;  %v1605_v59 = vmul.f32 %v11593_v12, %v1598_v55  ;;  %v1711_v45 = vrot.slane %v1696_v16, 1 }
 0x2e3   :  { %v1704_v62 = vrot.slane %v1693_v8, 1  ;;  %v925_v55 = vadd.f32 %v11508_v63, %v898_v57  ;;  %v917_v16 = vsel %vm317_vm15, %v11510_v36, %v11516_v40  ;;  %v901_v60 = vadd.f32 %v890_v61, %v11351_v51  ;;  %v11672_v57 = vpop.permute.xlu1 %1094 }
 0x2e4   :  { %v924_v54 = vadd.f32 %v915_v6, %v897_v39  ;;  %v1712_v8 = vsel %vm333_vm12, %v1707_v29, %v1711_v45  ;;  %v964_v29 = vsel %vm289_vm14, %v11514_v17, %v11520_v44  ;;  %v949_v39 = vadd.f32 %v11405_v0, %v927_v13 }
 0x2e5   :  { %v928_v63 = vadd.f32 %v917_v16, %v901_v60  ;;  %v1764_v61 = vrot.slane %v1750_v22, 1  ;;  %v1753_v13 = vmul.f32 %v11586_v56, %v11634_v20 }
 0x2e6   :  { %1620 = vrot.lane.b32.xlu1 %v1604_v37, %s10744_s4  ;;  %1618 = vrot.lane.b32.xlu0 %v1603_v33, %s10744_s4  ;;  %v916_v37 = vsel %vm317_vm15, %v11506_v48, %v11512_v10  ;;  %v1703_v33 = vrot.slane %v1691_v28, 1  ;;  %v902_v48 = vadd.f32 %v11504_v11, %v11359_v34  ;;  %v1709_v34 = vrot.slane %v11632_v15, 1 }
 0x2e7   :  { %v926_v28 = vadd.f32 %v916_v37, %v899_v1  ;;  %v1752_v11 = vmul.f32 %v11576_v43, %v11634_v20  ;;  %v946_v51 = vadd.f32 %v11376_v46, %v924_v54  ;;  %v947_v10 = vadd.f32 %v11394_v52, %v925_v55 }
 0x2e8   :  { %v1705_v5 = vsel %vm333_vm12, %v1703_v33, %v1704_v62  ;;  %v929_v36 = vadd.f32 %v11516_v40, %v902_v48  ;;  %v965_v40 = vsel %vm289_vm14, %v11518_v49, %v11522_v38  ;;  %v1710_v50 = vsel %vm333_vm12, %v1704_v62, %v1709_v34 }
 0x2e9   :  { %v948_v1 = vadd.f32 %v11391_v4, %v926_v28  ;;  %v1765_v46 = vrot.slane %v1752_v11, 1  ;;  %v1754_v52 = vmul.f32 %v11593_v12, %v11634_v20  ;;  %v974_v6 = vadd.f32 %v11520_v44, %v947_v10  ;;  %v8847_v44 = vld [vmem:[#allocation11 + $0x6] ss:$0 sm:$0xff]  ;;  %v16317_v10 = vld [vmem:[#allocation52_spill] sm:$0xff] }
 0x2ea   :  { %1622 = vrot.lane.b32.xlu0 %v1605_v59, %s10744_s4  ;;  %1715 = vrot.lane.b32.xlu1 %v1708_v53, %s10743_s3  ;;  %v950_v17 = vadd.f32 %v11379_v47, %v928_v63  ;;  %v951_v4 = vadd.f32 %v11397_v7, %v929_v36  ;;  %v973_v0 = vadd.f32 %v964_v29, %v946_v51  ;;  %v16313_v11 = vld [vmem:[#allocation43_spill] sm:$0xff]  ;;  %v16314_v36 = vld [vmem:[#allocation45_spill] sm:$0xff]  ;;  %v16316_v51 = vld [vmem:[#allocation44_spill] sm:$0xff] }
 0x2eb   :  { %v976_v49 = vadd.f32 %v11522_v38, %v949_v39  ;;  %v966_v37 = vsel %vm289_vm14, %v11526_v41, %v11530_v32  ;;  %v991_v59 = vsel %vm317_vm15, %v11536_v42, %v11534_v14  ;;  %v975_v15 = vadd.f32 %v965_v40, %v948_v1 }
 0x2ec   :  { %v992_v47 = vsel %vm317_vm15, %v11540_v3, %v11538_v2  ;;  %v1749_v7 = vmul.f32 %v11566_v35, %v11634_v20  ;;  %v1751_v38 = vmul.f32 %v11574_v26, %v11634_v20  ;;  %v978_v53 = vadd.f32 %v11530_v32, %v951_v4  ;;  %v11702_v3 = vpop.permute.xlu1 %1847  ;;  %v16315_v20 = vld [vmem:[#allocation46_spill] sm:$0xff] }
 0x2ed   :  { %v993_v41 = vsel %vm317_vm15, %v11544_v19, %v11542_v18  ;;  %v1766_v42 = vsel %vm333_vm12, %v1764_v61, %v1765_v46  ;;  %v977_v33 = vadd.f32 %v966_v37, %v950_v17  ;;  %v1001_v62 = vadd.f32 %v11534_v14, %v974_v6  ;;  %v16319_v6 = vld [vmem:[#allocation47_spill] sm:$0xff]  ;;  %v16320_v17 = vld [vmem:[#allocation48_spill] sm:$0xff] }
 0x2ee   :  { %1719 = vrot.lane.b32.xlu1 %v1712_v8, %s10743_s3  ;;  %1713 = vrot.lane.b32.xlu0 %v1705_v5, %s10743_s3  ;;  %v1000_v31 = vadd.f32 %v991_v59, %v973_v0  ;;  %v1003_v48 = vadd.f32 %v11538_v2, %v976_v49  ;;  %v1002_v32 = vadd.f32 %v992_v47, %v975_v15  ;;  %v1761_v19 = vrot.slane %v1749_v7, 1  ;;  %v16321_v0 = vld [vmem:[#allocation49_spill] sm:$0xff]  ;;  %v16322_v49 = vld [vmem:[#allocation50_spill] sm:$0xff]  ;;  %v11757_v47 = vpop.permute.xlu0 %1905 }
 0x2ef   :  { %v1005_v54 = vadd.f32 %v11542_v18, %v978_v53  ;;  %v1004_v55 = vadd.f32 %v993_v41, %v977_v33  ;;  %v1762_v16 = vrot.slane %v1751_v38, 1  ;;  %v1851_v14 = vmul.f32 %v11568_v24, %v11702_v3 }
 0x2f0   :  { %v1853_v28 = vmul.f32 %v11576_v43, %v11702_v3  ;;  %v1023_v22 = vadd.f32 %v11434_v23, %v1001_v62  ;;  %v1022_v2 = vadd.f32 %v11437_v58, %v1000_v31  ;;  %v1025_v18 = vadd.f32 %v11451_v30, %v1003_v48  ;;  %v16324_v31 = vld [vmem:[#allocation54_spill] sm:$0xff]  ;;  %v16325_v48 = vld [vmem:[#allocation53_spill] sm:$0xff] }
 0x2f1   :  { %v1024_v8 = vadd.f32 %v11455_v27, %v1002_v32  ;;  %v1041_v5 = vsel %vm289_vm14, %v11552_v25, %v11550_v9  ;;  %v1027_v63 = vadd.f32 %v16313_v11, %v1005_v54  ;;  %v1040_v23 = vsel %vm289_vm14, %v16315_v20, %v16314_v36 }
 0x2f2   :  { %1723 = vrot.lane.b32.xlu1 %v1711_v45, %s10743_s3  ;;  %1717 = vrot.lane.b32.xlu0 %v1710_v50, %s10743_s3  ;;  %v1769_v45 = vrot.slane %v1754_v52, 1  ;;  %v1026_v58 = vadd.f32 %v16316_v51, %v1004_v55  ;;  %v1763_v30 = vsel %vm333_vm12, %v1761_v19, %v1762_v16  ;;  %v1865_v1 = vrot.slane %v1851_v14, 2  ;;  %v16328_v19 = vld [vmem:[#allocation55_spill] sm:$0xff] }
 0x2f3   :  { %v1866_v27 = vrot.slane %v1853_v28, 2  ;;  %v1767_v39 = vrot.slane %v1753_v13, 1  ;;  %v1855_v25 = vmul.f32 %v11593_v12, %v11702_v3  ;;  %v1050_v40 = vadd.f32 %v16314_v36, %v1023_v22 }
 0x2f4   :  { %v1770_v60 = vsel %vm333_vm12, %v1765_v46, %v1769_v45  ;;  %v1052_v50 = vadd.f32 %v11550_v9, %v1025_v18  ;;  %v1051_v61 = vadd.f32 %v1041_v5, %v1024_v8  ;;  %v11739_v46 = vld [vmem:[#allocation10] sm:$0xf]  ;;  %v1049_v52 = vadd.f32 %v1040_v23, %v1022_v2 }
 0x2f5   :  { %v1042_v4 = vsel %vm289_vm14, %v16320_v17, %v16319_v6  ;;  %v1067_v37 = vsel %vm317_vm15, %v16322_v49, %v16321_v0  ;;  %9309 = vmatpush3.msk.msra.mxu1 %vm243_vm0, %v11739_v46  ;;  %v16323_v9 = vmov 0.0   ;;  %v1850_v15 = vmul.f32 %v11566_v35, %v11702_v3  ;;  %9357 = vmatpush3.msk.msra.mxu0 %vm243_vm0, %v11739_v46 }
 0x2f6   :  { %1804 = vrot.lane.b32.xlu0 %v8847_v44, %s10747_s9  ;;  %1773 = vrot.lane.b32.xlu1 %v1766_v42, %s10744_s4  ;;  %v1079_v59 = vadd.f32 %v16317_v10, %v1052_v50  ;;  %v1867_v7 = vsel %vm410_vm13, %v1865_v1, %v1866_v27  ;;  %v1768_v38 = vsel %vm333_vm12, %v1762_v16, %v1767_v39  ;;  %v1870_v53 = vrot.slane %v1855_v25, 2 }
 0x2f7   :  { %9310 = vmatprep.mubr.msk.f32.mxu1 %vm10748_vm6, %v16323_v9  ;;  %9313 = vmatprep.subr.mxu1 %v16323_v9  ;;  %v1852_v41 = vmul.f32 %v11574_v26, %v11702_v3  ;;  %v1054_v42 = vadd.f32 %v16319_v6, %v1027_v63  ;;  %v1076_v33 = vadd.f32 %v1067_v37, %v1049_v52  ;;  %v1862_v22 = vrot.slane %v1850_v15, 2 }
 0x2f8   :  { %9358 = vmatprep.mubr.msk.f32.mxu0 %vm10748_vm6, %v16323_v9  ;;  %9361 = vmatprep.subr.mxu0 %v16323_v9  ;;  %v1053_v62 = vadd.f32 %v1042_v4, %v1026_v58  ;;  %v1069_v32 = vsel %vm317_vm15, %v16325_v48, %v16324_v31  ;;  %v11777_v55 = vmul.f32 %v11640_v21, %v1079_v59 }
 0x2f9   :  { %v11780_v16 = vmul.f32 %v16328_v19, %v1076_v33  ;;  %v1854_v14 = vmul.f32 %v11586_v56, %v11702_v3  ;;  %v1909_v28 = vmul.f32 %v11568_v24, %v11757_v47  ;;  %v1871_v13 = vsel %vm410_vm13, %v1866_v27, %v1870_v53 }
 0x2fa   :  { %1721 = vrot.lane.b32.xlu0 %v1709_v34, %s10743_s3  ;;  %1777 = vrot.lane.b32.xlu1 %v1770_v60, %s10744_s4  ;;  %v16318_v34 = vld [vmem:[#allocation51_spill] sm:$0xff]  ;;  %16327 = vst [vmem:[#allocation45_spill] sm:$0xff] %v11777_v55  ;;  %v1863_v2 = vrot.slane %v1852_v41, 2  ;;  %v1080_v18 = vadd.f32 %v1069_v32, %v1053_v62  ;;  %v1081_v8 = vadd.f32 %v16324_v31, %v1054_v42  ;;  %v1121_v3 = vrot.slane %v11777_v55, 3 }
 0x2fb   :  { %v1068_v29 = vsel %vm317_vm15, %v16318_v34, %v16317_v10  ;;  %16329 = vst [vmem:[#allocation46_spill] sm:$0xff] %v11780_v16  ;;  %v1117_v11 = vrot.slane %v11780_v16, 3  ;;  %v1868_v20 = vrot.slane %v1854_v14, 2  ;;  %v1923_v58 = vrot.slane %v1909_v28, 2 }
 0x2fc   :  { %v1078_v44 = vadd.f32 %v1068_v29, %v1051_v61  ;;  %v11799_v63 = vmul.f32 %v11672_v57, %v1080_v18  ;;  %v11802_v36 = vmul.f32 %v11672_v57, %v1081_v8  ;;  %v1864_v51 = vsel %vm410_vm13, %v1862_v22, %v1863_v2 }
 0x2fd   :  { %v1108_v29 = vmul.f32 %v11777_v55, %v11777_v55  ;;  %v1105_v57 = vmul.f32 %v11780_v16, %v11780_v16  ;;  %v1908_v61 = vmul.f32 %v11566_v35, %v11757_v47  ;;  %v1910_v52 = vmul.f32 %v11574_v26, %v11757_v47  ;;  %v2813_v55 = vld [vmem:[#allocation16 + $0x20] sm:$0xff] }
 0x2fe   :  { %1781 = vrot.lane.b32.xlu1 %v1769_v45, %s10744_s4  ;;  %1771 = vrot.lane.b32.xlu0 %v1763_v30, %s10744_s4  ;;  %v1077_v45 = vadd.f32 %v16321_v0, %v1050_v40  ;;  %v11774_v54 = vmul.f32 %v11640_v21, %v1078_v44  ;;  %v1911_v21 = vmul.f32 %v11576_v43, %v11757_v47  ;;  %v1123_v1 = vrot.slane %v11799_v63, 3 }
 0x2ff   :  { %16331 = vst [vmem:[#allocation52_spill] sm:$0xff] %v11799_v63  ;;  %16332 = vst [vmem:[#allocation51_spill] sm:$0xff] %v11802_v36  ;;  %v1125_v27 = vrot.slane %v11802_v36, 3  ;;  %v1137_v17 = vrot.slane %v1108_v29, 3  ;;  %v1133_v4 = vrot.slane %v1105_v57, 3  ;;  %v1109_v49 = vmul.f32 %v11799_v63, %v11799_v63 }
 0x300   :  { %16326 = vst [vmem:[#allocation43_spill] sm:$0xff] %v11774_v54  ;;  %v11783_v60 = vmul.f32 %v16328_v19, %v1077_v45  ;;  %v1118_v5 = vrot.slane %v11774_v54, 3  ;;  %v1924_v10 = vrot.slane %v1911_v21, 2  ;;  %v1107_v34 = vmul.f32 %v11774_v54, %v11774_v54  ;;  %v2814_v54 = vld [vmem:[#allocation16 + $0x28] sm:$0xff] }
 0x301   :  { %v1110_v37 = vmul.f32 %v11802_v36, %v11802_v36  ;;  %v1126_v15 = vsel %vm499_vm1, %v1121_v3, %v1125_v27  ;;  %v1139_v41 = vrot.slane %v1109_v49, 3  ;;  %v1912_v32 = vmul.f32 %v11586_v56, %v11757_v47 }
 0x302   :  { %1874 = vrot.lane.b32.xlu1 %v1867_v7, %s10743_s3  ;;  %1775 = vrot.lane.b32.xlu0 %v1768_v38, %s10744_s4  ;;  %16330 = vst [vmem:[#allocation44_spill] sm:$0xff] %v11783_v60  ;;  %v1120_v23 = vrot.slane %v11783_v60, 3  ;;  %v1106_v30 = vmul.f32 %v11783_v60, %v11783_v60  ;;  %v1119_v25 = vsel %vm499_vm1, %v1117_v11, %v1118_v5  ;;  %v1134_v6 = vrot.slane %v1107_v34, 3 }
 0x303   :  { %v1925_v40 = vsel %vm410_vm13, %v1923_v58, %v1924_v10  ;;  %v1124_v44 = vsel %vm499_vm1, %v1118_v5, %v1123_v1  ;;  %v1920_v7 = vrot.slane %v1908_v61, 2  ;;  %v1921_v38 = vrot.slane %v1910_v52, 2 }
 0x304   :  { %v1122_v50 = vsel %vm499_vm1, %v1120_v23, %v1121_v3  ;;  %v1136_v0 = vrot.slane %v1106_v30, 3  ;;  %v1141_v42 = vrot.slane %v1110_v37, 3  ;;  %v10364_v45 = vpack.i.bf16 %v1126_v15, %v1124_v44 }
 0x305   :  { %v10359_v59 = vpack.i.bf16 %v1122_v50, %v1119_v25  ;;  %v1135_v33 = vsel %vm499_vm1, %v1133_v4, %v1134_v6  ;;  %v1922_v62 = vsel %vm410_vm13, %v1920_v7, %v1921_v38  ;;  %v1140_v28 = vsel %vm499_vm1, %v1134_v6, %v1139_v41 }
 0x306   :  { %1878 = vrot.lane.b32.xlu1 %v1871_v13, %s10743_s3  ;;  %1779 = vrot.lane.b32.xlu0 %v1767_v39, %s10744_s4  ;;  %v1869_v39 = vsel %vm410_vm13, %v1863_v2, %v1868_v20  ;;  %v1138_v48 = vsel %vm499_vm1, %v1136_v0, %v1137_v17  ;;  %v1142_v13 = vsel %vm499_vm1, %v1137_v17, %v1141_v42  ;;  %v1926_v22 = vrot.slane %v1912_v32, 2 }
 0x307   :  { %v10369_v19 = vpack.i.bf16 %v1138_v48, %v1135_v33  ;;  %v10374_v2 = vpack.i.bf16 %v1142_v13, %v1140_v28 }
 0x308   :  { %v1927_v21 = vsel %vm410_vm13, %v1921_v38, %v1926_v22 }
 0x30a   :  { %1882 = vrot.lane.b32.xlu1 %v1870_v53, %s10743_s3  ;;  %1872 = vrot.lane.b32.xlu0 %v1864_v51, %s10743_s3  ;;  %v1913_v53 = vmul.f32 %v11593_v12, %v11757_v47  ;;  %v11855_v47 = vpop.permute.xlu1 %1528 }
 0x30c   :  { %v1928_v31 = vrot.slane %v1913_v53, 2 }
 0x30e   :  { %1876 = vrot.lane.b32.xlu0 %v1869_v39, %s10743_s3  ;;  %1932 = vrot.lane.b32.xlu1 %v1925_v40, %s10744_s4  ;;  %v1929_v14 = vsel %vm410_vm13, %v1924_v10, %v1928_v31 }
 0x312   :  { %1880 = vrot.lane.b32.xlu0 %v1868_v20, %s10743_s3  ;;  %10360 = vrot.lane.b32.xlu1 %v10359_v59, %s10745_s29 }
 0x316   :  { %10365 = vrot.lane.b32.xlu1 %v10364_v45, %s10745_s29  ;;  %1930 = vrot.lane.b32.xlu0 %v1922_v62, %s10744_s4 }
 0x31a   :  { %1936 = vrot.lane.b32.xlu1 %v1929_v14, %s10744_s4  ;;  %10370 = vrot.lane.b32.xlu0 %v10369_v19, %s10745_s29 }
 0x31e   :  { %10375 = vrot.lane.b32.xlu1 %v10374_v2, %s10745_s29  ;;  %1934 = vrot.lane.b32.xlu0 %v1927_v21, %s10744_s4 }
 0x322   :  { %1940 = vrot.lane.b32.xlu1 %v1928_v31, %s10744_s4  ;;  %1938 = vrot.lane.b32.xlu0 %v1926_v22, %s10744_s4 }
 0x344   :  { %v11857_v18 = vpop.permute.xlu1 %1566  ;;  %v1565_v8 = vpop.permute.xlu0 %1564 }
 0x348   :  { %v11859_v5 = vpop.permute.xlu1 %1570  ;;  %v1569_v3 = vpop.permute.xlu0 %1568 }
 0x34c   :  { %v11861_v11 = vpop.permute.xlu1 %1572  ;;  %v11863_v20 = vpop.permute.xlu0 %1645 }
 0x350   :  { %v11865_v23 = vpop.permute.xlu1 %1612  ;;  %v11867_v51 = vpop.permute.xlu0 %1574 }
 0x354   :  { %v11869_v58 = vpop.permute.xlu1 %1616  ;;  %v11871_v10 = vpop.permute.xlu0 %1614 }
 0x356   :  { %v9304_v34 = vpop.f32.mrb[0].mxu0 }
 0x357   :  { %v638_v29 = vsel %vm636_vm8, %v9304_v34, 0.0  ;;  %v617_v57 = vpop.f32.mrb[1].mxu0 }
 0x358   :  { %v637_v30 = vsel %vm636_vm8, %v617_v57, 0.0  ;;  %v11875_v1 = vpop.permute.xlu1 %1620  ;;  %v11877_v27 = vpop.permute.xlu0 %1618 }
 0x359   :  { %v639_v39 = vadd.f32 %v638_v29, %v637_v30 }
 0x35a   :  { %v9307_v25 = vpop.f32.mrb[2].mxu0 }
 0x35b   :  { %v640_v40 = vrot.slane %v639_v39, 4  ;;  %v648_v50 = vsel %vm636_vm8, %v9307_v25, 0.0  ;;  %v627_v61 = vpop.f32.mrb[3].mxu0  ;;  %v1531_v25 = vmul.f32 %v11566_v35, %v11855_v47 }
 0x35c   :  { %v647_v52 = vsel %vm636_vm8, %v627_v61, 0.0  ;;  %v11881_v6 = vpop.permute.xlu1 %1715  ;;  %v11883_v17 = vpop.permute.xlu0 %1622  ;;  %v1576_v61 = vsel %vm289_vm14, %v1565_v8, %v11857_v18  ;;  %v1650_v8 = vmul.f32 %v11574_v26, %v11863_v20 }
 0x35d   :  { %v641_v4 = vadd.f32 %v640_v40, %v639_v39  ;;  %v649_v0 = vadd.f32 %v648_v50, %v647_v52  ;;  %v1532_v39 = vmul.f32 %v11568_v24, %v11855_v47  ;;  %v1649_v40 = vmul.f32 %v11568_v24, %v11863_v20 }
 0x35e   :  { %v1651_v50 = vmul.f32 %v11576_v43, %v11863_v20  ;;  %v1534_v52 = vmul.f32 %v11576_v43, %v11855_v47 }
 0x35f   :  { %v642_v49 = vrot.slane %v641_v4, 2  ;;  %v650_v37 = vrot.slane %v649_v0, 4 }
 0x360   :  { %v11885_v59 = vpop.permute.xlu1 %1719  ;;  %v11887_v44 = vpop.permute.xlu0 %1713 }
 0x361   :  { %v643_v15 = vadd.f32 %v642_v49, %v641_v4  ;;  %v651_v7 = vadd.f32 %v650_v37, %v649_v0  ;;  %v1533_v4 = vmul.f32 %v11574_v26, %v11855_v47  ;;  %v11927_v0 = vmul.f32 %v11593_v12, %v11863_v20 }
 0x362   :  { %v1577_v49 = vsel %vm289_vm14, %v1569_v3, %v11859_v5  ;;  %v1535_v37 = vmul.f32 %v11586_v56, %v11855_v47  ;;  %v11946_v3 = vmul.f32 %v11586_v56, %v11863_v20 }
 0x363   :  { %v644_v38 = vrot.slane %v643_v15, 1  ;;  %v652_v53 = vrot.slane %v651_v7, 2  ;;  %v1587_v36 = vadd.f32 %v1577_v49, %v1533_v4 }
 0x364   :  { %v11889_v41 = vpop.permute.xlu1 %1723  ;;  %v11891_v42 = vpop.permute.xlu0 %1717 }
 0x365   :  { %v645_v45 = vadd.f32 %v644_v38, %v643_v15  ;;  %v653_v33 = vadd.f32 %v652_v53, %v651_v7  ;;  %v1648_v15 = vmul.f32 %v11566_v35, %v11863_v20  ;;  %v1586_v53 = vadd.f32 %v11857_v18, %v1532_v39 }
 0x366   :  { %v1668_v18 = vrot.slane %v11927_v0, 1 }
 0x367   :  { %v646_v62 = vmul.f32 0.001953125, %v645_v45  ;;  %v654_v31 = vrot.slane %v653_v33, 1  ;;  %v1536_v45 = vmul.f32 %v11593_v12, %v11855_v47  ;;  %v1625_v47 = vsel %vm317_vm15, %v11869_v58, %v11877_v27 }
 0x368   :  { %v11893_v48 = vpop.permute.xlu1 %1773  ;;  %v11895_v32 = vpop.permute.xlu0 %1804  ;;  %v1634_v20 = vadd.f32 %v11871_v10, %v1586_v53  ;;  %v1660_v39 = vrot.slane %v1648_v15, 1  ;;  %v1666_v58 = vrot.slane %v11946_v3, 1  ;;  %v1635_v4 = vadd.f32 %v1625_v47, %v1587_v36  ;;  %v16333_v53 = vld [vmem:[#allocation29_spill] sm:$0xff] }
 0x369   :  { %v655_v19 = vadd.f32 %v654_v31, %v653_v33  ;;  %v657_v14 = vmul.f32 %v646_v62, %v646_v62  ;;  %v661_v33 = vstv %s11905_s26  ;;  %v1585_v31 = vadd.f32 %v1576_v61, %v1531_v25 }
 0x36a   :  { %v1661_v25 = vrot.slane %v1650_v8, 1  ;;  %v1810_v15 = vmul.f32 %v11576_v43, %v11895_v32 }
 0x36b   :  { %v656_v28 = vmul.f32 0.001953125, %v655_v19  ;;  %v1624_v19 = vsel %vm317_vm15, %v11865_v23, %v11871_v10 }
 0x36c   :  { %v11897_v13 = vpop.permute.xlu1 %1777  ;;  %v11899_v22 = vpop.permute.xlu0 %1721 }
 0x36d   :  { %v658_v2 = vsub.f32 %v656_v28, %v657_v14  ;;  %v1663_v14 = vrot.slane %v1649_v40, 1  ;;  %v1664_v28 = vrot.slane %v1651_v50, 1  ;;  %v1633_v40 = vadd.f32 %v1624_v19, %v1585_v31 }
 0x36f   :  { %v659_v21 = vadd.f32 1e-05, %v658_v2  ;;  %v1665_v10 = vsel %vm333_vm12, %v1663_v14, %v1664_v28  ;;  %v1669_v49 = vsel %vm333_vm12, %v1664_v28, %v1668_v18  ;;  %v1807_v14 = vmul.f32 %v11566_v35, %v11895_v32 }
 0x370   :  { %v11901_v34 = vpop.permute.xlu1 %1781  ;;  %v11903_v29 = vpop.permute.xlu0 %1771  ;;  %v1823_v28 = vrot.slane %v1810_v15, 2  ;;  %v1811_v35 = vmul.f32 %v11586_v56, %v11895_v32 }
 0x371   :  { %10429 = vrsqrt.f32 %v659_v21  ;;  %v1588_v21 = vadd.f32 %v11859_v5, %v1534_v52  ;;  %v1578_v5 = vsel %vm289_vm14, %v11861_v11, %v11867_v51  ;;  %v1590_v52 = vadd.f32 %v11867_v51, %v1536_v45 }
 0x372   :  { %v11975_v11 = vmul.f32 %v11593_v12, %v11895_v32  ;;  %v1589_v36 = vadd.f32 %v1578_v5, %v1535_v37  ;;  %v1677_v51 = vadd.f32 %v1665_v10, %v1634_v20  ;;  %v1626_v12 = vsel %vm317_vm15, %v11875_v1, %v11883_v17 }
 0x373   :  { %v1636_v50 = vadd.f32 %v11877_v27, %v1588_v21  ;;  %v1662_v27 = vsel %vm333_vm12, %v1660_v39, %v1661_v25  ;;  %v1667_v37 = vsel %vm333_vm12, %v1661_v25, %v1666_v58  ;;  %v1725_v1 = vsel %vm289_vm14, %v11887_v44, %v11881_v6 }
 0x374   :  { %v11907_v57 = vpop.permute.xlu1 %1874  ;;  %v11909_v30 = vpop.permute.xlu0 %1775  ;;  %v1735_v31 = vadd.f32 %v11881_v6, %v1677_v51  ;;  %v1678_v19 = vadd.f32 %v1667_v37, %v1635_v4  ;;  %v1809_v21 = vmul.f32 %v11574_v26, %v11895_v32  ;;  %v1637_v47 = vadd.f32 %v1626_v12, %v1589_v36  ;;  %v16335_v36 = vld [vmem:[#allocation31_spill] sm:$0xff] }
 0x375   :  { %v1679_v45 = vadd.f32 %v1669_v49, %v1636_v50  ;;  %v1726_v6 = vsel %vm289_vm14, %v11891_v42, %v11885_v59  ;;  %v1783_v26 = vsel %vm317_vm15, %v11903_v29, %v11893_v48  ;;  %v1819_v4 = vrot.slane %v1807_v14, 2 }
 0x376   :  { %v1784_v56 = vsel %vm317_vm15, %v11909_v30, %v11897_v13  ;;  %v1736_v29 = vadd.f32 %v1726_v6, %v1678_v19  ;;  %v1727_v30 = vsel %vm289_vm14, %v11899_v22, %v11889_v41  ;;  %v16336_v19 = vld [vmem:[#allocation32_spill] sm:$0xff] }
 0x378   :  { %v11937_v7 = vpop.permute.xlu1 %1878  ;;  %v11939_v38 = vpop.permute.xlu0 %1779 }
 0x37b   :  { %v10430_v2 = vpop.eup %10429 }
 0x37c   :  { %v11958_v61 = vpop.permute.xlu1 %1882  ;;  %v11960_v63 = vpop.permute.xlu0 %1872  ;;  %v662_v23 = vmul.f32 %v10430_v2, %v661_v33  ;;  %v1676_v33 = vadd.f32 %v1662_v27, %v1633_v40  ;;  %v1827_v2 = vrot.slane %v11975_v11, 2  ;;  %v1680_v27 = vadd.f32 %v1666_v58, %v1637_v47  ;;  %v16338_v11 = vld [vmem:[#allocation34_spill] sm:$0xff] }
 0x37e   :  { %9311 = vmatmul.mubr.msk.f32.vlgmr.msra.gmra.mrb[0].mxu1 %vm636_vm8, %v662_v23  ;;  %v739_v0 = vmul.f32 %v662_v23, %v646_v62  ;;  %v1808_v62 = vmul.f32 %v11568_v24, %v11895_v32  ;;  %v1638_v24 = vadd.f32 %v11883_v17, %v1590_v52  ;;  %v1737_v17 = vadd.f32 %v11885_v59, %v1679_v45  ;;  %v16334_v23 = vld [vmem:[#allocation30_spill] sm:$0xff] }
 0x37f   :  { %9314 = vmatpush3.msk.msra.mxu1 %vm243_vm0, %v11739_v46  ;;  %9315 = vmatprep.mubr.msk.f32.mxu1 %vm10748_vm6, %v16323_v9  ;;  %v1734_v40 = vadd.f32 %v1725_v1, %v1676_v33  ;;  %v1828_v32 = vsel %vm410_vm13, %v1823_v28, %v1827_v2  ;;  %v1820_v59 = vrot.slane %v1809_v21, 2  ;;  %v1785_v33 = vsel %vm317_vm15, %v11939_v38, %v11901_v34 }
 0x380   :  { %v11984_v8 = vpop.permute.xlu1 %1932  ;;  %v11986_v43 = vpop.permute.xlu0 %1876  ;;  %9897 = vmatprep.subr.bf16.mxu1 %v16333_v53  ;;  %v1822_v20 = vrot.slane %v1808_v62, 2  ;;  %v1681_v50 = vadd.f32 %v1668_v18, %v1638_v24  ;;  %v1795_v52 = vadd.f32 %v11897_v13, %v1737_v17  ;;  %v1793_v13 = vadd.f32 %v11893_v48, %v1735_v31 }
 0x381   :  { %v1792_v10 = vadd.f32 %v1783_v26, %v1734_v40  ;;  %v1794_v62 = vadd.f32 %v1784_v56, %v1736_v29  ;;  %v1821_v37 = vsel %vm410_vm13, %v1819_v4, %v1820_v59  ;;  %v1884_v48 = vsel %vm289_vm14, %v11960_v63, %v11907_v57 }
 0x382   :  { %9316 = vmatmul.mubr.msk.f32.vlgmr.msra.gmra.mrb[2].mxu1 %vm636_vm8, %v739_v0  ;;  %v1824_v18 = vsel %vm410_vm13, %v1822_v20, %v1823_v28  ;;  %v1825_v0 = vrot.slane %v1811_v35, 2  ;;  %v1739_v51 = vadd.f32 %v11889_v41, %v1681_v50  ;;  %v1838_v12 = vadd.f32 %v1828_v32, %v1795_v52 }
 0x383   :  { %9899 = vmatpush3.bf16.msra.mxu1 %v16333_v53  ;;  %v1836_v45 = vadd.f32 %v1824_v18, %v1793_v13  ;;  %v1738_v22 = vadd.f32 %v1727_v30, %v1680_v27  ;;  %v1835_v3 = vadd.f32 %v1821_v37, %v1792_v10  ;;  %v1885_v63 = vsel %vm289_vm14, %v11986_v43, %v11937_v7  ;;  %v1957_v30 = vld [vmem:[#allocation13] sm:$0xff] }
 0x384   :  { %v10361_v39 = vpop.permute.xlu1 %10360  ;;  %v1881_v25 = vpop.permute.xlu0 %1880  ;;  %9901 = vmatprep.subr.bf16.mxu1 %v16334_v23  ;;  %v1896_v41 = vadd.f32 %v11937_v7, %v1838_v12  ;;  %v1826_v58 = vsel %vm410_vm13, %v1820_v59, %v1825_v0  ;;  %v1797_v38 = vadd.f32 %v11901_v34, %v1739_v51  ;;  %v1958_v51 = vld [vmem:[#allocation13 + $0x8] sm:$0xff]  ;;  %v16340_v12 = vld [vmem:[#allocation37_spill] sm:$0xff] }
 0x385   :  { %v10363_v44 = vunpack.i.h.bf16 %v10361_v39  ;;  %v10362_v5 = vunpack.i.l.bf16 %v10361_v39  ;;  %v1894_v14 = vadd.f32 %v11907_v57, %v1836_v45  ;;  %v1796_v28 = vadd.f32 %v1785_v33, %v1738_v22  ;;  %v16337_v57 = vld [vmem:[#allocation33_spill] sm:$0xff]  ;;  %v1960_v22 = vld [vmem:[#allocation13 + $0x18] sm:$0xff] }
 0x386   :  { %v1893_v21 = vadd.f32 %v1884_v48, %v1835_v3  ;;  %v1837_v47 = vadd.f32 %v1826_v58, %v1794_v62  ;;  %v1840_v7 = vadd.f32 %v1827_v2, %v1797_v38  ;;  %v1886_v43 = vsel %vm289_vm14, %v1881_v25, %v11958_v61  ;;  %v1959_v48 = vld [vmem:[#allocation13 + $0x10] sm:$0xff] }
 0x387   :  { %9903 = vmatpush3.bf16.msra.mxu1 %v16334_v23  ;;  %v1159_v42 = vsel %vm542_vm4, %v10362_v5, %v10363_v44  ;;  %v1952_v20 = vadd.f32 %v11984_v8, %v1894_v14  ;;  %v1839_v44 = vadd.f32 %v1825_v0, %v1796_v28  ;;  %v9928_v45 = vpack.c.bf16 %v1958_v51, %v1957_v30 }
 0x388   :  { %v12027_v49 = vpop.permute.xlu1 %10365  ;;  %v1931_v15 = vpop.permute.xlu0 %1930  ;;  %9350 = vmatprep.mubr.f32.mxu1 %v1159_v42  ;;  %9905 = vmatprep.subr.bf16.mxu1 %v16335_v36  ;;  %v1895_v35 = vadd.f32 %v1885_v63, %v1837_v47  ;;  %v1898_v50 = vadd.f32 %v11958_v61, %v1840_v7  ;;  %v9932_v58 = vpack.c.bf16 %v1960_v22, %v1959_v48  ;;  %v1961_v63 = vld [vmem:[#allocation13 + $0x20] sm:$0xff]  ;;  %v1964_v47 = vld [vmem:[#allocation13 + $0x38] sm:$0xff] }
 0x389   :  { %v1942_v1 = vsel %vm317_vm15, %v1931_v15, %v11984_v8  ;;  %v1982_v8 = vrot.slane %v1952_v20, 3  ;;  %v1897_v52 = vadd.f32 %v1886_v43, %v1839_v44  ;;  %v16339_v15 = vld [vmem:[#allocation35_spill] sm:$0xff]  ;;  %v10368_v33 = vunpack.i.h.bf16 %v12027_v49  ;;  %v1965_v20 = vld [vmem:[#allocation13 + $0x40] sm:$0xff] }
 0x38a   :  { %v1951_v39 = vadd.f32 %v1942_v1, %v1893_v21  ;;  %v10367_v37 = vunpack.i.l.bf16 %v12027_v49  ;;  %v1962_v1 = vld [vmem:[#allocation13 + $0x28] sm:$0xff]  ;;  %v1969_v43 = vld [vmem:[#allocation13 + $0x60] sm:$0xff] }
 0x38b   :  { %9907 = vmatpush3.bf16.msra.mxu1 %v16335_v36  ;;  %v9936_v28 = vpack.c.bf16 %v1962_v1, %v1961_v63 }
 0x38c   :  { %v1937_v31 = vpop.permute.xlu1 %1936  ;;  %v12047_v24 = vpop.permute.xlu0 %10370  ;;  %9909 = vmatprep.subr.bf16.mxu1 %v16336_v19  ;;  %v1979_v4 = vrot.slane %v1951_v39, 3  ;;  %v1160_v14 = vsel %vm542_vm4, %v10367_v37, %v10368_v33 }
 0x38d   :  { %v1954_v17 = vadd.f32 %v1937_v31, %v1896_v41  ;;  %v10373_v41 = vunpack.i.h.bf16 %v12047_v24  ;;  %v10372_v3 = vunpack.i.l.bf16 %v12047_v24  ;;  %v1963_v24 = vld [vmem:[#allocation13 + $0x30] sm:$0xff] }
 0x38f   :  { %9911 = vmatpush3.bf16.msra.mxu1 %v16336_v19  ;;  %v1983_v5 = vrot.slane %v1954_v17, 3  ;;  %v1161_v49 = vsel %vm542_vm4, %v10372_v3, %v10373_v41  ;;  %v9940_v17 = vpack.c.bf16 %v1964_v47, %v1963_v24 }
 0x390   :  { %v10376_v34 = vpop.permute.xlu1 %10375  ;;  %v1935_v6 = vpop.permute.xlu0 %1934  ;;  %9913 = vmatprep.subr.bf16.mxu1 %v16337_v57 }
 0x391   :  { %v1943_v26 = vsel %vm317_vm15, %v1935_v6, %v1937_v31  ;;  %v1984_v10 = vsel %vm499_vm1, %v1982_v8, %v1983_v5  ;;  %v10378_v31 = vunpack.i.h.bf16 %v10376_v34  ;;  %v10377_v38 = vunpack.i.l.bf16 %v10376_v34  ;;  %v1967_v34 = vld [vmem:[#allocation13 + $0x50] sm:$0xff]  ;;  %v1968_v6 = vld [vmem:[#allocation13 + $0x58] sm:$0xff] }
 0x392   :  { %v1953_v40 = vadd.f32 %v1943_v26, %v1895_v35  ;;  %v1966_v35 = vld [vmem:[#allocation13 + $0x48] sm:$0xff]  ;;  %v9948_v7 = vpack.c.bf16 %v1968_v6, %v1967_v34 }
 0x393   :  { %9915 = vmatpush3.bf16.msra.mxu1 %v16337_v57  ;;  %v1162_v21 = vsel %vm542_vm4, %v10377_v38, %v10378_v31  ;;  %v9944_v39 = vpack.c.bf16 %v1966_v35, %v1965_v20  ;;  %v1970_v26 = vld [vmem:[#allocation13 + $0x68] sm:$0xff]  ;;  %v1276_v35 = vstv %s8834_s8 }
 0x394   :  { %v1980_v56 = vrot.slane %v1953_v40, 3  ;;  %v1941_v32 = vpop.permute.xlu1 %1940  ;;  %v1939_v59 = vpop.permute.xlu0 %1938  ;;  %9917 = vmatprep.subr.bf16.mxu1 %v16338_v11  ;;  %v9952_v44 = vpack.c.bf16 %v1970_v26, %v1969_v43  ;;  %v1972_v40 = vld [vmem:[#allocation13 + $0x78] sm:$0xff] }
 0x395   :  { %v1956_v2 = vadd.f32 %v1941_v32, %v1898_v50  ;;  %v1944_v25 = vsel %vm317_vm15, %v1939_v59, %v1941_v32 }
 0x396   :  { %v1981_v42 = vsel %vm499_vm1, %v1979_v4, %v1980_v56  ;;  %v1955_v29 = vadd.f32 %v1944_v25, %v1897_v52 }
 0x397   :  { %v1987_v18 = vrot.slane %v1956_v2, 3  ;;  %9919 = vmatpush3.bf16.msra.mxu1 %v16338_v11  ;;  %v10379_v61 = vpack.i.bf16 %v1984_v10, %v1981_v42 }
 0x398   :  { %v1985_v0 = vrot.slane %v1955_v29, 3  ;;  %9921 = vmatprep.subr.bf16.mxu1 %v16339_v15 }
 0x399   :  { %10380 = vrot.lane.b32.xlu0 %v10379_v61, %s10745_s29  ;;  %v1988_v13 = vsel %vm499_vm1, %v1983_v5, %v1987_v18  ;;  %v1971_v5 = vld [vmem:[#allocation13 + $0x70] sm:$0xff] }
 0x39a   :  { %v1986_v27 = vsel %vm499_vm1, %v1980_v56, %v1985_v0  ;;  %v9956_v50 = vpack.c.bf16 %v1972_v40, %v1971_v5 }
 0x39b   :  { %9923 = vmatpush3.bf16.msra.mxu1 %v16339_v15  ;;  %v10384_v62 = vpack.i.bf16 %v1988_v13, %v1986_v27 }
 0x39c   :  { %9925 = vmatprep.subr.bf16.mxu1 %v16340_v12 }
 0x39d   :  { %10385 = vrot.lane.b32.xlu1 %v10384_v62, %s10745_s29 }
 0x39f   :  { %9927 = vmatpush3.bf16.msra.mxu1 %v16340_v12 }
 0x3a0   :  { %9929 = vmatprep.subr.bf16.mxu1 %v9928_v45 }
 0x3a2   :  { %9351 = vmatmul.mubr.f32.vlgmr.msra.gmra.mrb[4].mxu1 %v1160_v14 }
 0x3a3   :  { %9353 = vmatprep.mubr.f32.mxu1 %v1161_v49  ;;  %9931 = vmatpush3.bf16.msra.mxu1 %v9928_v45 }
 0x3a4   :  { %9933 = vmatprep.subr.bf16.mxu1 %v9932_v58 }
 0x3a6   :  { %9354 = vmatmul.mubr.f32.gmra.mrb[6].mxu1 %v1162_v21 }
 0x3a7   :  { %9935 = vmatpush3.bf16.msra.mxu1 %v9932_v58 }
 0x3a8   :  { %9937 = vmatprep.subr.bf16.mxu1 %v9936_v28 }
 0x3ab   :  { %9939 = vmatpush3.bf16.msra.mxu1 %v9936_v28 }
 0x3ac   :  { %9941 = vmatprep.subr.bf16.mxu1 %v9940_v17 }
 0x3af   :  { %9943 = vmatpush3.bf16.msra.mxu1 %v9940_v17 }
 0x3b0   :  { %9945 = vmatprep.subr.bf16.mxu1 %v9944_v39 }
 0x3b3   :  { %9947 = vmatpush3.bf16.msra.mxu1 %v9944_v39 }
 0x3b4   :  { %9949 = vmatprep.subr.bf16.mxu1 %v9948_v7 }
 0x3b7   :  { %9951 = vmatpush3.bf16.msra.mxu1 %v9948_v7 }
 0x3b8   :  { %9953 = vmatprep.subr.bf16.mxu1 %v9952_v44 }
 0x3bb   :  { %9955 = vmatpush3.bf16.msra.mxu1 %v9952_v44 }
 0x3bc   :  { %9957 = vmatprep.subr.bf16.mxu1 %v9956_v50 }
 0x3bf   :  { %9959 = vmatpush3.bf16.msra.mxu1 %v9956_v50 }
 0x3c0   :  { %9439 = vmatprep.subr.mxu1 %v16323_v9 }
 0x40b   :  { %v10381_v8 = vpop.permute.xlu0 %10380 }
 0x40c   :  { %v10383_v52 = vunpack.i.h.bf16 %v10381_v8  ;;  %v10382_v4 = vunpack.i.l.bf16 %v10381_v8 }
 0x40e   :  { %v1997_v56 = vsel %vm542_vm4, %v10382_v4, %v10383_v52 }
 0x40f   :  { %v10386_v32 = vpop.permute.xlu1 %10385  ;;  %9398 = vmatprep.mubr.f32.mxu1 %v1997_v56 }
 0x410   :  { %v10388_v59 = vunpack.i.h.bf16 %v10386_v32  ;;  %v10387_v2 = vunpack.i.l.bf16 %v10386_v32 }
 0x412   :  { %v1998_v25 = vsel %vm542_vm4, %v10387_v2, %v10388_v59 }
 0x413   :  { %9399 = vmatmul.mubr.f32.vlgmr.msra.gmra.mrb[8].mxu1 %v1998_v25 }
 0x414   :  { %9440 = vmatpush3.msk.msra.mxu1 %vm243_vm0, %v11739_v46  ;;  %9441 = vmatprep.mubr.msk.f32.mxu1 %vm10748_vm6, %v16323_v9 }
 0x415   :  { %9444 = vmatprep.subr.mxu1 %v16323_v9 }
 0x451   :  { %v12095_v42 = vpop.f32.mrb[0].mxu1 }
 0x452   :  { %16341 = vst [vmem:[#allocation47_spill] sm:$0xff] %v12095_v42  ;;  %v9312_v29 = vpop.f32.mrb[1].mxu1 }
 0x455   :  { %v12097_v10 = vpop.f32.mrb[2].mxu1 }
 0x456   :  { %16342 = vst [vmem:[#allocation48_spill] sm:$0xff] %v12097_v10  ;;  %v9317_v18 = vpop.f32.mrb[3].mxu1  ;;  %v10000_v10 = vpack.c.bf16 %v2814_v54, %v2813_v55 }
 0x475   :  { %v9352_v61 = vpop.f32.mrb[4].mxu1 }
 0x476   :  { %v1253_v0 = vsel %vm636_vm8, %v9352_v61, 0.0  ;;  %v1233_v13 = vpop.f32.mrb[5].mxu1 }
 0x477   :  { %v1252_v30 = vsel %vm636_vm8, %v1233_v13, 0.0 }
 0x478   :  { %v1254_v51 = vadd.f32 %v1253_v0, %v1252_v30 }
 0x479   :  { %v9355_v27 = vpop.f32.mrb[6].mxu1 }
 0x47a   :  { %v1255_v62 = vrot.slane %v1254_v51, 4  ;;  %v1263_v45 = vsel %vm636_vm8, %v9355_v27, 0.0  ;;  %v1243_v33 = vpop.f32.mrb[7].mxu1 }
 0x47b   :  { %v1262_v37 = vsel %vm636_vm8, %v1243_v33, 0.0 }
 0x47c   :  { %v1256_v48 = vadd.f32 %v1255_v62, %v1254_v51  ;;  %v1264_v22 = vadd.f32 %v1263_v45, %v1262_v37 }
 0x47e   :  { %v1257_v41 = vrot.slane %v1256_v48, 2  ;;  %v1265_v3 = vrot.slane %v1264_v22, 4 }
 0x480   :  { %v1258_v58 = vadd.f32 %v1257_v41, %v1256_v48  ;;  %v1266_v31 = vadd.f32 %v1265_v3, %v1264_v22 }
 0x482   :  { %v1259_v38 = vrot.slane %v1258_v58, 1  ;;  %v1267_v14 = vrot.slane %v1266_v31, 2 }
 0x484   :  { %v1260_v63 = vadd.f32 %v1259_v38, %v1258_v58  ;;  %v1268_v1 = vadd.f32 %v1267_v14, %v1266_v31 }
 0x486   :  { %v1261_v49 = vmul.f32 0.001953125, %v1260_v63  ;;  %v1269_v28 = vrot.slane %v1268_v1, 1 }
 0x488   :  { %v1270_v21 = vadd.f32 %v1269_v28, %v1268_v1  ;;  %v1272_v24 = vmul.f32 %v1261_v49, %v1261_v49  ;;  %v8859_v28 = vld [vmem:[#allocation14 + $0x5] ss:$0 sm:$0xff] }
 0x48a   :  { %v1271_v47 = vmul.f32 0.001953125, %v1270_v21  ;;  %v8858_v21 = vld [vmem:[#allocation14 + $0x4] ss:$0 sm:$0xff] }
 0x48c   :  { %v1273_v17 = vsub.f32 %v1271_v47, %v1272_v24  ;;  %v8862_v24 = vld [vmem:[#allocation14 + $0x8] ss:$0 sm:$0xff]  ;;  %v8861_v47 = vld [vmem:[#allocation14 + $0x7] ss:$0 sm:$0xff] }
 0x48e   :  { %v1274_v20 = vadd.f32 1e-05, %v1273_v17  ;;  %v813_v17 = vlaneseq }
 0x490   :  { %10431 = vrsqrt.f32 %v1274_v20  ;;  %v814_v20 = vshrl.u32 %v813_v17, 7 }
 0x49a   :  { %v10432_v39 = vpop.eup %10431 }
 0x49b   :  { %v1277_v34 = vmul.f32 %v10432_v39, %v1276_v35  ;;  %v12171_v35 = vsub.s32 0, %v814_v20 }
 0x49d   :  { %9359 = vmatmul.mubr.msk.f32.vlgmr.msra.gmra.mrb[4].mxu0 %vm636_vm8, %v1277_v34  ;;  %v1351_v6 = vmul.f32 %v1277_v34, %v1261_v49  ;;  %v8855_v49 = vld [vmem:[#allocation14 + $0x1] ss:$0 sm:$0xff]  ;;  %16345 = vst [vmem:[#allocation54_spill] sm:$0xff] %v12171_v35 }
 0x49e   :  { %9362 = vmatpush3.msk.msra.mxu0 %vm243_vm0, %v11739_v46  ;;  %9363 = vmatprep.mubr.msk.f32.mxu0 %vm10748_vm6, %v16323_v9 }
 0x49f   :  { %9961 = vmatprep.subr.bf16.mxu0 %v16333_v53  ;;  %2401 = vrot.lane.b32.xlu1 %v8855_v49, %s10741_s22 }
 0x4a1   :  { %9364 = vmatmul.mubr.msk.f32.vlgmr.msra.gmra.mrb[6].mxu0 %vm636_vm8, %v1351_v6 }
 0x4a2   :  { %9963 = vmatpush3.bf16.msra.mxu0 %v16333_v53 }
 0x4a3   :  { %9965 = vmatprep.subr.bf16.mxu0 %v16334_v23  ;;  %2540 = vrot.lane.b32.xlu1 %v8858_v21, %s10741_s22 }
 0x4a6   :  { %9967 = vmatpush3.bf16.msra.mxu0 %v16334_v23 }
 0x4a7   :  { %9969 = vmatprep.subr.bf16.mxu0 %v16335_v36  ;;  %2699 = vrot.lane.b32.xlu1 %v8861_v47, %s10741_s22 }
 0x4aa   :  { %9971 = vmatpush3.bf16.msra.mxu0 %v16335_v36 }
 0x4ab   :  { %9973 = vmatprep.subr.bf16.mxu0 %v16336_v19 }
 0x4ae   :  { %9975 = vmatpush3.bf16.msra.mxu0 %v16336_v19 }
 0x4af   :  { %9977 = vmatprep.subr.bf16.mxu0 %v16337_v57 }
 0x4b2   :  { %9979 = vmatpush3.bf16.msra.mxu0 %v16337_v57 }
 0x4b3   :  { %9981 = vmatprep.subr.bf16.mxu0 %v16338_v11 }
 0x4b6   :  { %9983 = vmatpush3.bf16.msra.mxu0 %v16338_v11 }
 0x4b7   :  { %9985 = vmatprep.subr.bf16.mxu0 %v16339_v15 }
 0x4ba   :  { %9987 = vmatpush3.bf16.msra.mxu0 %v16339_v15 }
 0x4bb   :  { %9989 = vmatprep.subr.bf16.mxu0 %v16340_v12 }
 0x4be   :  { %9991 = vmatpush3.bf16.msra.mxu0 %v16340_v12 }
 0x4e6   :  { %v12125_v7 = vpop.f32.mrb[8].mxu1 }
 0x4e7   :  { %v12127_v43 = vpop.f32.mrb[9].mxu1  ;;  %v2077_v44 = vmul.f32 %v12125_v7, %v12125_v7 }
 0x4e8   :  { %v2076_v26 = vmul.f32 %v12127_v43, %v12127_v43  ;;  %9433 = vmatprep.mubr.f32.mxu0 %v12127_v43 }
 0x4e9   :  { %9434 = vmatmul.mubr.f32.vlgmr.msra.gmra.mrb[8].mxu0 %v12125_v7 }
 0x4ea   :  { %9436 = vmatprep.mubr.f32.mxu0 %v2076_v26 }
 0x4ed   :  { %9437 = vmatmul.mubr.f32.gmra.mrb[10].mxu0 %v2077_v44 }
 0x570   :  { %v12135_v5 = vpop.f32.mrb[4].mxu0 }
 0x571   :  { %16343 = vst [vmem:[#allocation49_spill] sm:$0xff] %v12135_v5  ;;  %v9360_v40 = vpop.f32.mrb[5].mxu0 }
 0x574   :  { %v12137_v50 = vpop.f32.mrb[6].mxu0 }
 0x575   :  { %16344 = vst [vmem:[#allocation50_spill] sm:$0xff] %v12137_v50  ;;  %v9365_v8 = vpop.f32.mrb[7].mxu0 }
 0x5bc   :  { %v9435_v52 = vpop.f32.mrb[8].mxu0 }
 0x5bd   :  { %v2164_v4 = vsel %vm636_vm8, %v9435_v52, 0.0  ;;  %v2144_v56 = vpop.f32.mrb[9].mxu0 }
 0x5be   :  { %v2163_v32 = vsel %vm636_vm8, %v2144_v56, 0.0 }
 0x5bf   :  { %v2165_v59 = vadd.f32 %v2164_v4, %v2163_v32 }
 0x5c0   :  { %v9438_v2 = vpop.f32.mrb[10].mxu0 }
 0x5c1   :  { %v2166_v25 = vrot.slane %v2165_v59, 4  ;;  %v2174_v29 = vsel %vm636_vm8, %v9438_v2, 0.0  ;;  %v2154_v18 = vpop.f32.mrb[11].mxu0 }
 0x5c2   :  { %v2173_v61 = vsel %vm636_vm8, %v2154_v18, 0.0  ;;  %v8854_v18 = vld [vmem:[#allocation14] ss:$0 sm:$0xff] }
 0x5c3   :  { %v2167_v0 = vadd.f32 %v2166_v25, %v2165_v59  ;;  %v2175_v13 = vadd.f32 %v2174_v29, %v2173_v61  ;;  %v8869_v61 = vld [vmem:[#allocation17 + $0x1] ss:$0 sm:$0xff] }
 0x5c5   :  { %v2168_v30 = vrot.slane %v2167_v0, 2  ;;  %v2176_v51 = vrot.slane %v2175_v13, 4 }
 0x5c7   :  { %v2169_v27 = vadd.f32 %v2168_v30, %v2167_v0  ;;  %v2177_v62 = vadd.f32 %v2176_v51, %v2175_v13  ;;  %v8870_v0 = vld [vmem:[#allocation17 + $0x2] ss:$0 sm:$0xff]  ;;  %v8871_v13 = vld [vmem:[#allocation17 + $0x3] ss:$0 sm:$0xff]  ;;  %v2402_v51 = vpop.permute.xlu1 %2401 }
 0x5c9   :  { %v2170_v45 = vrot.slane %v2169_v27, 1  ;;  %v2178_v33 = vrot.slane %v2177_v62, 2 }
 0x5cb   :  { %v2171_v37 = vadd.f32 %v2170_v45, %v2169_v27  ;;  %v2179_v48 = vadd.f32 %v2178_v33, %v2177_v62  ;;  %v12189_v62 = vpop.permute.xlu1 %2540 }
 0x5cd   :  { %v2172_v22 = vmul.f32 0.001953125, %v2171_v37  ;;  %v2180_v41 = vrot.slane %v2179_v48, 1 }
 0x5cf   :  { %v2181_v3 = vadd.f32 %v2180_v41, %v2179_v48  ;;  %v2183_v58 = vmul.f32 %v2172_v22, %v2172_v22  ;;  %v12193_v33 = vpop.permute.xlu1 %2699 }
 0x5d1   :  { %v2182_v31 = vmul.f32 0.001953125, %v2181_v3 }
 0x5d3   :  { %v2184_v38 = vsub.f32 %v2182_v31, %v2183_v58 }
 0x5d5   :  { %v2185_v14 = vadd.f32 1e-05, %v2184_v38 }
 0x5d7   :  { %10433 = vrsqrt.f32 %v2185_v14 }
 0x5e1   :  { %v10434_v63 = vpop.eup %10433 }
 0x5e2   :  { %9442 = vmatmul.mubr.msk.f32.vlgmr.msra.gmra.mrb[10].mxu1 %vm636_vm8, %v10434_v63  ;;  %v2260_v1 = vmul.f32 %v10434_v63, %v2172_v22 }
 0x5e3   :  { %9445 = vmatpush3.msk.msra.mxu1 %vm243_vm0, %v11739_v46  ;;  %9446 = vmatprep.mubr.msk.f32.mxu1 %vm10748_vm6, %v16323_v9  ;;  %v8856_v46 = vld [vmem:[#allocation14 + $0x2] ss:$0 sm:$0xff] }
 0x5e4   :  { %10025 = vmatprep.subr.bf16.mxu1 %v16333_v53  ;;  %2449 = vrot.lane.b32.xlu0 %v8856_v46, %s10746_s28 }
 0x5e6   :  { %9447 = vmatmul.mubr.msk.f32.vlgmr.msra.gmra.mrb[12].mxu1 %vm636_vm8, %v2260_v1 }
 0x5e7   :  { %10027 = vmatpush3.bf16.msra.mxu1 %v16333_v53 }
 0x5e8   :  { %10029 = vmatprep.subr.bf16.mxu1 %v16334_v23  ;;  %2598 = vrot.lane.b32.xlu0 %v8859_v28, %s10746_s28 }
 0x5eb   :  { %10031 = vmatpush3.bf16.msra.mxu1 %v16334_v23 }
 0x5ec   :  { %10033 = vmatprep.subr.bf16.mxu1 %v16335_v36  ;;  %2757 = vrot.lane.b32.xlu0 %v8862_v24, %s10746_s28 }
 0x5ef   :  { %10035 = vmatpush3.bf16.msra.mxu1 %v16335_v36 }
 0x5f0   :  { %10037 = vmatprep.subr.bf16.mxu1 %v16336_v19 }
 0x5f3   :  { %10039 = vmatpush3.bf16.msra.mxu1 %v16336_v19  ;;  %v2816_v19 = vld [vmem:[#allocation16 + $0x38] sm:$0xff] }
 0x5f4   :  { %10041 = vmatprep.subr.bf16.mxu1 %v16337_v57 }
 0x5f7   :  { %10043 = vmatpush3.bf16.msra.mxu1 %v16337_v57 }
 0x5f8   :  { %10045 = vmatprep.subr.bf16.mxu1 %v16338_v11 }
 0x5fb   :  { %10047 = vmatpush3.bf16.msra.mxu1 %v16338_v11 }
 0x5fc   :  { %10049 = vmatprep.subr.bf16.mxu1 %v16339_v15 }
 0x5ff   :  { %10051 = vmatpush3.bf16.msra.mxu1 %v16339_v15 }
 0x600   :  { %10053 = vmatprep.subr.bf16.mxu1 %v16340_v12 }
 0x603   :  { %10055 = vmatpush3.bf16.msra.mxu1 %v16340_v12 }
 0x656   :  { %v2450_v30 = vpop.permute.xlu0 %2449 }
 0x65a   :  { %v12187_v27 = vpop.permute.xlu0 %2598 }
 0x65e   :  { %v12191_v45 = vpop.permute.xlu0 %2757 }
 0x6b5   :  { %v2256_v39 = vpop.f32.mrb[10].mxu1 }
 0x6b6   :  { %v2337_v34 = vrot.slane %v2256_v39, %v12171_v35  ;;  %v9443_v6 = vpop.f32.mrb[11].mxu1 }
 0x6b8   :  { %v2338_v26 = vmul.f32 %v2337_v34, %v12127_v43  ;;  %v2339_v44 = vmul.f32 %v12125_v7, %v2337_v34  ;;  %v8857_v7 = vld [vmem:[#allocation14 + $0x3] ss:$0 sm:$0xff]  ;;  %v8860_v43 = vld [vmem:[#allocation14 + $0x6] ss:$0 sm:$0xff] }
 0x6b9   :  { %v2330_v40 = vpop.f32.mrb[12].mxu1 }
 0x6ba   :  { %v2343_v8 = vrot.slane %v2330_v40, %v12171_v35  ;;  %v9448_v52 = vpop.f32.mrb[13].mxu1 }
 0x6bc   :  { %v2344_v4 = vsub.f32 %v2338_v26, %v2343_v8  ;;  %v2345_v56 = vsub.f32 %v2339_v44, %v2343_v8 }
 0x6be   :  { %v2346_v32 = vmax.f32 %v2344_v4, 0.0  ;;  %v2347_v59 = vmax.f32 %v2345_v56, 0.0 }
 0x6c0   :  { %v2350_v2 = vrot.slane %v2346_v32, 4  ;;  %v2351_v25 = vrot.slane %v2347_v59, 4 }
 0x6c2   :  { %2353 = vrot.lane.b32.xlu0 %v2350_v2, %s10741_s22  ;;  %v2352_v29 = vsel %vm243_vm0, %v2350_v2, %v2351_v25 }
 0x6c3   :  { %2355 = vrot.lane.b32.xlu1 %v2352_v29, %s10741_s22 }
 0x6c6   :  { %2357 = vrot.lane.b32.xlu0 %v2351_v25, %s10741_s22 }
 0x6c7   :  { %2380 = vrot.lane.b32.xlu1 %v8854_v18, %s10747_s9 }
 0x6ca   :  { %2497 = vrot.lane.b32.xlu0 %v8857_v7, %s10747_s9 }
 0x6cb   :  { %2656 = vrot.lane.b32.xlu1 %v8860_v43, %s10747_s9 }
 0x6ce   :  { %3254 = vrot.lane.b32.xlu0 %v8869_v61, %s10747_s9 }
 0x6cf   :  { %3302 = vrot.lane.b32.xlu1 %v8870_v0, %s10741_s22 }
 0x6d2   :  { %3350 = vrot.lane.b32.xlu0 %v8871_v13, %s10746_s28 }
 0x734   :  { %v2354_v37 = vpop.permute.xlu0 %2353 }
 0x735   :  { %2362 = vst.msk [vmem:[#allocation3] sm:$0xf0] %vm256_vm9, %v2354_v37  ;;  %v2356_v48 = vpop.permute.xlu1 %2355 }
 0x736   :  { %2363 = vst.msk [vmem:[#allocation3 + $0x8] sm:$0xf0] %vm229_vm3, %v2354_v37 }
 0x737   :  { %2364 = vst.msk [vmem:[#allocation3 + $0x10] sm:$0xff] %vm259_vm11, %v2356_v48 }
 0x738   :  { %2365 = vst.msk [vmem:[#allocation3 + $0x18] sm:$0xff] %vm231_vm7, %v2356_v48  ;;  %v2358_v22 = vpop.permute.xlu0 %2357 }
 0x739   :  { %2366 = vst.msk [vmem:[#allocation3 + $0x20] sm:$0xf] %vm262_vm10, %v2358_v22 }
 0x73a   :  { %2367 = vst.msk [vmem:[#allocation3 + $0x28] sm:$0xf] %vm16198_vm5, %v2358_v22  ;;  %vm3425_vm5 = vcmask 785408  }
 0x73c   :  { %v12201_v41 = vld [vmem:[#allocation3] sm:$0xff] }
 0x73d   :  { %v12203_v3 = vld [vmem:[#allocation3 + $0x8] sm:$0xff]  ;;  %v2404_v58 = vmul.f32 %v2402_v51, %v12201_v41  ;;  %v2452_v49 = vmul.f32 %v2450_v30, %v12201_v41  ;;  %v2543_v7 = vmul.f32 %v12189_v62, %v12201_v41 }
 0x73e   :  { %v2405_v31 = vmul.f32 %v2402_v51, %v12203_v3  ;;  %v2453_v46 = vmul.f32 %v2450_v30, %v12203_v3  ;;  %v12225_v47 = vld [vmem:[#allocation3 + $0x10] sm:$0xff]  ;;  %v2544_v61 = vmul.f32 %v12189_v62, %v12203_v3 }
 0x73f   :  { %2416 = vrot.lane.b32.xlu0 %v2404_v58, %s10743_s3  ;;  %v12223_v24 = vld [vmem:[#allocation3 + $0x18] sm:$0xff]  ;;  %v2406_v20 = vmul.f32 %v2402_v51, %v12225_v47  ;;  %v2454_v39 = vmul.f32 %v2450_v30, %v12225_v47  ;;  %v2545_v43 = vmul.f32 %v12189_v62, %v12225_v47  ;;  %v2602_v58 = vmul.f32 %v12187_v27, %v12203_v3 }
 0x740   :  { %2418 = vrot.lane.b32.xlu1 %v2405_v31, %s10743_s3  ;;  %v12211_v14 = vld [vmem:[#allocation3 + $0x20] sm:$0xff]  ;;  %v2407_v17 = vmul.f32 %v2402_v51, %v12223_v24  ;;  %v2455_v34 = vmul.f32 %v2450_v30, %v12223_v24  ;;  %v2546_v0 = vmul.f32 %v12189_v62, %v12223_v24  ;;  %v2558_v48 = vrot.slane %v2544_v61, 1 }
 0x741   :  { %v12209_v38 = vld [vmem:[#allocation3 + $0x28] sm:$0xff]  ;;  %v2408_v1 = vmul.f32 %v2402_v51, %v12211_v14  ;;  %v2456_v21 = vmul.f32 %v2450_v30, %v12211_v14  ;;  %v2547_v26 = vmul.f32 %v12189_v62, %v12211_v14  ;;  %v2605_v52 = vmul.f32 %v12187_v27, %v12211_v14 }
 0x742   :  { %v2409_v63 = vmul.f32 %v2402_v51, %v12209_v38  ;;  %v2457_v28 = vmul.f32 %v2450_v30, %v12209_v38  ;;  %v2548_v6 = vmul.f32 %v12189_v62, %v12209_v38  ;;  %v2606_v8 = vmul.f32 %v12187_v27, %v12209_v38 }
 0x743   :  { %v2561_v40 = vrot.slane %v2547_v26, 1  ;;  %v2619_v56 = vrot.slane %v2605_v52, 1  ;;  %v12249_v32 = vmul.f32 %v12193_v33, %v12209_v38  ;;  %v12253_v59 = vmul.f32 %v12193_v33, %v12211_v14 }
 0x744   :  { %2426 = vrot.lane.b32.xlu0 %v2409_v63, %s10743_s3  ;;  %2424 = vrot.lane.b32.xlu1 %v2408_v1, %s10743_s3  ;;  %v2563_v44 = vrot.slane %v2548_v6, 1  ;;  %v2621_v4 = vrot.slane %v2606_v8, 1  ;;  %v12261_v29 = vmul.f32 %v12191_v45, %v12209_v38  ;;  %v12265_v18 = vmul.f32 %v12191_v45, %v12211_v14 }
 0x745   :  { %v2722_v2 = vrot.slane %v12249_v32, 2  ;;  %v2720_v25 = vrot.slane %v12253_v59, 2  ;;  %v2555_v51 = vrot.slane %v2543_v7, 1  ;;  %v2556_v37 = vrot.slane %v2545_v43, 1 }
 0x746   :  { %v2780_v13 = vrot.slane %v12261_v29, 2  ;;  %v2778_v30 = vrot.slane %v12265_v18, 2  ;;  %v2559_v22 = vrot.slane %v2546_v0, 1  ;;  %v2604_v62 = vmul.f32 %v12187_v27, %v12223_v24 }
 0x747   :  { %v2557_v31 = vsel %vm333_vm12, %v2555_v51, %v2556_v37  ;;  %v2601_v1 = vmul.f32 %v12187_v27, %v12201_v41  ;;  %v2705_v26 = vmul.f32 %v12193_v33, %v12223_v24  ;;  %v2761_v7 = vmul.f32 %v12191_v45, %v12203_v3 }
 0x748   :  { %2466 = vrot.lane.b32.xlu0 %v2453_v46, %s10744_s4  ;;  %2464 = vrot.lane.b32.xlu1 %v2452_v49, %s10744_s4  ;;  %v2560_v63 = vsel %vm333_vm12, %v2558_v48, %v2559_v22  ;;  %v2603_v46 = vmul.f32 %v12187_v27, %v12225_v47  ;;  %v2616_v49 = vrot.slane %v2602_v58, 1  ;;  %v2703_v27 = vmul.f32 %v12193_v33, %v12203_v3 }
 0x749   :  { %v2718_v59 = vrot.slane %v2705_v26, 2  ;;  %v2762_v61 = vmul.f32 %v12191_v45, %v12225_v47  ;;  %v2775_v0 = vrot.slane %v2761_v7, 2  ;;  %v8890_v26 = vld [vmem:[#allocation17 + $0x16] ss:$0 sm:$0xff] }
 0x74a   :  { %v2717_v32 = vrot.slane %v2703_v27, 2  ;;  %v8889_v27 = vld [vmem:[#allocation17 + $0x15] ss:$0 sm:$0xff] }
 0x74b   :  { %v2773_v58 = vrot.slane %v2762_v61, 2  ;;  %v12364_v7 = vld [vmem:[#allocation2 + $0x8] sm:$0xff] }
 0x74c   :  { %2474 = vrot.lane.b32.xlu0 %v2457_v28, %s10744_s4  ;;  %2472 = vrot.lane.b32.xlu1 %v2456_v21, %s10744_s4  ;;  %v2617_v28 = vrot.slane %v2604_v62, 1  ;;  %v2562_v21 = vsel %vm333_vm12, %v2556_v37, %v2561_v40  ;;  %v2719_v43 = vsel %vm410_vm13, %v2717_v32, %v2718_v59  ;;  %v2723_v37 = vsel %vm410_vm13, %v2718_v59, %v2722_v2 }
 0x74e   :  { %v2622_v8 = vsel %vm333_vm12, %v2617_v28, %v2621_v4 }
 0x750   :  { %2422 = vrot.lane.b32.xlu1 %v2407_v17, %s10743_s3  ;;  %2420 = vrot.lane.b32.xlu0 %v2406_v20, %s10743_s3  ;;  %v2564_v17 = vsel %vm333_vm12, %v2559_v22, %v2563_v44  ;;  %v2613_v20 = vrot.slane %v2601_v1, 1  ;;  %v8875_v1 = vld [vmem:[#allocation17 + $0x7] ss:$0 sm:$0xff] }
 0x754   :  { %2468 = vrot.lane.b32.xlu1 %v2454_v39, %s10744_s4  ;;  %2470 = vrot.lane.b32.xlu0 %v2455_v34, %s10744_s4  ;;  %v2614_v39 = vrot.slane %v2603_v46, 1  ;;  %v2618_v34 = vsel %vm333_vm12, %v2616_v49, %v2617_v28  ;;  %v8876_v46 = vld [vmem:[#allocation17 + $0x8] ss:$0 sm:$0xff]  ;;  %v8879_v49 = vld [vmem:[#allocation17 + $0xb] ss:$0 sm:$0xff] }
 0x755   :  { %v8881_v28 = vld [vmem:[#allocation17 + $0xd] ss:$0 sm:$0xff] }
 0x756   :  { %v2615_v6 = vsel %vm333_vm12, %v2613_v20, %v2614_v39  ;;  %v2620_v52 = vsel %vm333_vm12, %v2614_v39, %v2619_v56  ;;  %v8885_v20 = vld [vmem:[#allocation17 + $0x11] ss:$0 sm:$0xff]  ;;  %v8886_v39 = vld [vmem:[#allocation17 + $0x12] ss:$0 sm:$0xff] }
 0x758   :  { %2575 = vrot.lane.b32.xlu1 %v2563_v44, %s10743_s3  ;;  %2573 = vrot.lane.b32.xlu0 %v2561_v40, %s10743_s3  ;;  %v2702_v40 = vmul.f32 %v12193_v33, %v12201_v41  ;;  %v2704_v44 = vmul.f32 %v12193_v33, %v12225_v47  ;;  %v2763_v33 = vmul.f32 %v12191_v45, %v12223_v24 }
 0x75a   :  { %v2714_v29 = vrot.slane %v2702_v40, 2  ;;  %v2715_v18 = vrot.slane %v2704_v44, 2  ;;  %v2776_v51 = vrot.slane %v2763_v33, 2  ;;  %v8891_v40 = vld [vmem:[#allocation17 + $0x17] ss:$0 sm:$0xff]  ;;  %v12353_v44 = vpop.permute.xlu1 %2380 }
 0x75b   :  { %v2383_v60 = vmul.f32 %v12353_v44, %v12201_v41  ;;  %v2384_v16 = vmul.f32 %v12353_v44, %v12203_v3  ;;  %v2388_v50 = vmul.f32 %v12353_v44, %v12209_v38  ;;  %v2387_v5 = vmul.f32 %v12353_v44, %v12211_v14 }
 0x75c   :  { %2633 = vrot.lane.b32.xlu1 %v2621_v4, %s10744_s4  ;;  %2631 = vrot.lane.b32.xlu0 %v2619_v56, %s10744_s4  ;;  %v2716_v4 = vsel %vm410_vm13, %v2714_v29, %v2715_v18  ;;  %v2760_v56 = vmul.f32 %v12191_v45, %v12201_v41  ;;  %v2721_v48 = vsel %vm410_vm13, %v2715_v18, %v2720_v25  ;;  %v12361_v29 = vld [vmem:[#allocation2] sm:$0xff] }
 0x75d   :  { %v2777_v62 = vsel %vm410_vm13, %v2775_v0, %v2776_v51  ;;  %v12374_v0 = vld [vmem:[#allocation2 + $0x18] sm:$0xff]  ;;  %v2385_v42 = vmul.f32 %v12353_v44, %v12225_v47 }
 0x75e   :  { %v2772_v22 = vrot.slane %v2760_v56, 2  ;;  %v12357_v59 = vpop.permute.xlu1 %2656  ;;  %v12371_v56 = vld [vmem:[#allocation2 + $0x10] sm:$0xff] }
 0x75f   :  { %v12496_v54 = vmul.f32 %v12357_v59, %v12201_v41 }
 0x760   :  { %2734 = vrot.lane.b32.xlu1 %v2722_v2, %s10743_s3  ;;  %2732 = vrot.lane.b32.xlu0 %v2720_v25, %s10743_s3  ;;  %v2774_v45 = vsel %vm410_vm13, %v2772_v22, %v2773_v58  ;;  %v2779_v2 = vsel %vm410_vm13, %v2773_v58, %v2778_v30  ;;  %v8872_v25 = vld [vmem:[#allocation17 + $0x4] ss:$0 sm:$0xff]  ;;  %v12383_v22 = vld [vmem:[#allocation2 + $0x20] sm:$0xff] }
 0x764   :  { %2792 = vrot.lane.b32.xlu1 %v2780_v13, %s10744_s4  ;;  %2790 = vrot.lane.b32.xlu0 %v2778_v30, %s10744_s4  ;;  %v8880_v30 = vld [vmem:[#allocation17 + $0xc] ss:$0 sm:$0xff] }
 0x768   :  { %2565 = vrot.lane.b32.xlu1 %v2557_v31, %s10743_s3  ;;  %2567 = vrot.lane.b32.xlu0 %v2560_v63, %s10743_s3  ;;  %v2781_v31 = vsel %vm410_vm13, %v2776_v51, %v2780_v13  ;;  %v8874_v63 = vld [vmem:[#allocation17 + $0x6] ss:$0 sm:$0xff]  ;;  %v8877_v13 = vld [vmem:[#allocation17 + $0x9] ss:$0 sm:$0xff] }
 0x76c   :  { %2569 = vrot.lane.b32.xlu1 %v2562_v21, %s10743_s3  ;;  %2571 = vrot.lane.b32.xlu0 %v2564_v17, %s10743_s3  ;;  %v8882_v21 = vld [vmem:[#allocation17 + $0xe] ss:$0 sm:$0xff]  ;;  %v8884_v17 = vld [vmem:[#allocation17 + $0x10] ss:$0 sm:$0xff] }
 0x770   :  { %2625 = vrot.lane.b32.xlu1 %v2618_v34, %s10744_s4  ;;  %2623 = vrot.lane.b32.xlu0 %v2615_v6, %s10744_s4  ;;  %v8887_v34 = vld [vmem:[#allocation17 + $0x13] ss:$0 sm:$0xff]  ;;  %v12351_v6 = vpop.permute.xlu0 %2497 }
 0x771   :  { %v2502_v35 = vmul.f32 %v12351_v6, %v12225_v47 }
 0x774   :  { %2629 = vrot.lane.b32.xlu1 %v2622_v8, %s10744_s4  ;;  %2627 = vrot.lane.b32.xlu0 %v2620_v52, %s10744_s4  ;;  %v8892_v8 = vld [vmem:[#allocation17 + $0x18] ss:$0 sm:$0xff]  ;;  %v8868_v52 = vld [vmem:[#allocation17] ss:$0 sm:$0xff]  ;;  %v3255_v32 = vpop.permute.xlu0 %3254 }
 0x775   :  { %v3257_v18 = vmul.f32 %v12361_v29, %v3255_v32  ;;  %v3258_v33 = vmul.f32 %v12364_v7, %v3255_v32  ;;  %v3259_v61 = vmul.f32 %v12371_v56, %v3255_v32  ;;  %v3260_v51 = vmul.f32 %v12374_v0, %v3255_v32 }
 0x776   :  { %v3261_v58 = vmul.f32 %v12383_v22, %v3255_v32 }
 0x778   :  { %2726 = vrot.lane.b32.xlu1 %v2719_v43, %s10743_s3  ;;  %2724 = vrot.lane.b32.xlu0 %v2716_v4, %s10743_s3  ;;  %v3303_v43 = vpop.permute.xlu1 %3302  ;;  %v12369_v4 = vpop.permute.xlu0 %3350 }
 0x77c   :  { %2730 = vrot.lane.b32.xlu1 %v2723_v37, %s10743_s3  ;;  %2728 = vrot.lane.b32.xlu0 %v2721_v48, %s10743_s3 }
 0x780   :  { %2784 = vrot.lane.b32.xlu1 %v2777_v62, %s10744_s4  ;;  %2782 = vrot.lane.b32.xlu0 %v2774_v45, %s10744_s4  ;;  %v12386_v62 = vld [vmem:[#allocation2 + $0x28] sm:$0xff] }
 0x781   :  { %v3262_v45 = vmul.f32 %v12386_v62, %v3255_v32 }
 0x784   :  { %2788 = vrot.lane.b32.xlu1 %v2781_v31, %s10744_s4  ;;  %2786 = vrot.lane.b32.xlu0 %v2779_v2, %s10744_s4 }
 0x788   :  { %3398 = vrot.lane.b32.xlu1 %v8872_v25, %s10749_s23  ;;  %3490 = vrot.lane.b32.xlu0 %v8874_v63, %s10747_s9  ;;  %v3306_v25 = vmul.f32 %v12364_v7, %v3303_v43  ;;  %v3305_v63 = vmul.f32 %v12361_v29, %v3303_v43 }
 0x78c   :  { %3548 = vrot.lane.b32.xlu1 %v8875_v1, %s10741_s22  ;;  %3606 = vrot.lane.b32.xlu0 %v8876_v46, %s10746_s28 }
 0x790   :  { %3664 = vrot.lane.b32.xlu1 %v8877_v13, %s10749_s23  ;;  %3765 = vrot.lane.b32.xlu0 %v8879_v49, %s10747_s9  ;;  %v3308_v13 = vmul.f32 %v12374_v0, %v3303_v43  ;;  %v3307_v49 = vmul.f32 %v12371_v56, %v3303_v43 }
 0x794   :  { %3823 = vrot.lane.b32.xlu1 %v8880_v30, %s10741_s22  ;;  %3881 = vrot.lane.b32.xlu0 %v8881_v28, %s10746_s28 }
 0x798   :  { %3939 = vrot.lane.b32.xlu1 %v8882_v21, %s10749_s23  ;;  %4040 = vrot.lane.b32.xlu0 %v8884_v17, %s10747_s9  ;;  %v3310_v21 = vmul.f32 %v12386_v62, %v3303_v43  ;;  %v3309_v17 = vmul.f32 %v12383_v22, %v3303_v43  ;;  %v2810_v43 = vld [vmem:[#allocation16 + $0x8] sm:$0xff] }
 0x79c   :  { %4098 = vrot.lane.b32.xlu1 %v8885_v20, %s10741_s22  ;;  %4156 = vrot.lane.b32.xlu0 %v8886_v39, %s10746_s28 }
 0x7a0   :  { %4214 = vrot.lane.b32.xlu1 %v8887_v34, %s10749_s23  ;;  %4315 = vrot.lane.b32.xlu0 %v8889_v27, %s10747_s9 }
 0x7a4   :  { %4373 = vrot.lane.b32.xlu1 %v8890_v26, %s10741_s22  ;;  %4431 = vrot.lane.b32.xlu0 %v8891_v40, %s10746_s28 }
 0x7a8   :  { %4489 = vrot.lane.b32.xlu1 %v8892_v8, %s10749_s23  ;;  %3233 = vrot.lane.b32.xlu0 %v8868_v52, %s10750_s0 }
 0x7ac   :  { %3269 = vrot.lane.b32.xlu1 %v3257_v18, %s10743_s3  ;;  %3271 = vrot.lane.b32.xlu0 %v3258_v33, %s10743_s3  ;;  %v2809_v33 = vld [vmem:[#allocation16] sm:$0xff] }
 0x7b0   :  { %3273 = vrot.lane.b32.xlu1 %v3259_v61, %s10743_s3  ;;  %3275 = vrot.lane.b32.xlu0 %v3260_v51, %s10743_s3  ;;  %v9992_v61 = vpack.c.bf16 %v2810_v43, %v2809_v33 }
 0x7b1   :  { %v12379_v37 = vpop.permute.xlu0 %2416 }
 0x7b2   :  { %v12381_v48 = vpop.permute.xlu1 %2418  ;;  %9993 = vmatprep.subr.bf16.mxu0 %v9992_v61 }
 0x7b3   :  { %9995 = vmatpush3.bf16.msra.mxu0 %v9992_v61  ;;  %v2501_v61 = vmul.f32 %v12351_v6, %v12203_v3 }
 0x7b4   :  { %3277 = vrot.lane.b32.xlu1 %v3261_v58, %s10743_s3  ;;  %3279 = vrot.lane.b32.xlu0 %v3262_v45, %s10743_s3  ;;  %v2811_v45 = vld [vmem:[#allocation16 + $0x10] sm:$0xff] }
 0x7b6   :  { %v12391_v31 = vpop.permute.xlu0 %2426  ;;  %v12393_v2 = vpop.permute.xlu1 %2424 }
 0x7b7   :  { %v2442_v11 = vadd.f32 %v12391_v31, %v2388_v50 }
 0x7b8   :  { %3319 = vrot.lane.b32.xlu0 %v3306_v25, %s10744_s4  ;;  %3317 = vrot.lane.b32.xlu1 %v3305_v63, %s10744_s4  ;;  %v2812_v25 = vld [vmem:[#allocation16 + $0x18] sm:$0xff] }
 0x7b9   :  { %v9996_v63 = vpack.c.bf16 %v2812_v25, %v2811_v45  ;;  %v2503_v45 = vmul.f32 %v12351_v6, %v12223_v24  ;;  %v2500_v25 = vmul.f32 %v12351_v6, %v12201_v41 }
 0x7ba   :  { %v12399_v1 = vpop.permute.xlu0 %2466  ;;  %v12401_v46 = vpop.permute.xlu1 %2464 }
 0x7bb   :  { %9997 = vmatprep.subr.bf16.mxu0 %v9996_v63  ;;  %v2516_v57 = vrot.slane %v2503_v45, 1  ;;  %v12507_v45 = vmul.f32 %v12357_v59, %v12225_v47  ;;  %v2817_v47 = vld [vmem:[#allocation16 + $0x40] sm:$0xff] }
 0x7bc   :  { %3323 = vrot.lane.b32.xlu0 %v3308_v13, %s10744_s4  ;;  %3321 = vrot.lane.b32.xlu1 %v3307_v49, %s10744_s4  ;;  %v12441_v13 = vmul.f32 %v12351_v6, %v12211_v14  ;;  %v12445_v49 = vmul.f32 %v12351_v6, %v12209_v38  ;;  %v2512_v6 = vrot.slane %v2500_v25, 1 }
 0x7bd   :  { %9999 = vmatpush3.bf16.msra.mxu0 %v9996_v63  ;;  %v2386_v63 = vmul.f32 %v12353_v44, %v12223_v24  ;;  %v2515_v44 = vrot.slane %v2501_v61, 1  ;;  %v2513_v61 = vrot.slane %v2502_v35, 1  ;;  %v12515_v35 = vmul.f32 %v12357_v59, %v12223_v24 }
 0x7be   :  { %v12407_v30 = vpop.permute.xlu0 %2474  ;;  %v12409_v28 = vpop.permute.xlu1 %2472  ;;  %v2518_v12 = vrot.slane %v12441_v13, 1  ;;  %v2520_v15 = vrot.slane %v12445_v49, 1  ;;  %10001 = vmatprep.subr.bf16.mxu0 %v10000_v10  ;;  %v2815_v13 = vld [vmem:[#allocation16 + $0x30] sm:$0xff]  ;;  %v2428_v49 = vsel %vm289_vm14, %v12379_v37, %v12381_v48 }
 0x7bf   :  { %v10004_v36 = vpack.c.bf16 %v2816_v19, %v2815_v13  ;;  %v2490_v50 = vadd.f32 %v12407_v30, %v2442_v11  ;;  %v2517_v11 = vsel %vm333_vm12, %v2515_v44, %v2516_v57  ;;  %v2514_v13 = vsel %vm333_vm12, %v2512_v6, %v2513_v61 }
 0x7c0   :  { %3327 = vrot.lane.b32.xlu0 %v3310_v21, %s10744_s4  ;;  %3325 = vrot.lane.b32.xlu1 %v3309_v17, %s10744_s4  ;;  %v12449_v21 = vmul.f32 %v12357_v59, %v12211_v14  ;;  %v12453_v17 = vmul.f32 %v12357_v59, %v12209_v38  ;;  %v2430_v14 = vsel %vm289_vm14, %v12393_v2, %v12391_v31 }
 0x7c1   :  { %10003 = vmatpush3.bf16.msra.mxu0 %v10000_v10  ;;  %v2478_v2 = vsel %vm317_vm15, %v12409_v28, %v12407_v30  ;;  %v12503_v10 = vmul.f32 %v12357_v59, %v12203_v3  ;;  %v2441_v37 = vadd.f32 %v2430_v14, %v2387_v5  ;;  %v2437_v3 = vadd.f32 %v2428_v49, %v2383_v60  ;;  %v2818_v30 = vld [vmem:[#allocation16 + $0x48] sm:$0xff] }
 0x7c2   :  { %v12415_v20 = vpop.permute.xlu0 %2420  ;;  %v12417_v39 = vpop.permute.xlu1 %2422  ;;  %10005 = vmatprep.subr.bf16.mxu0 %v10004_v36  ;;  %v2438_v28 = vadd.f32 %v12381_v48, %v2384_v16  ;;  %v2476_v5 = vsel %vm317_vm15, %v12401_v46, %v12399_v1  ;;  %v10008_v59 = vpack.c.bf16 %v2818_v30, %v2817_v47  ;;  %v2521_v48 = vsel %vm333_vm12, %v2516_v57, %v2520_v15 }
 0x7c3   :  { %v2429_v19 = vsel %vm289_vm14, %v12415_v20, %v12417_v39  ;;  %v2489_v20 = vadd.f32 %v2478_v2, %v2441_v37  ;;  %v2440_v25 = vadd.f32 %v12417_v39, %v2386_v63  ;;  %v2671_v46 = vrot.slane %v12496_v54, 2  ;;  %v2820_v54 = vld [vmem:[#allocation16 + $0x58] sm:$0xff] }
 0x7c4   :  { %v2486_v60 = vadd.f32 %v12399_v1, %v2438_v28  ;;  %v2439_v16 = vadd.f32 %v2429_v19, %v2385_v42  ;;  %v2485_v14 = vadd.f32 %v2476_v5, %v2437_v3  ;;  %v2533_v44 = vadd.f32 %v2520_v15, %v2490_v50  ;;  %v2819_v1 = vld [vmem:[#allocation16 + $0x50] sm:$0xff] }
 0x7c5   :  { %10007 = vmatpush3.bf16.msra.mxu0 %v10004_v36  ;;  %v2519_v42 = vsel %vm333_vm12, %v2513_v61, %v2518_v12  ;;  %v2672_v57 = vrot.slane %v12507_v45, 2  ;;  %v2532_v2 = vadd.f32 %v2518_v12, %v2489_v20  ;;  %v10012_v6 = vpack.c.bf16 %v2820_v54, %v2819_v1 }
 0x7c6   :  { %v12419_v34 = vpop.permute.xlu0 %2470  ;;  %v12421_v27 = vpop.permute.xlu1 %2468  ;;  %10009 = vmatprep.subr.bf16.mxu0 %v10008_v59  ;;  %v2529_v50 = vadd.f32 %v2517_v11, %v2486_v60  ;;  %v2675_v61 = vrot.slane %v12515_v35, 2  ;;  %v2528_v12 = vadd.f32 %v2514_v13, %v2485_v14  ;;  %v2822_v35 = vld [vmem:[#allocation16 + $0x68] sm:$0xff] }
 0x7c7   :  { %v2477_v24 = vsel %vm317_vm15, %v12421_v27, %v12419_v34  ;;  %v2488_v36 = vadd.f32 %v12419_v34, %v2440_v25  ;;  %v2674_v34 = vrot.slane %v12503_v10, 2 }
 0x7c8   :  { %v2487_v63 = vadd.f32 %v2477_v24, %v2439_v16 }
 0x7c9   :  { %10011 = vmatpush3.bf16.msra.mxu0 %v10008_v59  ;;  %v2531_v3 = vadd.f32 %v2521_v48, %v2488_v36  ;;  %v16347_v36 = vrot.slane %v12449_v21, 2 }
 0x7ca   :  { %v12423_v26 = vpop.permute.xlu0 %2573  ;;  %v12425_v40 = vpop.permute.xlu1 %2575  ;;  %10013 = vmatprep.subr.bf16.mxu0 %v10012_v6  ;;  %v2530_v5 = vadd.f32 %v2519_v42, %v2487_v63 }
 0x7cb   :  { %v2579_v27 = vsel %vm289_vm14, %v12423_v26, %v12425_v40  ;;  %v2591_v15 = vadd.f32 %v12425_v40, %v2533_v44  ;;  %v16348_v13 = vmov %v16347_v36 }
 0x7cc   :  { %v2590_v45 = vadd.f32 %v2579_v27, %v2532_v2 }
 0x7cd   :  { %10015 = vmatpush3.bf16.msra.mxu0 %v10012_v6  ;;  %v2824_v6 = vld [vmem:[#allocation16 + $0x78] sm:$0xff] }
 0x7ce   :  { %v12427_v8 = vpop.permute.xlu0 %2631  ;;  %v12429_v52 = vpop.permute.xlu1 %2633 }
 0x7cf   :  { %v2637_v37 = vsel %vm317_vm15, %v12427_v8, %v12429_v52  ;;  %v2649_v19 = vadd.f32 %v12429_v52, %v2591_v15 }
 0x7d0   :  { %v2648_v47 = vadd.f32 %v2637_v37, %v2590_v45 }
 0x7d2   :  { %v12431_v32 = vpop.permute.xlu0 %2732  ;;  %v12433_v18 = vpop.permute.xlu1 %2734  ;;  %v2691_v44 = vadd.f32 %v16347_v36, %v2648_v47  ;;  %v3357_v36 = vmul.f32 %v12383_v22, %v12369_v4 }
 0x7d6   :  { %v12435_v51 = vpop.permute.xlu0 %2790  ;;  %v12437_v58 = vpop.permute.xlu1 %2792 }
 0x7d7   :  { %v2796_v54 = vsel %vm317_vm15, %v12435_v51, %v12437_v58 }
 0x7da   :  { %v12455_v33 = vpop.permute.xlu0 %2567  ;;  %v12457_v43 = vpop.permute.xlu1 %2565 }
 0x7db   :  { %v2577_v26 = vsel %vm289_vm14, %v12457_v43, %v12455_v33  ;;  %v2587_v10 = vadd.f32 %v12455_v33, %v2529_v50  ;;  %v2821_v43 = vld [vmem:[#allocation16 + $0x60] sm:$0xff]  ;;  %v16346_v33 = vrot.slane %v12453_v17, 2 }
 0x7dc   :  { %v2586_v30 = vadd.f32 %v2577_v26, %v2528_v12  ;;  %v10016_v20 = vpack.c.bf16 %v2822_v35, %v2821_v43 }
 0x7dd   :  { %v2692_v59 = vadd.f32 %v16346_v33, %v2649_v19 }
 0x7de   :  { %v12483_v55 = vpop.permute.xlu0 %2571  ;;  %v12485_v38 = vpop.permute.xlu1 %2569  ;;  %10017 = vmatprep.subr.bf16.mxu0 %v10016_v20 }
 0x7df   :  { %v2578_v8 = vsel %vm289_vm14, %v12485_v38, %v12483_v55  ;;  %v2589_v52 = vadd.f32 %v12483_v55, %v2531_v3  ;;  %10019 = vmatpush3.bf16.msra.mxu0 %v10016_v20  ;;  %v2750_v1 = vadd.f32 %v12433_v18, %v2692_v59 }
 0x7e0   :  { %v2588_v60 = vadd.f32 %v2578_v8, %v2530_v5 }
 0x7e2   :  { %v2624_v41 = vpop.permute.xlu0 %2623  ;;  %v2626_v31 = vpop.permute.xlu1 %2625 }
 0x7e3   :  { %v2635_v11 = vsel %vm317_vm15, %v2624_v41, %v2626_v31  ;;  %v2645_v25 = vadd.f32 %v2626_v31, %v2587_v10  ;;  %v2673_v41 = vsel %vm410_vm13, %v2671_v46, %v2672_v57  ;;  %v2676_v31 = vsel %vm410_vm13, %v2674_v34, %v2675_v61  ;;  %v2823_v34 = vld [vmem:[#allocation16 + $0x70] sm:$0xff] }
 0x7e4   :  { %v2644_v16 = vadd.f32 %v2635_v11, %v2586_v30  ;;  %v16349_v46 = vmov %v16346_v33  ;;  %v10020_v17 = vpack.c.bf16 %v2824_v6, %v2823_v34 }
 0x7e5   :  { %v2688_v63 = vadd.f32 %v2676_v31, %v2645_v25  ;;  %v2680_v42 = vsel %vm410_vm13, %v2675_v61, %v16349_v46 }
 0x7e6   :  { %v2628_v49 = vpop.permute.xlu0 %2627  ;;  %v2630_v39 = vpop.permute.xlu1 %2629  ;;  %v2687_v21 = vadd.f32 %v2673_v41, %v2644_v16  ;;  %10021 = vmatprep.subr.bf16.mxu0 %v10020_v17  ;;  %v3353_v16 = vmul.f32 %v12361_v29, %v12369_v4  ;;  %v8873_v41 = vld [vmem:[#allocation17 + $0x5] ss:$0 sm:$0xff] }
 0x7e7   :  { %v2636_v24 = vsel %vm317_vm15, %v2628_v49, %v2630_v39  ;;  %v2647_v48 = vadd.f32 %v2630_v39, %v2589_v52  ;;  %v2678_v49 = vsel %vm410_vm13, %v2672_v57, %v16348_v13  ;;  %v2738_v39 = vsel %vm289_vm14, %v12431_v32, %v12433_v18  ;;  %10023 = vmatpush3.bf16.msra.mxu0 %v10020_v17 }
 0x7e8   :  { %v2646_v55 = vadd.f32 %v2636_v24, %v2588_v60  ;;  %v2749_v26 = vadd.f32 %v2738_v39, %v2691_v44  ;;  %v2808_v18 = vadd.f32 %v12437_v58, %v2750_v1  ;;  %9522 = vmatprep.subr.mxu0 %v16323_v9 }
 0x7e9   :  { %v2690_v2 = vadd.f32 %v2680_v42, %v2647_v48  ;;  %v3354_v48 = vmul.f32 %v12364_v7, %v12369_v4 }
 0x7ea   :  { %v2725_v40 = vpop.permute.xlu0 %2724  ;;  %v2727_v28 = vpop.permute.xlu1 %2726  ;;  %v2689_v45 = vadd.f32 %v2678_v49, %v2646_v55  ;;  %v2807_v51 = vadd.f32 %v2796_v54, %v2749_v26  ;;  %v2839_v43 = vrot.slane %v2808_v18, 3  ;;  %v3358_v55 = vmul.f32 %v12386_v62, %v12369_v4 }
 0x7eb   :  { %v2736_v27 = vsel %vm289_vm14, %v2725_v40, %v2727_v28  ;;  %v2746_v32 = vadd.f32 %v2727_v28, %v2688_v63 }
 0x7ec   :  { %v2745_v61 = vadd.f32 %v2736_v27, %v2687_v21  ;;  %v2837_v30 = vrot.slane %v2807_v51, 3 }
 0x7ee   :  { %v2729_v38 = vpop.permute.xlu0 %2728  ;;  %v2731_v14 = vpop.permute.xlu1 %2730 }
 0x7ef   :  { %v2737_v37 = vsel %vm289_vm14, %v2729_v38, %v2731_v14  ;;  %v2748_v19 = vadd.f32 %v2731_v14, %v2690_v2  ;;  %v3355_v38 = vmul.f32 %v12371_v56, %v12369_v4  ;;  %v3356_v14 = vmul.f32 %v12374_v0, %v12369_v4 }
 0x7f0   :  { %v2747_v3 = vadd.f32 %v2737_v37, %v2689_v45 }
 0x7f2   :  { %v2783_v57 = vpop.permute.xlu0 %2782  ;;  %v2785_v15 = vpop.permute.xlu1 %2784 }
 0x7f3   :  { %v2794_v50 = vsel %vm317_vm15, %v2783_v57, %v2785_v15  ;;  %v2804_v12 = vadd.f32 %v2785_v15, %v2746_v32 }
 0x7f4   :  { %v2803_v40 = vadd.f32 %v2794_v50, %v2745_v61 }
 0x7f5   :  { %v2834_v35 = vrot.slane %v2804_v12, 3 }
 0x7f6   :  { %v2787_v10 = vpop.permute.xlu0 %2786  ;;  %v2789_v5 = vpop.permute.xlu1 %2788  ;;  %v2831_v58 = vrot.slane %v2803_v40, 3 }
 0x7f7   :  { %v2795_v28 = vsel %vm317_vm15, %v2787_v10, %v2789_v5  ;;  %v2806_v8 = vadd.f32 %v2789_v5, %v2748_v19 }
 0x7f8   :  { %v2805_v11 = vadd.f32 %v2795_v28, %v2747_v3 }
 0x7f9   :  { %v2835_v47 = vrot.slane %v2806_v8, 3 }
 0x7fa   :  { %v2832_v52 = vrot.slane %v2805_v11, 3  ;;  %v3399_v44 = vpop.permute.xlu1 %3398  ;;  %v3491_v13 = vpop.permute.xlu0 %3490 }
 0x7fb   :  { %v2840_v20 = vsel %vm499_vm1, %v2835_v47, %v2839_v43  ;;  %v2836_v25 = vsel %vm499_vm1, %v2834_v35, %v2835_v47  ;;  %v3401_v31 = vmul.f32 %v12361_v29, %v3399_v44  ;;  %v3402_v49 = vmul.f32 %v12364_v7, %v3399_v44 }
 0x7fc   :  { %v2838_v24 = vsel %vm499_vm1, %v2832_v52, %v2837_v30  ;;  %v2833_v33 = vsel %vm499_vm1, %v2831_v58, %v2832_v52  ;;  %v3403_v39 = vmul.f32 %v12371_v56, %v3399_v44  ;;  %v3493_v63 = vmul.f32 %v12361_v29, %v3491_v13 }
 0x7fd   :  { %v10394_v59 = vpack.i.bf16 %v2840_v20, %v2838_v24  ;;  %v10389_v60 = vpack.i.bf16 %v2836_v25, %v2833_v33  ;;  %v3495_v27 = vmul.f32 %v12371_v56, %v3491_v13  ;;  %v3404_v4 = vmul.f32 %v12374_v0, %v3399_v44 }
 0x7fe   :  { %v3405_v46 = vmul.f32 %v12383_v22, %v3399_v44  ;;  %v3494_v42 = vmul.f32 %v12364_v7, %v3491_v13  ;;  %v3505_v1 = vrot.slane %v3493_v63, 1  ;;  %v3496_v21 = vmul.f32 %v12374_v0, %v3491_v13  ;;  %v3549_v34 = vpop.permute.xlu1 %3548  ;;  %v3607_v19 = vpop.permute.xlu0 %3606 }
 0x7ff   :  { %10395 = vrot.lane.b32.xlu1 %v10394_v59, %s10745_s29  ;;  %10390 = vrot.lane.b32.xlu0 %v10389_v60, %s10745_s29  ;;  %v3506_v54 = vrot.slane %v3495_v27, 1  ;;  %v3497_v2 = vmul.f32 %v12383_v22, %v3491_v13  ;;  %v3406_v57 = vmul.f32 %v12386_v62, %v3399_v44  ;;  %v3498_v15 = vmul.f32 %v12386_v62, %v3491_v13 }
 0x800   :  { %v3508_v32 = vrot.slane %v3494_v42, 1  ;;  %v3509_v37 = vrot.slane %v3496_v21, 1  ;;  %v3551_v17 = vmul.f32 %v12361_v29, %v3549_v34  ;;  %v3553_v18 = vmul.f32 %v12371_v56, %v3549_v34 }
 0x801   :  { %v3507_v6 = vsel %vm333_vm12, %v3505_v1, %v3506_v54  ;;  %v3511_v50 = vrot.slane %v3497_v2, 1  ;;  %v3513_v45 = vrot.slane %v3498_v15, 1  ;;  %v3552_v51 = vmul.f32 %v12364_v7, %v3549_v34  ;;  %v8878_v1 = vld [vmem:[#allocation17 + $0xa] ss:$0 sm:$0xff] }
 0x802   :  { %v3510_v26 = vsel %vm333_vm12, %v3508_v32, %v3509_v37  ;;  %v3563_v12 = vrot.slane %v3551_v17, 1  ;;  %v3564_v40 = vrot.slane %v3553_v18, 1  ;;  %v3554_v10 = vmul.f32 %v12374_v0, %v3549_v34  ;;  %v12635_v28 = vpop.permute.xlu0 %3765  ;;  %v3665_v8 = vpop.permute.xlu1 %3664 }
 0x803   :  { %3365 = vrot.lane.b32.xlu1 %v3353_v16, %s10745_s29  ;;  %3367 = vrot.lane.b32.xlu0 %v3354_v48, %s10745_s29  ;;  %v3512_v61 = vsel %vm333_vm12, %v3506_v54, %v3511_v50  ;;  %v3514_v3 = vsel %vm333_vm12, %v3509_v37, %v3513_v45  ;;  %v3555_v5 = vmul.f32 %v12383_v22, %v3549_v34  ;;  %v3566_v11 = vrot.slane %v3552_v51, 1 }
 0x804   :  { %v3565_v43 = vsel %vm333_vm12, %v3563_v12, %v3564_v40  ;;  %v3567_v35 = vrot.slane %v3554_v10, 1  ;;  %v3556_v30 = vmul.f32 %v12386_v62, %v3549_v34  ;;  %v3609_v58 = vmul.f32 %v12361_v29, %v3607_v19 }
 0x805   :  { %v3569_v47 = vrot.slane %v3555_v5, 1  ;;  %v3611_v24 = vmul.f32 %v12371_v56, %v3607_v19  ;;  %v3610_v16 = vmul.f32 %v12364_v7, %v3607_v19  ;;  %v3668_v54 = vmul.f32 %v12364_v7, %v3665_v8 }
 0x806   :  { %v3568_v52 = vsel %vm333_vm12, %v3566_v11, %v3567_v35  ;;  %v3571_v25 = vrot.slane %v3556_v30, 1  ;;  %v12645_v33 = vpop.permute.xlu0 %3881  ;;  %v12647_v59 = vpop.permute.xlu1 %3823  ;;  %v3621_v60 = vrot.slane %v3609_v58, 1  ;;  %v3670_v21 = vmul.f32 %v12374_v0, %v3665_v8 }
 0x807   :  { %3369 = vrot.lane.b32.xlu1 %v3355_v38, %s10745_s29  ;;  %3371 = vrot.lane.b32.xlu0 %v3356_v14, %s10745_s29  ;;  %v3570_v20 = vsel %vm333_vm12, %v3564_v40, %v3569_v47  ;;  %v3622_v38 = vrot.slane %v3611_v24, 1  ;;  %v3612_v14 = vmul.f32 %v12374_v0, %v3607_v19  ;;  %v3669_v15 = vmul.f32 %v12371_v56, %v3665_v8 }
 0x808   :  { %v3572_v48 = vsel %vm333_vm12, %v3567_v35, %v3571_v25  ;;  %v3682_v32 = vrot.slane %v3668_v54, 1  ;;  %v3683_v37 = vrot.slane %v3670_v21, 1  ;;  %v3769_v40 = vmul.f32 %v12364_v7, %v12635_v28 }
 0x809   :  { %v3625_v13 = vrot.slane %v3612_v14, 1  ;;  %v3680_v17 = vrot.slane %v3669_v15, 1  ;;  %v3771_v10 = vmul.f32 %v12374_v0, %v12635_v28  ;;  %v3768_v11 = vmul.f32 %v12361_v29, %v12635_v28 }
 0x80a   :  { %v12659_v44 = vpop.permute.xlu1 %3939  ;;  %v3783_v30 = vrot.slane %v3769_v40, 2  ;;  %v3772_v24 = vmul.f32 %v12383_v22, %v12635_v28 }
 0x80b   :  { %3447 = vrot.lane.b32.xlu1 %v8873_v41, %s10750_s0  ;;  %3373 = vrot.lane.b32.xlu0 %v3357_v36, %s10745_s29  ;;  %v3613_v41 = vmul.f32 %v12383_v22, %v3607_v19  ;;  %v12657_v36 = vpop.permute.xlu0 %4040  ;;  %v3784_v58 = vrot.slane %v3771_v10, 2 }
 0x80e   :  { %v12669_v42 = vpop.permute.xlu1 %4098 }
 0x80f   :  { %3375 = vrot.lane.b32.xlu1 %v3358_v55, %s10745_s29  ;;  %3413 = vrot.lane.b32.xlu0 %v3401_v31, %s10751_s2  ;;  %v3624_v55 = vrot.slane %v3610_v16, 1  ;;  %v3623_v31 = vsel %vm333_vm12, %v3621_v60, %v3622_v38  ;;  %v3785_v60 = vsel %vm410_vm13, %v3783_v30, %v3784_v58  ;;  %v3889_v30 = vmul.f32 %v12386_v62, %v12645_v33 }
 0x811   :  { %v3626_v63 = vsel %vm333_vm12, %v3624_v55, %v3625_v13  ;;  %v3829_v55 = vmul.f32 %v12374_v0, %v12647_v59 }
 0x813   :  { %3415 = vrot.lane.b32.xlu1 %v3402_v49, %s10751_s2  ;;  %3417 = vrot.lane.b32.xlu0 %v3403_v39, %s10751_s2  ;;  %v3627_v49 = vrot.slane %v3613_v41, 1  ;;  %v3614_v39 = vmul.f32 %v12386_v62, %v3607_v19 }
 0x815   :  { %v3628_v27 = vsel %vm333_vm12, %v3622_v38, %v3627_v49  ;;  %v3786_v38 = vrot.slane %v3772_v24, 2 }
 0x817   :  { %3419 = vrot.lane.b32.xlu1 %v3404_v4, %s10751_s2  ;;  %3421 = vrot.lane.b32.xlu0 %v3405_v46, %s10751_s2  ;;  %v3629_v4 = vrot.slane %v3614_v39, 1  ;;  %v12667_v46 = vpop.permute.xlu0 %4156  ;;  %v3828_v39 = vmul.f32 %v12371_v56, %v12647_v59 }
 0x819   :  { %v3630_v2 = vsel %vm333_vm12, %v3625_v13, %v3629_v4  ;;  %v3839_v21 = vrot.slane %v3828_v39, 2 }
 0x81b   :  { %3423 = vrot.lane.b32.xlu1 %v3406_v57, %s10751_s2  ;;  %3515 = vrot.lane.b32.xlu0 %v3507_v6, %s10743_s3  ;;  %v3667_v57 = vmul.f32 %v12361_v29, %v3665_v8  ;;  %v12680_v34 = vpop.permute.xlu0 %4315  ;;  %v12682_v6 = vpop.permute.xlu1 %4214 }
 0x81f   :  { %3517 = vrot.lane.b32.xlu1 %v3510_v26, %s10743_s3  ;;  %3519 = vrot.lane.b32.xlu0 %v3512_v61, %s10743_s3  ;;  %v3672_v26 = vmul.f32 %v12386_v62, %v3665_v8  ;;  %v3671_v61 = vmul.f32 %v12383_v22, %v3665_v8  ;;  %v12690_v51 = vpop.permute.xlu0 %4431 }
 0x821   :  { %v3687_v19 = vrot.slane %v3672_v26, 1  ;;  %v3685_v12 = vrot.slane %v3671_v61, 1  ;;  %v3887_v61 = vmul.f32 %v12374_v0, %v12645_v33 }
 0x823   :  { %3521 = vrot.lane.b32.xlu1 %v3514_v3, %s10743_s3  ;;  %3523 = vrot.lane.b32.xlu0 %v3511_v50, %s10743_s3  ;;  %v3679_v50 = vrot.slane %v3667_v57, 1  ;;  %v12692_v3 = vpop.permute.xlu1 %4373  ;;  %v3688_v5 = vsel %vm333_vm12, %v3683_v37, %v3687_v19  ;;  %v3686_v8 = vsel %vm333_vm12, %v3680_v17, %v3685_v12  ;;  %v12708_v35 = vpop.permute.xlu0 %3233  ;;  %v3830_v57 = vmul.f32 %v12383_v22, %v12647_v59 }
 0x825   :  { %v3681_v18 = vsel %vm333_vm12, %v3679_v50, %v3680_v17  ;;  %v3844_v50 = vrot.slane %v3830_v57, 2 }
 0x827   :  { %3525 = vrot.lane.b32.xlu1 %v3513_v45, %s10743_s3  ;;  %3573 = vrot.lane.b32.xlu0 %v3565_v43, %s10744_s4  ;;  %v3684_v45 = vsel %vm333_vm12, %v3682_v32, %v3683_v37  ;;  %v3770_v43 = vmul.f32 %v12371_v56, %v12635_v28  ;;  %v12720_v14 = vpop.permute.xlu0 %3271 }
 0x82b   :  { %3575 = vrot.lane.b32.xlu1 %v3568_v52, %s10744_s4  ;;  %3577 = vrot.lane.b32.xlu0 %v3570_v20, %s10744_s4  ;;  %v3780_v52 = vrot.slane %v3768_v11, 2  ;;  %v3781_v20 = vrot.slane %v3770_v43, 2 }
 0x82d   :  { %v3782_v16 = vsel %vm410_vm13, %v3780_v52, %v3781_v20  ;;  %v3787_v13 = vsel %vm410_vm13, %v3781_v20, %v3786_v38 }
 0x82f   :  { %3579 = vrot.lane.b32.xlu1 %v3572_v48, %s10744_s4  ;;  %3581 = vrot.lane.b32.xlu0 %v3569_v47, %s10744_s4  ;;  %v12710_v47 = vpop.permute.xlu1 %4489 }
 0x833   :  { %3583 = vrot.lane.b32.xlu1 %v3571_v25, %s10744_s4  ;;  %3631 = vrot.lane.b32.xlu0 %v3623_v31, %s10745_s29  ;;  %v3773_v25 = vmul.f32 %v12386_v62, %v12635_v28  ;;  %v12722_v41 = vpop.permute.xlu1 %3269  ;;  %v3827_v28 = vmul.f32 %v12364_v7, %v12647_v59 }
 0x835   :  { %v3788_v48 = vrot.slane %v3773_v25, 2  ;;  %v3904_v25 = vrot.slane %v3889_v30, 2 }
 0x837   :  { %3633 = vrot.lane.b32.xlu1 %v3626_v63, %s10745_s29  ;;  %3635 = vrot.lane.b32.xlu0 %v3628_v27, %s10745_s29  ;;  %v3789_v31 = vsel %vm410_vm13, %v3784_v58, %v3788_v48  ;;  %v12738_v63 = vpop.permute.xlu0 %3275  ;;  %v12740_v27 = vpop.permute.xlu1 %3273  ;;  %v3888_v58 = vmul.f32 %v12383_v22, %v12645_v33 }
 0x839   :  { %v3902_v24 = vrot.slane %v3888_v58, 2 }
 0x83b   :  { %3637 = vrot.lane.b32.xlu1 %v3630_v2, %s10745_s29  ;;  %3722 = vrot.lane.b32.xlu0 %v8878_v1, %s10750_s0  ;;  %v3842_v1 = vrot.slane %v3829_v55, 2  ;;  %v3831_v2 = vmul.f32 %v12386_v62, %v12647_v59  ;;  %v12750_v17 = vpop.permute.xlu0 %3279  ;;  %v12752_v26 = vpop.permute.xlu1 %3277  ;;  %v8883_v55 = vld [vmem:[#allocation17 + $0xf] ss:$0 sm:$0xff] }
 0x83d   :  { %v3846_v37 = vrot.slane %v3831_v2, 2 }
 0x83f   :  { %3639 = vrot.lane.b32.xlu1 %v3627_v49, %s10745_s29  ;;  %3641 = vrot.lane.b32.xlu0 %v3629_v4, %s10745_s29  ;;  %v3826_v49 = vmul.f32 %v12361_v29, %v12647_v59  ;;  %v3841_v4 = vrot.slane %v3827_v28, 2  ;;  %v3885_v59 = vmul.f32 %v12364_v7, %v12645_v33  ;;  %v12768_v40 = vpop.permute.xlu0 %3319  ;;  %v12770_v10 = vpop.permute.xlu1 %3317 }
 0x841   :  { %v3838_v54 = vrot.slane %v3826_v49, 2  ;;  %v3843_v15 = vsel %vm410_vm13, %v3841_v4, %v3842_v1  ;;  %v3943_v4 = vmul.f32 %v12364_v7, %v12659_v44 }
 0x843   :  { %3691 = vrot.lane.b32.xlu0 %v3684_v45, %s10751_s2  ;;  %3689 = vrot.lane.b32.xlu1 %v3681_v18, %s10751_s2  ;;  %v3840_v32 = vsel %vm410_vm13, %v3838_v54, %v3839_v21  ;;  %v3847_v45 = vsel %vm410_vm13, %v3842_v1, %v3846_v37  ;;  %v3845_v18 = vsel %vm410_vm13, %v3839_v21, %v3844_v50 }
 0x844   :  { %v3945_v1 = vmul.f32 %v12374_v0, %v12659_v44  ;;  %v3946_v54 = vmul.f32 %v12383_v22, %v12659_v44 }
 0x847   :  { %3695 = vrot.lane.b32.xlu0 %v3688_v5, %s10751_s2  ;;  %3693 = vrot.lane.b32.xlu1 %v3686_v8, %s10751_s2  ;;  %v3899_v5 = vrot.slane %v3885_v59, 2  ;;  %v3900_v8 = vrot.slane %v3887_v61, 2 }
 0x849   :  { %v3901_v52 = vsel %vm410_vm13, %v3899_v5, %v3900_v8 }
 0x84b   :  { %3699 = vrot.lane.b32.xlu0 %v3687_v19, %s10751_s2  ;;  %3697 = vrot.lane.b32.xlu1 %v3685_v12, %s10751_s2  ;;  %v3884_v19 = vmul.f32 %v12361_v29, %v12645_v33  ;;  %v3886_v12 = vmul.f32 %v12371_v56, %v12645_v33  ;;  %v3942_v33 = vmul.f32 %v12361_v29, %v12659_v44 }
 0x84d   :  { %v3896_v11 = vrot.slane %v3884_v19, 2  ;;  %v3897_v43 = vrot.slane %v3886_v12, 2 }
 0x84f   :  { %3792 = vrot.lane.b32.xlu0 %v3785_v60, %s10743_s3  ;;  %3790 = vrot.lane.b32.xlu1 %v3782_v16, %s10743_s3  ;;  %v3898_v20 = vsel %vm410_vm13, %v3896_v11, %v3897_v43  ;;  %v12780_v60 = vpop.permute.xlu0 %3323  ;;  %v12782_v16 = vpop.permute.xlu1 %3321  ;;  %v3903_v28 = vsel %vm410_vm13, %v3897_v43, %v3902_v24  ;;  %v4045_v11 = vmul.f32 %v12371_v56, %v12657_v36 }
 0x853   :  { %3796 = vrot.lane.b32.xlu0 %v3789_v31, %s10743_s3  ;;  %3794 = vrot.lane.b32.xlu1 %v3787_v13, %s10743_s3  ;;  %v3954_v31 = vrot.slane %v3942_v33, 2  ;;  %v12794_v49 = vpop.permute.xlu0 %3327  ;;  %v12796_v39 = vpop.permute.xlu1 %3325  ;;  %v4056_v33 = vrot.slane %v4045_v11, 3 }
 0x857   :  { %3800 = vrot.lane.b32.xlu0 %v3788_v48, %s10743_s3  ;;  %3798 = vrot.lane.b32.xlu1 %v3786_v38, %s10743_s3  ;;  %v3944_v48 = vmul.f32 %v12371_v56, %v12659_v44  ;;  %v3905_v38 = vsel %vm410_vm13, %v3900_v8, %v3904_v25 }
 0x859   :  { %v3955_v13 = vrot.slane %v3944_v48, 2 }
 0x85b   :  { %3850 = vrot.lane.b32.xlu0 %v3843_v15, %s10744_s4  ;;  %3848 = vrot.lane.b32.xlu1 %v3840_v32, %s10744_s4  ;;  %v3956_v21 = vsel %vm410_vm13, %v3954_v31, %v3955_v13  ;;  %v3957_v15 = vrot.slane %v3943_v4, 2  ;;  %v3958_v32 = vrot.slane %v3945_v1, 2  ;;  %v4048_v4 = vmul.f32 %v12386_v62, %v12657_v36 }
 0x85d   :  { %v3959_v43 = vsel %vm410_vm13, %v3957_v15, %v3958_v32 }
 0x85f   :  { %3854 = vrot.lane.b32.xlu0 %v3847_v45, %s10744_s4  ;;  %3852 = vrot.lane.b32.xlu1 %v3845_v18, %s10744_s4 }
 0x863   :  { %3858 = vrot.lane.b32.xlu0 %v3846_v37, %s10744_s4  ;;  %3856 = vrot.lane.b32.xlu1 %v3844_v50, %s10744_s4  ;;  %v3960_v37 = vrot.slane %v3946_v54, 2  ;;  %v3947_v50 = vmul.f32 %v12386_v62, %v12659_v44  ;;  %v4043_v44 = vmul.f32 %v12361_v29, %v12657_v36 }
 0x865   :  { %v3961_v30 = vsel %vm410_vm13, %v3955_v13, %v3960_v37  ;;  %v3962_v58 = vrot.slane %v3947_v50, 2  ;;  %v4063_v50 = vrot.slane %v4048_v4, 3  ;;  %v12895_v4 = vld [vmem:[#allocation2 + $0x10] sm:$0xff] }
 0x867   :  { %3908 = vrot.lane.b32.xlu0 %v3901_v52, %s10745_s29  ;;  %3906 = vrot.lane.b32.xlu1 %v3898_v20, %s10745_s29  ;;  %v10451_v52 = vld [vmem:[#allocation10] sm:$0xf]  ;;  %v3963_v48 = vsel %vm410_vm13, %v3958_v32, %v3962_v58  ;;  %v4101_v32 = vmul.f32 %v12361_v29, %v12669_v42  ;;  %v4102_v29 = vmul.f32 %v12364_v7, %v12669_v42 }
 0x86b   :  { %3912 = vrot.lane.b32.xlu0 %v3905_v38, %s10745_s29  ;;  %3910 = vrot.lane.b32.xlu1 %v3903_v28, %s10745_s29  ;;  %v4044_v38 = vmul.f32 %v12364_v7, %v12657_v36  ;;  %v4046_v28 = vmul.f32 %v12374_v0, %v12657_v36 }
 0x86d   :  { %v4058_v54 = vrot.slane %v4044_v38, 3 }
 0x86f   :  { %3914 = vrot.lane.b32.xlu0 %v3902_v24, %s10745_s29  ;;  %3997 = vrot.lane.b32.xlu1 %v8883_v55, %s10750_s0  ;;  %v4055_v24 = vrot.slane %v4043_v44, 3  ;;  %v4047_v55 = vmul.f32 %v12383_v22, %v12657_v36  ;;  %v4104_v44 = vmul.f32 %v12374_v0, %v12669_v42 }
 0x871   :  { %v10391_v2 = vpop.permute.xlu0 %10390  ;;  %v10396_v57 = vpop.permute.xlu1 %10395  ;;  %v4057_v1 = vsel %vm499_vm1, %v4055_v24, %v4056_v33  ;;  %v4106_v24 = vmul.f32 %v12386_v62, %v12669_v42  ;;  %v4161_v62 = vmul.f32 %v12895_v4, %v12667_v46 }
 0x872   :  { %v10393_v59 = vunpack.i.h.bf16 %v10391_v2  ;;  %v10392_v61 = vunpack.i.l.bf16 %v10391_v2  ;;  %v10398_v45 = vunpack.i.h.bf16 %v10396_v57  ;;  %v10397_v18 = vunpack.i.l.bf16 %v10396_v57 }
 0x873   :  { %3916 = vrot.lane.b32.xlu1 %v3904_v25, %s10745_s29  ;;  %3964 = vrot.lane.b32.xlu0 %v3956_v21, %s10751_s2  ;;  %v4059_v21 = vrot.slane %v4046_v28, 3  ;;  %v4061_v2 = vrot.slane %v4047_v55, 3  ;;  %v4121_v55 = vrot.slane %v4106_v24, 3 }
 0x874   :  { %v2849_v19 = vsel %vm542_vm4, %v10392_v61, %v10393_v59  ;;  %v2850_v12 = vsel %vm542_vm4, %v10397_v18, %v10398_v45  ;;  %v4103_v59 = vmul.f32 %v12371_v56, %v12669_v42  ;;  %v4113_v18 = vrot.slane %v4101_v32, 3 }
 0x875   :  { %v12813_v5 = vpop.permute.xlu0 %3367  ;;  %9481 = vmatprep.mubr.f32.mxu0 %v2849_v19  ;;  %v12815_v8 = vpop.permute.xlu1 %3365  ;;  %v4062_v36 = vsel %vm499_vm1, %v4056_v33, %v4061_v2  ;;  %v4064_v19 = vsel %vm499_vm1, %v4059_v21, %v4063_v50  ;;  %v4105_v56 = vmul.f32 %v12383_v22, %v12669_v42  ;;  %v12889_v33 = vld [vmem:[#allocation2] sm:$0xff] }
 0x876   :  { %9482 = vmatmul.mubr.f32.vlgmr.msra.gmra.mrb[12].mxu0 %v2850_v12  ;;  %v4114_v12 = vrot.slane %v4103_v59, 3  ;;  %v12914_v59 = vld [vmem:[#allocation2 + $0x20] sm:$0xff] }
 0x877   :  { %3966 = vrot.lane.b32.xlu1 %v3959_v43, %s10751_s2  ;;  %3968 = vrot.lane.b32.xlu0 %v3961_v30, %s10751_s2  ;;  %v4116_v30 = vrot.slane %v4102_v29, 3  ;;  %v4221_v23 = vmul.f32 %v12914_v59, %v12682_v6 }
 0x878   :  { %9523 = vmatpush3.msk.msra.mxu0 %vm243_vm0, %v10451_v52  ;;  %9524 = vmatprep.mubr.msk.f32.mxu0 %vm10748_vm6, %v16323_v9  ;;  %v4115_v7 = vsel %vm499_vm1, %v4113_v18, %v4114_v12  ;;  %v4119_v52 = vrot.slane %v4105_v56, 3  ;;  %v4163_v18 = vmul.f32 %v12914_v59, %v12667_v46 }
 0x879   :  { %v12828_v20 = vpop.permute.xlu0 %3371  ;;  %v12830_v25 = vpop.permute.xlu1 %3369  ;;  %9527 = vmatprep.subr.mxu0 %v16323_v9 }
 0x87a   :  { %v4120_v28 = vsel %vm499_vm1, %v4114_v12, %v4119_v52 }
 0x87b   :  { %3970 = vrot.lane.b32.xlu1 %v3963_v48, %s10751_s2  ;;  %3972 = vrot.lane.b32.xlu0 %v3960_v37, %s10751_s2  ;;  %v4060_v37 = vsel %vm499_vm1, %v4058_v54, %v4059_v21  ;;  %v4159_v48 = vmul.f32 %v12889_v33, %v12667_v46  ;;  %v12905_v54 = vld [vmem:[#allocation2 + $0x8] sm:$0xff] }
 0x87c   :  { %v4160_v21 = vmul.f32 %v12905_v54, %v12667_v46 }
 0x87d   :  { %v12842_v31 = vpop.permute.xlu0 %3373  ;;  %v12844_v13 = vpop.permute.xlu1 %3447 }
 0x87e   :  { %v4174_v12 = vrot.slane %v4160_v21, 3 }
 0x87f   :  { %3974 = vrot.lane.b32.xlu1 %v3962_v58, %s10751_s2  ;;  %4065 = vrot.lane.b32.xlu0 %v4057_v1, %s10743_s3  ;;  %v4117_v58 = vrot.slane %v4104_v44, 3 }
 0x881   :  { %v12851_v57 = vpop.permute.xlu0 %3413  ;;  %v12853_v15 = vpop.permute.xlu1 %3375  ;;  %v4118_v38 = vsel %vm499_vm1, %v4116_v30, %v4117_v58  ;;  %v4177_v30 = vrot.slane %v4163_v18, 3 }
 0x883   :  { %4067 = vrot.lane.b32.xlu1 %v4060_v37, %s10743_s3  ;;  %4069 = vrot.lane.b32.xlu0 %v4062_v36, %s10743_s3  ;;  %v4122_v37 = vsel %vm499_vm1, %v4117_v58, %v4121_v55  ;;  %v4171_v36 = vrot.slane %v4159_v48, 3 }
 0x885   :  { %v12863_v61 = vpop.permute.xlu0 %3417  ;;  %v12865_v45 = vpop.permute.xlu1 %3415 }
 0x887   :  { %4071 = vrot.lane.b32.xlu1 %v4064_v19, %s10743_s3  ;;  %4073 = vrot.lane.b32.xlu0 %v4061_v2, %s10743_s3  ;;  %v12909_v2 = vld [vmem:[#allocation2 + $0x18] sm:$0xff] }
 0x888   :  { %v4162_v32 = vmul.f32 %v12909_v2, %v12667_v46 }
 0x889   :  { %v12876_v11 = vpop.permute.xlu0 %3421  ;;  %v12878_v43 = vpop.permute.xlu1 %3419 }
 0x88a   :  { %v4175_v56 = vrot.slane %v4162_v32, 3  ;;  %v4220_v32 = vmul.f32 %v12909_v2, %v12682_v6 }
 0x88b   :  { %4075 = vrot.lane.b32.xlu1 %v4063_v50, %s10743_s3  ;;  %4123 = vrot.lane.b32.xlu0 %v4115_v7, %s10744_s4  ;;  %v4172_v50 = vrot.slane %v4161_v62, 3  ;;  %v12925_v7 = vld [vmem:[#allocation2 + $0x28] sm:$0xff] }
 0x88c   :  { %v4164_v58 = vmul.f32 %v12925_v7, %v12667_v46  ;;  %v4176_v48 = vsel %vm499_vm1, %v4174_v12, %v4175_v56  ;;  %v8888_v62 = vld [vmem:[#allocation17 + $0x14] ss:$0 sm:$0xff] }
 0x88d   :  { %v12885_v0 = vpop.permute.xlu0 %3515  ;;  %v12887_v22 = vpop.permute.xlu1 %3423  ;;  %v4173_v44 = vsel %vm499_vm1, %v4171_v36, %v4172_v50  ;;  %v4217_v36 = vmul.f32 %v12889_v33, %v12682_v6 }
 0x88f   :  { %4125 = vrot.lane.b32.xlu1 %v4118_v38, %s10744_s4  ;;  %4127 = vrot.lane.b32.xlu0 %v4120_v28, %s10744_s4  ;;  %v4178_v38 = vsel %vm499_vm1, %v4172_v50, %v4177_v30  ;;  %v4179_v28 = vrot.slane %v4164_v58, 3  ;;  %v4219_v50 = vmul.f32 %v12895_v4, %v12682_v6  ;;  %v4233_v58 = vrot.slane %v4220_v32, 3 }
 0x891   :  { %v12901_v42 = vpop.permute.xlu0 %3519  ;;  %v12903_v1 = vpop.permute.xlu1 %3517 }
 0x893   :  { %4129 = vrot.lane.b32.xlu1 %v4122_v37, %s10744_s4  ;;  %4131 = vrot.lane.b32.xlu0 %v4119_v52, %s10744_s4  ;;  %v4180_v37 = vsel %vm499_vm1, %v4175_v56, %v4179_v28  ;;  %v4222_v56 = vmul.f32 %v12925_v7, %v12682_v6 }
 0x895   :  { %v12920_v29 = vpop.permute.xlu0 %3523  ;;  %v12922_v19 = vpop.permute.xlu1 %3521  ;;  %v4237_v32 = vrot.slane %v4222_v56, 3 }
 0x897   :  { %4133 = vrot.lane.b32.xlu1 %v4121_v55, %s10744_s4  ;;  %4181 = vrot.lane.b32.xlu0 %v4173_v44, %s10745_s29  ;;  %v4218_v55 = vmul.f32 %v12905_v54, %v12682_v6 }
 0x899   :  { %v12931_v24 = vpop.permute.xlu0 %3573  ;;  %v12933_v52 = vpop.permute.xlu1 %3525  ;;  %v4232_v44 = vrot.slane %v4218_v55, 3 }
 0x89b   :  { %4183 = vrot.lane.b32.xlu1 %v4176_v48, %s10745_s29  ;;  %4185 = vrot.lane.b32.xlu0 %v4178_v38, %s10745_s29  ;;  %v4229_v48 = vrot.slane %v4217_v36, 3  ;;  %v4230_v38 = vrot.slane %v4219_v50, 3  ;;  %v4234_v53 = vsel %vm499_vm1, %v4232_v44, %v4233_v58  ;;  %v4235_v36 = vrot.slane %v4221_v23, 3 }
 0x89c   :  { %v4238_v44 = vsel %vm499_vm1, %v4233_v58, %v4237_v32  ;;  %v4318_v23 = vmul.f32 %v12889_v33, %v12680_v34 }
 0x89d   :  { %v12939_v21 = vpop.permute.xlu0 %3577  ;;  %v12941_v46 = vpop.permute.xlu1 %3575  ;;  %v4231_v55 = vsel %vm499_vm1, %v4229_v48, %v4230_v38  ;;  %v4236_v48 = vsel %vm499_vm1, %v4230_v38, %v4235_v36  ;;  %v4323_v38 = vmul.f32 %v12925_v7, %v12680_v34 }
 0x89f   :  { %4272 = vrot.lane.b32.xlu0 %v8888_v62, %s10750_s0  ;;  %4187 = vrot.lane.b32.xlu1 %v4180_v37, %s10745_s29 }
 0x8a1   :  { %v12954_v18 = vpop.permute.xlu0 %3581  ;;  %v12956_v12 = vpop.permute.xlu1 %3579 }
 0x8a3   :  { %4191 = vrot.lane.b32.xlu0 %v4179_v28, %s10745_s29  ;;  %4189 = vrot.lane.b32.xlu1 %v4177_v30, %s10745_s29  ;;  %v4319_v30 = vmul.f32 %v12905_v54, %v12680_v34  ;;  %v4321_v28 = vmul.f32 %v12909_v2, %v12680_v34 }
 0x8a5   :  { %v12964_v62 = vpop.permute.xlu0 %3631  ;;  %v12966_v37 = vpop.permute.xlu1 %3583  ;;  %v4333_v9 = vrot.slane %v4319_v30, 4 }
 0x8a6   :  { %16350 = vst [vmem:[#allocation53_spill] sm:$0xff] %v12964_v62  ;;  %v4330_v62 = vrot.slane %v4318_v23, 4 }
 0x8a7   :  { %4241 = vrot.lane.b32.xlu0 %v4234_v53, %s10751_s2  ;;  %4239 = vrot.lane.b32.xlu1 %v4231_v55, %s10751_s2  ;;  %v4320_v53 = vmul.f32 %v12895_v4, %v12680_v34 }
 0x8a9   :  { %v12972_v50 = vpop.permute.xlu0 %3635  ;;  %v12974_v6 = vpop.permute.xlu1 %3633  ;;  %v4331_v58 = vrot.slane %v4320_v53, 4 }
 0x8aa   :  { %16351 = vst [vmem:[#allocation55_spill] sm:$0xff] %v12972_v50  ;;  %16352 = vst [vmem:[#allocation56_spill] sm:$0xff] %v12974_v6  ;;  %v4334_v50 = vrot.slane %v4321_v28, 4  ;;  %v4322_v6 = vmul.f32 %v12914_v59, %v12680_v34  ;;  %v4338_v28 = vrot.slane %v4323_v38, 4 }
 0x8ab   :  { %4245 = vrot.lane.b32.xlu0 %v4238_v44, %s10751_s2  ;;  %4243 = vrot.lane.b32.xlu1 %v4236_v48, %s10751_s2  ;;  %v4332_v30 = vsel %vm243_vm0, %v4330_v62, %v4331_v58 }
 0x8ac   :  { %v4336_v23 = vrot.slane %v4322_v6, 4  ;;  %v4376_v6 = vmul.f32 %v12889_v33, %v12692_v3 }
 0x8ad   :  { %v12988_v56 = vpop.permute.xlu0 %3722  ;;  %v12990_v55 = vpop.permute.xlu1 %3637 }
 0x8ae   :  { %16353 = vst [vmem:[#allocation57_spill] sm:$0xff] %v12988_v56  ;;  %v4335_v56 = vsel %vm243_vm0, %v4333_v9, %v4334_v50  ;;  %v4339_v9 = vsel %vm243_vm0, %v4334_v50, %v4338_v28  ;;  %v4337_v62 = vsel %vm243_vm0, %v4331_v58, %v4336_v23  ;;  %v4381_v58 = vmul.f32 %v12925_v7, %v12692_v3 }
 0x8af   :  { %4249 = vrot.lane.b32.xlu0 %v4237_v32, %s10751_s2  ;;  %4247 = vrot.lane.b32.xlu1 %v4235_v36, %s10751_s2  ;;  %v4377_v32 = vmul.f32 %v12905_v54, %v12692_v3  ;;  %v4379_v36 = vmul.f32 %v12909_v2, %v12692_v3 }
 0x8b1   :  { %v12998_v44 = vpop.permute.xlu0 %3641  ;;  %v13000_v48 = vpop.permute.xlu1 %3639 }
 0x8b2   :  { %16354 = vst [vmem:[#allocation58_spill] sm:$0xff] %v12998_v44  ;;  %16355 = vst [vmem:[#allocation59_spill] sm:$0xff] %v13000_v48  ;;  %v4388_v48 = vrot.slane %v4376_v6, 4  ;;  %v4380_v44 = vmul.f32 %v12914_v59, %v12692_v3 }
 0x8b3   :  { %4342 = vrot.lane.b32.xlu0 %v4335_v56, %s10743_s3  ;;  %4340 = vrot.lane.b32.xlu1 %v4332_v30, %s10743_s3  ;;  %v4378_v56 = vmul.f32 %v12895_v4, %v12692_v3 }
 0x8b4   :  { %v4394_v6 = vrot.slane %v4380_v44, 4  ;;  %v4434_v44 = vmul.f32 %v12889_v33, %v12690_v51 }
 0x8b5   :  { %v13006_v53 = vpop.permute.xlu0 %3691  ;;  %v13008_v34 = vpop.permute.xlu1 %3689  ;;  %v4389_v50 = vrot.slane %v4378_v56, 4 }
 0x8b6   :  { %16356 = vst [vmem:[#allocation60_spill] sm:$0xff] %v13006_v53  ;;  %16357 = vst [vmem:[#allocation61_spill] sm:$0xff] %v13008_v34  ;;  %v4391_v34 = vrot.slane %v4377_v32, 4  ;;  %v4392_v53 = vrot.slane %v4379_v36, 4  ;;  %v4396_v36 = vrot.slane %v4381_v58, 4 }
 0x8b7   :  { %4346 = vrot.lane.b32.xlu0 %v4339_v9, %s10743_s3  ;;  %4344 = vrot.lane.b32.xlu1 %v4337_v62, %s10743_s3  ;;  %v4390_v32 = vsel %vm243_vm0, %v4388_v48, %v4389_v50  ;;  %v4395_v48 = vsel %vm243_vm0, %v4389_v50, %v4394_v6  ;;  %v4439_v50 = vmul.f32 %v12925_v7, %v12690_v51 }
 0x8b9   :  { %v13022_v38 = vpop.permute.xlu0 %3695  ;;  %v13024_v30 = vpop.permute.xlu1 %3693 }
 0x8ba   :  { %16358 = vst [vmem:[#allocation62_spill] sm:$0xff] %v13024_v30  ;;  %v4393_v30 = vsel %vm243_vm0, %v4391_v34, %v4392_v53  ;;  %v4397_v34 = vsel %vm243_vm0, %v4392_v53, %v4396_v36 }
 0x8bb   :  { %4350 = vrot.lane.b32.xlu0 %v4338_v28, %s10743_s3  ;;  %4348 = vrot.lane.b32.xlu1 %v4336_v23, %s10743_s3  ;;  %v4435_v28 = vmul.f32 %v12905_v54, %v12690_v51  ;;  %v4437_v23 = vmul.f32 %v12909_v2, %v12690_v51 }
 0x8bd   :  { %v13032_v9 = vpop.permute.xlu0 %3699  ;;  %v13034_v62 = vpop.permute.xlu1 %3697 }
 0x8be   :  { %16359 = vst [vmem:[#allocation63_spill] sm:$0xff] %v13032_v9  ;;  %16360 = vst [vmem:[#allocation64_spill] sm:$0xff] %v13034_v62  ;;  %v4446_v62 = vrot.slane %v4434_v44, 4  ;;  %v4438_v9 = vmul.f32 %v12914_v59, %v12690_v51 }
 0x8bf   :  { %4400 = vrot.lane.b32.xlu0 %v4393_v30, %s10744_s4  ;;  %4398 = vrot.lane.b32.xlu1 %v4390_v32, %s10744_s4  ;;  %v4436_v30 = vmul.f32 %v12895_v4, %v12690_v51 }
 0x8c0   :  { %v4452_v44 = vrot.slane %v4438_v9, 4  ;;  %v4492_v9 = vmul.f32 %v12889_v33, %v12710_v47 }
 0x8c1   :  { %v13040_v56 = vpop.permute.xlu0 %3792  ;;  %v13042_v3 = vpop.permute.xlu1 %3790  ;;  %v4447_v53 = vrot.slane %v4436_v30, 4 }
 0x8c2   :  { %16361 = vst [vmem:[#allocation65_spill] sm:$0xff] %v13040_v56  ;;  %16362 = vst [vmem:[#allocation66_spill] sm:$0xff] %v13042_v3  ;;  %v4449_v3 = vrot.slane %v4435_v28, 4  ;;  %v4450_v56 = vrot.slane %v4437_v23, 4  ;;  %v4454_v23 = vrot.slane %v4439_v50, 4 }
 0x8c3   :  { %4404 = vrot.lane.b32.xlu0 %v4397_v34, %s10744_s4  ;;  %4402 = vrot.lane.b32.xlu1 %v4395_v48, %s10744_s4  ;;  %v4448_v28 = vsel %vm243_vm0, %v4446_v62, %v4447_v53  ;;  %v4453_v62 = vsel %vm243_vm0, %v4447_v53, %v4452_v44  ;;  %v4497_v53 = vmul.f32 %v12925_v7, %v12710_v47 }
 0x8c5   :  { %v13056_v58 = vpop.permute.xlu0 %3796  ;;  %v13058_v32 = vpop.permute.xlu1 %3794 }
 0x8c6   :  { %16363 = vst [vmem:[#allocation67_spill] sm:$0xff] %v13058_v32  ;;  %v4451_v32 = vsel %vm243_vm0, %v4449_v3, %v4450_v56  ;;  %v4455_v3 = vsel %vm243_vm0, %v4450_v56, %v4454_v23 }
 0x8c7   :  { %4408 = vrot.lane.b32.xlu0 %v4396_v36, %s10744_s4  ;;  %4406 = vrot.lane.b32.xlu1 %v4394_v6, %s10744_s4  ;;  %v4493_v36 = vmul.f32 %v12905_v54, %v12710_v47  ;;  %v4495_v6 = vmul.f32 %v12909_v2, %v12710_v47 }
 0x8c9   :  { %v13066_v34 = vpop.permute.xlu0 %3800  ;;  %v13068_v48 = vpop.permute.xlu1 %3798 }
 0x8ca   :  { %16364 = vst [vmem:[#allocation68_spill] sm:$0xff] %v13066_v34  ;;  %16365 = vst [vmem:[#allocation69_spill] sm:$0xff] %v13068_v48  ;;  %v4504_v48 = vrot.slane %v4492_v9, 4  ;;  %v4496_v34 = vmul.f32 %v12914_v59, %v12710_v47 }
 0x8cb   :  { %4458 = vrot.lane.b32.xlu0 %v4451_v32, %s10745_s29  ;;  %4456 = vrot.lane.b32.xlu1 %v4448_v28, %s10745_s29  ;;  %v4494_v32 = vmul.f32 %v12895_v4, %v12710_v47 }
 0x8cc   :  { %v4510_v9 = vrot.slane %v4496_v34, 4 }
 0x8cd   :  { %v13074_v30 = vpop.permute.xlu0 %3850  ;;  %v13076_v51 = vpop.permute.xlu1 %3848  ;;  %v4505_v56 = vrot.slane %v4494_v32, 4 }
 0x8ce   :  { %16366 = vst [vmem:[#allocation70_spill] sm:$0xff] %v13074_v30  ;;  %16367 = vst [vmem:[#allocation71_spill] sm:$0xff] %v13076_v51  ;;  %v4507_v51 = vrot.slane %v4493_v36, 4  ;;  %v4508_v30 = vrot.slane %v4495_v6, 4  ;;  %v4512_v6 = vrot.slane %v4497_v53, 4 }
 0x8cf   :  { %4462 = vrot.lane.b32.xlu0 %v4455_v3, %s10745_s29  ;;  %4460 = vrot.lane.b32.xlu1 %v4453_v62, %s10745_s29  ;;  %v4506_v36 = vsel %vm243_vm0, %v4504_v48, %v4505_v56 }
 0x8d1   :  { %v13090_v50 = vpop.permute.xlu0 %3854  ;;  %v13092_v28 = vpop.permute.xlu1 %3852 }
 0x8d2   :  { %16368 = vst [vmem:[#allocation72_spill] sm:$0xff] %v13092_v28  ;;  %v4509_v28 = vsel %vm243_vm0, %v4507_v51, %v4508_v30 }
 0x8d3   :  { %4466 = vrot.lane.b32.xlu0 %v4454_v23, %s10745_s29  ;;  %4464 = vrot.lane.b32.xlu1 %v4452_v44, %s10745_s29  ;;  %v4513_v23 = vsel %vm243_vm0, %v4508_v30, %v4512_v6  ;;  %v4511_v44 = vsel %vm243_vm0, %v4505_v56, %v4510_v9 }
 0x8d5   :  { %v13100_v3 = vpop.permute.xlu0 %3858  ;;  %v13102_v62 = vpop.permute.xlu1 %3856 }
 0x8d6   :  { %16369 = vst [vmem:[#allocation73_spill] sm:$0xff] %v13100_v3  ;;  %16370 = vst [vmem:[#allocation74_spill] sm:$0xff] %v13102_v62  ;;  %v4541_v3 = vld [vmem:[#allocation19] sm:$0xff]  ;;  %v4542_v62 = vld [vmem:[#allocation19 + $0x8] sm:$0xff] }
 0x8d7   :  { %4516 = vrot.lane.b32.xlu0 %v4509_v28, %s10751_s2  ;;  %4514 = vrot.lane.b32.xlu1 %v4506_v36, %s10751_s2  ;;  %v13116_v48 = vpack.c.bf16 %v4542_v62, %v4541_v3 }
 0x8d9   :  { %v13108_v32 = vpop.permute.xlu0 %3908  ;;  %v13110_v47 = vpop.permute.xlu1 %3906  ;;  %16373 = vst [vmem:[#allocation77_spill] sm:$0xff] %v13116_v48  ;;  %10057 = vmatprep.subr.bf16.mxu1 %v13116_v48 }
 0x8da   :  { %16371 = vst [vmem:[#allocation75_spill] sm:$0xff] %v13108_v32  ;;  %16372 = vst [vmem:[#allocation76_spill] sm:$0xff] %v13110_v47 }
 0x8db   :  { %4520 = vrot.lane.b32.xlu0 %v4513_v23, %s10751_s2  ;;  %4518 = vrot.lane.b32.xlu1 %v4511_v44, %s10751_s2 }
 0x8dd   :  { %v13118_v34 = vpop.permute.xlu0 %3912  ;;  %v13120_v51 = vpop.permute.xlu1 %3910 }
 0x8de   :  { %16374 = vst [vmem:[#allocation78_spill] sm:$0xff] %v13118_v34  ;;  %16375 = vst [vmem:[#allocation79_spill] sm:$0xff] %v13120_v51 }
 0x8df   :  { %4524 = vrot.lane.b32.xlu0 %v4512_v6, %s10751_s2  ;;  %4522 = vrot.lane.b32.xlu1 %v4510_v9, %s10751_s2 }
 0x8e1   :  { %v13125_v30 = vpop.permute.xlu0 %3914  ;;  %v13127_v28 = vpop.permute.xlu1 %3997 }
 0x8e2   :  { %16376 = vst [vmem:[#allocation80_spill] sm:$0xff] %v13125_v30  ;;  %16377 = vst [vmem:[#allocation81_spill] sm:$0xff] %v13127_v28 }
 0x8e5   :  { %v13129_v56 = vpop.permute.xlu0 %3964  ;;  %v13131_v53 = vpop.permute.xlu1 %3916 }
 0x8e6   :  { %16378 = vst [vmem:[#allocation82_spill] sm:$0xff] %v13129_v56  ;;  %16379 = vst [vmem:[#allocation83_spill] sm:$0xff] %v13131_v53 }
 0x8e9   :  { %v13133_v3 = vpop.permute.xlu0 %3968  ;;  %v13135_v62 = vpop.permute.xlu1 %3966 }
 0x8ea   :  { %16380 = vst [vmem:[#allocation84_spill] sm:$0xff] %v13133_v3  ;;  %16381 = vst [vmem:[#allocation85_spill] sm:$0xff] %v13135_v62 }
 0x8ed   :  { %v13137_v36 = vpop.permute.xlu0 %3972  ;;  %v13139_v23 = vpop.permute.xlu1 %3970 }
 0x8ee   :  { %16382 = vst [vmem:[#allocation86_spill] sm:$0xff] %v13137_v36  ;;  %16383 = vst [vmem:[#allocation87_spill] sm:$0xff] %v13139_v23 }
 0x8f1   :  { %v13141_v44 = vpop.permute.xlu0 %4065  ;;  %v13143_v6 = vpop.permute.xlu1 %3974 }
 0x8f2   :  { %16384 = vst [vmem:[#allocation88_spill] sm:$0xff] %v13141_v44  ;;  %16385 = vst [vmem:[#allocation89_spill] sm:$0xff] %v13143_v6 }
 0x8f5   :  { %v13145_v9 = vpop.permute.xlu0 %4069  ;;  %v13147_v48 = vpop.permute.xlu1 %4067 }
 0x8f6   :  { %16386 = vst [vmem:[#allocation90_spill] sm:$0xff] %v13145_v9  ;;  %16387 = vst [vmem:[#allocation91_spill] sm:$0xff] %v13147_v48  ;;  %v3237_v9 = vmul.f32 %v12905_v54, %v12708_v35 }
 0x8f8   :  { %v3291_v48 = vadd.f32 %v12720_v14, %v3237_v9  ;;  %v3426_v9 = vsel %vm3425_vm5, %v12851_v57, %v12865_v45 }
 0x8f9   :  { %v13149_v30 = vpop.permute.xlu0 %4073  ;;  %v13151_v56 = vpop.permute.xlu1 %4071 }
 0x8fa   :  { %16388 = vst [vmem:[#allocation92_spill] sm:$0xff] %v13149_v30  ;;  %16389 = vst [vmem:[#allocation93_spill] sm:$0xff] %v13151_v56  ;;  %v3281_v30 = vsel %vm289_vm14, %v12722_v41, %v12720_v14  ;;  %v3241_v41 = vmul.f32 %v12925_v7, %v12708_v35  ;;  %v3329_v56 = vsel %vm317_vm15, %v12770_v10, %v12768_v40 }
 0x8fb   :  { %v3339_v10 = vadd.f32 %v12768_v40, %v3291_v48  ;;  %v3331_v14 = vsel %vm317_vm15, %v12796_v39, %v12794_v49  ;;  %v3452_v40 = vmul.f32 %v12895_v4, %v12844_v13 }
 0x8fc   :  { %v3295_v34 = vadd.f32 %v12750_v17, %v3241_v41 }
 0x8fd   :  { %v13153_v53 = vpop.permute.xlu0 %4123  ;;  %v13155_v3 = vpop.permute.xlu1 %4075 }
 0x8fe   :  { %16390 = vst [vmem:[#allocation94_spill] sm:$0xff] %v13153_v53  ;;  %16391 = vst [vmem:[#allocation95_spill] sm:$0xff] %v13155_v3  ;;  %v3236_v53 = vmul.f32 %v12889_v33, %v12708_v35  ;;  %v3239_v3 = vmul.f32 %v12909_v2, %v12708_v35 }
 0x900   :  { %v3293_v6 = vadd.f32 %v12738_v63, %v3239_v3  ;;  %v3343_v3 = vadd.f32 %v12794_v49, %v3295_v34  ;;  %v3463_v49 = vrot.slane %v3452_v40, 1 }
 0x901   :  { %v13157_v62 = vpop.permute.xlu0 %4127  ;;  %v13159_v36 = vpop.permute.xlu1 %4125 }
 0x902   :  { %16392 = vst [vmem:[#allocation96_spill] sm:$0xff] %v13157_v62  ;;  %16393 = vst [vmem:[#allocation97_spill] sm:$0xff] %v13159_v36  ;;  %v3282_v62 = vsel %vm289_vm14, %v12740_v27, %v12738_v63  ;;  %v3240_v36 = vmul.f32 %v12914_v59, %v12708_v35  ;;  %v3290_v27 = vadd.f32 %v3281_v30, %v3236_v53 }
 0x903   :  { %v3377_v63 = vsel %vm542_vm4, %v12815_v8, %v12813_v5  ;;  %v3450_v30 = vmul.f32 %v12889_v33, %v12844_v13  ;;  %v3341_v48 = vadd.f32 %v12780_v60, %v3293_v6  ;;  %v3454_v8 = vmul.f32 %v12914_v59, %v12844_v13 }
 0x904   :  { %v3338_v32 = vadd.f32 %v3329_v56, %v3290_v27  ;;  %v3453_v56 = vmul.f32 %v12909_v2, %v12844_v13  ;;  %v3379_v6 = vsel %vm542_vm4, %v12842_v31, %v12853_v15  ;;  %v3391_v57 = vadd.f32 %v12853_v15, %v3343_v3 }
 0x905   :  { %v13161_v23 = vpop.permute.xlu0 %4131  ;;  %v13163_v44 = vpop.permute.xlu1 %4129  ;;  %v3462_v41 = vrot.slane %v3450_v30, 1  ;;  %v3527_v15 = vsel %vm289_vm14, %v12885_v0, %v12903_v1  ;;  %v3529_v3 = vsel %vm289_vm14, %v12920_v29, %v12933_v52  ;;  %v3585_v0 = vsel %vm317_vm15, %v12931_v24, %v12941_v46 }
 0x906   :  { %16394 = vst [vmem:[#allocation98_spill] sm:$0xff] %v13161_v23  ;;  %16395 = vst [vmem:[#allocation99_spill] sm:$0xff] %v13163_v44  ;;  %v3283_v23 = vsel %vm289_vm14, %v12752_v26, %v12750_v17  ;;  %v3238_v44 = vmul.f32 %v12895_v4, %v12708_v35  ;;  %v3330_v35 = vsel %vm317_vm15, %v12782_v16, %v12780_v60 }
 0x907   :  { %v3294_v47 = vadd.f32 %v3283_v23, %v3240_v36  ;;  %v3378_v17 = vsel %vm542_vm4, %v12830_v25, %v12828_v20  ;;  %v3451_v16 = vmul.f32 %v12905_v54, %v12844_v13  ;;  %v3387_v36 = vadd.f32 %v12813_v5, %v3339_v10 }
 0x908   :  { %v3292_v51 = vadd.f32 %v3282_v62, %v3238_v44  ;;  %v3455_v23 = vmul.f32 %v12925_v7, %v12844_v13  ;;  %v3386_v60 = vadd.f32 %v3377_v63, %v3338_v32  ;;  %v3427_v5 = vsel %vm3425_vm5, %v12863_v61, %v12878_v43 }
 0x909   :  { %v13191_v26 = vpop.permute.xlu0 %4181  ;;  %v13193_v28 = vpop.permute.xlu1 %4133  ;;  %v3342_v62 = vadd.f32 %v3331_v14, %v3294_v47  ;;  %v3465_v47 = vrot.slane %v3451_v16, 1  ;;  %v3466_v13 = vrot.slane %v3453_v56, 1  ;;  %v3468_v32 = vrot.slane %v3454_v8, 1 }
 0x90a   :  { %v3340_v39 = vadd.f32 %v3330_v35, %v3292_v51  ;;  %v3389_v51 = vadd.f32 %v12828_v20, %v3341_v48  ;;  %v3428_v20 = vsel %vm3425_vm5, %v12876_v11, %v12887_v22  ;;  %v3436_v35 = vadd.f32 %v12865_v45, %v3387_v36 }
 0x90b   :  { %v3390_v27 = vadd.f32 %v3379_v6, %v3342_v62  ;;  %v3470_v10 = vrot.slane %v3455_v23, 1  ;;  %v3435_v14 = vadd.f32 %v3426_v9, %v3386_v60  ;;  %v3440_v30 = vadd.f32 %v12887_v22, %v3391_v57 }
 0x90c   :  { %v3388_v44 = vadd.f32 %v3378_v17, %v3340_v39  ;;  %v3438_v63 = vadd.f32 %v12878_v43, %v3389_v51  ;;  %v3464_v11 = vsel %vm333_vm12, %v3462_v41, %v3463_v49  ;;  %v3467_v16 = vsel %vm333_vm12, %v3465_v47, %v3466_v13 }
 0x90d   :  { %v13220_v53 = vpop.permute.xlu0 %4185  ;;  %v13222_v25 = vpop.permute.xlu1 %4183  ;;  %v3439_v17 = vadd.f32 %v3428_v20, %v3390_v27  ;;  %v3479_v39 = vadd.f32 %v3467_v16, %v3436_v35  ;;  %v3469_v45 = vsel %vm333_vm12, %v3463_v49, %v3468_v32  ;;  %v3471_v43 = vsel %vm333_vm12, %v3466_v13, %v3470_v10  ;;  %v16397_v20 = vld [vmem:[#allocation53_spill] sm:$0xff] }
 0x90e   :  { %v3437_v61 = vadd.f32 %v3427_v5, %v3388_v44  ;;  %v3478_v56 = vadd.f32 %v3464_v11, %v3435_v14  ;;  %v3481_v8 = vadd.f32 %v3471_v43, %v3438_v63  ;;  %v3528_v22 = vsel %vm289_vm14, %v12901_v42, %v12922_v19  ;;  %v16399_v27 = vld [vmem:[#allocation57_spill] sm:$0xff] }
 0x90f   :  { %v3482_v36 = vadd.f32 %v3468_v32, %v3439_v17  ;;  %v3483_v23 = vadd.f32 %v3470_v10, %v3440_v30  ;;  %v3537_v51 = vadd.f32 %v12903_v1, %v3479_v39  ;;  %v3586_v49 = vsel %vm317_vm15, %v12939_v21, %v12956_v12  ;;  %v16398_v32 = vld [vmem:[#allocation55_spill] sm:$0xff] }
 0x910   :  { %v3480_v62 = vadd.f32 %v3469_v45, %v3437_v61  ;;  %v3536_v60 = vadd.f32 %v3527_v15, %v3478_v56  ;;  %v3539_v44 = vadd.f32 %v12922_v19, %v3481_v8  ;;  %v3587_v1 = vsel %vm317_vm15, %v12954_v18, %v12966_v37  ;;  %v16396_v19 = vld [vmem:[#allocation56_spill] sm:$0xff]  ;;  %v16400_v15 = vld [vmem:[#allocation58_spill] sm:$0xff]  ;;  %v16401_v45 = vld [vmem:[#allocation59_spill] sm:$0xff] }
 0x911   :  { %v13241_v34 = vpop.permute.xlu0 %4272  ;;  %v13243_v31 = vpop.permute.xlu1 %4187  ;;  %v3540_v41 = vadd.f32 %v3529_v3, %v3482_v36  ;;  %v3541_v29 = vadd.f32 %v12933_v52, %v3483_v23  ;;  %v3595_v24 = vadd.f32 %v12941_v46, %v3537_v51  ;;  %v3643_v13 = vsel %vm542_vm4, %v16397_v20, %v16396_v19  ;;  %v16402_v56 = vld [vmem:[#allocation60_spill] sm:$0xff]  ;;  %v16403_v8 = vld [vmem:[#allocation61_spill] sm:$0xff]  ;;  %v16404_v3 = vld [vmem:[#allocation62_spill] sm:$0xff] }
 0x912   :  { %v3538_v42 = vadd.f32 %v3528_v22, %v3480_v62  ;;  %v3594_v47 = vadd.f32 %v3585_v0, %v3536_v60  ;;  %v3597_v5 = vadd.f32 %v12956_v12, %v3539_v44  ;;  %v3644_v52 = vsel %vm542_vm4, %v16398_v32, %v12990_v55  ;;  %v16405_v23 = vld [vmem:[#allocation63_spill] sm:$0xff]  ;;  %v16406_v0 = vld [vmem:[#allocation64_spill] sm:$0xff] }
 0x913   :  { %v3726_v21 = vmul.f32 %v12905_v54, %v16399_v27  ;;  %v3728_v46 = vmul.f32 %v12909_v2, %v16399_v27  ;;  %v3725_v12 = vmul.f32 %v12889_v33, %v16399_v27  ;;  %v3727_v18 = vmul.f32 %v12895_v4, %v16399_v27 }
 0x914   :  { %v3596_v57 = vadd.f32 %v3586_v49, %v3538_v42  ;;  %v3730_v35 = vmul.f32 %v12925_v7, %v16399_v27  ;;  %v3598_v63 = vadd.f32 %v3587_v1, %v3540_v41  ;;  %v3599_v61 = vadd.f32 %v12966_v37, %v3541_v29 }
 0x915   :  { %v13251_v40 = vpop.permute.xlu0 %4191  ;;  %v13253_v48 = vpop.permute.xlu1 %4189  ;;  %v3653_v17 = vadd.f32 %v16396_v19, %v3595_v24  ;;  %v3729_v30 = vmul.f32 %v12914_v59, %v16399_v27  ;;  %v3652_v11 = vadd.f32 %v3643_v13, %v3594_v47  ;;  %v3655_v39 = vadd.f32 %v12990_v55, %v3597_v5 }
 0x916   :  { %v3654_v16 = vadd.f32 %v3644_v52, %v3596_v57  ;;  %v3645_v43 = vsel %vm542_vm4, %v16401_v45, %v16400_v15  ;;  %v3701_v22 = vsel %vm3425_vm5, %v16403_v8, %v16402_v56  ;;  %v3702_v37 = vsel %vm3425_vm5, %v16404_v3, %v13022_v38  ;;  %v16412_v8 = vld [vmem:[#allocation70_spill] sm:$0xff] }
 0x917   :  { %v3740_v62 = vrot.slane %v3726_v21, 2  ;;  %v3741_v36 = vrot.slane %v3728_v46, 2  ;;  %v3703_v60 = vsel %vm3425_vm5, %v16406_v0, %v16405_v23  ;;  %v3737_v51 = vrot.slane %v3725_v12, 2  ;;  %v16407_v12 = vld [vmem:[#allocation65_spill] sm:$0xff] }
 0x918   :  { %v3738_v55 = vrot.slane %v3727_v18, 2  ;;  %v3745_v44 = vrot.slane %v3730_v35, 2  ;;  %v3657_v29 = vadd.f32 %v16400_v15, %v3599_v61  ;;  %v3656_v49 = vadd.f32 %v3645_v43, %v3598_v63  ;;  %v16408_v18 = vld [vmem:[#allocation66_spill] sm:$0xff]  ;;  %v16409_v63 = vld [vmem:[#allocation67_spill] sm:$0xff] }
 0x919   :  { %v13271_v6 = vpop.permute.xlu0 %4241  ;;  %v13273_v9 = vpop.permute.xlu1 %4239  ;;  %v3711_v47 = vadd.f32 %v16402_v56, %v3653_v17  ;;  %v3743_v24 = vrot.slane %v3729_v30, 2  ;;  %v3710_v5 = vadd.f32 %v3701_v22, %v3652_v11  ;;  %v3713_v1 = vadd.f32 %v13022_v38, %v3655_v39  ;;  %v16411_v39 = vld [vmem:[#allocation69_spill] sm:$0xff]  ;;  %v16413_v22 = vld [vmem:[#allocation71_spill] sm:$0xff] }
 0x91a   :  { %v3712_v19 = vadd.f32 %v3702_v37, %v3654_v16  ;;  %v3715_v20 = vadd.f32 %v16405_v23, %v3657_v29  ;;  %v3714_v13 = vadd.f32 %v3703_v60, %v3656_v49  ;;  %v3742_v32 = vsel %vm410_vm13, %v3740_v62, %v3741_v36  ;;  %v16410_v16 = vld [vmem:[#allocation68_spill] sm:$0xff] }
 0x91b   :  { %v3739_v52 = vsel %vm410_vm13, %v3737_v51, %v3738_v55  ;;  %v3746_v27 = vsel %vm410_vm13, %v3741_v36, %v3745_v44  ;;  %v3754_v57 = vadd.f32 %v3742_v32, %v3711_v47  ;;  %v3802_v35 = vsel %vm289_vm14, %v16408_v18, %v16407_v12  ;;  %v16420_v32 = vld [vmem:[#allocation79_spill] sm:$0xff] }
 0x91c   :  { %v3744_v38 = vsel %vm410_vm13, %v3738_v55, %v3743_v24  ;;  %v3803_v61 = vsel %vm289_vm14, %v16409_v63, %v13056_v58  ;;  %v3753_v17 = vadd.f32 %v3739_v52, %v3710_v5  ;;  %v3756_v30 = vadd.f32 %v3746_v27, %v3713_v1  ;;  %v16416_v5 = vld [vmem:[#allocation74_spill] sm:$0xff]  ;;  %v16417_v1 = vld [vmem:[#allocation75_spill] sm:$0xff]  ;;  %v16421_v27 = vld [vmem:[#allocation81_spill] sm:$0xff] }
 0x91d   :  { %v13300_v10 = vpop.permute.xlu0 %4245  ;;  %v13302_v14 = vpop.permute.xlu1 %4243  ;;  %v3755_v11 = vadd.f32 %v3744_v38, %v3712_v19  ;;  %v3804_v15 = vsel %vm289_vm14, %v16411_v39, %v16410_v16  ;;  %v3812_v45 = vadd.f32 %v16407_v12, %v3754_v57  ;;  %v3758_v43 = vadd.f32 %v3745_v44, %v3715_v20  ;;  %v16414_v44 = vld [vmem:[#allocation72_spill] sm:$0xff] }
 0x91e   :  { %v3757_v56 = vadd.f32 %v3743_v24, %v3714_v13  ;;  %v3860_v3 = vsel %vm317_vm15, %v16413_v22, %v16412_v8  ;;  %v3811_v37 = vadd.f32 %v3802_v35, %v3753_v17  ;;  %v3814_v62 = vadd.f32 %v13056_v58, %v3756_v30  ;;  %v16415_v24 = vld [vmem:[#allocation73_spill] sm:$0xff]  ;;  %v16418_v19 = vld [vmem:[#allocation76_spill] sm:$0xff]  ;;  %v16419_v13 = vld [vmem:[#allocation78_spill] sm:$0xff] }
 0x91f   :  { %v3813_v36 = vadd.f32 %v3803_v61, %v3755_v11  ;;  %v3816_v60 = vadd.f32 %v16410_v16, %v3758_v43  ;;  %v3870_v55 = vadd.f32 %v16412_v8, %v3812_v45  ;;  %v3861_v29 = vsel %vm317_vm15, %v16414_v44, %v13090_v50  ;;  %v16422_v43 = vld [vmem:[#allocation83_spill] sm:$0xff]  ;;  %v16424_v22 = vld [vmem:[#allocation85_spill] sm:$0xff] }
 0x920   :  { %v3815_v51 = vadd.f32 %v3804_v15, %v3757_v56  ;;  %v3869_v49 = vadd.f32 %v3860_v3, %v3811_v37  ;;  %v3872_v47 = vadd.f32 %v13090_v50, %v3814_v62  ;;  %v3862_v58 = vsel %vm317_vm15, %v16416_v5, %v16415_v24  ;;  %v16423_v56 = vld [vmem:[#allocation80_spill] sm:$0xff]  ;;  %v16425_v3 = vld [vmem:[#allocation82_spill] sm:$0xff]  ;;  %v16426_v62 = vld [vmem:[#allocation87_spill] sm:$0xff] }
 0x921   :  { %v13321_v42 = vpop.permute.xlu0 %4249  ;;  %v13323_v41 = vpop.permute.xlu1 %4247  ;;  %v3918_v20 = vsel %vm542_vm4, %v16418_v19, %v16417_v1  ;;  %v3919_v52 = vsel %vm542_vm4, %v16420_v32, %v16419_v13  ;;  %v4000_v57 = vmul.f32 %v12889_v33, %v16421_v27  ;;  %v4001_v12 = vmul.f32 %v12905_v54, %v16421_v27 }
 0x922   :  { %v4002_v50 = vmul.f32 %v12895_v4, %v16421_v27  ;;  %v3871_v18 = vadd.f32 %v3861_v29, %v3813_v36  ;;  %v4003_v35 = vmul.f32 %v12909_v2, %v16421_v27  ;;  %v4004_v38 = vmul.f32 %v12914_v59, %v16421_v27  ;;  %v16427_v36 = vld [vmem:[#allocation84_spill] sm:$0xff] }
 0x923   :  { %v4005_v63 = vmul.f32 %v12925_v7, %v16421_v27  ;;  %v3874_v30 = vadd.f32 %v16415_v24, %v3816_v60  ;;  %v3873_v11 = vadd.f32 %v3862_v58, %v3815_v51  ;;  %v3928_v16 = vadd.f32 %v16417_v1, %v3870_v55  ;;  %v16428_v55 = vld [vmem:[#allocation89_spill] sm:$0xff] }
 0x924   :  { %v3927_v39 = vadd.f32 %v3918_v20, %v3869_v49  ;;  %v3930_v15 = vadd.f32 %v16419_v13, %v3872_v47  ;;  %v3929_v45 = vadd.f32 %v3919_v52, %v3871_v18  ;;  %v3920_v8 = vsel %vm542_vm4, %v16423_v56, %v16422_v43  ;;  %v16429_v49 = vld [vmem:[#allocation86_spill] sm:$0xff] }
 0x925   :  { %v13332_v21 = vpop.permute.xlu0 %4342  ;;  %v13334_v46 = vpop.permute.xlu1 %4340  ;;  %v3976_v37 = vsel %vm3425_vm5, %v16425_v3, %v16424_v22  ;;  %v3977_v44 = vsel %vm3425_vm5, %v16427_v36, %v16426_v62  ;;  %v4012_v60 = vrot.slane %v4000_v57, 3  ;;  %v4013_v51 = vrot.slane %v4002_v50, 3  ;;  %v16435_v36 = vld [vmem:[#allocation92_spill] sm:$0xff] }
 0x926   :  { %v4015_v29 = vrot.slane %v4001_v12, 3  ;;  %v3978_v47 = vsel %vm3425_vm5, %v16429_v49, %v16428_v55  ;;  %v4016_v24 = vrot.slane %v4003_v35, 3  ;;  %v4018_v5 = vrot.slane %v4004_v38, 3  ;;  %v16430_v38 = vld [vmem:[#allocation91_spill] sm:$0xff] }
 0x927   :  { %v4020_v58 = vrot.slane %v4005_v63, 3  ;;  %v3931_v20 = vadd.f32 %v3920_v8, %v3873_v11  ;;  %v3932_v13 = vadd.f32 %v16422_v43, %v3874_v30  ;;  %v3985_v32 = vadd.f32 %v3976_v37, %v3927_v39  ;;  %v16431_v63 = vld [vmem:[#allocation88_spill] sm:$0xff]  ;;  %v16432_v43 = vld [vmem:[#allocation93_spill] sm:$0xff]  ;;  %v16433_v8 = vld [vmem:[#allocation90_spill] sm:$0xff] }
 0x928   :  { %v3986_v52 = vadd.f32 %v16424_v22, %v3928_v16  ;;  %v3987_v27 = vadd.f32 %v3977_v44, %v3929_v45  ;;  %v3988_v57 = vadd.f32 %v16426_v62, %v3930_v15  ;;  %v4014_v18 = vsel %vm499_vm1, %v4012_v60, %v4013_v51  ;;  %v16434_v62 = vld [vmem:[#allocation95_spill] sm:$0xff] }
 0x929   :  { %v13351_v23 = vpop.permute.xlu0 %4346  ;;  %v13353_v0 = vpop.permute.xlu1 %4344  ;;  %v3989_v12 = vadd.f32 %v3978_v47, %v3931_v20  ;;  %v3990_v50 = vadd.f32 %v16428_v55, %v3932_v13  ;;  %v4017_v35 = vsel %vm499_vm1, %v4015_v29, %v4016_v24  ;;  %v4077_v56 = vsel %vm289_vm14, %v16431_v63, %v16430_v38  ;;  %v16436_v20 = vld [vmem:[#allocation97_spill] sm:$0xff] }
 0x92a   :  { %v4019_v11 = vsel %vm499_vm1, %v4013_v51, %v4018_v5  ;;  %v4028_v16 = vadd.f32 %v4014_v18, %v3985_v32  ;;  %v4029_v45 = vadd.f32 %v4017_v35, %v3986_v52  ;;  %v4021_v15 = vsel %vm499_vm1, %v4016_v24, %v4020_v58  ;;  %v16437_v24 = vld [vmem:[#allocation94_spill] sm:$0xff]  ;;  %v16438_v32 = vld [vmem:[#allocation99_spill] sm:$0xff]  ;;  %v16439_v52 = vld [vmem:[#allocation96_spill] sm:$0xff] }
 0x92b   :  { %v4078_v22 = vsel %vm289_vm14, %v16433_v8, %v16432_v43  ;;  %v4030_v3 = vadd.f32 %v4019_v11, %v3987_v27  ;;  %v4031_v37 = vadd.f32 %v4021_v15, %v3988_v57  ;;  %v4079_v44 = vsel %vm289_vm14, %v16435_v36, %v16434_v62 }
 0x92c   :  { %v4086_v60 = vadd.f32 %v4077_v56, %v4028_v16  ;;  %v4087_v51 = vadd.f32 %v16430_v38, %v4029_v45  ;;  %v4032_v29 = vadd.f32 %v4018_v5, %v3989_v12  ;;  %v4033_v55 = vadd.f32 %v4020_v58, %v3990_v50  ;;  %v16440_v58 = vld [vmem:[#allocation98_spill] sm:$0xff] }
 0x92d   :  { %v13382_v61 = vpop.permute.xlu0 %4350  ;;  %v13384_v17 = vpop.permute.xlu1 %4348  ;;  %v4088_v49 = vadd.f32 %v4078_v22, %v4030_v3  ;;  %v4089_v47 = vadd.f32 %v16432_v43, %v4031_v37  ;;  %v4135_v13 = vsel %vm317_vm15, %v16437_v24, %v16436_v20  ;;  %v4136_v27 = vsel %vm317_vm15, %v16439_v52, %v16438_v32  ;;  %v4543_v52 = vld [vmem:[#allocation19 + $0x10] sm:$0xff] }
 0x92e   :  { %v4090_v35 = vadd.f32 %v4079_v44, %v4032_v29  ;;  %v4091_v38 = vadd.f32 %v16434_v62, %v4033_v55  ;;  %v4145_v5 = vadd.f32 %v16436_v20, %v4087_v51  ;;  %v4137_v12 = vsel %vm317_vm15, %v16440_v58, %v13193_v28 }
 0x92f   :  { %v4193_v50 = vsel %vm542_vm4, %v13191_v26, %v13222_v25  ;;  %v4276_v63 = vmul.f32 %v12905_v54, %v13241_v34  ;;  %v4278_v56 = vmul.f32 %v12909_v2, %v13241_v34  ;;  %v4275_v11 = vmul.f32 %v12889_v33, %v13241_v34 }
 0x930   :  { %v4144_v16 = vadd.f32 %v4135_v13, %v4086_v60  ;;  %v4146_v45 = vadd.f32 %v4136_v27, %v4088_v49  ;;  %v4147_v15 = vadd.f32 %v16438_v32, %v4089_v47  ;;  %v4277_v43 = vmul.f32 %v12895_v4, %v13241_v34  ;;  %v4544_v27 = vld [vmem:[#allocation19 + $0x18] sm:$0xff] }
 0x931   :  { %v13401_v1 = vpop.permute.xlu0 %4400  ;;  %v13403_v19 = vpop.permute.xlu1 %4398  ;;  %v4148_v8 = vadd.f32 %v4137_v12, %v4090_v35  ;;  %v4149_v22 = vadd.f32 %v13193_v28, %v4091_v38  ;;  %v4280_v26 = vmul.f32 %v12925_v7, %v13241_v34  ;;  %v13460_v54 = vmul.f32 %v12914_v59, %v13241_v34 }
 0x932   :  { %v4202_v33 = vadd.f32 %v4193_v50, %v4144_v16  ;;  %v4203_v37 = vadd.f32 %v13222_v25, %v4145_v5  ;;  %v4194_v62 = vsel %vm542_vm4, %v13220_v53, %v13243_v31  ;;  %v4251_v4 = vsel %vm3425_vm5, %v13273_v9, %v13271_v6 }
 0x933   :  { %v4205_v28 = vadd.f32 %v13243_v31, %v4147_v15  ;;  %v4290_v7 = vrot.slane %v4276_v63, 4  ;;  %v4291_v36 = vrot.slane %v4278_v56, 4  ;;  %v4287_v44 = vrot.slane %v4275_v11, 4 }
 0x934   :  { %v4195_v59 = vsel %vm542_vm4, %v13253_v48, %v13251_v40  ;;  %v4261_v34 = vadd.f32 %v13271_v6, %v4203_v37  ;;  %v4252_v25 = vsel %vm3425_vm5, %v13302_v14, %v13300_v10  ;;  %v4288_v53 = vrot.slane %v4277_v43, 4 }
 0x935   :  { %v13415_v30 = vpop.permute.xlu0 %4404  ;;  %v13417_v39 = vpop.permute.xlu1 %4402  ;;  %v4204_v60 = vadd.f32 %v4194_v62, %v4146_v45  ;;  %v4260_v51 = vadd.f32 %v4251_v4, %v4202_v33  ;;  %v4295_v29 = vrot.slane %v4280_v26, 4  ;;  %v4293_v9 = vrot.slane %v13460_v54, 4 }
 0x936   :  { %v4263_v49 = vadd.f32 %v13300_v10, %v4205_v28  ;;  %v4207_v47 = vadd.f32 %v13251_v40, %v4149_v22  ;;  %v4206_v20 = vadd.f32 %v4195_v59, %v4148_v8  ;;  %v4292_v6 = vsel %vm243_vm0, %v4290_v7, %v4291_v36 }
 0x937   :  { %v4262_v48 = vadd.f32 %v4252_v25, %v4204_v60  ;;  %v4253_v14 = vsel %vm3425_vm5, %v13323_v41, %v13321_v42  ;;  %v4304_v24 = vadd.f32 %v4292_v6, %v4261_v34  ;;  %v4289_v13 = vsel %vm243_vm0, %v4287_v44, %v4288_v53  ;;  %v4546_v44 = vld [vmem:[#allocation19 + $0x28] sm:$0xff]  ;;  %v4547_v6 = vld [vmem:[#allocation19 + $0x30] sm:$0xff] }
 0x938   :  { %v4352_v32 = vsel %vm289_vm14, %v13334_v46, %v13332_v21  ;;  %v4265_v10 = vadd.f32 %v13321_v42, %v4207_v47  ;;  %v4303_v40 = vadd.f32 %v4289_v13, %v4260_v51  ;;  %v4296_v35 = vsel %vm243_vm0, %v4291_v36, %v4295_v29  ;;  %v4545_v36 = vld [vmem:[#allocation19 + $0x20] sm:$0xff] }
 0x939   :  { %v13434_v57 = vpop.permute.xlu0 %4408  ;;  %v13436_v18 = vpop.permute.xlu1 %4406  ;;  %v4294_v38 = vsel %vm243_vm0, %v4288_v53, %v4293_v9  ;;  %v4362_v41 = vadd.f32 %v13332_v21, %v4304_v24  ;;  %v4306_v12 = vadd.f32 %v4296_v35, %v4263_v49  ;;  %v4353_v50 = vsel %vm289_vm14, %v13353_v0, %v13351_v23 }
 0x93a   :  { %v4410_v46 = vsel %vm317_vm15, %v13403_v19, %v13401_v1  ;;  %v4264_v63 = vadd.f32 %v4253_v14, %v4206_v20  ;;  %v4361_v42 = vadd.f32 %v4352_v32, %v4303_v40  ;;  %v4305_v56 = vadd.f32 %v4294_v38, %v4262_v48  ;;  %v4548_v14 = vld [vmem:[#allocation19 + $0x38] sm:$0xff] }
 0x93b   :  { %v10060_v11 = vpack.c.bf16 %v4544_v27, %v4543_v52  ;;  %v4364_v16 = vadd.f32 %v13351_v23, %v4306_v12  ;;  %v4420_v45 = vadd.f32 %v13401_v1, %v4362_v41  ;;  %v4411_v21 = vsel %vm317_vm15, %v13417_v39, %v13415_v30 }
 0x93c   :  { %v4363_v43 = vadd.f32 %v4353_v50, %v4305_v56  ;;  %v4308_v0 = vadd.f32 %v4295_v29, %v4265_v10  ;;  %v4354_v19 = vsel %vm289_vm14, %v13384_v17, %v13382_v61  ;;  %v4419_v8 = vadd.f32 %v4410_v46, %v4361_v42  ;;  %v4549_v50 = vld [vmem:[#allocation19 + $0x40] sm:$0xff]  ;;  %v4550_v46 = vld [vmem:[#allocation19 + $0x48] sm:$0xff] }
 0x93d   :  { %v4459_v2 = vpop.permute.xlu0 %4458  ;;  %v4457_v3 = vpop.permute.xlu1 %4456  ;;  %v4422_v54 = vadd.f32 %v13415_v30, %v4364_v16  ;;  %v4412_v17 = vsel %vm317_vm15, %v13436_v18, %v13434_v57  ;;  %v10072_v16 = vpack.c.bf16 %v4550_v46, %v4549_v50  ;;  %v16448_v50 = vld [vmem:[#allocation34_spill] sm:$0xff]  ;;  %v16449_v46 = vld [vmem:[#allocation35_spill] sm:$0xff] }
 0x93e   :  { %v4468_v15 = vsel %vm542_vm4, %v4457_v3, %v4459_v2  ;;  %v4478_v23 = vadd.f32 %v4459_v2, %v4420_v45  ;;  %v4366_v39 = vadd.f32 %v13382_v61, %v4308_v0  ;;  %v4307_v3 = vadd.f32 %v4293_v9, %v4264_v63  ;;  %v16441_v9 = vld [vmem:[#allocation77_spill] sm:$0xff]  ;;  %v4554_v0 = vld [vmem:[#allocation19 + $0x68] sm:$0xff] }
 0x93f   :  { %v4421_v62 = vadd.f32 %v4411_v21, %v4363_v43  ;;  %v4477_v4 = vadd.f32 %v4468_v15, %v4419_v8  ;;  %v4551_v45 = vld [vmem:[#allocation19 + $0x50] sm:$0xff]  ;;  %v4552_v21 = vld [vmem:[#allocation19 + $0x58] sm:$0xff]  ;;  %v4553_v43 = vld [vmem:[#allocation19 + $0x60] sm:$0xff] }
 0x940   :  { %v4365_v59 = vadd.f32 %v4354_v19, %v4307_v3  ;;  %v4424_v61 = vadd.f32 %v13434_v57, %v4366_v39  ;;  %v10064_v57 = vpack.c.bf16 %v4546_v44, %v4545_v36  ;;  %v10076_v15 = vpack.c.bf16 %v4552_v21, %v4551_v45  ;;  %v4555_v8 = vld [vmem:[#allocation19 + $0x70] sm:$0xff]  ;;  %v16451_v21 = vld [vmem:[#allocation54_spill] sm:$0xff] }
 0x941   :  { %v4463_v31 = vpop.permute.xlu0 %4462  ;;  %v4461_v55 = vpop.permute.xlu1 %4460  ;;  %v10080_v19 = vpack.c.bf16 %v4554_v0, %v4553_v43 }
 0x942   :  { %v4469_v1 = vsel %vm542_vm4, %v4461_v55, %v4463_v31  ;;  %v4480_v7 = vadd.f32 %v4463_v31, %v4422_v54  ;;  %v4423_v31 = vadd.f32 %v4412_v17, %v4365_v59  ;;  %v16442_v54 = vmov 0.0  }
 0x943   :  { %v4479_v34 = vadd.f32 %v4469_v1, %v4421_v62 }
 0x945   :  { %v4467_v5 = vpop.permute.xlu0 %4466  ;;  %v4465_v58 = vpop.permute.xlu1 %4464 }
 0x946   :  { %v4470_v18 = vsel %vm542_vm4, %v4465_v58, %v4467_v5  ;;  %v4482_v47 = vadd.f32 %v4467_v5, %v4424_v61  ;;  %v10068_v5 = vpack.c.bf16 %v4548_v14, %v4547_v6 }
 0x947   :  { %v4481_v24 = vadd.f32 %v4470_v18, %v4423_v31 }
 0x949   :  { %v4517_v22 = vpop.permute.xlu0 %4516  ;;  %v4515_v26 = vpop.permute.xlu1 %4514 }
 0x94a   :  { %v4526_v33 = vsel %vm3425_vm5, %v4515_v26, %v4517_v22  ;;  %v13510_v37 = vpop.f32.mrb[12].mxu0  ;;  %v4536_v30 = vadd.f32 %v4517_v22, %v4478_v23  ;;  %v4556_v22 = vld [vmem:[#allocation19 + $0x78] sm:$0xff] }
 0x94b   :  { %v13513_v28 = vpop.f32.mrb[13].mxu0  ;;  %v4535_v25 = vadd.f32 %v4526_v33, %v4477_v4  ;;  %v2929_v55 = vmul.f32 %v13510_v37, %v13510_v37  ;;  %v10084_v26 = vpack.c.bf16 %v4556_v22, %v4555_v8 }
 0x94c   :  { %v2928_v2 = vmul.f32 %v13513_v28, %v13513_v28  ;;  %9516 = vmatprep.mubr.f32.mxu1 %v13513_v28  ;;  %v4566_v20 = vrot.slane %v4536_v30, 2 }
 0x94d   :  { %9517 = vmatmul.mubr.f32.vlgmr.msra.gmra.mrb[14].mxu1 %v13510_v37  ;;  %v4521_v53 = vpop.permute.xlu0 %4520  ;;  %v4519_v60 = vpop.permute.xlu1 %4518  ;;  %v4563_v13 = vrot.slane %v4535_v25, 2 }
 0x94e   :  { %v4538_v51 = vadd.f32 %v4521_v53, %v4480_v7  ;;  %v4527_v29 = vsel %vm3425_vm5, %v4519_v60, %v4521_v53  ;;  %9519 = vmatprep.mubr.f32.mxu1 %v2928_v2  ;;  %10059 = vmatpush3.bf16.msra.mxu1 %v16441_v9  ;;  %v13538_v7 = vld [vmem:[#allocation10] sm:$0xf] }
 0x94f   :  { %v4537_v49 = vadd.f32 %v4527_v29, %v4479_v34  ;;  %10061 = vmatprep.subr.bf16.mxu1 %v10060_v11 }
 0x950   :  { %v4567_v48 = vrot.slane %v4538_v51, 2 }
 0x951   :  { %v4564_v32 = vrot.slane %v4537_v49, 2  ;;  %9520 = vmatmul.mubr.f32.gmra.mrb[16].mxu1 %v2929_v55  ;;  %v4525_v52 = vpop.permute.xlu0 %4524  ;;  %v4523_v27 = vpop.permute.xlu1 %4522 }
 0x952   :  { %v4540_v10 = vadd.f32 %v4525_v52, %v4482_v47  ;;  %v4528_v40 = vsel %vm3425_vm5, %v4523_v27, %v4525_v52  ;;  %v4568_v35 = vsel %vm410_vm13, %v4566_v20, %v4567_v48  ;;  %10063 = vmatpush3.bf16.msra.mxu1 %v10060_v11  ;;  %v3039_v27 = vstv %s8840_s24 }
 0x953   :  { %v4565_v38 = vsel %vm410_vm13, %v4563_v13, %v4564_v32  ;;  %v4539_v58 = vadd.f32 %v4528_v40, %v4481_v24  ;;  %10065 = vmatprep.subr.bf16.mxu1 %v10064_v57 }
 0x954   :  { %v4571_v41 = vrot.slane %v4540_v10, 2  ;;  %v10399_v12 = vpack.i.bf16 %v4568_v35, %v4565_v38  ;;  %v16443_v38 = vld [vmem:[#allocation29_spill] sm:$0xff] }
 0x955   :  { %v4569_v63 = vrot.slane %v4539_v58, 2  ;;  %v16444_v58 = vld [vmem:[#allocation30_spill] sm:$0xff] }
 0x956   :  { %10400 = vrot.lane.b32.xlu1 %v10399_v12, %s10744_s4  ;;  %v4572_v42 = vsel %vm410_vm13, %v4567_v48, %v4571_v41  ;;  %10067 = vmatpush3.bf16.msra.mxu1 %v10064_v57  ;;  %v16446_v41 = vld [vmem:[#allocation32_spill] sm:$0xff]  ;;  %v16447_v12 = vld [vmem:[#allocation33_spill] sm:$0xff] }
 0x957   :  { %v4570_v56 = vsel %vm410_vm13, %v4564_v32, %v4569_v63  ;;  %10069 = vmatprep.subr.bf16.mxu1 %v10068_v5  ;;  %v16450_v63 = vld [vmem:[#allocation37_spill] sm:$0xff] }
 0x958   :  { %v10404_v11 = vpack.i.bf16 %v4572_v42, %v4570_v56 }
 0x95a   :  { %10405 = vrot.lane.b32.xlu0 %v10404_v11, %s10744_s4  ;;  %10071 = vmatpush3.bf16.msra.mxu1 %v10068_v5  ;;  %v16445_v5 = vld [vmem:[#allocation31_spill] sm:$0xff] }
 0x95b   :  { %10073 = vmatprep.subr.bf16.mxu1 %v10072_v16 }
 0x95e   :  { %10075 = vmatpush3.bf16.msra.mxu1 %v10072_v16 }
 0x95f   :  { %10077 = vmatprep.subr.bf16.mxu1 %v10076_v15 }
 0x962   :  { %10079 = vmatpush3.bf16.msra.mxu1 %v10076_v15 }
 0x963   :  { %10081 = vmatprep.subr.bf16.mxu1 %v10080_v19 }
 0x966   :  { %10083 = vmatpush3.bf16.msra.mxu1 %v10080_v19 }
 0x967   :  { %10085 = vmatprep.subr.bf16.mxu1 %v10084_v26 }
 0x96a   :  { %10087 = vmatpush3.bf16.msra.mxu1 %v10084_v26 }
 0x96b   :  { %9605 = vmatprep.subr.mxu1 %v16442_v54 }
 0x9c8   :  { %v10401_v23 = vpop.permute.xlu1 %10400 }
 0x9c9   :  { %v10403_v1 = vunpack.i.h.bf16 %v10401_v23  ;;  %v10402_v33 = vunpack.i.l.bf16 %v10401_v23 }
 0x9cb   :  { %v4581_v39 = vsel %vm317_vm15, %v10402_v33, %v10403_v1  ;;  %v8898_v33 = vld [vmem:[%s16122_s11 + $0x1] ss:$0 sm:$0xff] }
 0x9cc   :  { %v10406_v3 = vpop.permute.xlu0 %10405  ;;  %9564 = vmatprep.mubr.f32.mxu1 %v4581_v39  ;;  %v8899_v39 = vld [vmem:[%s16122_s11 + $0x2] ss:$0 sm:$0xff]  ;;  %4985 = vrot.lane.b32.xlu0 %v8898_v33, %s10747_s9  ;;  %v8897_v33 = vld [vmem:[%s16122_s11] ss:$0 sm:$0xff] }
 0x9cd   :  { %v10408_v62 = vunpack.i.h.bf16 %v10406_v3  ;;  %v10407_v4 = vunpack.i.l.bf16 %v10406_v3  ;;  %5033 = vrot.lane.b32.xlu1 %v8899_v39, %s10741_s22  ;;  %v8902_v39 = vld [vmem:[%s16122_s11 + $0x5] ss:$0 sm:$0xff] }
 0x9cf   :  { %v4582_v17 = vsel %vm317_vm15, %v10407_v4, %v10408_v62 }
 0x9d0   :  { %9565 = vmatmul.mubr.f32.vlgmr.msra.gmra.mrb[18].mxu1 %v4582_v17  ;;  %v8903_v17 = vld [vmem:[%s16122_s11 + $0x6] ss:$0 sm:$0xff] }
 0x9d1   :  { %9606 = vmatpush3.msk.msra.mxu1 %vm243_vm0, %v13538_v7  ;;  %9607 = vmatprep.mubr.msk.f32.mxu1 %vm10748_vm6, %v16442_v54 }
 0x9d2   :  { %9610 = vmatprep.subr.mxu1 %v16442_v54 }
 0xa20   :  { %v9518_v30 = vpop.f32.mrb[14].mxu1 }
 0xa21   :  { %v3016_v2 = vsel %vm636_vm8, %v9518_v30, 0.0  ;;  %v2996_v36 = vpop.f32.mrb[15].mxu1  ;;  %v8904_v30 = vld [vmem:[%s16122_s11 + $0x7] ss:$0 sm:$0xff] }
 0xa22   :  { %v3015_v44 = vsel %vm636_vm8, %v2996_v36, 0.0  ;;  %v8906_v36 = vld [vmem:[%s16122_s11 + $0x9] ss:$0 sm:$0xff] }
 0xa23   :  { %v3017_v59 = vadd.f32 %v3016_v2, %v3015_v44  ;;  %v8905_v2 = vld [vmem:[%s16122_s11 + $0x8] ss:$0 sm:$0xff]  ;;  %v8908_v44 = vld [vmem:[%s16122_s11 + $0xb] ss:$0 sm:$0xff] }
 0xa24   :  { %v9521_v61 = vpop.f32.mrb[16].mxu1 }
 0xa25   :  { %v3018_v34 = vrot.slane %v3017_v59, 4  ;;  %v3026_v25 = vsel %vm636_vm8, %v9521_v61, 0.0  ;;  %v3006_v53 = vpop.f32.mrb[17].mxu1  ;;  %v8910_v61 = vld [vmem:[%s16122_s11 + $0xd] ss:$0 sm:$0xff] }
 0xa26   :  { %v3025_v60 = vsel %vm636_vm8, %v3006_v53, 0.0  ;;  %v8914_v53 = vld [vmem:[%s16122_s11 + $0x11] ss:$0 sm:$0xff] }
 0xa27   :  { %v3019_v18 = vadd.f32 %v3018_v34, %v3017_v59  ;;  %v3027_v51 = vadd.f32 %v3026_v25, %v3025_v60  ;;  %v8909_v59 = vld [vmem:[%s16122_s11 + $0xc] ss:$0 sm:$0xff]  ;;  %v8911_v34 = vld [vmem:[%s16122_s11 + $0xe] ss:$0 sm:$0xff]  ;;  %v8913_v25 = vld [vmem:[%s16122_s11 + $0x10] ss:$0 sm:$0xff] }
 0xa28   :  { %v8915_v60 = vld [vmem:[%s16122_s11 + $0x12] ss:$0 sm:$0xff] }
 0xa29   :  { %v3020_v29 = vrot.slane %v3019_v18, 2  ;;  %v3028_v9 = vrot.slane %v3027_v51, 4 }
 0xa2b   :  { %v3021_v31 = vadd.f32 %v3020_v29, %v3019_v18  ;;  %v3029_v55 = vadd.f32 %v3028_v9, %v3027_v51  ;;  %v8916_v18 = vld [vmem:[%s16122_s11 + $0x13] ss:$0 sm:$0xff]  ;;  %v8918_v51 = vld [vmem:[%s16122_s11 + $0x15] ss:$0 sm:$0xff]  ;;  %v8919_v29 = vld [vmem:[%s16122_s11 + $0x16] ss:$0 sm:$0xff] }
 0xa2c   :  { %v8920_v9 = vld [vmem:[%s16122_s11 + $0x17] ss:$0 sm:$0xff] }
 0xa2d   :  { %v3022_v49 = vrot.slane %v3021_v31, 1  ;;  %v3030_v57 = vrot.slane %v3029_v55, 2 }
 0xa2f   :  { %v3023_v47 = vadd.f32 %v3022_v49, %v3021_v31  ;;  %v3031_v20 = vadd.f32 %v3030_v57, %v3029_v55 }
 0xa31   :  { %v3024_v48 = vmul.f32 0.001953125, %v3023_v47  ;;  %v3032_v6 = vrot.slane %v3031_v20, 1 }
 0xa33   :  { %v3033_v14 = vadd.f32 %v3032_v6, %v3031_v20  ;;  %v3035_v24 = vmul.f32 %v3024_v48, %v3024_v48 }
 0xa35   :  { %v3034_v13 = vmul.f32 0.001953125, %v3033_v14 }
 0xa37   :  { %v3036_v32 = vsub.f32 %v3034_v13, %v3035_v24 }
 0xa39   :  { %v3037_v52 = vadd.f32 1e-05, %v3036_v32 }
 0xa3b   :  { %10435 = vrsqrt.f32 %v3037_v52 }
 0xa45   :  { %v10436_v10 = vpop.eup %10435 }
 0xa46   :  { %v3040_v40 = vmul.f32 %v10436_v10, %v3039_v27 }
 0xa48   :  { %9525 = vmatmul.mubr.msk.f32.vlgmr.msra.gmra.mrb[14].mxu0 %vm636_vm8, %v3040_v40  ;;  %v3114_v35 = vmul.f32 %v3040_v40, %v3024_v48 }
 0xa49   :  { %9528 = vmatpush3.msk.msra.mxu0 %vm243_vm0, %v13538_v7  ;;  %9529 = vmatprep.mubr.msk.f32.mxu0 %vm10748_vm6, %v16442_v54 }
 0xa4a   :  { %10089 = vmatprep.subr.bf16.mxu0 %v16443_v38 }
 0xa4c   :  { %9530 = vmatmul.mubr.msk.f32.vlgmr.msra.gmra.mrb[16].mxu0 %vm636_vm8, %v3114_v35 }
 0xa4d   :  { %10091 = vmatpush3.bf16.msra.mxu0 %v16443_v38 }
 0xa4e   :  { %10093 = vmatprep.subr.bf16.mxu0 %v16444_v58 }
 0xa51   :  { %10095 = vmatpush3.bf16.msra.mxu0 %v16444_v58 }
 0xa52   :  { %10097 = vmatprep.subr.bf16.mxu0 %v16445_v5 }
 0xa55   :  { %10099 = vmatpush3.bf16.msra.mxu0 %v16445_v5 }
 0xa56   :  { %10101 = vmatprep.subr.bf16.mxu0 %v16446_v41 }
 0xa59   :  { %10103 = vmatpush3.bf16.msra.mxu0 %v16446_v41 }
 0xa5a   :  { %10105 = vmatprep.subr.bf16.mxu0 %v16447_v12 }
 0xa5d   :  { %10107 = vmatpush3.bf16.msra.mxu0 %v16447_v12 }
 0xa5e   :  { %10109 = vmatprep.subr.bf16.mxu0 %v16448_v50 }
 0xa61   :  { %10111 = vmatpush3.bf16.msra.mxu0 %v16448_v50 }
 0xa62   :  { %10113 = vmatprep.subr.bf16.mxu0 %v16449_v46 }
 0xa65   :  { %10115 = vmatpush3.bf16.msra.mxu0 %v16449_v46 }
 0xa66   :  { %10117 = vmatprep.subr.bf16.mxu0 %v16450_v63 }
 0xa69   :  { %10119 = vmatpush3.bf16.msra.mxu0 %v16450_v63 }
 0xaa3   :  { %v13571_v42 = vpop.f32.mrb[18].mxu1 }
 0xaa4   :  { %v13573_v56 = vpop.f32.mrb[19].mxu1  ;;  %v4661_v11 = vmul.f32 %v13571_v42, %v13571_v42 }
 0xaa5   :  { %v4660_v16 = vmul.f32 %v13573_v56, %v13573_v56  ;;  %9599 = vmatprep.mubr.f32.mxu0 %v13573_v56 }
 0xaa6   :  { %9600 = vmatmul.mubr.f32.vlgmr.msra.gmra.mrb[18].mxu0 %v13571_v42 }
 0xaa7   :  { %9602 = vmatprep.mubr.f32.mxu0 %v4660_v16 }
 0xaaa   :  { %9603 = vmatmul.mubr.f32.gmra.mrb[20].mxu0 %v4661_v11 }
 0xb1b   :  { %v3110_v45 = vpop.f32.mrb[14].mxu0 }
 0xb1c   :  { %v3191_v15 = vrot.slane %v3110_v45, %v16451_v21  ;;  %v9526_v43 = vpop.f32.mrb[15].mxu0 }
 0xb1e   :  { %v3192_v0 = vmul.f32 %v3191_v15, %v13513_v28  ;;  %v3193_v19 = vmul.f32 %v13510_v37, %v3191_v15  ;;  %v8900_v37 = vld [vmem:[%s16122_s11 + $0x3] ss:$0 sm:$0xff]  ;;  %v8901_v28 = vld [vmem:[%s16122_s11 + $0x4] ss:$0 sm:$0xff] }
 0xb1f   :  { %v3184_v8 = vpop.f32.mrb[16].mxu0  ;;  %5081 = vrot.lane.b32.xlu0 %v8900_v37, %s10746_s28  ;;  %5129 = vrot.lane.b32.xlu1 %v8901_v28, %s10749_s23  ;;  %v8907_v37 = vld [vmem:[%s16122_s11 + $0xa] ss:$0 sm:$0xff]  ;;  %v8912_v28 = vld [vmem:[%s16122_s11 + $0xf] ss:$0 sm:$0xff] }
 0xb20   :  { %v3197_v22 = vrot.slane %v3184_v8, %v16451_v21  ;;  %v9531_v26 = vpop.f32.mrb[17].mxu0 }
 0xb22   :  { %v3198_v23 = vsub.f32 %v3192_v0, %v3197_v22  ;;  %v3199_v1 = vsub.f32 %v3193_v19, %v3197_v22 }
 0xb23   :  { %5220 = vrot.lane.b32.xlu0 %v8903_v17, %s10747_s9  ;;  %5278 = vrot.lane.b32.xlu1 %v8904_v30, %s10741_s22  ;;  %v8917_v17 = vld [vmem:[%s16122_s11 + $0x14] ss:$0 sm:$0xff] }
 0xb24   :  { %v13591_v3 = vrot.slane %v3198_v23, 5  ;;  %v13593_v62 = vrot.slane %v3199_v1, 5 }
 0xb26   :  { %16452 = vst [vmem:[#allocation56_spill] sm:$0xff] %v13591_v3  ;;  %16453 = vst [vmem:[#allocation53_spill] sm:$0xff] %v13593_v62  ;;  %v13606_v4 = vsel %vm16202_vm2, %v13591_v3, %v13593_v62  ;;  %vm16460_vm2 = vcmask 257024  }
 0xb27   :  { %16454 = vst [vmem:[#allocation55_spill] sm:$0xff] %v13606_v4  ;;  %5336 = vrot.lane.b32.xlu0 %v8905_v2, %s10746_s28  ;;  %5394 = vrot.lane.b32.xlu1 %v8906_v36, %s10749_s23 }
 0xb2b   :  { %5495 = vrot.lane.b32.xlu0 %v8908_v44, %s10747_s9  ;;  %5553 = vrot.lane.b32.xlu1 %v8909_v59, %s10741_s22 }
 0xb2f   :  { %5611 = vrot.lane.b32.xlu0 %v8910_v61, %s10746_s28  ;;  %5669 = vrot.lane.b32.xlu1 %v8911_v34, %s10749_s23 }
 0xb33   :  { %5770 = vrot.lane.b32.xlu0 %v8913_v25, %s10747_s9  ;;  %5828 = vrot.lane.b32.xlu1 %v8914_v53, %s10741_s22 }
 0xb37   :  { %5886 = vrot.lane.b32.xlu0 %v8915_v60, %s10746_s28  ;;  %5944 = vrot.lane.b32.xlu1 %v8916_v18, %s10749_s23 }
 0xb3b   :  { %6045 = vrot.lane.b32.xlu0 %v8918_v51, %s10747_s9  ;;  %6103 = vrot.lane.b32.xlu1 %v8919_v29, %s10741_s22 }
 0xb3f   :  { %6161 = vrot.lane.b32.xlu0 %v8920_v9, %s10746_s28 }
 0xb43   :  { %4964 = vrot.lane.b32.xlu0 %v8897_v33, %s10750_s0 }
 0xb47   :  { %5452 = vrot.lane.b32.xlu0 %v8907_v37, %s10750_s0 }
 0xb4b   :  { %6002 = vrot.lane.b32.xlu0 %v8917_v17, %s10750_s0 }
 0xb79   :  { %v9601_v31 = vpop.f32.mrb[18].mxu0 }
 0xb7a   :  { %v4748_v55 = vsel %vm636_vm8, %v9601_v31, 0.0  ;;  %v4728_v49 = vpop.f32.mrb[19].mxu0 }
 0xb7b   :  { %v4747_v57 = vsel %vm636_vm8, %v4728_v49, 0.0 }
 0xb7c   :  { %v4749_v47 = vadd.f32 %v4748_v55, %v4747_v57 }
 0xb7d   :  { %v9604_v20 = vpop.f32.mrb[20].mxu0 }
 0xb7e   :  { %v4750_v48 = vrot.slane %v4749_v47, 4  ;;  %v4758_v6 = vsel %vm636_vm8, %v9604_v20, 0.0  ;;  %v4738_v14 = vpop.f32.mrb[21].mxu0 }
 0xb7f   :  { %v4757_v24 = vsel %vm636_vm8, %v4738_v14, 0.0 }
 0xb80   :  { %v4751_v13 = vadd.f32 %v4750_v48, %v4749_v47  ;;  %v4759_v32 = vadd.f32 %v4758_v6, %v4757_v24 }
 0xb82   :  { %v4752_v52 = vrot.slane %v4751_v13, 2  ;;  %v4760_v27 = vrot.slane %v4759_v32, 4 }
 0xb84   :  { %v4753_v10 = vadd.f32 %v4752_v52, %v4751_v13  ;;  %v4761_v40 = vadd.f32 %v4760_v27, %v4759_v32 }
 0xb86   :  { %v4754_v35 = vrot.slane %v4753_v10, 1  ;;  %v4762_v16 = vrot.slane %v4761_v40, 2 }
 0xb88   :  { %v4755_v11 = vadd.f32 %v4754_v35, %v4753_v10  ;;  %v4763_v45 = vadd.f32 %v4762_v16, %v4761_v40 }
 0xb8a   :  { %v4756_v15 = vmul.f32 0.001953125, %v4755_v11  ;;  %v4764_v43 = vrot.slane %v4763_v45, 1 }
 0xb8c   :  { %v4765_v0 = vadd.f32 %v4764_v43, %v4763_v45  ;;  %v4767_v19 = vmul.f32 %v4756_v15, %v4756_v15 }
 0xb8e   :  { %v4766_v8 = vmul.f32 0.001953125, %v4765_v0 }
 0xb90   :  { %v4768_v22 = vsub.f32 %v4766_v8, %v4767_v19 }
 0xb92   :  { %v4769_v26 = vadd.f32 1e-05, %v4768_v22 }
 0xb94   :  { %10437 = vrsqrt.f32 %v4769_v26 }
 0xb9e   :  { %v10438_v23 = vpop.eup %10437 }
 0xb9f   :  { %9608 = vmatmul.mubr.msk.f32.vlgmr.msra.gmra.mrb[20].mxu1 %vm636_vm8, %v10438_v23  ;;  %v4844_v1 = vmul.f32 %v10438_v23, %v4756_v15 }
 0xba0   :  { %9611 = vmatpush3.msk.msra.mxu1 %vm243_vm0, %v13538_v7  ;;  %9612 = vmatprep.mubr.msk.f32.mxu1 %vm10748_vm6, %v16442_v54  ;;  %v8921_v7 = vld [vmem:[%s16122_s11 + $0x18] ss:$0 sm:$0xff] }
 0xba1   :  { %10153 = vmatprep.subr.bf16.mxu1 %v16443_v38  ;;  %6219 = vrot.lane.b32.xlu1 %v8921_v7, %s10749_s23 }
 0xba3   :  { %9613 = vmatmul.mubr.msk.f32.vlgmr.msra.gmra.mrb[22].mxu1 %vm636_vm8, %v4844_v1 }
 0xba4   :  { %10155 = vmatpush3.bf16.msra.mxu1 %v16443_v38 }
 0xba5   :  { %10157 = vmatprep.subr.bf16.mxu1 %v16444_v58  ;;  %5177 = vrot.lane.b32.xlu1 %v8902_v39, %s10750_s0 }
 0xba8   :  { %10159 = vmatpush3.bf16.msra.mxu1 %v16444_v58 }
 0xba9   :  { %10161 = vmatprep.subr.bf16.mxu1 %v16445_v5  ;;  %5727 = vrot.lane.b32.xlu1 %v8912_v28, %s10750_s0 }
 0xbac   :  { %10163 = vmatpush3.bf16.msra.mxu1 %v16445_v5 }
 0xbad   :  { %10165 = vmatprep.subr.bf16.mxu1 %v16446_v41 }
 0xbb0   :  { %10167 = vmatpush3.bf16.msra.mxu1 %v16446_v41 }
 0xbb1   :  { %10169 = vmatprep.subr.bf16.mxu1 %v16447_v12 }
 0xbb4   :  { %10171 = vmatpush3.bf16.msra.mxu1 %v16447_v12 }
 0xbb5   :  { %10173 = vmatprep.subr.bf16.mxu1 %v16448_v50 }
 0xbb8   :  { %10175 = vmatpush3.bf16.msra.mxu1 %v16448_v50 }
 0xbb9   :  { %10177 = vmatprep.subr.bf16.mxu1 %v16449_v46 }
 0xbbc   :  { %10179 = vmatpush3.bf16.msra.mxu1 %v16449_v46 }
 0xbbd   :  { %10181 = vmatprep.subr.bf16.mxu1 %v16450_v63 }
 0xbc0   :  { %10183 = vmatpush3.bf16.msra.mxu1 %v16450_v63 }
 0xc72   :  { %v4840_v30 = vpop.f32.mrb[20].mxu1 }
 0xc73   :  { %v4921_v2 = vrot.slane %v4840_v30, %v16451_v21  ;;  %v9609_v36 = vpop.f32.mrb[21].mxu1 }
 0xc75   :  { %v4922_v44 = vmul.f32 %v4921_v2, %v13573_v56  ;;  %v4923_v59 = vmul.f32 %v13571_v42, %v4921_v2  ;;  %v13728_v56 = vpop.permute.xlu0 %4985  ;;  %v13730_v42 = vpop.permute.xlu1 %5033 }
 0xc76   :  { %v4914_v61 = vpop.f32.mrb[22].mxu1 }
 0xc77   :  { %v4927_v34 = vrot.slane %v4914_v61, %v16451_v21  ;;  %v9614_v25 = vpop.f32.mrb[23].mxu1 }
 0xc79   :  { %v4928_v53 = vsub.f32 %v4922_v44, %v4927_v34  ;;  %v4929_v60 = vsub.f32 %v4923_v59, %v4927_v34  ;;  %v13732_v55 = vpop.permute.xlu0 %5081  ;;  %v13734_v49 = vpop.permute.xlu1 %5129 }
 0xc7b   :  { %v4930_v18 = vmax.f32 %v4928_v53, 0.0  ;;  %v4931_v51 = vmax.f32 %v4929_v60, 0.0 }
 0xc7d   :  { %v4934_v29 = vrot.slane %v4930_v18, 4  ;;  %v4935_v9 = vrot.slane %v4931_v51, 4  ;;  %v13736_v57 = vpop.permute.xlu0 %5220  ;;  %v13738_v47 = vpop.permute.xlu1 %5278 }
 0xc7f   :  { %4937 = vrot.lane.b32.xlu1 %v4934_v29, %s10741_s22  ;;  %v4936_v31 = vsel %vm243_vm0, %v4934_v29, %v4935_v9 }
 0xc80   :  { %4939 = vrot.lane.b32.xlu0 %v4936_v31, %s10741_s22 }
 0xc81   :  { %v13740_v20 = vpop.permute.xlu0 %5336  ;;  %v13742_v48 = vpop.permute.xlu1 %5394 }
 0xc83   :  { %4941 = vrot.lane.b32.xlu1 %v4935_v9, %s10741_s22 }
 0xc85   :  { %v13744_v6 = vpop.permute.xlu0 %5495  ;;  %v13746_v14 = vpop.permute.xlu1 %5553 }
 0xc89   :  { %v13748_v24 = vpop.permute.xlu0 %5611  ;;  %v13750_v13 = vpop.permute.xlu1 %5669 }
 0xc8d   :  { %v13752_v32 = vpop.permute.xlu0 %5770  ;;  %v13754_v52 = vpop.permute.xlu1 %5828 }
 0xc91   :  { %v13756_v27 = vpop.permute.xlu0 %5886  ;;  %v13758_v10 = vpop.permute.xlu1 %5944 }
 0xc95   :  { %v13760_v40 = vpop.permute.xlu0 %6045  ;;  %v13762_v35 = vpop.permute.xlu1 %6103 }
 0xc99   :  { %v13764_v16 = vpop.permute.xlu0 %6161  ;;  %v13766_v11 = vpop.permute.xlu1 %6219 }
 0xc9d   :  { %v13768_v45 = vpop.permute.xlu0 %4964  ;;  %v13770_v15 = vpop.permute.xlu1 %5177 }
 0xc9e   :  { %16455 = vst [vmem:[#allocation57_spill] sm:$0xff] %v13768_v45  ;;  %16456 = vst [vmem:[#allocation58_spill] sm:$0xff] %v13770_v15 }
 0xca1   :  { %v13772_v43 = vpop.permute.xlu0 %5452  ;;  %v13774_v0 = vpop.permute.xlu1 %5727 }
 0xca2   :  { %16457 = vst [vmem:[#allocation59_spill] sm:$0xff] %v13772_v43  ;;  %16458 = vst [vmem:[#allocation60_spill] sm:$0xff] %v13774_v0 }
 0xca5   :  { %v13776_v19 = vpop.permute.xlu0 %6002 }
 0xca6   :  { %16459 = vst [vmem:[#allocation61_spill] sm:$0xff] %v13776_v19 }
 0xcf1   :  { %v4938_v8 = vpop.permute.xlu1 %4937 }
 0xcf2   :  { %4946 = vst.msk [vmem:[#allocation3] sm:$0xf0] %vm256_vm9, %v4938_v8  ;;  %v4940_v22 = vpop.permute.xlu0 %4939  ;;  %vm7667_vm9 = vcmask 523264  }
 0xcf3   :  { %4947 = vst.msk [vmem:[#allocation3 + $0x8] sm:$0xf0] %vm229_vm3, %v4938_v8  ;;  %vm8085_vm3 = vcmask 1041408  }
 0xcf4   :  { %4948 = vst.msk [vmem:[#allocation3 + $0x10] sm:$0xff] %vm259_vm11, %v4940_v22 }
 0xcf5   :  { %4949 = vst.msk [vmem:[#allocation3 + $0x18] sm:$0xff] %vm231_vm7, %v4940_v22  ;;  %v4942_v26 = vpop.permute.xlu1 %4941  ;;  %vm7635_vm7 = vcmask 654336  }
 0xcf6   :  { %4950 = vst.msk [vmem:[#allocation3 + $0x20] sm:$0xf] %vm262_vm10, %v4942_v26  ;;  %vm16643_vm10 = vcmask 1042432  }
 0xcf7   :  { %4951 = vst.msk [vmem:[#allocation3 + $0x28] sm:$0xf] %vm16460_vm2, %v4942_v26 }
 0xcf9   :  { %v13784_v23 = vld [vmem:[#allocation3] sm:$0xff] }
 0xcfa   :  { %v13786_v1 = vld [vmem:[#allocation3 + $0x8] sm:$0xff]  ;;  %v4988_v7 = vmul.f32 %v13728_v56, %v13784_v23  ;;  %v5036_v30 = vmul.f32 %v13730_v42, %v13784_v23  ;;  %v5084_v59 = vmul.f32 %v13732_v55, %v13784_v23  ;;  %v5132_v60 = vmul.f32 %v13734_v49, %v13784_v23 }
 0xcfb   :  { %v4989_v33 = vmul.f32 %v13728_v56, %v13786_v1  ;;  %v5037_v2 = vmul.f32 %v13730_v42, %v13786_v1  ;;  %v5085_v61 = vmul.f32 %v13732_v55, %v13786_v1  ;;  %v5133_v53 = vmul.f32 %v13734_v49, %v13786_v1  ;;  %v13838_v29 = vld [vmem:[#allocation3 + $0x10] sm:$0xff] }
 0xcfc   :  { %5000 = vrot.lane.b32.xlu1 %v4988_v7, %s10743_s3  ;;  %v13840_v9 = vld [vmem:[#allocation3 + $0x18] sm:$0xff]  ;;  %v4990_v8 = vmul.f32 %v13728_v56, %v13838_v29  ;;  %v5038_v26 = vmul.f32 %v13730_v42, %v13838_v29  ;;  %v5223_v38 = vmul.f32 %v13736_v57, %v13784_v23 }
 0xcfd   :  { %5002 = vrot.lane.b32.xlu0 %v4989_v33, %s10743_s3  ;;  %v13794_v39 = vld [vmem:[#allocation3 + $0x20] sm:$0xff]  ;;  %v4991_v31 = vmul.f32 %v13728_v56, %v13840_v9  ;;  %v5039_v22 = vmul.f32 %v13730_v42, %v13840_v9  ;;  %v5087_v7 = vmul.f32 %v13732_v55, %v13840_v9  ;;  %v5134_v33 = vmul.f32 %v13734_v49, %v13838_v29 }
 0xcfe   :  { %16461 = vst [vmem:[#allocation62_spill] sm:$0xff] %v13794_v39  ;;  %v13796_v37 = vld [vmem:[#allocation3 + $0x28] sm:$0xff]  ;;  %v4992_v28 = vmul.f32 %v13728_v56, %v13794_v39  ;;  %v5040_v36 = vmul.f32 %v13730_v42, %v13794_v39  ;;  %v5088_v25 = vmul.f32 %v13732_v55, %v13794_v39  ;;  %v5136_v51 = vmul.f32 %v13734_v49, %v13794_v39 }
 0xcff   :  { %16462 = vst [vmem:[#allocation63_spill] sm:$0xff] %v13796_v37  ;;  %v4993_v17 = vmul.f32 %v13728_v56, %v13796_v37  ;;  %v5041_v44 = vmul.f32 %v13730_v42, %v13796_v37  ;;  %v5089_v34 = vmul.f32 %v13732_v55, %v13796_v37  ;;  %v5137_v18 = vmul.f32 %v13734_v49, %v13796_v37 }
 0xd00   :  { %5008 = vrot.lane.b32.xlu1 %v4992_v28, %s10743_s3  ;;  %v5086_v56 = vmul.f32 %v13732_v55, %v13838_v29  ;;  %v5135_v42 = vmul.f32 %v13734_v49, %v13840_v9  ;;  %v13868_v28 = vmul.f32 %v13736_v57, %v13794_v39  ;;  %v13884_v49 = vmul.f32 %v13738_v47, %v13796_v37 }
 0xd01   :  { %5010 = vrot.lane.b32.xlu0 %v4993_v17, %s10743_s3  ;;  %v13872_v17 = vmul.f32 %v13736_v57, %v13796_v37  ;;  %v14024_v63 = vmul.f32 %v13756_v27, %v13796_v37  ;;  %v14028_v46 = vmul.f32 %v13756_v27, %v13794_v39  ;;  %v14040_v50 = vmul.f32 %v13758_v10, %v13796_v37 }
 0xd02   :  { %v16216_v55 = vrot.slane %v13868_v28, 1  ;;  %v14044_v4 = vmul.f32 %v13758_v10, %v13794_v39  ;;  %v14056_v62 = vmul.f32 %v13760_v40, %v13796_v37  ;;  %v14060_v12 = vmul.f32 %v13760_v40, %v13794_v39 }
 0xd03   :  { %v14072_v3 = vmul.f32 %v13762_v35, %v13796_v37  ;;  %v14076_v41 = vmul.f32 %v13762_v35, %v13794_v39  ;;  %v14088_v5 = vmul.f32 %v13764_v16, %v13796_v37  ;;  %v14092_v58 = vmul.f32 %v13764_v16, %v13794_v39 }
 0xd04   :  { %5048 = vrot.lane.b32.xlu1 %v5036_v30, %s10744_s4  ;;  %v16215_v30 = vrot.slane %v13872_v17, 1  ;;  %v5235_v0 = vrot.slane %v5223_v38, 1 }
 0xd05   :  { %5050 = vrot.lane.b32.xlu0 %v5037_v2, %s10744_s4  ;;  %v13880_v2 = vmul.f32 %v13738_v47, %v13794_v39  ;;  %16463 = vst [vmem:[#allocation64_spill] sm:$0xff] %v14088_v5  ;;  %v16464_v21 = vrot.slane %v14076_v41, 4  ;;  %v16247_v54 = vrot.slane %v14088_v5, 4  ;;  %v16248_v19 = vrot.slane %v14092_v58, 4 }
 0xd08   :  { %5056 = vrot.lane.b32.xlu1 %v5040_v36, %s10744_s4  ;;  %v16212_v36 = vrot.slane %v13880_v2, 1 }
 0xd09   :  { %5058 = vrot.lane.b32.xlu0 %v5041_v44, %s10744_s4  ;;  %v16211_v44 = vrot.slane %v13884_v49, 1 }
 0xd0c   :  { %5096 = vrot.lane.b32.xlu1 %v5084_v59, %s10745_s29  ;;  %v13896_v59 = vmul.f32 %v13740_v20, %v13796_v37 }
 0xd0d   :  { %5098 = vrot.lane.b32.xlu0 %v5085_v61, %s10745_s29  ;;  %v13900_v61 = vmul.f32 %v13740_v20, %v13794_v39 }
 0xd10   :  { %5106 = vrot.lane.b32.xlu1 %v5089_v34, %s10745_s29  ;;  %v16207_v34 = vrot.slane %v13896_v59, 1 }
 0xd11   :  { %5104 = vrot.lane.b32.xlu0 %v5088_v25, %s10745_s29  ;;  %v16208_v25 = vrot.slane %v13900_v61, 1 }
 0xd14   :  { %5146 = vrot.lane.b32.xlu1 %v5133_v53, %s10751_s2  ;;  %v13912_v53 = vmul.f32 %v13742_v48, %v13796_v37 }
 0xd15   :  { %5144 = vrot.lane.b32.xlu0 %v5132_v60, %s10751_s2  ;;  %v13916_v60 = vmul.f32 %v13742_v48, %v13794_v39 }
 0xd18   :  { %5154 = vrot.lane.b32.xlu1 %v5137_v18, %s10751_s2  ;;  %v16204_v18 = vrot.slane %v13912_v53, 1 }
 0xd19   :  { %5152 = vrot.lane.b32.xlu0 %v5136_v51, %s10751_s2  ;;  %v16203_v51 = vrot.slane %v13916_v60, 1 }
 0xd1c   :  { %5004 = vrot.lane.b32.xlu1 %v4990_v8, %s10743_s3  ;;  %v13932_v8 = vmul.f32 %v13744_v6, %v13794_v39 }
 0xd1d   :  { %5006 = vrot.lane.b32.xlu0 %v4991_v31, %s10743_s3  ;;  %v13928_v31 = vmul.f32 %v13744_v6, %v13796_v37 }
 0xd20   :  { %5052 = vrot.lane.b32.xlu1 %v5038_v26, %s10744_s4  ;;  %v16205_v26 = vrot.slane %v13932_v8, 2 }
 0xd21   :  { %5054 = vrot.lane.b32.xlu0 %v5039_v22, %s10744_s4  ;;  %v16206_v22 = vrot.slane %v13928_v31, 2 }
 0xd24   :  { %5100 = vrot.lane.b32.xlu1 %v5086_v56, %s10745_s29  ;;  %v13948_v56 = vmul.f32 %v13746_v14, %v13794_v39 }
 0xd25   :  { %5102 = vrot.lane.b32.xlu0 %v5087_v7, %s10745_s29  ;;  %v13944_v7 = vmul.f32 %v13746_v14, %v13796_v37 }
 0xd28   :  { %5150 = vrot.lane.b32.xlu1 %v5135_v42, %s10751_s2  ;;  %v16209_v42 = vrot.slane %v13948_v56, 2 }
 0xd29   :  { %5148 = vrot.lane.b32.xlu0 %v5134_v33, %s10751_s2  ;;  %v16210_v33 = vrot.slane %v13944_v7, 2 }
 0xd2c   :  { %5255 = vrot.lane.b32.xlu1 %v16215_v30, %s10743_s3  ;;  %v14008_v30 = vmul.f32 %v13754_v52, %v13794_v39 }
 0xd2d   :  { %5253 = vrot.lane.b32.xlu0 %v16216_v55, %s10743_s3  ;;  %v14012_v55 = vmul.f32 %v13754_v52, %v13796_v37 }
 0xd30   :  { %5313 = vrot.lane.b32.xlu1 %v16211_v44, %s10744_s4  ;;  %v13992_v44 = vmul.f32 %v13752_v32, %v13794_v39 }
 0xd31   :  { %5311 = vrot.lane.b32.xlu0 %v16212_v36, %s10744_s4  ;;  %v13996_v36 = vmul.f32 %v13752_v32, %v13796_v37 }
 0xd34   :  { %5369 = vrot.lane.b32.xlu1 %v16208_v25, %s10745_s29  ;;  %v13980_v25 = vmul.f32 %v13750_v13, %v13796_v37 }
 0xd35   :  { %5371 = vrot.lane.b32.xlu0 %v16207_v34, %s10745_s29  ;;  %v13976_v34 = vmul.f32 %v13750_v13, %v13794_v39 }
 0xd38   :  { %5427 = vrot.lane.b32.xlu1 %v16203_v51, %s10751_s2  ;;  %v13960_v51 = vmul.f32 %v13748_v24, %v13794_v39 }
 0xd39   :  { %5429 = vrot.lane.b32.xlu0 %v16204_v18, %s10751_s2  ;;  %v13964_v18 = vmul.f32 %v13748_v24, %v13796_v37 }
 0xd3c   :  { %5528 = vrot.lane.b32.xlu1 %v16205_v26, %s10743_s3  ;;  %v16213_v26 = vrot.slane %v13960_v51, 2 }
 0xd3d   :  { %5530 = vrot.lane.b32.xlu0 %v16206_v22, %s10743_s3  ;;  %v16214_v22 = vrot.slane %v13964_v18, 2 }
 0xd40   :  { %5586 = vrot.lane.b32.xlu1 %v16209_v42, %s10744_s4  ;;  %v16218_v42 = vrot.slane %v13976_v34, 2 }
 0xd41   :  { %5588 = vrot.lane.b32.xlu0 %v16210_v33, %s10744_s4  ;;  %v16217_v33 = vrot.slane %v13980_v25, 2 }
 0xd44   :  { %5646 = vrot.lane.b32.xlu1 %v16214_v22, %s10745_s29  ;;  %v16221_v22 = vrot.slane %v13996_v36, 3 }
 0xd45   :  { %5644 = vrot.lane.b32.xlu0 %v16213_v26, %s10745_s29  ;;  %v16222_v26 = vrot.slane %v13992_v44, 3 }
 0xd48   :  { %5704 = vrot.lane.b32.xlu1 %v16217_v33, %s10751_s2  ;;  %v16225_v33 = vrot.slane %v14008_v30, 3 }
 0xd49   :  { %5702 = vrot.lane.b32.xlu0 %v16218_v42, %s10751_s2  ;;  %v16224_v42 = vrot.slane %v14012_v55, 3 }
 0xd4c   :  { %5805 = vrot.lane.b32.xlu1 %v16221_v22, %s10743_s3  ;;  %v16228_v22 = vrot.slane %v14024_v63, 3 }
 0xd4d   :  { %5803 = vrot.lane.b32.xlu0 %v16222_v26, %s10743_s3  ;;  %v16229_v26 = vrot.slane %v14028_v46, 3 }
 0xd50   :  { %5863 = vrot.lane.b32.xlu1 %v16224_v42, %s10744_s4  ;;  %v16232_v42 = vrot.slane %v14040_v50, 3 }
 0xd51   :  { %5861 = vrot.lane.b32.xlu0 %v16225_v33, %s10744_s4  ;;  %v16233_v33 = vrot.slane %v14044_v4, 3 }
 0xd54   :  { %5919 = vrot.lane.b32.xlu1 %v16229_v26, %s10745_s29  ;;  %v16238_v26 = vrot.slane %v14060_v12, 4 }
 0xd55   :  { %5921 = vrot.lane.b32.xlu0 %v16228_v22, %s10745_s29  ;;  %v16237_v22 = vrot.slane %v14056_v62, 4 }
 0xd58   :  { %5977 = vrot.lane.b32.xlu1 %v16233_v33, %s10751_s2  ;;  %v5226_v33 = vmul.f32 %v13736_v57, %v13840_v9 }
 0xd59   :  { %5979 = vrot.lane.b32.xlu0 %v16232_v42, %s10751_s2  ;;  %v16246_v42 = vrot.slane %v14072_v3, 4 }
 0xd5a   :  { %v5239_v15 = vrot.slane %v5226_v33, 1 }
 0xd5c   :  { %6078 = vrot.lane.b32.xlu1 %v16238_v26, %s10743_s3  ;;  %v5224_v26 = vmul.f32 %v13736_v57, %v13786_v1 }
 0xd5d   :  { %6080 = vrot.lane.b32.xlu0 %v16237_v22, %s10743_s3  ;;  %v5225_v22 = vmul.f32 %v13736_v57, %v13838_v29  ;;  %v5281_v57 = vmul.f32 %v13738_v47, %v13784_v23 }
 0xd5e   :  { %v5238_v45 = vrot.slane %v5224_v26, 1  ;;  %v5284_v26 = vmul.f32 %v13738_v47, %v13840_v9 }
 0xd5f   :  { %v5236_v43 = vrot.slane %v5225_v22, 1  ;;  %v5282_v22 = vmul.f32 %v13738_v47, %v13786_v1  ;;  %v5293_v33 = vrot.slane %v5281_v57, 1 }
 0xd60   :  { %6136 = vrot.lane.b32.xlu1 %v16464_v21, %s10744_s4  ;;  %v5283_v21 = vmul.f32 %v13738_v47, %v13838_v29  ;;  %v5240_v38 = vsel %vm333_vm12, %v5238_v45, %v5239_v15  ;;  %v5297_v5 = vrot.slane %v5284_v26, 1 }
 0xd61   :  { %6138 = vrot.lane.b32.xlu0 %v16246_v42, %s10744_s4  ;;  %v5237_v42 = vsel %vm333_vm12, %v5235_v0, %v5236_v43  ;;  %v16466_v0 = vrot.slane %v13872_v17, 1  ;;  %v5296_v39 = vrot.slane %v5282_v22, 1  ;;  %v16468_v22 = vrot.slane %v13884_v49, 1 }
 0xd63   :  { %v5244_v45 = vsel %vm333_vm12, %v5239_v15, %v16466_v0  ;;  %v5341_v15 = vmul.f32 %v13740_v20, %v13838_v29  ;;  %v5302_v26 = vsel %vm333_vm12, %v5297_v5, %v16468_v22  ;;  %v16470_v22 = vrot.slane %v13900_v61, 1 }
 0xd64   :  { %6194 = vrot.lane.b32.xlu1 %v16248_v19, %s10745_s29  ;;  %v16465_v19 = vrot.slane %v13868_v28, 1  ;;  %v5339_v28 = vmul.f32 %v13740_v20, %v13784_v23  ;;  %v5499_v61 = vmul.f32 %v13744_v6, %v13786_v1 }
 0xd65   :  { %6196 = vrot.lane.b32.xlu0 %v16247_v54, %s10745_s29  ;;  %v5294_v54 = vrot.slane %v5283_v21, 1  ;;  %v5352_v0 = vrot.slane %v5341_v15, 1  ;;  %v5399_v15 = vmul.f32 %v13742_v48, %v13838_v29 }
 0xd66   :  { %v5242_v37 = vsel %vm333_vm12, %v5236_v43, %v16465_v19  ;;  %v5298_v43 = vsel %vm333_vm12, %v5296_v39, %v5297_v5  ;;  %v5340_v19 = vmul.f32 %v13740_v20, %v13786_v1 }
 0xd67   :  { %v5295_v57 = vsel %vm333_vm12, %v5293_v33, %v5294_v54  ;;  %v5351_v33 = vrot.slane %v5339_v28, 1  ;;  %v5397_v28 = vmul.f32 %v13742_v48, %v13784_v23 }
 0xd68   :  { %5247 = vrot.lane.b32.xlu1 %v5240_v38, %s10743_s3  ;;  %v16467_v38 = vrot.slane %v13880_v2, 1  ;;  %v5398_v2 = vmul.f32 %v13742_v48, %v13786_v1 }
 0xd69   :  { %5245 = vrot.lane.b32.xlu0 %v5237_v42, %s10743_s3  ;;  %v5353_v5 = vsel %vm333_vm12, %v5351_v33, %v5352_v0  ;;  %v16471_v33 = vrot.slane %v13896_v59, 1  ;;  %v5501_v59 = vmul.f32 %v13744_v6, %v13840_v9 }
 0xd6a   :  { %v5300_v39 = vsel %vm333_vm12, %v5294_v54, %v16467_v38  ;;  %v5400_v54 = vmul.f32 %v13742_v48, %v13840_v9  ;;  %v5412_v38 = vrot.slane %v5398_v2, 1  ;;  %v5410_v48 = vrot.slane %v5399_v15, 1 }
 0xd6c   :  { %5251 = vrot.lane.b32.xlu1 %v5244_v45, %s10743_s3  ;;  %v5354_v45 = vrot.slane %v5340_v19, 1 }
 0xd6d   :  { %5249 = vrot.lane.b32.xlu0 %v5242_v37, %s10743_s3  ;;  %v5342_v37 = vmul.f32 %v13740_v20, %v13840_v9 }
 0xd6e   :  { %v14136_v47 = vpop.permute.xlu1 %5000 }
 0xd6f   :  { %v14138_v42 = vpop.permute.xlu0 %5002  ;;  %v5355_v20 = vrot.slane %v5342_v37, 1 }
 0xd70   :  { %5305 = vrot.lane.b32.xlu1 %v5298_v43, %s10744_s4 }
 0xd71   :  { %5303 = vrot.lane.b32.xlu0 %v5295_v57, %s10744_s4  ;;  %v5356_v49 = vsel %vm333_vm12, %v5354_v45, %v5355_v20  ;;  %v5360_v45 = vsel %vm333_vm12, %v5355_v20, %v16471_v33  ;;  %v5498_v20 = vmul.f32 %v13744_v6, %v13784_v23 }
 0xd72   :  { %v14152_v17 = vpop.permute.xlu1 %5008 }
 0xd73   :  { %v14154_v21 = vpop.permute.xlu0 %5010 }
 0xd74   :  { %5309 = vrot.lane.b32.xlu1 %v5302_v26, %s10744_s4  ;;  %v5358_v26 = vsel %vm333_vm12, %v5352_v0, %v16470_v22  ;;  %v5513_v22 = vrot.slane %v5499_v61, 2  ;;  %v5556_v61 = vmul.f32 %v13746_v14, %v13784_v23 }
 0xd75   :  { %5307 = vrot.lane.b32.xlu0 %v5300_v39, %s10744_s4  ;;  %v5413_v39 = vrot.slane %v5400_v54, 1  ;;  %v5500_v54 = vmul.f32 %v13744_v6, %v13838_v29 }
 0xd76   :  { %v14164_v57 = vpop.permute.xlu1 %5048 }
 0xd77   :  { %16469 = vst [vmem:[#allocation65_spill] sm:$0xff] %v14164_v57  ;;  %v14166_v43 = vpop.permute.xlu0 %5050  ;;  %v5409_v57 = vrot.slane %v5397_v28, 1  ;;  %v5414_v2 = vsel %vm333_vm12, %v5412_v38, %v5413_v39  ;;  %v16473_v38 = vrot.slane %v13912_v53, 1  ;;  %v5511_v6 = vrot.slane %v5500_v54, 2 }
 0xd78   :  { %5363 = vrot.lane.b32.xlu1 %v5356_v49, %s10745_s29  ;;  %v5557_v53 = vmul.f32 %v13746_v14, %v13786_v1 }
 0xd79   :  { %5361 = vrot.lane.b32.xlu0 %v5353_v5, %s10745_s29  ;;  %v5411_v0 = vsel %vm333_vm12, %v5409_v57, %v5410_v48  ;;  %v5418_v57 = vsel %vm333_vm12, %v5413_v39, %v16473_v38  ;;  %v5559_v39 = vmul.f32 %v13746_v14, %v13840_v9  ;;  %v16477_v38 = vrot.slane %v13928_v31, 2 }
 0xd7a   :  { %v14180_v19 = vpop.permute.xlu1 %5056  ;;  %v5615_v31 = vmul.f32 %v13748_v24, %v13786_v1 }
 0xd7b   :  { %v14182_v37 = vpop.permute.xlu0 %5058 }
 0xd7c   :  { %5367 = vrot.lane.b32.xlu1 %v5360_v45, %s10745_s29  ;;  %v5514_v45 = vrot.slane %v5501_v59, 2  ;;  %v5558_v59 = vmul.f32 %v13746_v14, %v13838_v29 }
 0xd7d   :  { %5365 = vrot.lane.b32.xlu0 %v5358_v26, %s10745_s29  ;;  %v16474_v26 = vrot.slane %v13916_v60, 1 }
 0xd7e   :  { %v14192_v5 = vpop.permute.xlu1 %5096  ;;  %v5515_v60 = vsel %vm410_vm13, %v5513_v22, %v5514_v45  ;;  %v5571_v22 = vrot.slane %v5557_v53, 2  ;;  %v5569_v14 = vrot.slane %v5558_v59, 2  ;;  %v5614_v53 = vmul.f32 %v13748_v24, %v13784_v23 }
 0xd7f   :  { %16472 = vst [vmem:[#allocation66_spill] sm:$0xff] %v14192_v5  ;;  %v14194_v49 = vpop.permute.xlu0 %5098  ;;  %v5416_v33 = vsel %vm333_vm12, %v5410_v48, %v16474_v26  ;;  %v5510_v5 = vrot.slane %v5498_v20, 2 }
 0xd80   :  { %5419 = vrot.lane.b32.xlu1 %v5411_v0, %s10751_s2 }
 0xd81   :  { %5421 = vrot.lane.b32.xlu0 %v5414_v2, %s10751_s2  ;;  %v5512_v48 = vsel %vm410_vm13, %v5510_v5, %v5511_v6  ;;  %v16478_v5 = vrot.slane %v13932_v8, 2 }
 0xd82   :  { %v14208_v28 = vpop.permute.xlu1 %5106 }
 0xd83   :  { %v14210_v15 = vpop.permute.xlu0 %5104  ;;  %v5517_v26 = vsel %vm410_vm13, %v5511_v6, %v16478_v5  ;;  %v16480_v5 = vrot.slane %v13948_v56, 2  ;;  %v5674_v56 = vmul.f32 %v13750_v13, %v13838_v29 }
 0xd84   :  { %5423 = vrot.lane.b32.xlu1 %v5416_v33, %s10751_s2  ;;  %v5572_v33 = vrot.slane %v5559_v39, 2  ;;  %v5616_v39 = vmul.f32 %v13748_v24, %v13838_v29 }
 0xd85   :  { %5425 = vrot.lane.b32.xlu0 %v5418_v57, %s10751_s2  ;;  %v5519_v57 = vsel %vm410_vm13, %v5514_v45, %v16477_v38  ;;  %v5617_v45 = vmul.f32 %v13748_v24, %v13840_v9  ;;  %v5629_v38 = vrot.slane %v5615_v31, 2 }
 0xd86   :  { %v14220_v2 = vpop.permute.xlu1 %5146  ;;  %v5573_v8 = vsel %vm410_vm13, %v5571_v22, %v5572_v33  ;;  %v16479_v22 = vrot.slane %v13944_v7, 2  ;;  %v5627_v24 = vrot.slane %v5616_v39, 2  ;;  %v5672_v7 = vmul.f32 %v13750_v13, %v13784_v23 }
 0xd87   :  { %16475 = vst [vmem:[#allocation67_spill] sm:$0xff] %v14220_v2  ;;  %v14222_v0 = vpop.permute.xlu0 %5144  ;;  %v5626_v2 = vrot.slane %v5614_v53, 2 }
 0xd88   :  { %16476 = vst [vmem:[#allocation68_spill] sm:$0xff] %v14222_v0  ;;  %5520 = vrot.lane.b32.xlu1 %v5512_v48, %s10743_s3  ;;  %v5568_v0 = vrot.slane %v5556_v61, 2 }
 0xd89   :  { %5522 = vrot.lane.b32.xlu0 %v5515_v60, %s10743_s3 }
 0xd8a   :  { %v14236_v20 = vpop.permute.xlu1 %5154  ;;  %v5570_v6 = vsel %vm410_vm13, %v5568_v0, %v5569_v14  ;;  %v5577_v0 = vsel %vm410_vm13, %v5572_v33, %v16479_v22  ;;  %v5628_v33 = vsel %vm410_vm13, %v5626_v2, %v5627_v24  ;;  %v16484_v22 = vrot.slane %v13960_v51, 2 }
 0xd8b   :  { %v14238_v54 = vpop.permute.xlu0 %5152  ;;  %v5775_v51 = vmul.f32 %v13752_v32, %v13838_v29 }
 0xd8c   :  { %5524 = vrot.lane.b32.xlu1 %v5517_v26, %s10743_s3  ;;  %v5575_v26 = vsel %vm410_vm13, %v5569_v14, %v16480_v5  ;;  %v5673_v14 = vmul.f32 %v13750_v13, %v13786_v1  ;;  %v5684_v5 = vrot.slane %v5672_v7, 2 }
 0xd8d   :  { %5526 = vrot.lane.b32.xlu0 %v5519_v57, %s10743_s3  ;;  %v5630_v57 = vrot.slane %v5617_v45, 2  ;;  %v5675_v45 = vmul.f32 %v13750_v13, %v13840_v9 }
 0xd8e   :  { %v14248_v60 = vpop.permute.xlu1 %5004 }
 0xd8f   :  { %v14250_v48 = vpop.permute.xlu0 %5006  ;;  %v5631_v31 = vsel %vm410_vm13, %v5629_v38, %v5630_v57  ;;  %v16483_v38 = vrot.slane %v13964_v18, 2  ;;  %v5688_v13 = vrot.slane %v5675_v45, 2  ;;  %v5773_v18 = vmul.f32 %v13752_v32, %v13784_v23 }
 0xd90   :  { %5578 = vrot.lane.b32.xlu1 %v5570_v6, %s10744_s4 }
 0xd91   :  { %5580 = vrot.lane.b32.xlu0 %v5573_v8, %s10744_s4  ;;  %v5635_v2 = vsel %vm410_vm13, %v5630_v57, %v16483_v38  ;;  %v5774_v57 = vmul.f32 %v13752_v32, %v13786_v1  ;;  %v5785_v38 = vrot.slane %v5773_v18, 3 }
 0xd92   :  { %v14264_v61 = vpop.permute.xlu1 %5052 }
 0xd93   :  { %v14266_v59 = vpop.permute.xlu0 %5054 }
 0xd94   :  { %5582 = vrot.lane.b32.xlu1 %v5575_v26, %s10744_s4  ;;  %v5685_v26 = vrot.slane %v5674_v56, 2 }
 0xd95   :  { %5584 = vrot.lane.b32.xlu0 %v5577_v0, %s10744_s4  ;;  %v5633_v0 = vsel %vm410_vm13, %v5627_v24, %v16484_v22  ;;  %v5776_v24 = vmul.f32 %v13752_v32, %v13840_v9  ;;  %v5788_v22 = vrot.slane %v5774_v57, 3 }
 0xd96   :  { %v14276_v8 = vpop.permute.xlu1 %5100  ;;  %v5686_v7 = vsel %vm410_vm13, %v5684_v5, %v5685_v26  ;;  %v16486_v5 = vrot.slane %v13980_v25, 2  ;;  %v5833_v25 = vmul.f32 %v13754_v52, %v13838_v29 }
 0xd97   :  { %16481 = vst [vmem:[#allocation69_spill] sm:$0xff] %v14276_v8  ;;  %v14278_v6 = vpop.permute.xlu0 %5102  ;;  %v5687_v8 = vrot.slane %v5673_v14, 2 }
 0xd98   :  { %5636 = vrot.lane.b32.xlu1 %v5628_v33, %s10745_s29 }
 0xd99   :  { %5638 = vrot.lane.b32.xlu0 %v5631_v31, %s10745_s29  ;;  %v5689_v56 = vsel %vm410_vm13, %v5687_v8, %v5688_v13  ;;  %v5693_v8 = vsel %vm410_vm13, %v5688_v13, %v16486_v5 }
 0xd9a   :  { %v14292_v53 = vpop.permute.xlu1 %5150 }
 0xd9b   :  { %v14294_v39 = vpop.permute.xlu0 %5148 }
 0xd9c   :  { %16482 = vst [vmem:[#allocation70_spill] sm:$0xff] %v14294_v39  ;;  %5640 = vrot.lane.b32.xlu1 %v5633_v0, %s10745_s29  ;;  %v5789_v0 = vrot.slane %v5776_v24, 3  ;;  %v16485_v39 = vrot.slane %v13976_v34, 2  ;;  %v5831_v34 = vmul.f32 %v13754_v52, %v13784_v23  ;;  %v16488_v24 = vrot.slane %v13992_v44, 3 }
 0xd9d   :  { %5642 = vrot.lane.b32.xlu0 %v5635_v2, %s10745_s29  ;;  %v5786_v2 = vrot.slane %v5775_v51, 3  ;;  %v5889_v44 = vmul.f32 %v13756_v27, %v13784_v23 }
 0xd9e   :  { %v14304_v31 = vpop.permute.xlu1 %5255  ;;  %v5691_v32 = vsel %vm410_vm13, %v5685_v26, %v16485_v39  ;;  %v5790_v51 = vsel %vm499_vm1, %v5788_v22, %v5789_v0  ;;  %v5832_v39 = vmul.f32 %v13754_v52, %v13786_v1  ;;  %v5834_v26 = vmul.f32 %v13754_v52, %v13840_v9 }
 0xd9f   :  { %v14306_v33 = vpop.permute.xlu0 %5253  ;;  %v5787_v18 = vsel %vm499_vm1, %v5785_v38, %v5786_v2  ;;  %v5792_v38 = vsel %vm499_vm1, %v5786_v2, %v16488_v24  ;;  %v16489_v22 = vrot.slane %v13996_v36, 3  ;;  %v5843_v5 = vrot.slane %v5831_v34, 3 }
 0xda0   :  { %5696 = vrot.lane.b32.xlu1 %v5689_v56, %s10751_s2  ;;  %v5847_v52 = vrot.slane %v5834_v26, 3  ;;  %v5891_v36 = vmul.f32 %v13756_v27, %v13838_v29  ;;  %v5890_v2 = vmul.f32 %v13756_v27, %v13786_v1  ;;  %v5901_v24 = vrot.slane %v5889_v44, 3 }
 0xda1   :  { %5694 = vrot.lane.b32.xlu0 %v5686_v7, %s10751_s2 }
 0xda2   :  { %v14320_v14 = vpop.permute.xlu1 %5313 }
 0xda3   :  { %v14322_v45 = vpop.permute.xlu0 %5311 }
 0xda4   :  { %5700 = vrot.lane.b32.xlu1 %v5693_v8, %s10751_s2  ;;  %v5844_v8 = vrot.slane %v5833_v25, 3 }
 0xda5   :  { %5698 = vrot.lane.b32.xlu0 %v5691_v32, %s10751_s2  ;;  %v5794_v32 = vsel %vm499_vm1, %v5789_v0, %v16489_v22  ;;  %v5892_v0 = vmul.f32 %v13756_v27, %v13840_v9  ;;  %v5904_v22 = vrot.slane %v5890_v2, 3 }
 0xda6   :  { %v14332_v7 = vpop.permute.xlu1 %5369  ;;  %v5845_v34 = vsel %vm499_vm1, %v5843_v5, %v5844_v8  ;;  %v16495_v5 = vrot.slane %v14012_v55, 3  ;;  %v5949_v55 = vmul.f32 %v13758_v10, %v13838_v29 }
 0xda7   :  { %16487 = vst [vmem:[#allocation71_spill] sm:$0xff] %v14332_v7  ;;  %v14334_v56 = vpop.permute.xlu0 %5371  ;;  %v5846_v7 = vrot.slane %v5832_v39, 3 }
 0xda8   :  { %5797 = vrot.lane.b32.xlu1 %v5790_v51, %s10743_s3 }
 0xda9   :  { %5795 = vrot.lane.b32.xlu0 %v5787_v18, %s10743_s3  ;;  %v5848_v25 = vsel %vm499_vm1, %v5846_v7, %v5847_v52  ;;  %v5852_v7 = vsel %vm499_vm1, %v5847_v52, %v16495_v5  ;;  %v5950_v52 = vmul.f32 %v13758_v10, %v13840_v9 }
 0xdaa   :  { %v14348_v13 = vpop.permute.xlu1 %5427 }
 0xdab   :  { %v14350_v57 = vpop.permute.xlu0 %5429 }
 0xdac   :  { %5801 = vrot.lane.b32.xlu1 %v5794_v32, %s10743_s3  ;;  %v5905_v32 = vrot.slane %v5892_v0, 3  ;;  %v16500_v0 = vrot.slane %v14028_v46, 3  ;;  %v6048_v46 = vmul.f32 %v13760_v40, %v13784_v23 }
 0xdad   :  { %5799 = vrot.lane.b32.xlu0 %v5792_v38, %s10743_s3  ;;  %v5902_v38 = vrot.slane %v5891_v36, 3 }
 0xdae   :  { %v14360_v18 = vpop.permute.xlu1 %5528  ;;  %v5906_v36 = vsel %vm499_vm1, %v5904_v22, %v5905_v32  ;;  %v16501_v22 = vrot.slane %v14024_v63, 3  ;;  %v6050_v63 = vmul.f32 %v13760_v40, %v13838_v29 }
 0xdaf   :  { %16490 = vst [vmem:[#allocation72_spill] sm:$0xff] %v14360_v18  ;;  %v14362_v51 = vpop.permute.xlu0 %5530  ;;  %v16494_v18 = vrot.slane %v14008_v30, 3  ;;  %v5903_v44 = vsel %vm499_vm1, %v5901_v24, %v5902_v38  ;;  %v5947_v30 = vmul.f32 %v13758_v10, %v13784_v23  ;;  %v5908_v24 = vsel %vm499_vm1, %v5902_v38, %v16500_v0 }
 0xdb0   :  { %16491 = vst [vmem:[#allocation73_spill] sm:$0xff] %v14362_v51  ;;  %5855 = vrot.lane.b32.xlu1 %v5848_v25, %s10744_s4  ;;  %v6060_v0 = vrot.slane %v6048_v46, 4 }
 0xdb1   :  { %5853 = vrot.lane.b32.xlu0 %v5845_v34, %s10744_s4  ;;  %v5850_v27 = vsel %vm499_vm1, %v5844_v8, %v16494_v18  ;;  %v5948_v8 = vmul.f32 %v13758_v10, %v13786_v1  ;;  %v5959_v5 = vrot.slane %v5947_v30, 3  ;;  %v5963_v10 = vrot.slane %v5950_v52, 3 }
 0xdb2   :  { %v14376_v39 = vpop.permute.xlu1 %5586  ;;  %v6049_v30 = vmul.f32 %v13760_v40, %v13786_v1 }
 0xdb3   :  { %16492 = vst [vmem:[#allocation74_spill] sm:$0xff] %v14376_v39  ;;  %v14378_v26 = vpop.permute.xlu0 %5588 }
 0xdb4   :  { %16493 = vst [vmem:[#allocation75_spill] sm:$0xff] %v14378_v26  ;;  %5859 = vrot.lane.b32.xlu1 %v5852_v7, %s10744_s4  ;;  %v5960_v7 = vrot.slane %v5949_v55, 3  ;;  %v6051_v55 = vmul.f32 %v13760_v40, %v13840_v9 }
 0xdb5   :  { %5857 = vrot.lane.b32.xlu0 %v5850_v27, %s10744_s4  ;;  %v5910_v27 = vsel %vm499_vm1, %v5905_v32, %v16501_v22  ;;  %v16506_v22 = vrot.slane %v14044_v4, 3  ;;  %v6106_v4 = vmul.f32 %v13762_v35, %v13784_v23 }
 0xdb6   :  { %v14388_v34 = vpop.permute.xlu1 %5646  ;;  %v5961_v38 = vsel %vm499_vm1, %v5959_v5, %v5960_v7  ;;  %v6064_v40 = vrot.slane %v6051_v55, 4 }
 0xdb7   :  { %16496 = vst [vmem:[#allocation76_spill] sm:$0xff] %v14388_v34  ;;  %v14390_v25 = vpop.permute.xlu0 %5644  ;;  %v10459_v34 = vld [vmem:[#allocation3 + $0x28] sm:$0xff] }
 0xdb8   :  { %16497 = vst [vmem:[#allocation78_spill] sm:$0xff] %v14390_v25  ;;  %5913 = vrot.lane.b32.xlu1 %v5906_v36, %s10745_s29  ;;  %v5962_v25 = vrot.slane %v5948_v8, 3 }
 0xdb9   :  { %5911 = vrot.lane.b32.xlu0 %v5903_v44, %s10745_s29 }
 0xdba   :  { %v14404_v18 = vpop.permute.xlu1 %5704  ;;  %v5964_v32 = vsel %vm499_vm1, %v5962_v25, %v5963_v10  ;;  %v5966_v25 = vsel %vm499_vm1, %v5960_v7, %v16506_v22  ;;  %v16513_v22 = vrot.slane %v14056_v62, 4  ;;  %v6166_v62 = vmul.f32 %v13764_v16, %v13838_v29 }
 0xdbb   :  { %16498 = vst [vmem:[#allocation79_spill] sm:$0xff] %v14404_v18  ;;  %v14406_v2 = vpop.permute.xlu0 %5702 }
 0xdbc   :  { %16499 = vst [vmem:[#allocation81_spill] sm:$0xff] %v14406_v2  ;;  %5917 = vrot.lane.b32.xlu1 %v5910_v27, %s10745_s29  ;;  %v16507_v27 = vrot.slane %v14040_v50, 3  ;;  %v6108_v50 = vmul.f32 %v13762_v35, %v13838_v29 }
 0xdbd   :  { %5915 = vrot.lane.b32.xlu0 %v5908_v24, %s10745_s29  ;;  %v6061_v24 = vrot.slane %v6050_v63, 4  ;;  %v6109_v63 = vmul.f32 %v13762_v35, %v13840_v9 }
 0xdbe   :  { %v14416_v44 = vpop.permute.xlu1 %5805  ;;  %v5968_v5 = vsel %vm499_vm1, %v5963_v10, %v16507_v27  ;;  %v6107_v10 = vmul.f32 %v13762_v35, %v13786_v1  ;;  %v6118_v27 = vrot.slane %v6106_v4, 4  ;;  %v6165_v4 = vmul.f32 %v13764_v16, %v13786_v1 }
 0xdbf   :  { %16502 = vst [vmem:[#allocation83_spill] sm:$0xff] %v14416_v44  ;;  %v14418_v36 = vpop.permute.xlu0 %5803  ;;  %v6062_v46 = vsel %vm243_vm0, %v6060_v0, %v6061_v24  ;;  %v16512_v0 = vrot.slane %v14060_v12, 4  ;;  %v6122_v35 = vrot.slane %v6109_v63, 4  ;;  %v6164_v12 = vmul.f32 %v13764_v16, %v13784_v23 }
 0xdc0   :  { %16503 = vst [vmem:[#allocation80_spill] sm:$0xff] %v14418_v36  ;;  %5969 = vrot.lane.b32.xlu1 %v5961_v38, %s10751_s2  ;;  %v6063_v36 = vrot.slane %v6049_v30, 4 }
 0xdc1   :  { %5971 = vrot.lane.b32.xlu0 %v5964_v32, %s10751_s2 }
 0xdc2   :  { %v14432_v8 = vpop.permute.xlu1 %5863  ;;  %v6065_v7 = vsel %vm243_vm0, %v6063_v36, %v6064_v40  ;;  %v6067_v36 = vsel %vm243_vm0, %v6061_v24, %v16512_v0  ;;  %v6176_v0 = vrot.slane %v6164_v12, 4 }
 0xdc3   :  { %16504 = vst [vmem:[#allocation85_spill] sm:$0xff] %v14432_v8  ;;  %v14434_v52 = vpop.permute.xlu0 %5861 }
 0xdc4   :  { %16505 = vst [vmem:[#allocation82_spill] sm:$0xff] %v14434_v52  ;;  %5973 = vrot.lane.b32.xlu1 %v5966_v25, %s10751_s2  ;;  %v6069_v25 = vsel %vm243_vm0, %v6064_v40, %v16513_v22  ;;  %v16518_v22 = vrot.slane %v14076_v41, 4  ;;  %v6222_v41 = vmul.f32 %v13766_v11, %v13784_v23  ;;  %v16522_v23 = vrot.slane %v14092_v58, 4 }
 0xdc5   :  { %5975 = vrot.lane.b32.xlu0 %v5968_v5, %s10751_s2  ;;  %v6119_v5 = vrot.slane %v6108_v50, 4  ;;  %v6167_v50 = vmul.f32 %v13764_v16, %v13840_v9 }
 0xdc6   :  { %v14444_v38 = vpop.permute.xlu1 %5919 }
 0xdc7   :  { %16508 = vst [vmem:[#allocation87_spill] sm:$0xff] %v14444_v38  ;;  %v14446_v32 = vpop.permute.xlu0 %5921  ;;  %v6121_v38 = vrot.slane %v6107_v10, 4  ;;  %v6120_v24 = vsel %vm243_vm0, %v6118_v27, %v6119_v5  ;;  %v6180_v16 = vrot.slane %v6167_v50, 4 }
 0xdc8   :  { %16509 = vst [vmem:[#allocation84_spill] sm:$0xff] %v14446_v32  ;;  %6070 = vrot.lane.b32.xlu1 %v6062_v46, %s10743_s3 }
 0xdc9   :  { %6072 = vrot.lane.b32.xlu0 %v6065_v7, %s10743_s3  ;;  %v6123_v40 = vsel %vm243_vm0, %v6121_v38, %v6122_v35  ;;  %v6125_v38 = vsel %vm243_vm0, %v6119_v5, %v16518_v22 }
 0xdca   :  { %v14460_v30 = vpop.permute.xlu1 %5977 }
 0xdcb   :  { %16510 = vst [vmem:[#allocation89_spill] sm:$0xff] %v14460_v30  ;;  %v14462_v55 = vpop.permute.xlu0 %5979 }
 0xdcc   :  { %16511 = vst [vmem:[#allocation86_spill] sm:$0xff] %v14462_v55  ;;  %6074 = vrot.lane.b32.xlu1 %v6067_v36, %s10743_s3  ;;  %v6177_v36 = vrot.slane %v6166_v62, 4  ;;  %v6225_v62 = vmul.f32 %v13766_v11, %v13840_v9 }
 0xdcd   :  { %6076 = vrot.lane.b32.xlu0 %v6069_v25, %s10743_s3  ;;  %v16519_v25 = vrot.slane %v14072_v3, 4  ;;  %v6224_v3 = vmul.f32 %v13766_v11, %v13838_v29 }
 0xdce   :  { %v14472_v46 = vpop.permute.xlu1 %6078  ;;  %v6178_v12 = vsel %vm243_vm0, %v6176_v0, %v6177_v36  ;;  %v16523_v0 = vld [vmem:[#allocation64_spill] sm:$0xff] }
 0xdcf   :  { %16514 = vst [vmem:[#allocation91_spill] sm:$0xff] %v14472_v46  ;;  %v14474_v7 = vpop.permute.xlu0 %6080  ;;  %v6127_v27 = vsel %vm243_vm0, %v6122_v35, %v16519_v25  ;;  %v6179_v46 = vrot.slane %v6165_v4, 4  ;;  %v6223_v35 = vmul.f32 %v13766_v11, %v13786_v1  ;;  %v16524_v22 = vrot.slane %v16523_v0, 4  ;;  %v16525_v25 = vld [vmem:[#allocation62_spill] sm:$0xff] }
 0xdd0   :  { %16515 = vst [vmem:[#allocation88_spill] sm:$0xff] %v14474_v7  ;;  %6128 = vrot.lane.b32.xlu1 %v6120_v24, %s10744_s4  ;;  %v6234_v1 = vrot.slane %v6222_v41, 4 }
 0xdd1   :  { %6130 = vrot.lane.b32.xlu0 %v6123_v40, %s10744_s4  ;;  %v6181_v5 = vsel %vm243_vm0, %v6179_v46, %v6180_v16  ;;  %v6183_v46 = vsel %vm243_vm0, %v6177_v36, %v16522_v23 }
 0xdd2   :  { %v14488_v10 = vpop.permute.xlu1 %6136 }
 0xdd3   :  { %16516 = vst [vmem:[#allocation93_spill] sm:$0xff] %v14488_v10  ;;  %v14490_v63 = vpop.permute.xlu0 %6138 }
 0xdd4   :  { %16517 = vst [vmem:[#allocation90_spill] sm:$0xff] %v14490_v63  ;;  %6132 = vrot.lane.b32.xlu1 %v6125_v38, %s10744_s4  ;;  %v6185_v38 = vsel %vm243_vm0, %v6180_v16, %v16524_v22 }
 0xdd5   :  { %6134 = vrot.lane.b32.xlu0 %v6127_v27, %s10744_s4  ;;  %v6226_v27 = vmul.f32 %v13766_v11, %v16525_v25  ;;  %v6272_v25 = vld [vmem:[%s16123_s12 + $0x8] sm:$0xff] }
 0xdd6   :  { %v14500_v24 = vpop.permute.xlu1 %6194 }
 0xdd7   :  { %16520 = vst [vmem:[#allocation95_spill] sm:$0xff] %v14500_v24  ;;  %v14502_v40 = vpop.permute.xlu0 %6196  ;;  %v6235_v24 = vrot.slane %v6224_v3, 4  ;;  %v6240_v23 = vrot.slane %v6226_v27, 4 }
 0xdd8   :  { %16521 = vst [vmem:[#allocation92_spill] sm:$0xff] %v14502_v40  ;;  %6186 = vrot.lane.b32.xlu1 %v6178_v12, %s10745_s29  ;;  %v6237_v12 = vrot.slane %v6223_v35, 4  ;;  %v6238_v40 = vrot.slane %v6225_v62, 4 }
 0xdd9   :  { %6188 = vrot.lane.b32.xlu0 %v6181_v5, %s10745_s29  ;;  %v16526_v5 = vld [vmem:[#allocation63_spill] sm:$0xff]  ;;  %v6236_v16 = vsel %vm243_vm0, %v6234_v1, %v6235_v24  ;;  %v6241_v35 = vsel %vm243_vm0, %v6235_v24, %v6240_v23 }
 0xdda   :  { %v14516_v4 = vpop.permute.xlu1 %5247  ;;  %v6227_v10 = vmul.f32 %v13766_v11, %v16526_v5  ;;  %v6239_v41 = vsel %vm243_vm0, %v6237_v12, %v6238_v40  ;;  %v6273_v12 = vld [vmem:[%s16123_s12 + $0x10] sm:$0xff]  ;;  %v6274_v5 = vld [vmem:[%s16123_s12 + $0x18] sm:$0xff] }
 0xddb   :  { %v14518_v50 = vpop.permute.xlu0 %5245 }
 0xddc   :  { %6190 = vrot.lane.b32.xlu1 %v6183_v46, %s10745_s29  ;;  %v6242_v0 = vrot.slane %v6227_v10, 4 }
 0xddd   :  { %6192 = vrot.lane.b32.xlu0 %v6185_v38, %s10745_s29 }
 0xdde   :  { %v14532_v58 = vpop.permute.xlu1 %5251  ;;  %v6243_v62 = vsel %vm243_vm0, %v6238_v40, %v6242_v0  ;;  %v6271_v40 = vld [vmem:[%s16123_s12] sm:$0xff] }
 0xddf   :  { %v14534_v36 = vpop.permute.xlu0 %5249  ;;  %v10120_v27 = vpack.c.bf16 %v6272_v25, %v6271_v40  ;;  %v6277_v40 = vld [vmem:[%s16123_s12 + $0x30] sm:$0xff]  ;;  %v6278_v25 = vld [vmem:[%s16123_s12 + $0x38] sm:$0xff] }
 0xde0   :  { %6244 = vrot.lane.b32.xlu1 %v6236_v16, %s10751_s2  ;;  %v10124_v16 = vpack.c.bf16 %v6274_v5, %v6273_v12  ;;  %v10132_v63 = vpack.c.bf16 %v6278_v25, %v6277_v40  ;;  %v6282_v40 = vld [vmem:[%s16123_s12 + $0x58] sm:$0xff] }
 0xde1   :  { %6246 = vrot.lane.b32.xlu0 %v6239_v41, %s10751_s2  ;;  %v6275_v41 = vld [vmem:[%s16123_s12 + $0x20] sm:$0xff]  ;;  %10121 = vmatprep.subr.bf16.mxu0 %v10120_v27 }
 0xde2   :  { %v14540_v3 = vpop.permute.xlu1 %5305  ;;  %10123 = vmatpush3.bf16.msra.mxu0 %v10120_v27  ;;  %v6279_v27 = vld [vmem:[%s16123_s12 + $0x40] sm:$0xff] }
 0xde3   :  { %v14542_v11 = vpop.permute.xlu0 %5303  ;;  %10125 = vmatprep.subr.bf16.mxu0 %v10124_v16 }
 0xde4   :  { %16527 = vst [vmem:[#allocation97_spill] sm:$0xff] %v14542_v11  ;;  %6248 = vrot.lane.b32.xlu1 %v6241_v35, %s10751_s2 }
 0xde5   :  { %6250 = vrot.lane.b32.xlu0 %v6243_v62, %s10751_s2 }
 0xde6   :  { %v14548_v46 = vpop.permute.xlu1 %5309  ;;  %10127 = vmatpush3.bf16.msra.mxu0 %v10124_v16  ;;  %v6281_v16 = vld [vmem:[%s16123_s12 + $0x50] sm:$0xff] }
 0xde7   :  { %16528 = vst [vmem:[#allocation94_spill] sm:$0xff] %v14548_v46  ;;  %v14550_v22 = vpop.permute.xlu0 %5307  ;;  %v10140_v32 = vpack.c.bf16 %v6282_v40, %v6281_v16  ;;  %v16558_v46 = vld [vmem:[#allocation61_spill] sm:$0xff] }
 0xde8   :  { %16529 = vst [vmem:[#allocation99_spill] sm:$0xff] %v14550_v22  ;;  %6252 = vrot.lane.b32.xlu1 %v6240_v23, %s10751_s2  ;;  %v6276_v23 = vld [vmem:[%s16123_s12 + $0x28] sm:$0xff] }
 0xde9   :  { %6254 = vrot.lane.b32.xlu0 %v6242_v0, %s10751_s2  ;;  %v10128_v62 = vpack.c.bf16 %v6276_v23, %v6275_v41  ;;  %v6280_v41 = vld [vmem:[%s16123_s12 + $0x48] sm:$0xff] }
 0xdea   :  { %v14554_v10 = vpop.permute.xlu1 %5363  ;;  %v10136_v30 = vpack.c.bf16 %v6280_v41, %v6279_v27  ;;  %v6284_v27 = vld [vmem:[%s16123_s12 + $0x68] sm:$0xff] }
 0xdeb   :  { %16530 = vst [vmem:[#allocation96_spill] sm:$0xff] %v14554_v10  ;;  %v14556_v38 = vpop.permute.xlu0 %5361  ;;  %10129 = vmatprep.subr.bf16.mxu0 %v10128_v62  ;;  %v14688_v22 = vld [vmem:[#allocation3 + $0x18] sm:$0xff] }
 0xdec   :  { %16531 = vst [vmem:[#allocation98_spill] sm:$0xff] %v14556_v38  ;;  %10131 = vmatpush3.bf16.msra.mxu0 %v10128_v62  ;;  %v6283_v62 = vld [vmem:[%s16123_s12 + $0x60] sm:$0xff] }
 0xded   :  { %10133 = vmatprep.subr.bf16.mxu0 %v10132_v63  ;;  %v10144_v8 = vpack.c.bf16 %v6284_v27, %v6283_v62  ;;  %v14684_v38 = vld [vmem:[#allocation3 + $0x10] sm:$0xff] }
 0xdee   :  { %v14558_v1 = vpop.permute.xlu1 %5367 }
 0xdef   :  { %16532 = vst [vmem:[#allocation77_spill] sm:$0xff] %v14558_v1  ;;  %v14560_v24 = vpop.permute.xlu0 %5365  ;;  %v5014_v1 = vsel %vm289_vm14, %v14152_v17, %v14154_v21 }
 0xdf0   :  { %16533 = vst [vmem:[#allocation64_spill] sm:$0xff] %v14560_v24  ;;  %10135 = vmatpush3.bf16.msra.mxu0 %v10132_v63 }
 0xdf1   :  { %10137 = vmatprep.subr.bf16.mxu0 %v10136_v30 }
 0xdf2   :  { %v14580_v0 = vpop.permute.xlu1 %5419 }
 0xdf3   :  { %16534 = vst [vmem:[#allocation62_spill] sm:$0xff] %v14580_v0  ;;  %v14582_v35 = vpop.permute.xlu0 %5421 }
 0xdf4   :  { %16535 = vst [vmem:[#allocation63_spill] sm:$0xff] %v14582_v35  ;;  %10139 = vmatpush3.bf16.msra.mxu0 %v10136_v30 }
 0xdf5   :  { %10141 = vmatprep.subr.bf16.mxu0 %v10140_v32 }
 0xdf6   :  { %v14590_v12 = vpop.permute.xlu1 %5423 }
 0xdf7   :  { %16536 = vst [vmem:[#allocation100_spill] sm:$0xff] %v14590_v12  ;;  %v14592_v5 = vpop.permute.xlu0 %5425 }
 0xdf8   :  { %16537 = vst [vmem:[#allocation101_spill] sm:$0xff] %v14592_v5  ;;  %10143 = vmatpush3.bf16.msra.mxu0 %v10140_v32 }
 0xdf9   :  { %10145 = vmatprep.subr.bf16.mxu0 %v10144_v8 }
 0xdfa   :  { %v14600_v23 = vpop.permute.xlu1 %5520 }
 0xdfb   :  { %16538 = vst [vmem:[#allocation102_spill] sm:$0xff] %v14600_v23  ;;  %v14602_v7 = vpop.permute.xlu0 %5522 }
 0xdfc   :  { %16539 = vst [vmem:[#allocation103_spill] sm:$0xff] %v14602_v7  ;;  %10147 = vmatpush3.bf16.msra.mxu0 %v10144_v8 }
 0xdfe   :  { %v14610_v25 = vpop.permute.xlu1 %5524 }
 0xdff   :  { %16540 = vst [vmem:[#allocation104_spill] sm:$0xff] %v14610_v25  ;;  %v14612_v55 = vpop.permute.xlu0 %5526 }
 0xe00   :  { %16541 = vst [vmem:[#allocation105_spill] sm:$0xff] %v14612_v55  ;;  %v16555_v55 = vld [vmem:[#allocation60_spill] sm:$0xff] }
 0xe01   :  { %v14667_v23 = vmul.f32 %v10459_v34, %v16555_v55 }
 0xe02   :  { %v14620_v41 = vpop.permute.xlu1 %5578 }
 0xe03   :  { %16542 = vst [vmem:[#allocation106_spill] sm:$0xff] %v14620_v41  ;;  %v14622_v52 = vpop.permute.xlu0 %5580  ;;  %v16550_v41 = vld [vmem:[#allocation58_spill] sm:$0xff] }
 0xe04   :  { %16543 = vst [vmem:[#allocation107_spill] sm:$0xff] %v14622_v52  ;;  %v14637_v30 = vmul.f32 %v10459_v34, %v16550_v41  ;;  %v5183_v8 = vmul.f32 %v16550_v41, %v13840_v9  ;;  %v16554_v52 = vld [vmem:[#allocation59_spill] sm:$0xff] }
 0xe05   :  { %v14664_v9 = vmul.f32 %v10459_v34, %v16554_v52 }
 0xe06   :  { %v14624_v44 = vpop.permute.xlu1 %5582  ;;  %v5196_v0 = vrot.slane %v5183_v8, 1 }
 0xe07   :  { %16544 = vst [vmem:[#allocation108_spill] sm:$0xff] %v14624_v44  ;;  %v14626_v63 = vpop.permute.xlu0 %5584  ;;  %v14643_v44 = vld [vmem:[#allocation3 + $0x8] sm:$0xff] }
 0xe08   :  { %16545 = vst [vmem:[#allocation109_spill] sm:$0xff] %v14626_v63  ;;  %v5181_v32 = vmul.f32 %v14643_v44, %v16550_v41 }
 0xe0a   :  { %v14628_v16 = vpop.permute.xlu1 %5636  ;;  %v5195_v5 = vrot.slane %v5181_v32, 1 }
 0xe0b   :  { %16546 = vst [vmem:[#allocation110_spill] sm:$0xff] %v14628_v16  ;;  %v14630_v40 = vpop.permute.xlu0 %5638  ;;  %v14649_v16 = vld [vmem:[#allocation3] sm:$0xff] }
 0xe0c   :  { %16547 = vst [vmem:[#allocation111_spill] sm:$0xff] %v14630_v40  ;;  %v16553_v40 = vld [vmem:[#allocation57_spill] sm:$0xff] }
 0xe0d   :  { %v4969_v10 = vmul.f32 %v14684_v38, %v16553_v40  ;;  %v4970_v26 = vmul.f32 %v14688_v22, %v16553_v40 }
 0xe0e   :  { %v14632_v2 = vpop.permute.xlu1 %5640 }
 0xe0f   :  { %16548 = vst [vmem:[#allocation112_spill] sm:$0xff] %v14632_v2  ;;  %v14634_v18 = vpop.permute.xlu0 %5642  ;;  %v5180_v2 = vmul.f32 %v14649_v16, %v16550_v41 }
 0xe10   :  { %16549 = vst [vmem:[#allocation113_spill] sm:$0xff] %v14634_v18  ;;  %v5182_v18 = vmul.f32 %v16550_v41, %v13838_v29  ;;  %v4968_v29 = vmul.f32 %v14643_v44, %v16553_v40 }
 0xe11   :  { %v5192_v35 = vrot.slane %v5180_v2, 1  ;;  %v5197_v2 = vsel %vm333_vm12, %v5195_v5, %v5196_v0 }
 0xe12   :  { %v14639_v62 = vpop.permute.xlu1 %5696  ;;  %v5193_v24 = vrot.slane %v5182_v18, 1 }
 0xe13   :  { %16551 = vst [vmem:[#allocation58_spill] sm:$0xff] %v14639_v62  ;;  %v14641_v27 = vpop.permute.xlu0 %5694  ;;  %v4967_v62 = vmul.f32 %v14649_v16, %v16553_v40 }
 0xe14   :  { %16552 = vst [vmem:[#allocation114_spill] sm:$0xff] %v14641_v27  ;;  %v10462_v27 = vld [vmem:[#allocation3 + $0x20] sm:$0xff]  ;;  %v14713_v17 = vsel %vm333_vm12, %v5192_v35, %v5193_v24 }
 0xe15   :  { %v14658_v63 = vmul.f32 %v10462_v27, %v16550_v41  ;;  %v14661_v25 = vmul.f32 %v10462_v27, %v16554_v52  ;;  %v14670_v7 = vmul.f32 %v10462_v27, %v16555_v55  ;;  %v4971_v39 = vmul.f32 %v10462_v27, %v16553_v40 }
 0xe16   :  { %v4972_v41 = vmul.f32 %v10459_v34, %v16553_v40  ;;  %v14677_v51 = vpop.permute.xlu1 %5700  ;;  %v14702_v11 = vmul.f32 %v10462_v27, %v16558_v46  ;;  %v14705_v40 = vmul.f32 %v10459_v34, %v16558_v46  ;;  %v5012_v34 = vsel %vm289_vm14, %v14136_v47, %v14138_v42 }
 0xe17   :  { %16556 = vst [vmem:[#allocation57_spill] sm:$0xff] %v14677_v51  ;;  %v14679_v12 = vpop.permute.xlu0 %5698  ;;  %v5062_v51 = vsel %vm317_vm15, %v14180_v19, %v14182_v37  ;;  %v5025_v18 = vadd.f32 %v5014_v1, %v4971_v39  ;;  %v5110_v39 = vsel %vm542_vm4, %v14210_v15, %v14208_v28  ;;  %v5455_v1 = vmul.f32 %v14649_v16, %v16554_v52 }
 0xe18   :  { %16557 = vst [vmem:[#allocation59_spill] sm:$0xff] %v14679_v12  ;;  %v5198_v12 = vrot.slane %v14658_v63, 1  ;;  %v5026_v8 = vadd.f32 %v14154_v21, %v4972_v41  ;;  %16559 = vst [vmem:[#allocation60_spill] sm:$0xff] %v14702_v11  ;;  %v16562_v21 = vrot.slane %v14637_v30, 1  ;;  %v14738_v47 = vmul.f32 %v14684_v38, %v16554_v52 }
 0xe19   :  { %v5073_v35 = vadd.f32 %v5062_v51, %v5025_v18  ;;  %v5158_v51 = vsel %vm3425_vm5, %v14238_v54, %v14236_v20  ;;  %v5022_v11 = vadd.f32 %v14138_v42, %v4968_v29  ;;  %v5061_v42 = vsel %vm317_vm15, %v14264_v61, %v14266_v59  ;;  %v16567_v29 = vld [vmem:[#allocation67_spill] sm:$0xff] }
 0xe1a   :  { %v14707_v63 = vpop.permute.xlu1 %5797  ;;  %v14718_v19 = vsel %vm333_vm12, %v5196_v0, %v16562_v21  ;;  %v5074_v27 = vadd.f32 %v14182_v37, %v5026_v8  ;;  %v14730_v5 = vsel %vm333_vm12, %v5193_v24, %v5198_v12  ;;  %v14734_v0 = vmul.f32 %v14643_v44, %v16554_v52  ;;  %v16563_v37 = vld [vmem:[#allocation65_spill] sm:$0xff] }
 0xe1b   :  { %16560 = vst [vmem:[#allocation61_spill] sm:$0xff] %v14707_v63  ;;  %v14709_v32 = vpop.permute.xlu0 %5795  ;;  %v5060_v41 = vsel %vm317_vm15, %v16563_v37, %v14166_v43  ;;  %v14749_v24 = vmul.f32 %v14688_v22, %v16554_v52  ;;  %v5021_v21 = vadd.f32 %v5012_v34, %v4967_v62  ;;  %v5024_v52 = vadd.f32 %v14250_v48, %v4970_v26  ;;  %v16568_v34 = vld [vmem:[#allocation68_spill] sm:$0xff] }
 0xe1c   :  { %16561 = vst [vmem:[#allocation115_spill] sm:$0xff] %v14709_v32  ;;  %v5122_v15 = vadd.f32 %v14208_v28, %v5074_v27  ;;  %v5121_v32 = vadd.f32 %v5110_v39, %v5073_v35  ;;  %v5013_v28 = vsel %vm289_vm14, %v14248_v60, %v14250_v48  ;;  %v16566_v27 = vld [vmem:[#allocation66_spill] sm:$0xff]  ;;  %v5467_v63 = vrot.slane %v5455_v1, 2 }
 0xe1d   :  { %v5108_v54 = vsel %vm542_vm4, %v16566_v27, %v14194_v49  ;;  %v5156_v60 = vsel %vm3425_vm5, %v16568_v34, %v16567_v29  ;;  %v5023_v39 = vadd.f32 %v5013_v28, %v4969_v10  ;;  %v5072_v35 = vadd.f32 %v14266_v59, %v5024_v52 }
 0xe1e   :  { %v14751_v18 = vpop.permute.xlu1 %5801  ;;  %v5170_v37 = vadd.f32 %v14236_v20, %v5122_v15  ;;  %v5169_v62 = vadd.f32 %v5158_v51, %v5121_v32  ;;  %v5468_v20 = vrot.slane %v14738_v47, 2  ;;  %v5470_v32 = vrot.slane %v14734_v0, 2 }
 0xe1f   :  { %16564 = vst [vmem:[#allocation65_spill] sm:$0xff] %v14751_v18  ;;  %v14753_v8 = vpop.permute.xlu0 %5799  ;;  %v5069_v18 = vadd.f32 %v5060_v41, %v5021_v21  ;;  %v5071_v1 = vadd.f32 %v5061_v42, %v5023_v39  ;;  %v5120_v10 = vadd.f32 %v14278_v6, %v5072_v35  ;;  %v16570_v59 = vrot.slane %v14637_v30, 1 }
 0xe20   :  { %16565 = vst [vmem:[#allocation116_spill] sm:$0xff] %v14753_v8  ;;  %v5070_v8 = vadd.f32 %v14166_v43, %v5022_v11  ;;  %v16569_v11 = vld [vmem:[#allocation69_spill] sm:$0xff]  ;;  %v5259_v47 = vsel %vm289_vm14, %v14306_v33, %v14304_v31  ;;  %v5212_v21 = vadd.f32 %v5198_v12, %v5169_v62  ;;  %v5317_v30 = vsel %vm317_vm15, %v14322_v45, %v14320_v14  ;;  %v16572_v45 = vld [vmem:[#allocation71_spill] sm:$0xff] }
 0xe21   :  { %v5117_v26 = vadd.f32 %v5108_v54, %v5069_v18  ;;  %v5109_v61 = vsel %vm542_vm4, %v16569_v11, %v14278_v6  ;;  %v5213_v41 = vadd.f32 %v16570_v59, %v5170_v37  ;;  %v5168_v0 = vadd.f32 %v14292_v53, %v5120_v10 }
 0xe22   :  { %v14773_v15 = vpop.permute.xlu1 %5855  ;;  %v5118_v43 = vadd.f32 %v14194_v49, %v5070_v8  ;;  %v16571_v49 = vld [vmem:[#allocation70_spill] sm:$0xff]  ;;  %v5119_v28 = vadd.f32 %v5109_v61, %v5071_v1  ;;  %v5270_v54 = vadd.f32 %v5259_v47, %v5212_v21  ;;  %v5471_v37 = vrot.slane %v14749_v24, 2 }
 0xe23   :  { %v14775_v48 = vpop.permute.xlu0 %5853  ;;  %v5165_v18 = vadd.f32 %v5156_v60, %v5117_v26  ;;  %v5157_v8 = vsel %vm3425_vm5, %v16571_v49, %v14292_v53  ;;  %v5271_v6 = vadd.f32 %v14304_v31, %v5213_v41  ;;  %v14804_v52 = vmul.f32 %v14643_v44, %v16555_v55  ;;  %v16574_v41 = vld [vmem:[#allocation94_spill] sm:$0xff] }
 0xe24   :  { %v5166_v51 = vadd.f32 %v16567_v29, %v5118_v43  ;;  %v14808_v53 = vmul.f32 %v14688_v22, %v16555_v55  ;;  %v5167_v31 = vadd.f32 %v5157_v8, %v5119_v28  ;;  %v5375_v62 = vsel %vm542_vm4, %v16572_v45, %v14334_v56  ;;  %v16578_v28 = vld [vmem:[#allocation77_spill] sm:$0xff] }
 0xe25   :  { %v5329_v12 = vadd.f32 %v14320_v14, %v5271_v6  ;;  %v14816_v42 = vmul.f32 %v14649_v16, %v16555_v55  ;;  %v5328_v24 = vadd.f32 %v5317_v30, %v5270_v54  ;;  %v5257_v34 = vsel %vm289_vm14, %v14518_v50, %v14516_v4  ;;  %v16580_v30 = vld [vmem:[#allocation63_spill] sm:$0xff]  ;;  %v16581_v54 = vld [vmem:[#allocation62_spill] sm:$0xff] }
 0xe26   :  { %v14797_v27 = vpop.permute.xlu1 %5859  ;;  %v5209_v29 = vadd.f32 %v5197_v2, %v5166_v51  ;;  %v5469_v60 = vsel %vm410_vm13, %v5467_v63, %v5468_v20  ;;  %v5433_v14 = vsel %vm3425_vm5, %v14348_v13, %v14350_v57  ;;  %v5208_v35 = vadd.f32 %v14713_v17, %v5165_v18  ;;  %v16576_v51 = vld [vmem:[#allocation96_spill] sm:$0xff] }
 0xe27   :  { %v14799_v33 = vpop.permute.xlu0 %5857  ;;  %v5387_v39 = vadd.f32 %v14334_v56, %v5329_v12  ;;  %v5211_v26 = vadd.f32 %v14718_v19, %v5168_v0  ;;  %v5386_v2 = vadd.f32 %v5375_v62, %v5328_v24  ;;  %v5258_v50 = vsel %vm289_vm14, %v14534_v36, %v14532_v58  ;;  %v16573_v56 = vld [vmem:[#allocation97_spill] sm:$0xff]  ;;  %v16577_v36 = vld [vmem:[#allocation98_spill] sm:$0xff]  ;;  %v16579_v0 = vld [vmem:[#allocation64_spill] sm:$0xff] }
 0xe28   :  { %v5267_v61 = vadd.f32 %v14516_v4, %v5209_v29  ;;  %v5315_v63 = vsel %vm317_vm15, %v16573_v56, %v14540_v3  ;;  %v5266_v17 = vadd.f32 %v5257_v34, %v5208_v35  ;;  %v5210_v1 = vadd.f32 %v14730_v5, %v5167_v31  ;;  %v16575_v4 = vld [vmem:[#allocation99_spill] sm:$0xff]  ;;  %v16588_v56 = vld [vmem:[#allocation73_spill] sm:$0xff] }
 0xe29   :  { %v5445_v13 = vadd.f32 %v14350_v57, %v5387_v39  ;;  %v5269_v19 = vadd.f32 %v14532_v58, %v5211_v26  ;;  %v5444_v10 = vadd.f32 %v5433_v14, %v5386_v2  ;;  %v5316_v47 = vsel %vm317_vm15, %v16575_v4, %v16574_v41  ;;  %v16585_v26 = vld [vmem:[#allocation101_spill] sm:$0xff]  ;;  %v16586_v2 = vld [vmem:[#allocation100_spill] sm:$0xff] }
 0xe2a   :  { %v14828_v43 = vpop.permute.xlu1 %5913  ;;  %v5325_v59 = vadd.f32 %v14540_v3, %v5267_v61  ;;  %v5373_v18 = vsel %vm542_vm4, %v16577_v36, %v16576_v51  ;;  %v5268_v49 = vadd.f32 %v5258_v50, %v5210_v1  ;;  %v5324_v8 = vadd.f32 %v5315_v63, %v5266_v17  ;;  %v16589_v63 = vld [vmem:[#allocation72_spill] sm:$0xff] }
 0xe2b   :  { %v14830_v11 = vpop.permute.xlu0 %5911  ;;  %v5327_v57 = vadd.f32 %v16574_v41, %v5269_v19  ;;  %v5472_v21 = vsel %vm410_vm13, %v5470_v32, %v5471_v37  ;;  %v5374_v6 = vsel %vm542_vm4, %v16579_v0, %v16578_v28  ;;  %v5431_v31 = vsel %vm3425_vm5, %v16581_v54, %v16580_v30 }
 0xe2c   :  { %v5383_v3 = vadd.f32 %v16576_v51, %v5325_v59  ;;  %v16582_v12 = vrot.slane %v14661_v25, 2  ;;  %v16583_v32 = vrot.slane %v14664_v9, 2  ;;  %v5326_v24 = vadd.f32 %v5316_v47, %v5268_v49  ;;  %v16590_v47 = vld [vmem:[#allocation75_spill] sm:$0xff]  ;;  %v16591_v51 = vld [vmem:[#allocation74_spill] sm:$0xff] }
 0xe2d   :  { %v5382_v29 = vadd.f32 %v5373_v18, %v5324_v8  ;;  %v5385_v34 = vadd.f32 %v16578_v28, %v5327_v57  ;;  %v5432_v61 = vsel %vm3425_vm5, %v16586_v2, %v16585_v26  ;;  %v5745_v59 = vrot.slane %v14804_v52, 3  ;;  %v16593_v57 = vld [vmem:[#allocation102_spill] sm:$0xff]  ;;  %v16600_v2 = vld [vmem:[#allocation109_spill] sm:$0xff] }
 0xe2e   :  { %v14851_v58 = vpop.permute.xlu1 %5917  ;;  %v5474_v45 = vsel %vm410_vm13, %v5468_v20, %v16582_v12  ;;  %v5488_v62 = vadd.f32 %v16583_v32, %v5445_v13  ;;  %v16584_v39 = vmov %v16582_v12  ;;  %v5441_v35 = vadd.f32 %v16580_v30, %v5383_v3  ;;  %v16595_v12 = vld [vmem:[#allocation104_spill] sm:$0xff] }
 0xe2f   :  { %v14853_v5 = vpop.permute.xlu0 %5915  ;;  %v5487_v14 = vadd.f32 %v16584_v39, %v5444_v10  ;;  %v16587_v50 = vmov %v16583_v32  ;;  %v5534_v13 = vsel %vm289_vm14, %v16589_v63, %v16588_v56  ;;  %v5384_v17 = vadd.f32 %v5374_v6, %v5326_v24  ;;  %v16596_v32 = vld [vmem:[#allocation107_spill] sm:$0xff]  ;;  %v16598_v24 = vld [vmem:[#allocation76_spill] sm:$0xff] }
 0xe30   :  { %v5476_v20 = vsel %vm410_vm13, %v5471_v37, %v16587_v50  ;;  %v5440_v19 = vadd.f32 %v5431_v31, %v5382_v29  ;;  %v5443_v1 = vadd.f32 %v16585_v26, %v5385_v34  ;;  %v5746_v41 = vrot.slane %v14808_v53, 3  ;;  %v16592_v53 = vld [vmem:[#allocation103_spill] sm:$0xff]  ;;  %v16594_v31 = vld [vmem:[#allocation105_spill] sm:$0xff]  ;;  %v16599_v29 = vld [vmem:[#allocation78_spill] sm:$0xff] }
 0xe31   :  { %v14889_v9 = vmul.f32 %v14684_v38, %v16555_v55  ;;  %v5742_v37 = vrot.slane %v14816_v42, 3  ;;  %v5546_v4 = vadd.f32 %v16588_v56, %v5488_v62  ;;  %v5592_v36 = vsel %vm317_vm15, %v16591_v51, %v16590_v47  ;;  %v16597_v62 = vld [vmem:[#allocation106_spill] sm:$0xff] }
 0xe32   :  { %v14881_v25 = vpop.permute.xlu1 %5969  ;;  %v5442_v18 = vadd.f32 %v5432_v61, %v5384_v17  ;;  %v14898_v49 = vmul.f32 %v14649_v16, %v16558_v46  ;;  %v5545_v52 = vadd.f32 %v5534_v13, %v5487_v14  ;;  %v5484_v8 = vadd.f32 %v5472_v21, %v5441_v35  ;;  %v16601_v61 = vld [vmem:[#allocation108_spill] sm:$0xff]  ;;  %v16603_v56 = vld [vmem:[#allocation110_spill] sm:$0xff]  ;;  %v16604_v13 = vld [vmem:[#allocation79_spill] sm:$0xff] }
 0xe33   :  { %v14883_v10 = vpop.permute.xlu0 %5971  ;;  %v5532_v55 = vsel %vm289_vm14, %v16593_v57, %v16592_v53  ;;  %v14905_v42 = vmul.f32 %v14643_v44, %v16558_v46  ;;  %v5604_v3 = vadd.f32 %v16590_v47, %v5546_v4  ;;  %v5483_v28 = vadd.f32 %v5469_v60, %v5440_v19  ;;  %v16605_v17 = vld [vmem:[#allocation81_spill] sm:$0xff]  ;;  %v16608_v57 = vld [vmem:[#allocation58_spill] sm:$0xff] }
 0xe34   :  { %v5486_v0 = vadd.f32 %v5476_v20, %v5443_v1  ;;  %v14914_v16 = vmul.f32 %v14684_v38, %v16558_v46  ;;  %v5603_v21 = vadd.f32 %v5592_v36, %v5545_v52  ;;  %v5542_v54 = vadd.f32 %v16592_v53, %v5484_v8  ;;  %v16602_v20 = vld [vmem:[#allocation111_spill] sm:$0xff]  ;;  %v16606_v52 = vld [vmem:[#allocation113_spill] sm:$0xff]  ;;  %v16607_v8 = vld [vmem:[#allocation112_spill] sm:$0xff] }
 0xe35   :  { %v5533_v44 = vsel %vm289_vm14, %v16595_v12, %v16594_v31  ;;  %v5590_v60 = vsel %vm317_vm15, %v16597_v62, %v16596_v32  ;;  %v5650_v34 = vsel %vm542_vm4, %v16599_v29, %v16598_v24  ;;  %v5541_v39 = vadd.f32 %v5532_v55, %v5483_v28  ;;  %v16609_v55 = vld [vmem:[#allocation114_spill] sm:$0xff] }
 0xe36   :  { %v14908_v6 = vpop.permute.xlu1 %5973  ;;  %v5485_v14 = vadd.f32 %v5474_v45, %v5442_v18  ;;  %v5544_v38 = vadd.f32 %v16594_v31, %v5486_v0  ;;  %v5662_v35 = vadd.f32 %v16598_v24, %v5604_v3  ;;  %v5600_v26 = vadd.f32 %v16596_v32, %v5542_v54  ;;  %v16611_v32 = vld [vmem:[#allocation59_spill] sm:$0xff] }
 0xe37   :  { %v14910_v30 = vpop.permute.xlu0 %5975  ;;  %v5591_v50 = vsel %vm317_vm15, %v16601_v61, %v16600_v2  ;;  %v5648_v63 = vsel %vm542_vm4, %v16603_v56, %v16602_v20  ;;  %v5708_v19 = vsel %vm3425_vm5, %v16605_v17, %v16604_v13  ;;  %v5599_v45 = vadd.f32 %v5590_v60, %v5541_v39 }
 0xe38   :  { %v5543_v1 = vadd.f32 %v5533_v44, %v5485_v14  ;;  %v5602_v4 = vadd.f32 %v16600_v2, %v5544_v38  ;;  %v5661_v36 = vadd.f32 %v5650_v34, %v5603_v21  ;;  %v5658_v18 = vadd.f32 %v16602_v20, %v5600_v26  ;;  %v16610_v21 = vld [vmem:[#allocation57_spill] sm:$0xff] }
 0xe39   :  { %v5649_v53 = vsel %vm542_vm4, %v16607_v8, %v16606_v52  ;;  %v5706_v3 = vsel %vm3425_vm5, %v16609_v55, %v16608_v57  ;;  %v5720_v28 = vadd.f32 %v16604_v13, %v5662_v35  ;;  %v5657_v54 = vadd.f32 %v5648_v63, %v5599_v45  ;;  %v16617_v45 = vld [vmem:[#allocation83_spill] sm:$0xff]  ;;  %v16621_v55 = vld [vmem:[#allocation116_spill] sm:$0xff] }
 0xe3a   :  { %v14939_v47 = vpop.permute.xlu1 %6070  ;;  %v5601_v0 = vadd.f32 %v5591_v50, %v5543_v1  ;;  %v5660_v31 = vadd.f32 %v16606_v52, %v5602_v4  ;;  %v5719_v12 = vadd.f32 %v5708_v19, %v5661_v36  ;;  %v5716_v44 = vadd.f32 %v16608_v57, %v5658_v18  ;;  %v16615_v19 = vld [vmem:[#allocation61_spill] sm:$0xff]  ;;  %v16616_v1 = vld [vmem:[#allocation115_spill] sm:$0xff] }
 0xe3b   :  { %v14941_v51 = vpop.permute.xlu0 %6072  ;;  %v5707_v62 = vsel %vm3425_vm5, %v16611_v32, %v16610_v21  ;;  %v5743_v60 = vrot.slane %v14889_v9, 3  ;;  %v5715_v29 = vadd.f32 %v5706_v3, %v5657_v54  ;;  %v14960_v39 = vmul.f32 %v14688_v22, %v16558_v46  ;;  %v16620_v57 = vld [vmem:[#allocation65_spill] sm:$0xff] }
 0xe3c   :  { %v5659_v24 = vadd.f32 %v5649_v53, %v5601_v0  ;;  %v5718_v34 = vadd.f32 %v16610_v21, %v5660_v31  ;;  %v6025_v35 = vrot.slane %v14705_v40, 4  ;;  %v5747_v26 = vsel %vm499_vm1, %v5745_v59, %v5746_v41 }
 0xe3d   :  { %v16612_v2 = vrot.slane %v14667_v23, 3  ;;  %v6017_v61 = vrot.slane %v14898_v49, 4  ;;  %v6018_v46 = vrot.slane %v14914_v16, 4  ;;  %v6020_v22 = vrot.slane %v14905_v42, 4  ;;  %v16618_v49 = vld [vmem:[#allocation80_spill] sm:$0xff] }
 0xe3e   :  { %v14962_v14 = vpop.permute.xlu1 %6074  ;;  %v5717_v56 = vadd.f32 %v5707_v62, %v5659_v24  ;;  %v16614_v63 = vrot.slane %v14670_v7, 3  ;;  %v5759_v17 = vadd.f32 %v5747_v26, %v5716_v44  ;;  %v5744_v59 = vsel %vm499_vm1, %v5742_v37, %v5743_v60  ;;  %v16622_v62 = vld [vmem:[#allocation85_spill] sm:$0xff] }
 0xe3f   :  { %v14964_v38 = vpop.permute.xlu0 %6076  ;;  %v5751_v9 = vsel %vm499_vm1, %v5746_v41, %v16612_v2  ;;  %v16613_v50 = vmov %v16612_v2  ;;  %v5807_v41 = vsel %vm289_vm14, %v16616_v1, %v16615_v19  ;;  %v5809_v23 = vsel %vm289_vm14, %v16618_v49, %v16617_v45 }
 0xe40   :  { %v5763_v20 = vadd.f32 %v16613_v50, %v5720_v28  ;;  %v5762_v13 = vadd.f32 %v16614_v63, %v5719_v12  ;;  %v5758_v4 = vadd.f32 %v5744_v59, %v5715_v29  ;;  %v5761_v36 = vadd.f32 %v5751_v9, %v5718_v34  ;;  %v16624_v9 = vld [vmem:[#allocation84_spill] sm:$0xff]  ;;  %v16625_v50 = vld [vmem:[#allocation87_spill] sm:$0xff]  ;;  %v16626_v59 = vld [vmem:[#allocation86_spill] sm:$0xff] }
 0xe41   :  { %v6021_v18 = vrot.slane %v14960_v39, 4  ;;  %v5817_v8 = vadd.f32 %v16615_v19, %v5759_v17  ;;  %v16619_v53 = vmov %v16614_v63  ;;  %v5808_v3 = vsel %vm289_vm14, %v16621_v55, %v16620_v57  ;;  %v16627_v19 = vld [vmem:[#allocation89_spill] sm:$0xff] }
 0xe42   :  { %v6129_v52 = vpop.permute.xlu1 %6128  ;;  %v5749_v37 = vsel %vm499_vm1, %v5743_v60, %v16619_v53  ;;  %v5865_v28 = vsel %vm317_vm15, %v14775_v48, %v14773_v15  ;;  %v5821_v0 = vadd.f32 %v16617_v45, %v5763_v20  ;;  %v5816_v54 = vadd.f32 %v5807_v41, %v5758_v4  ;;  %v16623_v60 = vld [vmem:[#allocation82_spill] sm:$0xff]  ;;  %v16628_v4 = vld [vmem:[#allocation60_spill] sm:$0xff] }
 0xe43   :  { %v6131_v42 = vpop.permute.xlu0 %6130  ;;  %v5819_v31 = vadd.f32 %v16620_v57, %v5761_v36  ;;  %v5760_v12 = vadd.f32 %v5749_v37, %v5717_v56  ;;  %v5820_v44 = vadd.f32 %v5809_v23, %v5762_v13  ;;  %v5875_v21 = vadd.f32 %v14773_v15, %v5817_v8 }
 0xe44   :  { %v5866_v7 = vsel %vm317_vm15, %v14799_v33, %v14797_v27  ;;  %v5923_v32 = vsel %vm542_vm4, %v14830_v11, %v14828_v43  ;;  %v5867_v48 = vsel %vm317_vm15, %v16623_v60, %v16622_v62  ;;  %v5874_v29 = vadd.f32 %v5865_v28, %v5816_v54 }
 0xe45   :  { %v5818_v24 = vadd.f32 %v5808_v3, %v5760_v12  ;;  %v5877_v34 = vadd.f32 %v14797_v27, %v5819_v31  ;;  %v5879_v15 = vadd.f32 %v16622_v62, %v5821_v0  ;;  %v5933_v2 = vadd.f32 %v14828_v43, %v5875_v21  ;;  %v16630_v62 = vld [vmem:[#allocation91_spill] sm:$0xff] }
 0xe46   :  { %v6133_v39 = vpop.permute.xlu1 %6132  ;;  %v5924_v33 = vsel %vm542_vm4, %v14853_v5, %v14851_v58  ;;  %v5981_v11 = vsel %vm3425_vm5, %v14881_v25, %v14883_v10  ;;  %v5925_v20 = vsel %vm542_vm4, %v16625_v50, %v16624_v9  ;;  %v5932_v27 = vadd.f32 %v5923_v32, %v5874_v29 }
 0xe47   :  { %v6135_v26 = vpop.permute.xlu0 %6134  ;;  %v5876_v56 = vadd.f32 %v5866_v7, %v5818_v24  ;;  %v5935_v63 = vadd.f32 %v14851_v58, %v5877_v34  ;;  %v5878_v13 = vadd.f32 %v5867_v48, %v5820_v44  ;;  %v5937_v17 = vadd.f32 %v16624_v9, %v5879_v15 }
 0xe48   :  { %v5991_v43 = vadd.f32 %v14883_v10, %v5933_v2  ;;  %v5982_v5 = vsel %vm3425_vm5, %v14908_v6, %v14910_v30  ;;  %v5983_v25 = vsel %vm3425_vm5, %v16627_v19, %v16626_v59  ;;  %v5990_v41 = vadd.f32 %v5981_v11, %v5932_v27  ;;  %v16632_v11 = vld [vmem:[#allocation93_spill] sm:$0xff] }
 0xe49   :  { %v5934_v1 = vadd.f32 %v5924_v33, %v5876_v56  ;;  %v5993_v45 = vadd.f32 %v14910_v30, %v5935_v63  ;;  %v5936_v58 = vadd.f32 %v5925_v20, %v5878_v13  ;;  %v6023_v36 = vrot.slane %v16628_v4, 4  ;;  %v16631_v33 = vld [vmem:[#allocation90_spill] sm:$0xff] }
 0xe4a   :  { %v6187_v49 = vpop.permute.xlu1 %6186  ;;  %v5995_v8 = vadd.f32 %v16626_v59, %v5937_v17  ;;  %v6019_v6 = vsel %vm243_vm0, %v6017_v61, %v6018_v46  ;;  %v6022_v53 = vsel %vm243_vm0, %v6020_v22, %v6021_v18  ;;  %v6082_v30 = vsel %vm289_vm14, %v14939_v47, %v14941_v51  ;;  %v16634_v59 = vld [vmem:[#allocation95_spill] sm:$0xff] }
 0xe4b   :  { %v6189_v23 = vpop.permute.xlu0 %6188  ;;  %v5992_v10 = vadd.f32 %v5982_v5, %v5934_v1  ;;  %v5994_v37 = vadd.f32 %v5983_v25, %v5936_v58  ;;  %v6034_v57 = vadd.f32 %v6022_v53, %v5991_v43  ;;  %v6026_v55 = vsel %vm243_vm0, %v6021_v18, %v6025_v35  ;;  %v16633_v5 = vld [vmem:[#allocation92_spill] sm:$0xff] }
 0xe4c   :  { %v6033_v3 = vadd.f32 %v6019_v6, %v5990_v41  ;;  %v6036_v28 = vadd.f32 %v6026_v55, %v5993_v45  ;;  %v6024_v61 = vsel %vm243_vm0, %v6018_v46, %v6023_v36  ;;  %v6083_v22 = vsel %vm289_vm14, %v14962_v14, %v14964_v38  ;;  %v16629_v46 = vld [vmem:[#allocation88_spill] sm:$0xff] }
 0xe4d   :  { %v6092_v31 = vadd.f32 %v14941_v51, %v6034_v57  ;;  %v6140_v47 = vsel %vm317_vm15, %v6129_v52, %v6131_v42  ;;  %v6038_v12 = vadd.f32 %v6025_v35, %v5995_v8  ;;  %v6035_v44 = vadd.f32 %v6024_v61, %v5992_v10  ;;  %v6285_v35 = vld [vmem:[%s16123_s12 + $0x70] sm:$0xff] }
 0xe4e   :  { %v6191_v0 = vpop.permute.xlu1 %6190  ;;  %v6091_v18 = vadd.f32 %v6082_v30, %v6033_v3  ;;  %v6094_v21 = vadd.f32 %v14964_v38, %v6036_v28  ;;  %v6037_v7 = vadd.f32 %v6023_v36, %v5994_v37  ;;  %v6141_v51 = vsel %vm317_vm15, %v6133_v39, %v6135_v26  ;;  %v6286_v38 = vld [vmem:[%s16123_s12 + $0x78] sm:$0xff]  ;;  %v8928_v61 = vld [vmem:[#allocation20 + $0x1] ss:$0 sm:$0xff] }
 0xe4f   :  { %v6193_v54 = vpop.permute.xlu0 %6192  ;;  %v6150_v32 = vadd.f32 %v6131_v42, %v6092_v31  ;;  %v6198_v16 = vsel %vm542_vm4, %v6187_v49, %v6189_v23  ;;  %v6084_v60 = vsel %vm289_vm14, %v16630_v62, %v16629_v46  ;;  %v6093_v14 = vadd.f32 %v6083_v22, %v6035_v44  ;;  %v8934_v44 = vld [vmem:[#allocation20 + $0x7] ss:$0 sm:$0xff] }
 0xe50   :  { %v6149_v48 = vadd.f32 %v6140_v47, %v6091_v18  ;;  %v6152_v52 = vadd.f32 %v6135_v26, %v6094_v21  ;;  %v6199_v29 = vsel %vm542_vm4, %v6191_v0, %v6193_v54  ;;  %v10148_v39 = vpack.c.bf16 %v6286_v38, %v6285_v35  ;;  %v8929_v18 = vld [vmem:[#allocation20 + $0x2] ss:$0 sm:$0xff]  ;;  %v8932_v21 = vld [vmem:[#allocation20 + $0x5] ss:$0 sm:$0xff]  ;;  %v15095_v35 = vld [vmem:[#allocation2] sm:$0xff] }
 0xe51   :  { %v6208_v42 = vadd.f32 %v6189_v23, %v6150_v32  ;;  %v6151_v15 = vadd.f32 %v6141_v51, %v6093_v14  ;;  %v6096_v26 = vadd.f32 %v16629_v46, %v6038_v12  ;;  %v6142_v9 = vsel %vm317_vm15, %v16632_v11, %v16631_v33  ;;  %v8931_v12 = vld [vmem:[#allocation20 + $0x4] ss:$0 sm:$0xff]  ;;  %v8935_v32 = vld [vmem:[#allocation20 + $0x8] ss:$0 sm:$0xff] }
 0xe52   :  { %v6245_v24 = vpop.permute.xlu1 %6244  ;;  %v6207_v2 = vadd.f32 %v6198_v16, %v6149_v48  ;;  %v6210_v50 = vadd.f32 %v6193_v54, %v6152_v52  ;;  %10149 = vmatprep.subr.bf16.mxu0 %v10148_v39  ;;  %v6095_v56 = vadd.f32 %v6084_v60, %v6037_v7  ;;  %v6200_v19 = vsel %vm542_vm4, %v16634_v59, %v16633_v5  ;;  %v8927_v7 = vld [vmem:[#allocation20] ss:$0 sm:$0xff] }
 0xe53   :  { %v6247_v40 = vpop.permute.xlu0 %6246  ;;  %v6209_v27 = vadd.f32 %v6199_v29, %v6151_v15  ;;  %10151 = vmatpush3.bf16.msra.mxu0 %v10148_v39  ;;  %v6154_v43 = vadd.f32 %v16631_v33, %v6096_v26  ;;  %v16635_v41 = vmov 0.0   ;;  %v15101_v29 = vld [vmem:[#allocation2 + $0x18] sm:$0xff]  ;;  %v15104_v39 = vld [vmem:[#allocation2 + $0x10] sm:$0xff]  ;;  %v15116_v33 = vld [vmem:[#allocation2 + $0x20] sm:$0xff] }
 0xe54   :  { %v6256_v34 = vsel %vm3425_vm5, %v6245_v24, %v6247_v40  ;;  %v6266_v20 = vadd.f32 %v6247_v40, %v6208_v42  ;;  %9688 = vmatprep.subr.mxu0 %v16635_v41  ;;  %v6153_v45 = vadd.f32 %v6142_v9, %v6095_v56  ;;  %v15092_v24 = vld [vmem:[#allocation2 + $0x8] sm:$0xff]  ;;  %v8930_v26 = vld [vmem:[#allocation20 + $0x3] ss:$0 sm:$0xff] }
 0xe55   :  { %v6265_v63 = vadd.f32 %v6256_v34, %v6207_v2  ;;  %v6212_v23 = vadd.f32 %v16633_v5, %v6154_v43  ;;  %v15107_v2 = vld [vmem:[#allocation10] sm:$0xf] }
 0xe56   :  { %v6249_v13 = vpop.permute.xlu1 %6248  ;;  %v6296_v58 = vrot.slane %v6266_v20, 2  ;;  %v6211_v36 = vadd.f32 %v6200_v19, %v6153_v45 }
 0xe57   :  { %v6251_v17 = vpop.permute.xlu0 %6250  ;;  %v6293_v8 = vrot.slane %v6265_v63, 2 }
 0xe58   :  { %v6257_v25 = vsel %vm3425_vm5, %v6249_v13, %v6251_v17  ;;  %v6268_v1 = vadd.f32 %v6251_v17, %v6210_v50  ;;  %v15121_v50 = vld [vmem:[#allocation2 + $0x28] sm:$0xff] }
 0xe59   :  { %v6267_v49 = vadd.f32 %v6257_v25, %v6209_v27 }
 0xe5a   :  { %v6297_v4 = vrot.slane %v6268_v1, 2  ;;  %v6253_v6 = vpop.permute.xlu1 %6252 }
 0xe5b   :  { %v6294_v10 = vrot.slane %v6267_v49, 2  ;;  %v6255_v53 = vpop.permute.xlu0 %6254 }
 0xe5c   :  { %v6258_v37 = vsel %vm3425_vm5, %v6253_v6, %v6255_v53  ;;  %v6270_v57 = vadd.f32 %v6255_v53, %v6212_v23  ;;  %v6298_v30 = vsel %vm410_vm13, %v6296_v58, %v6297_v4 }
 0xe5d   :  { %v6269_v55 = vadd.f32 %v6258_v37, %v6211_v36  ;;  %v6295_v3 = vsel %vm410_vm13, %v6293_v8, %v6294_v10 }
 0xe5e   :  { %v6301_v28 = vrot.slane %v6270_v57, 2  ;;  %v10409_v0 = vpack.i.bf16 %v6298_v30, %v6295_v3  ;;  %v8933_v30 = vld [vmem:[#allocation20 + $0x6] ss:$0 sm:$0xff] }
 0xe5f   :  { %v6299_v54 = vrot.slane %v6269_v55, 2 }
 0xe60   :  { %10410 = vrot.lane.b32.xlu1 %v10409_v0, %s10744_s4  ;;  %v6302_v31 = vsel %vm410_vm13, %v6297_v4, %v6301_v28 }
 0xe61   :  { %v6300_v22 = vsel %vm410_vm13, %v6294_v10, %v6299_v54 }
 0xe62   :  { %v10414_v47 = vpack.i.bf16 %v6302_v31, %v6300_v22 }
 0xe64   :  { %6716 = vrot.lane.b32.xlu1 %v8928_v61, %s10741_s22  ;;  %10415 = vrot.lane.b32.xlu0 %v10414_v47, %s10744_s4 }
 0xe68   :  { %6855 = vrot.lane.b32.xlu1 %v8931_v12, %s10741_s22  ;;  %6764 = vrot.lane.b32.xlu0 %v8929_v18, %s10749_s23 }
 0xe6c   :  { %7014 = vrot.lane.b32.xlu1 %v8934_v44, %s10741_s22  ;;  %6913 = vrot.lane.b32.xlu0 %v8932_v21, %s10749_s23 }
 0xe70   :  { %6695 = vrot.lane.b32.xlu1 %v8927_v7, %s10750_s0  ;;  %7072 = vrot.lane.b32.xlu0 %v8935_v32, %s10749_s23 }
 0xed2   :  { %v10411_v51 = vpop.permute.xlu1 %10410 }
 0xed3   :  { %v10413_v16 = vunpack.i.h.bf16 %v10411_v51  ;;  %v10412_v46 = vunpack.i.l.bf16 %v10411_v51 }
 0xed5   :  { %v6311_v62 = vsel %vm317_vm15, %v10412_v46, %v10413_v16 }
 0xed6   :  { %v6717_v60 = vpop.permute.xlu1 %6716  ;;  %9647 = vmatprep.mubr.f32.mxu0 %v6311_v62  ;;  %v10416_v14 = vpop.permute.xlu0 %10415 }
 0xed7   :  { %v10418_v48 = vunpack.i.h.bf16 %v10416_v14  ;;  %v10417_v52 = vunpack.i.l.bf16 %v10416_v14  ;;  %v6720_v40 = vmul.f32 %v15092_v24, %v6717_v60  ;;  %v6719_v38 = vmul.f32 %v15095_v35, %v6717_v60 }
 0xed8   :  { %v6722_v34 = vmul.f32 %v15101_v29, %v6717_v60  ;;  %v6721_v15 = vmul.f32 %v15104_v39, %v6717_v60  ;;  %v6723_v11 = vmul.f32 %v15116_v33, %v6717_v60  ;;  %v6724_v20 = vmul.f32 %v15121_v50, %v6717_v60 }
 0xed9   :  { %6733 = vrot.lane.b32.xlu1 %v6720_v40, %s10744_s4  ;;  %6731 = vrot.lane.b32.xlu0 %v6719_v38, %s10744_s4  ;;  %v6312_v42 = vsel %vm317_vm15, %v10417_v52, %v10418_v48 }
 0xeda   :  { %9648 = vmatmul.mubr.f32.vlgmr.msra.gmra.mrb[22].mxu0 %v6312_v42  ;;  %v6765_v9 = vpop.permute.xlu0 %6764  ;;  %v6856_v27 = vpop.permute.xlu1 %6855 }
 0xedb   :  { %9689 = vmatpush3.msk.msra.mxu0 %vm243_vm0, %v15107_v2  ;;  %9690 = vmatprep.mubr.msk.f32.mxu0 %vm10748_vm6, %v16635_v41  ;;  %v6767_v56 = vmul.f32 %v15095_v35, %v6765_v9  ;;  %v6768_v63 = vmul.f32 %v15092_v24, %v6765_v9  ;;  %v6769_v13 = vmul.f32 %v15104_v39, %v6765_v9 }
 0xedc   :  { %9693 = vmatprep.subr.mxu0 %v16635_v41  ;;  %v6858_v17 = vmul.f32 %v15095_v35, %v6856_v27  ;;  %v6860_v43 = vmul.f32 %v15104_v39, %v6856_v27  ;;  %v6770_v5 = vmul.f32 %v15101_v29, %v6765_v9  ;;  %v6771_v59 = vmul.f32 %v15116_v33, %v6765_v9 }
 0xedd   :  { %6737 = vrot.lane.b32.xlu1 %v6722_v34, %s10744_s4  ;;  %6735 = vrot.lane.b32.xlu0 %v6721_v15, %s10744_s4  ;;  %v6859_v19 = vmul.f32 %v15092_v24, %v6856_v27  ;;  %v6861_v45 = vmul.f32 %v15101_v29, %v6856_v27  ;;  %v6862_v49 = vmul.f32 %v15116_v33, %v6856_v27 }
 0xede   :  { %v6870_v25 = vrot.slane %v6858_v17, 2  ;;  %v6871_v1 = vrot.slane %v6860_v43, 2  ;;  %v6772_v23 = vmul.f32 %v15121_v50, %v6765_v9  ;;  %v6863_v58 = vmul.f32 %v15121_v50, %v6856_v27  ;;  %v6914_v6 = vpop.permute.xlu0 %6913  ;;  %v7015_v44 = vpop.permute.xlu1 %7014 }
 0xedf   :  { %v6873_v36 = vrot.slane %v6859_v19, 2  ;;  %v6874_v8 = vrot.slane %v6861_v45, 2  ;;  %v6876_v10 = vrot.slane %v6862_v49, 2  ;;  %v6917_v55 = vmul.f32 %v15092_v24, %v6914_v6 }
 0xee0   :  { %v6872_v4 = vsel %vm410_vm13, %v6870_v25, %v6871_v1  ;;  %v6878_v57 = vrot.slane %v6863_v58, 2  ;;  %v6919_v3 = vmul.f32 %v15101_v29, %v6914_v6  ;;  %v6916_v0 = vmul.f32 %v15095_v35, %v6914_v6 }
 0xee1   :  { %6739 = vrot.lane.b32.xlu1 %v6723_v11, %s10744_s4  ;;  %6812 = vrot.lane.b32.xlu0 %v8930_v26, %s10750_s0  ;;  %v6875_v53 = vsel %vm410_vm13, %v6873_v36, %v6874_v8  ;;  %v6877_v37 = vsel %vm410_vm13, %v6871_v1, %v6876_v10  ;;  %v6918_v54 = vmul.f32 %v15104_v39, %v6914_v6  ;;  %v6931_v31 = vrot.slane %v6917_v55, 2 }
 0xee2   :  { %v6879_v28 = vsel %vm410_vm13, %v6874_v8, %v6878_v57  ;;  %v6932_v61 = vrot.slane %v6919_v3, 2  ;;  %v6928_v22 = vrot.slane %v6916_v0, 2  ;;  %v6921_v12 = vmul.f32 %v15121_v50, %v6914_v6  ;;  %v7073_v26 = vpop.permute.xlu0 %7072 }
 0xee3   :  { %v6929_v47 = vrot.slane %v6918_v54, 2  ;;  %v6920_v18 = vmul.f32 %v15116_v33, %v6914_v6  ;;  %v7018_v16 = vmul.f32 %v15092_v24, %v7015_v44  ;;  %v7020_v46 = vmul.f32 %v15101_v29, %v7015_v44  ;;  %v7124_v6 = vld [vmem:[%s16125_s14] sm:$0xff] }
 0xee4   :  { %v6933_v21 = vsel %vm410_vm13, %v6931_v31, %v6932_v61  ;;  %v6936_v32 = vrot.slane %v6921_v12, 2  ;;  %v7017_v14 = vmul.f32 %v15095_v35, %v7015_v44  ;;  %v7019_v48 = vmul.f32 %v15104_v39, %v7015_v44 }
 0xee5   :  { %6741 = vrot.lane.b32.xlu0 %v6724_v20, %s10744_s4  ;;  %6779 = vrot.lane.b32.xlu1 %v6767_v56, %s10751_s2  ;;  %v6930_v7 = vsel %vm410_vm13, %v6928_v22, %v6929_v47  ;;  %v6934_v51 = vrot.slane %v6920_v18, 2  ;;  %v7032_v52 = vrot.slane %v7018_v16, 4  ;;  %v7033_v40 = vrot.slane %v7020_v46, 4 }
 0xee6   :  { %v6937_v62 = vsel %vm410_vm13, %v6932_v61, %v6936_v32  ;;  %v7029_v38 = vrot.slane %v7017_v14, 4  ;;  %v7030_v42 = vrot.slane %v7019_v48, 4  ;;  %v7022_v34 = vmul.f32 %v15121_v50, %v7015_v44 }
 0xee7   :  { %v6935_v60 = vsel %vm410_vm13, %v6929_v47, %v6934_v51  ;;  %v7021_v15 = vmul.f32 %v15116_v33, %v7015_v44  ;;  %v7034_v11 = vsel %vm243_vm0, %v7032_v52, %v7033_v40  ;;  %v7076_v27 = vmul.f32 %v15092_v24, %v7073_v26 }
 0xee8   :  { %v7031_v9 = vsel %vm243_vm0, %v7029_v38, %v7030_v42  ;;  %v7037_v20 = vrot.slane %v7022_v34, 4  ;;  %v7075_v43 = vmul.f32 %v15095_v35, %v7073_v26  ;;  %v7080_v19 = vmul.f32 %v15121_v50, %v7073_v26 }
 0xee9   :  { %6781 = vrot.lane.b32.xlu0 %v6768_v63, %s10751_s2  ;;  %6783 = vrot.lane.b32.xlu1 %v6769_v13, %s10751_s2  ;;  %v7035_v56 = vrot.slane %v7021_v15, 4  ;;  %v7078_v63 = vmul.f32 %v15101_v29, %v7073_v26  ;;  %v7079_v49 = vmul.f32 %v15116_v33, %v7073_v26 }
 0xeea   :  { %v7038_v13 = vsel %vm243_vm0, %v7033_v40, %v7037_v20  ;;  %v7087_v1 = vrot.slane %v7075_v43, 4 }
 0xeeb   :  { %v7036_v17 = vsel %vm243_vm0, %v7030_v42, %v7035_v56  ;;  %v7091_v25 = vrot.slane %v7078_v63, 4  ;;  %v7093_v36 = vrot.slane %v7079_v49, 4 }
 0xeed   :  { %6785 = vrot.lane.b32.xlu0 %v6770_v5, %s10751_s2  ;;  %6787 = vrot.lane.b32.xlu1 %v6771_v59, %s10751_s2  ;;  %v7077_v5 = vmul.f32 %v15104_v39, %v7073_v26  ;;  %v7090_v59 = vrot.slane %v7076_v27, 4 }
 0xeef   :  { %v7088_v45 = vrot.slane %v7077_v5, 4 }
 0xef1   :  { %6789 = vrot.lane.b32.xlu0 %v6772_v23, %s10751_s2  ;;  %6880 = vrot.lane.b32.xlu1 %v6872_v4, %s10744_s4  ;;  %v7092_v23 = vsel %vm243_vm0, %v7090_v59, %v7091_v25  ;;  %v7089_v58 = vsel %vm243_vm0, %v7087_v1, %v7088_v45  ;;  %v7095_v4 = vrot.slane %v7080_v19, 4 }
 0xef3   :  { %v7096_v8 = vsel %vm243_vm0, %v7091_v25, %v7095_v4 }
 0xef5   :  { %6882 = vrot.lane.b32.xlu0 %v6875_v53, %s10744_s4  ;;  %6884 = vrot.lane.b32.xlu1 %v6877_v37, %s10744_s4  ;;  %v7125_v53 = vld [vmem:[%s16125_s14 + $0x8] sm:$0xff] }
 0xef6   :  { %v15208_v37 = vpack.c.bf16 %v7125_v53, %v7124_v6 }
 0xef8   :  { %10185 = vmatprep.subr.bf16.mxu1 %v15208_v37 }
 0xef9   :  { %6886 = vrot.lane.b32.xlu0 %v6879_v28, %s10744_s4  ;;  %6971 = vrot.lane.b32.xlu1 %v8933_v30, %s10750_s0 }
 0xefd   :  { %6888 = vrot.lane.b32.xlu0 %v6876_v10, %s10744_s4  ;;  %6890 = vrot.lane.b32.xlu1 %v6878_v57, %s10744_s4  ;;  %v7094_v10 = vsel %vm243_vm0, %v7088_v45, %v7093_v36  ;;  %v6696_v57 = vpop.permute.xlu1 %6695 }
 0xefe   :  { %v6699_v48 = vmul.f32 %v15092_v24, %v6696_v57  ;;  %v6698_v42 = vmul.f32 %v15095_v35, %v6696_v57  ;;  %v6702_v53 = vmul.f32 %v15116_v33, %v6696_v57 }
 0xf01   :  { %6940 = vrot.lane.b32.xlu1 %v6933_v21, %s10751_s2  ;;  %6938 = vrot.lane.b32.xlu0 %v6930_v7, %s10751_s2 }
 0xf05   :  { %6944 = vrot.lane.b32.xlu1 %v6937_v62, %s10751_s2  ;;  %6942 = vrot.lane.b32.xlu0 %v6935_v60, %s10751_s2 }
 0xf09   :  { %6948 = vrot.lane.b32.xlu1 %v6936_v32, %s10751_s2  ;;  %6946 = vrot.lane.b32.xlu0 %v6934_v51, %s10751_s2 }
 0xf0d   :  { %7041 = vrot.lane.b32.xlu1 %v7034_v11, %s10744_s4  ;;  %7039 = vrot.lane.b32.xlu0 %v7031_v9, %s10744_s4 }
 0xf11   :  { %7045 = vrot.lane.b32.xlu1 %v7038_v13, %s10744_s4  ;;  %7043 = vrot.lane.b32.xlu0 %v7036_v17, %s10744_s4  ;;  %v6700_v13 = vmul.f32 %v15104_v39, %v6696_v57  ;;  %v6703_v17 = vmul.f32 %v15121_v50, %v6696_v57 }
 0xf15   :  { %7049 = vrot.lane.b32.xlu1 %v7037_v20, %s10744_s4  ;;  %7047 = vrot.lane.b32.xlu0 %v7035_v56, %s10744_s4  ;;  %v6701_v20 = vmul.f32 %v15101_v29, %v6696_v57 }
 0xf19   :  { %7099 = vrot.lane.b32.xlu1 %v7092_v23, %s10751_s2  ;;  %7097 = vrot.lane.b32.xlu0 %v7089_v58, %s10751_s2 }
 0xf1d   :  { %7103 = vrot.lane.b32.xlu1 %v7096_v8, %s10751_s2  ;;  %7101 = vrot.lane.b32.xlu0 %v7094_v10, %s10751_s2 }
 0xf21   :  { %7107 = vrot.lane.b32.xlu1 %v7095_v4, %s10751_s2  ;;  %7105 = vrot.lane.b32.xlu0 %v7093_v36, %s10751_s2 }
 0xf4b   :  { %v6734_v30 = vpop.permute.xlu1 %6733  ;;  %v6732_v55 = vpop.permute.xlu0 %6731 }
 0xf4c   :  { %v6743_v52 = vsel %vm317_vm15, %v6732_v55, %v6734_v30  ;;  %v6753_v27 = vadd.f32 %v6734_v30, %v6699_v48 }
 0xf4d   :  { %v6752_v63 = vadd.f32 %v6743_v52, %v6698_v42 }
 0xf4f   :  { %v6738_v3 = vpop.permute.xlu1 %6737  ;;  %v6736_v28 = vpop.permute.xlu0 %6735 }
 0xf50   :  { %v6755_v43 = vadd.f32 %v6738_v3, %v6701_v20  ;;  %v6744_v5 = vsel %vm317_vm15, %v6736_v28, %v6738_v3 }
 0xf51   :  { %v6754_v6 = vadd.f32 %v6744_v5, %v6700_v13 }
 0xf53   :  { %v6740_v0 = vpop.permute.xlu1 %6739  ;;  %v6813_v54 = vpop.permute.xlu0 %6812 }
 0xf54   :  { %v6815_v40 = vmul.f32 %v15095_v35, %v6813_v54  ;;  %v6817_v38 = vmul.f32 %v15104_v39, %v6813_v54  ;;  %v6816_v34 = vmul.f32 %v15092_v24, %v6813_v54  ;;  %v6818_v15 = vmul.f32 %v15101_v29, %v6813_v54 }
 0xf55   :  { %v15233_v26 = vmul.f32 %v15116_v33, %v6813_v54  ;;  %v6820_v56 = vmul.f32 %v15121_v50, %v6813_v54 }
 0xf56   :  { %v6827_v59 = vrot.slane %v6815_v40, 2  ;;  %v6828_v19 = vrot.slane %v6817_v38, 2  ;;  %v6830_v1 = vrot.slane %v6816_v34, 2  ;;  %v6831_v45 = vrot.slane %v6818_v15, 2 }
 0xf57   :  { %v6780_v31 = vpop.permute.xlu1 %6779  ;;  %v6742_v61 = vpop.permute.xlu0 %6741  ;;  %v6833_v49 = vrot.slane %v15233_v26, 2  ;;  %v6835_v10 = vrot.slane %v6820_v56, 2 }
 0xf58   :  { %v6745_v4 = vsel %vm317_vm15, %v6740_v0, %v6742_v61  ;;  %v6757_v30 = vadd.f32 %v6742_v61, %v6703_v17  ;;  %v6829_v28 = vsel %vm410_vm13, %v6827_v59, %v6828_v19  ;;  %v6832_v48 = vsel %vm410_vm13, %v6830_v1, %v6831_v45 }
 0xf59   :  { %v6756_v54 = vadd.f32 %v6745_v4, %v6702_v53  ;;  %v6834_v52 = vsel %vm410_vm13, %v6828_v19, %v6833_v49  ;;  %v6836_v57 = vsel %vm410_vm13, %v6831_v45, %v6835_v10 }
 0xf5b   :  { %v6784_v22 = vpop.permute.xlu1 %6783  ;;  %v6782_v47 = vpop.permute.xlu0 %6781 }
 0xf5c   :  { %v6791_v25 = vsel %vm3425_vm5, %v6780_v31, %v6782_v47  ;;  %v6801_v36 = vadd.f32 %v6782_v47, %v6753_v27 }
 0xf5d   :  { %v6800_v55 = vadd.f32 %v6791_v25, %v6752_v63 }
 0xf5f   :  { %v6788_v12 = vpop.permute.xlu1 %6787  ;;  %v6786_v18 = vpop.permute.xlu0 %6785  ;;  %v6843_v26 = vadd.f32 %v6829_v28, %v6800_v55 }
 0xf60   :  { %v6792_v8 = vsel %vm3425_vm5, %v6784_v22, %v6786_v18  ;;  %v6803_v3 = vadd.f32 %v6786_v18, %v6755_v43  ;;  %v6844_v22 = vadd.f32 %v6832_v48, %v6801_v36 }
 0xf61   :  { %v6802_v31 = vadd.f32 %v6792_v8, %v6754_v6 }
 0xf63   :  { %v6881_v44 = vpop.permute.xlu1 %6880  ;;  %v6790_v21 = vpop.permute.xlu0 %6789  ;;  %v6845_v27 = vadd.f32 %v6834_v52, %v6802_v31 }
 0xf64   :  { %v6793_v47 = vsel %vm3425_vm5, %v6788_v12, %v6790_v21  ;;  %v6805_v15 = vadd.f32 %v6790_v21, %v6757_v30  ;;  %v6846_v12 = vadd.f32 %v6836_v57, %v6803_v3 }
 0xf65   :  { %v6804_v20 = vadd.f32 %v6793_v47, %v6756_v54 }
 0xf66   :  { %v6848_v45 = vadd.f32 %v6835_v10, %v6805_v15 }
 0xf67   :  { %v15211_v7 = vpop.permute.xlu1 %6884  ;;  %v6883_v32 = vpop.permute.xlu0 %6882  ;;  %v6847_v55 = vadd.f32 %v6833_v49, %v6804_v20 }
 0xf68   :  { %v6892_v38 = vsel %vm317_vm15, %v6881_v44, %v6883_v32  ;;  %v6902_v56 = vadd.f32 %v6883_v32, %v6844_v22 }
 0xf69   :  { %v6901_v43 = vadd.f32 %v6892_v38, %v6843_v26 }
 0xf6b   :  { %v15213_v51 = vpop.permute.xlu1 %6971  ;;  %v15215_v16 = vpop.permute.xlu0 %6886 }
 0xf6c   :  { %v6975_v61 = vmul.f32 %v15092_v24, %v15213_v51  ;;  %v6977_v18 = vmul.f32 %v15101_v29, %v15213_v51  ;;  %v6974_v42 = vmul.f32 %v15095_v35, %v15213_v51  ;;  %v6976_v34 = vmul.f32 %v15104_v39, %v15213_v51 }
 0xf6d   :  { %v6979_v44 = vmul.f32 %v15121_v50, %v15213_v51  ;;  %v6978_v13 = vmul.f32 %v15116_v33, %v15213_v51  ;;  %v6893_v5 = vsel %vm317_vm15, %v15211_v7, %v15215_v16  ;;  %v6904_v21 = vadd.f32 %v15215_v16, %v6846_v12 }
 0xf6e   :  { %v6989_v19 = vrot.slane %v6975_v61, 4  ;;  %v6990_v25 = vrot.slane %v6977_v18, 4  ;;  %v6986_v32 = vrot.slane %v6974_v42, 4  ;;  %v6987_v1 = vrot.slane %v6976_v34, 4 }
 0xf6f   :  { %v15217_v46 = vpop.permute.xlu1 %6890  ;;  %v15219_v62 = vpop.permute.xlu0 %6888  ;;  %v6994_v36 = vrot.slane %v6979_v44, 4  ;;  %v6903_v8 = vadd.f32 %v6893_v5, %v6845_v27  ;;  %v6992_v16 = vrot.slane %v6978_v13, 4 }
 0xf70   :  { %v6906_v10 = vadd.f32 %v15217_v46, %v6848_v45 }
 0xf71   :  { %v6995_v31 = vsel %vm243_vm0, %v6990_v25, %v6994_v36 }
 0xf73   :  { %v15221_v60 = vpop.permute.xlu1 %6940  ;;  %v15223_v14 = vpop.permute.xlu0 %6938 }
 0xf74   :  { %v6950_v59 = vsel %vm3425_vm5, %v15223_v14, %v15221_v60  ;;  %v6960_v4 = vadd.f32 %v15221_v60, %v6902_v56  ;;  %v6894_v14 = vsel %vm317_vm15, %v15219_v62, %v15217_v46  ;;  %v6991_v60 = vsel %vm243_vm0, %v6989_v19, %v6990_v25 }
 0xf75   :  { %v6959_v6 = vadd.f32 %v6950_v59, %v6901_v43  ;;  %v6905_v49 = vadd.f32 %v6894_v14, %v6847_v55  ;;  %v6993_v62 = vsel %vm243_vm0, %v6987_v1, %v6992_v16  ;;  %v8944_v55 = vld [vmem:[%s16126_s15 + $0x3] ss:$0 sm:$0xff]  ;;  %v8943_v14 = vld [vmem:[%s16126_s15 + $0x2] ss:$0 sm:$0xff] }
 0xf76   :  { %v7003_v54 = vadd.f32 %v6991_v60, %v6960_v4  ;;  %v8949_v60 = vld [vmem:[%s16126_s15 + $0x8] ss:$0 sm:$0xff] }
 0xf77   :  { %v15235_v11 = vpop.permute.xlu1 %6944  ;;  %v6943_v9 = vpop.permute.xlu0 %6942 }
 0xf78   :  { %v6951_v51 = vsel %vm3425_vm5, %v6943_v9, %v15235_v11  ;;  %v6962_v7 = vadd.f32 %v15235_v11, %v6904_v21  ;;  %v6988_v9 = vsel %vm243_vm0, %v6986_v32, %v6987_v1 }
 0xf79   :  { %v6961_v3 = vadd.f32 %v6951_v51, %v6903_v8  ;;  %v7002_v48 = vadd.f32 %v6988_v9, %v6959_v6  ;;  %v8948_v9 = vld [vmem:[%s16126_s15 + $0x7] ss:$0 sm:$0xff] }
 0xf7a   :  { %v7005_v52 = vadd.f32 %v6995_v31, %v6962_v7  ;;  %v7127_v31 = vld [vmem:[%s16125_s14 + $0x18] sm:$0xff] }
 0xf7b   :  { %v15244_v23 = vpop.permute.xlu1 %6948  ;;  %v6947_v58 = vpop.permute.xlu0 %6946  ;;  %v7004_v42 = vadd.f32 %v6993_v62, %v6961_v3  ;;  %v8945_v3 = vld [vmem:[%s16126_s15 + $0x4] ss:$0 sm:$0xff] }
 0xf7c   :  { %v6952_v28 = vsel %vm3425_vm5, %v6947_v58, %v15244_v23  ;;  %v6964_v22 = vadd.f32 %v15244_v23, %v6906_v10  ;;  %v8947_v10 = vld [vmem:[%s16126_s15 + $0x6] ss:$0 sm:$0xff] }
 0xf7d   :  { %v6963_v58 = vadd.f32 %v6952_v28, %v6905_v49  ;;  %v8952_v28 = vld [vmem:[%s16126_s15 + $0xb] ss:$0 sm:$0xff] }
 0xf7e   :  { %v7007_v20 = vadd.f32 %v6994_v36, %v6964_v22  ;;  %v7128_v22 = vld [vmem:[%s16125_s14 + $0x20] sm:$0xff] }
 0xf7f   :  { %v7042_v40 = vpop.permute.xlu1 %7041  ;;  %v7040_v0 = vpop.permute.xlu0 %7039 }
 0xf80   :  { %v7051_v11 = vsel %vm317_vm15, %v7040_v0, %v7042_v40  ;;  %v7061_v38 = vadd.f32 %v7042_v40, %v7003_v54  ;;  %v7006_v40 = vadd.f32 %v6992_v16, %v6963_v58  ;;  %v8950_v54 = vld [vmem:[%s16126_s15 + $0x9] ss:$0 sm:$0xff] }
 0xf81   :  { %v7060_v18 = vadd.f32 %v7051_v11, %v7002_v48  ;;  %v7126_v11 = vld [vmem:[%s16125_s14 + $0x10] sm:$0xff]  ;;  %v8954_v48 = vld [vmem:[%s16126_s15 + $0xd] ss:$0 sm:$0xff] }
 0xf83   :  { %v7046_v63 = vpop.permute.xlu1 %7045  ;;  %v7044_v17 = vpop.permute.xlu0 %7043 }
 0xf84   :  { %v7052_v57 = vsel %vm317_vm15, %v7044_v17, %v7046_v63  ;;  %v7063_v0 = vadd.f32 %v7046_v63, %v7005_v52  ;;  %v8953_v52 = vld [vmem:[%s16126_s15 + $0xc] ss:$0 sm:$0xff] }
 0xf85   :  { %v7062_v15 = vadd.f32 %v7052_v57, %v7004_v42  ;;  %v8957_v57 = vld [vmem:[%s16126_s15 + $0x10] ss:$0 sm:$0xff] }
 0xf86   :  { %v7130_v42 = vld [vmem:[%s16125_s14 + $0x30] sm:$0xff] }
 0xf87   :  { %v7050_v53 = vpop.permute.xlu1 %7049  ;;  %v7048_v30 = vpop.permute.xlu0 %7047 }
 0xf88   :  { %v7053_v56 = vsel %vm317_vm15, %v7048_v30, %v7050_v53  ;;  %v7065_v17 = vadd.f32 %v7050_v53, %v7007_v20  ;;  %v8942_v53 = vld [vmem:[%s16126_s15 + $0x1] ss:$0 sm:$0xff]  ;;  %v8960_v20 = vld [vmem:[%s16126_s15 + $0x13] ss:$0 sm:$0xff] }
 0xf89   :  { %v7064_v21 = vadd.f32 %v7053_v56, %v7006_v40  ;;  %v8964_v40 = vld [vmem:[%s16126_s15 + $0x17] ss:$0 sm:$0xff] }
 0xf8b   :  { %v7100_v47 = vpop.permute.xlu1 %7099  ;;  %v7098_v46 = vpop.permute.xlu0 %7097 }
 0xf8c   :  { %v7109_v61 = vsel %vm3425_vm5, %v7098_v46, %v7100_v47  ;;  %v7119_v34 = vadd.f32 %v7100_v47, %v7061_v38  ;;  %v10188_v46 = vpack.c.bf16 %v7127_v31, %v7126_v11  ;;  %v7129_v38 = vld [vmem:[%s16125_s14 + $0x28] sm:$0xff] }
 0xf8d   :  { %v7118_v26 = vadd.f32 %v7109_v61, %v7060_v18  ;;  %v8955_v61 = vld [vmem:[%s16126_s15 + $0xe] ss:$0 sm:$0xff]  ;;  %v10192_v18 = vpack.c.bf16 %v7129_v38, %v7128_v22 }
 0xf8e   :  { %v7149_v43 = vrot.slane %v7119_v34, 2  ;;  %v8958_v34 = vld [vmem:[%s16126_s15 + $0x11] ss:$0 sm:$0xff] }
 0xf8f   :  { %v7104_v12 = vpop.permute.xlu1 %7103  ;;  %v7102_v44 = vpop.permute.xlu0 %7101  ;;  %v7146_v59 = vrot.slane %v7118_v26, 2  ;;  %v7132_v26 = vld [vmem:[%s16125_s14 + $0x40] sm:$0xff] }
 0xf90   :  { %v7121_v27 = vadd.f32 %v7104_v12, %v7063_v0  ;;  %v7110_v23 = vsel %vm3425_vm5, %v7102_v44, %v7104_v12  ;;  %v7131_v0 = vld [vmem:[%s16125_s14 + $0x38] sm:$0xff]  ;;  %v7133_v12 = vld [vmem:[%s16125_s14 + $0x48] sm:$0xff]  ;;  %v8962_v44 = vld [vmem:[%s16126_s15 + $0x15] ss:$0 sm:$0xff] }
 0xf91   :  { %v7120_v13 = vadd.f32 %v7110_v23, %v7062_v15  ;;  %v10196_v15 = vpack.c.bf16 %v7131_v0, %v7130_v42  ;;  %v10200_v56 = vpack.c.bf16 %v7133_v12, %v7132_v26  ;;  %v7135_v23 = vld [vmem:[%s16125_s14 + $0x58] sm:$0xff] }
 0xf92   :  { %v7150_v5 = vrot.slane %v7121_v27, 2  ;;  %v7134_v27 = vld [vmem:[%s16125_s14 + $0x50] sm:$0xff] }
 0xf93   :  { %v7147_v19 = vrot.slane %v7120_v13, 2  ;;  %v7108_v63 = vpop.permute.xlu1 %7107  ;;  %v7106_v25 = vpop.permute.xlu0 %7105  ;;  %v8963_v13 = vld [vmem:[%s16126_s15 + $0x16] ss:$0 sm:$0xff] }
 0xf94   :  { %v7123_v32 = vadd.f32 %v7108_v63, %v7065_v17  ;;  %v7111_v1 = vsel %vm3425_vm5, %v7106_v25, %v7108_v63  ;;  %v7151_v45 = vsel %vm410_vm13, %v7149_v43, %v7150_v5  ;;  %v10204_v17 = vpack.c.bf16 %v7135_v23, %v7134_v27  ;;  %v7136_v43 = vld [vmem:[%s16125_s14 + $0x60] sm:$0xff]  ;;  %v7139_v63 = vld [vmem:[%s16125_s14 + $0x78] sm:$0xff] }
 0xf95   :  { %v7148_v4 = vsel %vm410_vm13, %v7146_v59, %v7147_v19  ;;  %v7122_v51 = vadd.f32 %v7111_v1, %v7064_v21  ;;  %v8965_v21 = vld [vmem:[%s16126_s15 + $0x18] ss:$0 sm:$0xff] }
 0xf96   :  { %v7154_v36 = vrot.slane %v7123_v32, 2  ;;  %v10419_v8 = vpack.i.bf16 %v7151_v45, %v7148_v4 }
 0xf97   :  { %v7152_v6 = vrot.slane %v7122_v51, 2 }
 0xf98   :  { %10420 = vrot.lane.b32.xlu0 %v10419_v8, %s10744_s4  ;;  %v7155_v7 = vsel %vm410_vm13, %v7150_v5, %v7154_v36  ;;  %v7137_v5 = vld [vmem:[%s16125_s14 + $0x68] sm:$0xff] }
 0xf99   :  { %v7153_v16 = vsel %vm410_vm13, %v7147_v19, %v7152_v6  ;;  %v10208_v59 = vpack.c.bf16 %v7137_v5, %v7136_v43  ;;  %v7138_v19 = vld [vmem:[%s16125_s14 + $0x70] sm:$0xff]  ;;  %s10753_s14 = smov 80  }
 0xf9a   :  { %v10424_v30 = vpack.i.bf16 %v7155_v7, %v7153_v16  ;;  %v10212_v25 = vpack.c.bf16 %v7139_v63, %v7138_v19 }
 0xf9c   :  { %7554 = vrot.lane.b32.xlu0 %v8942_v53, %s10750_s0  ;;  %10425 = vrot.lane.b32.xlu1 %v10424_v30, %s10744_s4 }
 0xfa0   :  { %7616 = vrot.lane.b32.xlu0 %v8944_v55, %s10749_s23  ;;  %7585 = vrot.lane.b32.xlu1 %v8943_v14, %s10741_s22 }
 0xfa4   :  { %7700 = vrot.lane.b32.xlu0 %v8947_v10, %s10750_s0  ;;  %7648 = vrot.lane.b32.xlu1 %v8945_v3, %s10752_s13 }
 0xfa8   :  { %7790 = vrot.lane.b32.xlu0 %v8949_v60, %s10749_s23  ;;  %7745 = vrot.lane.b32.xlu1 %v8948_v9, %s10741_s22 }
 0xfac   :  { %7900 = vrot.lane.b32.xlu0 %v8952_v28, %s10750_s0  ;;  %7835 = vrot.lane.b32.xlu1 %v8950_v54, %s10752_s13 }
 0xfad   :  { %v15343_v49 = vpop.f32.mrb[22].mxu0 }
 0xfae   :  { %v15351_v62 = vpop.f32.mrb[23].mxu0  ;;  %v6391_v58 = vmul.f32 %v15343_v49, %v15343_v49 }
 0xfaf   :  { %v6390_v47 = vmul.f32 %v15351_v62, %v15351_v62  ;;  %9682 = vmatprep.mubr.f32.mxu1 %v15351_v62 }
 0xfb0   :  { %7990 = vrot.lane.b32.xlu0 %v8954_v48, %s10749_s23  ;;  %7945 = vrot.lane.b32.xlu1 %v8953_v52, %s10741_s22 }
 0xfb1   :  { %9683 = vmatmul.mubr.f32.vlgmr.msra.gmra.mrb[24].mxu1 %v15343_v49 }
 0xfb2   :  { %9685 = vmatprep.mubr.f32.mxu1 %v6390_v47  ;;  %10187 = vmatpush3.bf16.msra.mxu1 %v15208_v37  ;;  %v8959_v37 = vld [vmem:[%s16126_s15 + $0x12] ss:$0 sm:$0xff] }
 0xfb3   :  { %10189 = vmatprep.subr.bf16.mxu1 %v10188_v46 }
 0xfb4   :  { %8101 = vrot.lane.b32.xlu0 %v8957_v57, %s10750_s0  ;;  %8035 = vrot.lane.b32.xlu1 %v8955_v61, %s10752_s13 }
 0xfb5   :  { %9686 = vmatmul.mubr.f32.gmra.mrb[26].mxu1 %v6391_v58 }
 0xfb6   :  { %10191 = vmatpush3.bf16.msra.mxu1 %v10188_v46 }
 0xfb7   :  { %10193 = vmatprep.subr.bf16.mxu1 %v10192_v18 }
 0xfb8   :  { %8191 = vrot.lane.b32.xlu0 %v8959_v37, %s10749_s23  ;;  %8146 = vrot.lane.b32.xlu1 %v8958_v34, %s10741_s22 }
 0xfba   :  { %10195 = vmatpush3.bf16.msra.mxu1 %v10192_v18 }
 0xfbb   :  { %10197 = vmatprep.subr.bf16.mxu1 %v10196_v15 }
 0xfbc   :  { %8290 = vrot.lane.b32.xlu0 %v8962_v44, %s10750_s0  ;;  %8236 = vrot.lane.b32.xlu1 %v8960_v20, %s10752_s13 }
 0xfbe   :  { %10199 = vmatpush3.bf16.msra.mxu1 %v10196_v15 }
 0xfbf   :  { %10201 = vmatprep.subr.bf16.mxu1 %v10200_v56 }
 0xfc0   :  { %8352 = vrot.lane.b32.xlu0 %v8964_v40, %s10749_s23  ;;  %8321 = vrot.lane.b32.xlu1 %v8963_v13, %s10741_s22  ;;  %s8940_s23 = sld [smem:[#allocation4 + $0x7]] }
 0xfc2   :  { %10203 = vmatpush3.bf16.msra.mxu1 %v10200_v56 }
 0xfc3   :  { %10205 = vmatprep.subr.bf16.mxu1 %v10204_v17 }
 0xfc4   :  { %8383 = vrot.lane.b32.xlu1 %v8965_v21, %s10752_s13 }
 0xfc6   :  { %10207 = vmatpush3.bf16.msra.mxu1 %v10204_v17 }
 0xfc7   :  { %10209 = vmatprep.subr.bf16.mxu1 %v10208_v59 }
 0xfca   :  { %10211 = vmatpush3.bf16.msra.mxu1 %v10208_v59 }
 0xfcb   :  { %10213 = vmatprep.subr.bf16.mxu1 %v10212_v25 }
 0xfce   :  { %10215 = vmatpush3.bf16.msra.mxu1 %v10212_v25 }
 0xfcf   :  { %9771 = vmatprep.subr.mxu1 %v16635_v41 }
0x100a   :  { %v10421_v32 = vpop.permute.xlu0 %10420 }
0x100b   :  { %v10423_v1 = vunpack.i.h.bf16 %v10421_v32  ;;  %v10422_v45 = vunpack.i.l.bf16 %v10421_v32 }
0x100d   :  { %v7164_v4 = vsel %vm317_vm15, %v10422_v45, %v10423_v1 }
0x100e   :  { %v10426_v51 = vpop.permute.xlu1 %10425  ;;  %v7555_v36 = vpop.permute.xlu0 %7554  ;;  %9730 = vmatprep.mubr.f32.mxu1 %v7164_v4 }
0x100f   :  { %v10428_v8 = vunpack.i.h.bf16 %v10426_v51  ;;  %v10427_v6 = vunpack.i.l.bf16 %v10426_v51  ;;  %v7558_v7 = vmul.f32 %v15092_v24, %v7555_v36  ;;  %v7557_v16 = vmul.f32 %v15095_v35, %v7555_v36 }
0x1010   :  { %v7560_v30 = vmul.f32 %v15101_v29, %v7555_v36  ;;  %v7559_v55 = vmul.f32 %v15104_v39, %v7555_v36 }
0x1011   :  { %7567 = vrot.lane.b32.xlu1 %v7558_v7, %s10744_s4  ;;  %7565 = vrot.lane.b32.xlu0 %v7557_v16, %s10744_s4  ;;  %v7165_v53 = vsel %vm317_vm15, %v10427_v6, %v10428_v8 }
0x1012   :  { %9731 = vmatmul.mubr.f32.vlgmr.msra.gmra.mrb[28].mxu1 %v7165_v53  ;;  %v7586_v14 = vpop.permute.xlu1 %7585  ;;  %v7617_v9 = vpop.permute.xlu0 %7616 }
0x1013   :  { %9772 = vmatpush3.msk.msra.mxu1 %vm243_vm0, %v15107_v2  ;;  %9773 = vmatprep.mubr.msk.f32.mxu1 %vm10748_vm6, %v16635_v41  ;;  %v7589_v10 = vmul.f32 %v15092_v24, %v7586_v14  ;;  %v7588_v3 = vmul.f32 %v15095_v35, %v7586_v14  ;;  %v7591_v2 = vmul.f32 %v15101_v29, %v7586_v14 }
0x1014   :  { %9776 = vmatprep.subr.mxu1 %v16635_v41  ;;  %v7590_v60 = vmul.f32 %v15104_v39, %v7586_v14  ;;  %v7620_v28 = vmul.f32 %v15092_v24, %v7617_v9  ;;  %v7619_v54 = vmul.f32 %v15095_v35, %v7617_v9  ;;  %v7622_v11 = vmul.f32 %v15101_v29, %v7617_v9 }
0x1015   :  { %7571 = vrot.lane.b32.xlu1 %v7560_v30, %s10744_s4  ;;  %7569 = vrot.lane.b32.xlu0 %v7559_v55, %s10744_s4  ;;  %v7621_v31 = vmul.f32 %v15104_v39, %v7617_v9 }
0x1016   :  { %v7649_v48 = vpop.permute.xlu1 %7648  ;;  %v7701_v52 = vpop.permute.xlu0 %7700 }
0x1017   :  { %v7652_v47 = vmul.f32 %v15092_v24, %v7649_v48  ;;  %v7651_v46 = vmul.f32 %v15095_v35, %v7649_v48  ;;  %v7704_v22 = vmul.f32 %v15092_v24, %v7701_v52  ;;  %v7706_v38 = vmul.f32 %v15101_v29, %v7701_v52 }
0x1018   :  { %v7703_v57 = vmul.f32 %v15095_v35, %v7701_v52  ;;  %v7705_v61 = vmul.f32 %v15104_v39, %v7701_v52  ;;  %v7654_v58 = vmul.f32 %v15101_v29, %v7649_v48  ;;  %v7653_v18 = vmul.f32 %v15104_v39, %v7649_v48 }
0x1019   :  { %7598 = vrot.lane.b32.xlu1 %v7589_v10, %s10751_s2  ;;  %7596 = vrot.lane.b32.xlu0 %v7588_v3, %s10751_s2  ;;  %v7708_v42 = vmul.f32 %v15121_v50, %v7701_v52  ;;  %v7707_v0 = vmul.f32 %v15116_v33, %v7701_v52  ;;  %v7718_v34 = vrot.slane %v7704_v22, 2  ;;  %v7719_v15 = vrot.slane %v7706_v38, 2 }
0x101a   :  { %v7746_v37 = vpop.permute.xlu1 %7745  ;;  %v7715_v26 = vrot.slane %v7703_v57, 2  ;;  %v7716_v12 = vrot.slane %v7705_v61, 2  ;;  %v7791_v19 = vpop.permute.xlu0 %7790 }
0x101b   :  { %v7723_v44 = vrot.slane %v7708_v42, 2  ;;  %v7721_v20 = vrot.slane %v7707_v0, 2  ;;  %v7749_v56 = vmul.f32 %v15092_v24, %v7746_v37  ;;  %v7751_v27 = vmul.f32 %v15101_v29, %v7746_v37 }
0x101c   :  { %v7720_v23 = vsel %vm410_vm13, %v7718_v34, %v7719_v15  ;;  %v7717_v40 = vsel %vm410_vm13, %v7715_v26, %v7716_v12  ;;  %v7748_v13 = vmul.f32 %v15095_v35, %v7746_v37  ;;  %v7750_v17 = vmul.f32 %v15104_v39, %v7746_v37 }
0x101d   :  { %7602 = vrot.lane.b32.xlu1 %v7591_v2, %s10751_s2  ;;  %7600 = vrot.lane.b32.xlu0 %v7590_v60, %s10751_s2  ;;  %v7724_v43 = vsel %vm410_vm13, %v7719_v15, %v7723_v44  ;;  %v7722_v5 = vsel %vm410_vm13, %v7716_v12, %v7721_v20  ;;  %v7763_v21 = vrot.slane %v7749_v56, 2  ;;  %v7764_v59 = vrot.slane %v7751_v27, 2 }
0x101e   :  { %v7760_v63 = vrot.slane %v7748_v13, 2  ;;  %v7761_v25 = vrot.slane %v7750_v17, 2  ;;  %v7753_v32 = vmul.f32 %v15121_v50, %v7746_v37  ;;  %v7752_v1 = vmul.f32 %v15116_v33, %v7746_v37  ;;  %v7836_v10 = vpop.permute.xlu1 %7835 }
0x101f   :  { %v7765_v45 = vsel %vm410_vm13, %v7763_v21, %v7764_v59  ;;  %v7794_v4 = vmul.f32 %v15092_v24, %v7791_v19  ;;  %v7796_v51 = vmul.f32 %v15101_v29, %v7791_v19  ;;  %v7793_v36 = vmul.f32 %v15095_v35, %v7791_v19 }
0x1020   :  { %v7762_v8 = vsel %vm410_vm13, %v7760_v63, %v7761_v25  ;;  %v7768_v6 = vrot.slane %v7753_v32, 2  ;;  %v7766_v7 = vrot.slane %v7752_v1, 2  ;;  %v7795_v16 = vmul.f32 %v15104_v39, %v7791_v19  ;;  %v15540_v63 = vld [vmem:[#allocation2 + $0x18] sm:$0xff]  ;;  %v15544_v1 = vld [vmem:[#allocation2] sm:$0xff] }
0x1021   :  { %7629 = vrot.lane.b32.xlu1 %v7620_v28, %s10753_s14  ;;  %7627 = vrot.lane.b32.xlu0 %v7619_v54, %s10753_s14  ;;  %v7808_v53 = vrot.slane %v7794_v4, 2  ;;  %v7809_v30 = vrot.slane %v7796_v51, 2  ;;  %v7805_v55 = vrot.slane %v7793_v36, 2  ;;  %v7798_v14 = vmul.f32 %v15121_v50, %v7791_v19 }
0x1022   :  { %v7769_v3 = vsel %vm410_vm13, %v7764_v59, %v7768_v6  ;;  %v7767_v2 = vsel %vm410_vm13, %v7761_v25, %v7766_v7  ;;  %v7806_v60 = vrot.slane %v7795_v16, 2  ;;  %v7797_v9 = vmul.f32 %v15116_v33, %v7791_v19  ;;  %v15537_v59 = vld [vmem:[#allocation2 + $0x8] sm:$0xff] }
0x1023   :  { %v7810_v28 = vsel %vm410_vm13, %v7808_v53, %v7809_v30  ;;  %v7813_v54 = vrot.slane %v7798_v14, 2  ;;  %v7843_v61 = vmul.f32 %v15121_v50, %v7836_v10  ;;  %v7842_v37 = vmul.f32 %v15116_v33, %v7836_v10  ;;  %v15553_v6 = vld [vmem:[#allocation2 + $0x28] sm:$0xff]  ;;  %v15557_v14 = vld [vmem:[#allocation2 + $0x20] sm:$0xff] }
0x1024   :  { %v7807_v48 = vsel %vm410_vm13, %v7805_v55, %v7806_v60  ;;  %v7811_v52 = vrot.slane %v7797_v9, 2 }
0x1025   :  { %7633 = vrot.lane.b32.xlu1 %v7622_v11, %s10753_s14  ;;  %7631 = vrot.lane.b32.xlu0 %v7621_v31, %s10753_s14  ;;  %v7839_v11 = vmul.f32 %v15092_v24, %v7836_v10  ;;  %v7841_v31 = vmul.f32 %v15101_v29, %v7836_v10  ;;  %v7814_v22 = vsel %vm410_vm13, %v7809_v30, %v7813_v54  ;;  %v7858_v15 = vrot.slane %v7843_v61, 2 }
0x1026   :  { %v7856_v20 = vrot.slane %v7842_v37, 2 }
0x1027   :  { %v7853_v38 = vrot.slane %v7839_v11, 2  ;;  %v7854_v57 = vrot.slane %v7841_v31, 2 }
0x1029   :  { %7661 = vrot.lane.b32.xlu1 %v7652_v47, %s10752_s13  ;;  %7659 = vrot.lane.b32.xlu0 %v7651_v46, %s10752_s13  ;;  %v7838_v47 = vmul.f32 %v15095_v35, %v7836_v10  ;;  %v7840_v46 = vmul.f32 %v15104_v39, %v7836_v10  ;;  %v7855_v34 = vsel %vm410_vm13, %v7853_v38, %v7854_v57 }
0x102b   :  { %v7850_v42 = vrot.slane %v7838_v47, 2  ;;  %v7851_v0 = vrot.slane %v7840_v46, 2 }
0x102d   :  { %7665 = vrot.lane.b32.xlu1 %v7654_v58, %s10752_s13  ;;  %7663 = vrot.lane.b32.xlu0 %v7653_v18, %s10752_s13  ;;  %v7901_v58 = vpop.permute.xlu0 %7900  ;;  %v7812_v18 = vsel %vm410_vm13, %v7806_v60, %v7811_v52  ;;  %v7852_v44 = vsel %vm410_vm13, %v7850_v42, %v7851_v0 }
0x102e   :  { %v7904_v26 = vmul.f32 %v15092_v24, %v7901_v58  ;;  %v7906_v12 = vmul.f32 %v15101_v29, %v7901_v58  ;;  %v7903_v56 = vmul.f32 %v15095_v35, %v7901_v58  ;;  %v7905_v27 = vmul.f32 %v15104_v39, %v7901_v58  ;;  %v7946_v24 = vpop.permute.xlu1 %7945 }
0x102f   :  { %v7908_v17 = vmul.f32 %v15121_v50, %v7901_v58  ;;  %v7857_v29 = vsel %vm410_vm13, %v7851_v0, %v7856_v20  ;;  %v7907_v21 = vmul.f32 %v15116_v33, %v7901_v58  ;;  %v7949_v19 = vmul.f32 %v15537_v59, %v7946_v24 }
0x1030   :  { %v7919_v13 = vrot.slane %v7906_v12, 4  ;;  %v7951_v50 = vmul.f32 %v15540_v63, %v7946_v24  ;;  %v7948_v33 = vmul.f32 %v15544_v1, %v7946_v24  ;;  %v7953_v7 = vmul.f32 %v15553_v6, %v7946_v24 }
0x1031   :  { %7727 = vrot.lane.b32.xlu1 %v7720_v23, %s10744_s4  ;;  %7725 = vrot.lane.b32.xlu0 %v7717_v40, %s10744_s4  ;;  %v7859_v23 = vsel %vm410_vm13, %v7854_v57, %v7858_v15  ;;  %v7918_v40 = vrot.slane %v7904_v26, 4  ;;  %v7923_v39 = vrot.slane %v7908_v17, 4  ;;  %v7921_v32 = vrot.slane %v7907_v21, 4  ;;  %v7991_v16 = vpop.permute.xlu0 %7990 }
0x1032   :  { %v7963_v36 = vrot.slane %v7949_v19, 4  ;;  %v7960_v30 = vrot.slane %v7948_v33, 4  ;;  %v7952_v10 = vmul.f32 %v15557_v14, %v7946_v24  ;;  %v7994_v60 = vmul.f32 %v15537_v59, %v7991_v16 }
0x1033   :  { %v7920_v35 = vsel %vm243_vm0, %v7918_v40, %v7919_v13  ;;  %v7924_v51 = vsel %vm243_vm0, %v7919_v13, %v7923_v39  ;;  %v7996_v9 = vmul.f32 %v15540_v63, %v7991_v16  ;;  %v7993_v11 = vmul.f32 %v15544_v1, %v7991_v16 }
0x1034   :  { %v7966_v54 = vrot.slane %v7952_v10, 4  ;;  %v8008_v52 = vrot.slane %v7994_v60, 4  ;;  %v7998_v46 = vmul.f32 %v15553_v6, %v7991_v16  ;;  %v7997_v58 = vmul.f32 %v15557_v14, %v7991_v16 }
0x1035   :  { %7731 = vrot.lane.b32.xlu1 %v7724_v43, %s10744_s4  ;;  %7729 = vrot.lane.b32.xlu0 %v7722_v5, %s10744_s4  ;;  %v7915_v43 = vrot.slane %v7903_v56, 4  ;;  %v7916_v5 = vrot.slane %v7905_v27, 4  ;;  %v8009_v47 = vrot.slane %v7996_v9, 4  ;;  %v8005_v57 = vrot.slane %v7993_v11, 4 }
0x1036   :  { %v8013_v42 = vrot.slane %v7998_v46, 4  ;;  %v8011_v15 = vrot.slane %v7997_v58, 4 }
0x1037   :  { %v7917_v25 = vsel %vm243_vm0, %v7915_v43, %v7916_v5  ;;  %v7922_v53 = vsel %vm243_vm0, %v7916_v5, %v7921_v32 }
0x1039   :  { %7772 = vrot.lane.b32.xlu1 %v7765_v45, %s10751_s2  ;;  %7770 = vrot.lane.b32.xlu0 %v7762_v8, %s10751_s2  ;;  %v15547_v45 = vld [vmem:[#allocation2 + $0x10] sm:$0xff]  ;;  %v7964_v8 = vrot.slane %v7951_v50, 4 }
0x103a   :  { %v7950_v4 = vmul.f32 %v15547_v45, %v7946_v24  ;;  %v7995_v31 = vmul.f32 %v15547_v45, %v7991_v16 }
0x103c   :  { %v7961_v55 = vrot.slane %v7950_v4, 4  ;;  %v8006_v61 = vrot.slane %v7995_v31, 4 }
0x103d   :  { %7776 = vrot.lane.b32.xlu1 %v7769_v3, %s10751_s2  ;;  %7774 = vrot.lane.b32.xlu0 %v7767_v2, %s10751_s2  ;;  %v7965_v3 = vsel %vm243_vm0, %v7963_v36, %v7964_v8  ;;  %v7968_v2 = vrot.slane %v7953_v7, 4 }
0x103e   :  { %v7967_v38 = vsel %vm243_vm0, %v7961_v55, %v7966_v54  ;;  %v8012_v40 = vsel %vm243_vm0, %v8006_v61, %v8011_v15 }
0x1041   :  { %7817 = vrot.lane.b32.xlu1 %v7810_v28, %s10753_s14  ;;  %7815 = vrot.lane.b32.xlu0 %v7807_v48, %s10753_s14  ;;  %v7962_v28 = vsel %vm243_vm0, %v7960_v30, %v7961_v55  ;;  %v7969_v48 = vsel %vm243_vm0, %v7964_v8, %v7968_v2 }
0x1045   :  { %7821 = vrot.lane.b32.xlu1 %v7814_v22, %s10753_s14  ;;  %7819 = vrot.lane.b32.xlu0 %v7812_v18, %s10753_s14  ;;  %v8036_v22 = vpop.permute.xlu1 %8035  ;;  %v8010_v18 = vsel %vm243_vm0, %v8008_v52, %v8009_v47 }
0x1046   :  { %v8039_v0 = vmul.f32 %v15537_v59, %v8036_v22  ;;  %v8041_v37 = vmul.f32 %v15540_v63, %v8036_v22  ;;  %v8038_v26 = vmul.f32 %v15544_v1, %v8036_v22  ;;  %v8040_v12 = vmul.f32 %v15547_v45, %v8036_v22 }
0x1047   :  { %v8043_v27 = vmul.f32 %v15553_v6, %v8036_v22  ;;  %v8042_v24 = vmul.f32 %v15557_v14, %v8036_v22 }
0x1048   :  { %v8053_v20 = vrot.slane %v8039_v0, 4  ;;  %v8054_v56 = vrot.slane %v8041_v37, 4  ;;  %v8050_v13 = vrot.slane %v8038_v26, 4  ;;  %v8051_v17 = vrot.slane %v8040_v12, 4 }
0x1049   :  { %7862 = vrot.lane.b32.xlu1 %v7855_v34, %s10752_s13  ;;  %7860 = vrot.lane.b32.xlu0 %v7852_v44, %s10752_s13  ;;  %v8007_v34 = vsel %vm243_vm0, %v8005_v57, %v8006_v61  ;;  %v8014_v44 = vsel %vm243_vm0, %v8009_v47, %v8013_v42  ;;  %v8058_v43 = vrot.slane %v8043_v27, 4  ;;  %v8056_v39 = vrot.slane %v8042_v24, 4 }
0x104b   :  { %v8057_v36 = vsel %vm243_vm0, %v8051_v17, %v8056_v39 }
0x104d   :  { %7866 = vrot.lane.b32.xlu1 %v7859_v23, %s10752_s13  ;;  %7864 = vrot.lane.b32.xlu0 %v7857_v29, %s10752_s13  ;;  %v8102_v23 = vpop.permute.xlu0 %8101  ;;  %v8055_v29 = vsel %vm243_vm0, %v8053_v20, %v8054_v56 }
0x104e   :  { %v8105_v5 = vmul.f32 %v15537_v59, %v8102_v23  ;;  %v8107_v21 = vmul.f32 %v15540_v63, %v8102_v23  ;;  %v8104_v19 = vmul.f32 %v15544_v1, %v8102_v23  ;;  %v8106_v50 = vmul.f32 %v15547_v45, %v8102_v23 }
0x104f   :  { %v8109_v4 = vmul.f32 %v15553_v6, %v8102_v23  ;;  %v8108_v16 = vmul.f32 %v15557_v14, %v8102_v23 }
0x1050   :  { %v8119_v32 = vrot.slane %v8105_v5, 6  ;;  %v8120_v33 = vrot.slane %v8107_v21, 6  ;;  %v8116_v8 = vrot.slane %v8104_v19, 6  ;;  %v8117_v7 = vrot.slane %v8106_v50, 6 }
0x1051   :  { %7927 = vrot.lane.b32.xlu1 %v7920_v35, %s10744_s4  ;;  %7925 = vrot.lane.b32.xlu0 %v7917_v25, %s10744_s4  ;;  %v8052_v35 = vsel %vm243_vm0, %v8050_v13, %v8051_v17  ;;  %v8059_v25 = vsel %vm243_vm0, %v8054_v56, %v8058_v43  ;;  %v8124_v30 = vrot.slane %v8109_v4, 6  ;;  %v8122_v2 = vrot.slane %v8108_v16, 6 }
0x1053   :  { %v8125_v11 = vsel %vm8085_vm3, %v8120_v33, %v8124_v30  ;;  %v8123_v47 = vsel %vm8085_vm3, %v8117_v7, %v8122_v2 }
0x1055   :  { %7931 = vrot.lane.b32.xlu1 %v7924_v51, %s10744_s4  ;;  %7929 = vrot.lane.b32.xlu0 %v7922_v53, %s10744_s4  ;;  %v8147_v51 = vpop.permute.xlu1 %8146  ;;  %v8121_v53 = vsel %vm8085_vm3, %v8119_v32, %v8120_v33 }
0x1056   :  { %v8150_v55 = vmul.f32 %v15537_v59, %v8147_v51  ;;  %v8152_v10 = vmul.f32 %v15540_v63, %v8147_v51  ;;  %v8149_v60 = vmul.f32 %v15544_v1, %v8147_v51  ;;  %v8151_v9 = vmul.f32 %v15547_v45, %v8147_v51 }
0x1057   :  { %v8154_v52 = vmul.f32 %v15553_v6, %v8147_v51 }
0x1058   :  { %v8164_v31 = vrot.slane %v8150_v55, 6  ;;  %v8161_v46 = vrot.slane %v8149_v60, 6  ;;  %v8162_v22 = vrot.slane %v8151_v9, 6 }
0x1059   :  { %7972 = vrot.lane.b32.xlu1 %v7965_v3, %s10751_s2  ;;  %7970 = vrot.lane.b32.xlu0 %v7962_v28, %s10751_s2  ;;  %v8118_v3 = vsel %vm8085_vm3, %v8116_v8, %v8117_v7  ;;  %v8192_v28 = vpop.permute.xlu0 %8191  ;;  %v8237_v54 = vpop.permute.xlu1 %8236  ;;  %v8169_v61 = vrot.slane %v8154_v52, 6 }
0x105a   :  { %v8195_v58 = vmul.f32 %v15537_v59, %v8192_v28  ;;  %v8163_v42 = vsel %vm8085_vm3, %v8161_v46, %v8162_v22  ;;  %v8194_v37 = vmul.f32 %v15544_v1, %v8192_v28  ;;  %v8199_v56 = vmul.f32 %v15553_v6, %v8192_v28 }
0x105b   :  { %v8198_v13 = vmul.f32 %v15557_v14, %v8192_v28  ;;  %v8240_v5 = vmul.f32 %v15537_v59, %v8237_v54  ;;  %v8242_v21 = vmul.f32 %v15540_v63, %v8237_v54  ;;  %v8239_v19 = vmul.f32 %v15544_v1, %v8237_v54 }
0x105c   :  { %v8206_v23 = vrot.slane %v8194_v37, 6  ;;  %v8214_v43 = vrot.slane %v8199_v56, 6  ;;  %v8241_v50 = vmul.f32 %v15547_v45, %v8237_v54  ;;  %v8243_v16 = vmul.f32 %v15557_v14, %v8237_v54 }
0x105d   :  { %7976 = vrot.lane.b32.xlu1 %v7969_v48, %s10751_s2  ;;  %7974 = vrot.lane.b32.xlu0 %v7967_v38, %s10751_s2  ;;  %v8165_v48 = vrot.slane %v8152_v10, 6  ;;  %v8153_v38 = vmul.f32 %v15557_v14, %v8147_v51  ;;  %v15624_v15 = vpop.permute.xlu0 %8290  ;;  %v15626_v26 = vpop.permute.xlu1 %8321  ;;  %v8212_v39 = vrot.slane %v8198_v13, 6  ;;  %v8254_v4 = vrot.slane %v8240_v5, 6 }
0x105e   :  { %v8255_v59 = vrot.slane %v8242_v21, 6  ;;  %v8244_v51 = vmul.f32 %v15553_v6, %v8237_v54  ;;  %v8251_v7 = vrot.slane %v8239_v19, 6  ;;  %v8252_v1 = vrot.slane %v8241_v50, 6  ;;  %v15685_v50 = vld [vmem:[#allocation2] sm:$0xff] }
0x105f   :  { %v8166_v57 = vsel %vm8085_vm3, %v8164_v31, %v8165_v48  ;;  %v8167_v0 = vrot.slane %v8153_v38, 6  ;;  %v8170_v12 = vsel %vm8085_vm3, %v8165_v48, %v8169_v61  ;;  %v8257_v31 = vrot.slane %v8243_v16, 6 }
0x1060   :  { %v8256_v9 = vsel %vm8085_vm3, %v8254_v4, %v8255_v59  ;;  %v8294_v56 = vmul.f32 %v15540_v63, %v15624_v15  ;;  %v8295_v19 = vmul.f32 %v15557_v14, %v15624_v15 }
0x1061   :  { %8017 = vrot.lane.b32.xlu1 %v8010_v18, %s10753_s14  ;;  %8015 = vrot.lane.b32.xlu0 %v8007_v34, %s10753_s14  ;;  %v8197_v18 = vmul.f32 %v15540_v63, %v8192_v28  ;;  %v8196_v34 = vmul.f32 %v15547_v45, %v8192_v28  ;;  %v8168_v27 = vsel %vm8085_vm3, %v8162_v22, %v8167_v0  ;;  %v15636_v17 = vpop.permute.xlu0 %8352  ;;  %v15638_v24 = vpop.permute.xlu1 %8383  ;;  %v8941_v0 = vld [vmem:[%s16126_s15] ss:$0 sm:$0xff] }
0x1062   :  { %v8253_v28 = vsel %vm8085_vm3, %v8251_v7, %v8252_v1 }
0x1063   :  { %v8210_v20 = vrot.slane %v8197_v18, 6 }
0x1065   :  { %8021 = vrot.lane.b32.xlu1 %v8014_v44, %s10753_s14  ;;  %8019 = vrot.lane.b32.xlu0 %v8012_v40, %s10753_s14  ;;  %v8209_v44 = vrot.slane %v8195_v58, 6  ;;  %v8207_v40 = vrot.slane %v8196_v34, 6  ;;  %v8215_v33 = vsel %vm8085_vm3, %v8210_v20, %v8214_v43  ;;  %v8258_v58 = vsel %vm8085_vm3, %v8252_v1, %v8257_v31  ;;  %v15671_v34 = vld [vmem:[#allocation2 + $0x10] sm:$0xff] }
0x1066   :  { %v7545_v13 = vmul.f32 %v8941_v0, %v15671_v34  ;;  %v8325_v1 = vmul.f32 %v15540_v63, %v15626_v26 }
0x1067   :  { %v8213_v8 = vsel %vm8085_vm3, %v8207_v40, %v8212_v39  ;;  %v8296_v39 = vmul.f32 %v15553_v6, %v15624_v15 }
0x1069   :  { %8062 = vrot.lane.b32.xlu1 %v8055_v29, %s10752_s13  ;;  %8060 = vrot.lane.b32.xlu0 %v8052_v35, %s10752_s13  ;;  %v8211_v29 = vsel %vm8085_vm3, %v8209_v44, %v8210_v20  ;;  %v8208_v35 = vsel %vm8085_vm3, %v8206_v23, %v8207_v40 }
0x106d   :  { %8066 = vrot.lane.b32.xlu1 %v8059_v25, %s10752_s13  ;;  %8064 = vrot.lane.b32.xlu0 %v8057_v36, %s10752_s13 }
0x1071   :  { %8128 = vrot.lane.b32.xlu1 %v8121_v53, %s10744_s4  ;;  %8126 = vrot.lane.b32.xlu0 %v8118_v3, %s10744_s4 }
0x1075   :  { %8132 = vrot.lane.b32.xlu1 %v8125_v11, %s10744_s4  ;;  %8130 = vrot.lane.b32.xlu0 %v8123_v47, %s10744_s4  ;;  %v8259_v11 = vrot.slane %v8244_v51, 6  ;;  %v7544_v51 = vmul.f32 %v8941_v0, %v15685_v50 }
0x1077   :  { %v8260_v61 = vsel %vm8085_vm3, %v8255_v59, %v8259_v11 }
0x1079   :  { %8173 = vrot.lane.b32.xlu1 %v8166_v57, %s10751_s2  ;;  %8171 = vrot.lane.b32.xlu0 %v8163_v42, %s10751_s2 }
0x107d   :  { %8177 = vrot.lane.b32.xlu1 %v8170_v12, %s10751_s2  ;;  %8175 = vrot.lane.b32.xlu0 %v8168_v27, %s10751_s2  ;;  %v8293_v27 = vmul.f32 %v15547_v45, %v15624_v15 }
0x1081   :  { %8218 = vrot.lane.b32.xlu1 %v8211_v29, %s10753_s14  ;;  %8216 = vrot.lane.b32.xlu0 %v8208_v35, %s10753_s14 }
0x1083   :  { %v15648_v25 = vpop.permute.xlu1 %7567  ;;  %v7566_v32 = vpop.permute.xlu0 %7565 }
0x1084   :  { %v9684_v36 = vpop.f32.mrb[24].mxu1 }
0x1085   :  { %v6478_v53 = vsel %vm636_vm8, %v9684_v36, 0.0  ;;  %v6458_v30 = vpop.f32.mrb[25].mxu1  ;;  %8222 = vrot.lane.b32.xlu1 %v8215_v33, %s10753_s14  ;;  %8220 = vrot.lane.b32.xlu0 %v8213_v8, %s10753_s14  ;;  %v7573_v33 = vsel %vm317_vm15, %v7566_v32, %v15648_v25 }
0x1086   :  { %v6477_v55 = vsel %vm636_vm8, %v6458_v30, 0.0  ;;  %v7577_v25 = vadd.f32 %v7573_v33, %v7544_v51  ;;  %v8386_v51 = vmul.f32 %v15547_v45, %v15638_v24 }
0x1087   :  { %v6479_v10 = vadd.f32 %v6478_v53, %v6477_v55  ;;  %v7572_v3 = vpop.permute.xlu1 %7571  ;;  %v7570_v2 = vpop.permute.xlu0 %7569  ;;  %v8324_v55 = vmul.f32 %v15547_v45, %v15626_v26 }
0x1088   :  { %v9687_v60 = vpop.f32.mrb[26].mxu1  ;;  %v7574_v29 = vsel %vm317_vm15, %v7570_v2, %v7572_v3 }
0x1089   :  { %v6480_v54 = vrot.slane %v6479_v10, 4  ;;  %v6488_v48 = vsel %vm636_vm8, %v9687_v60, 0.0  ;;  %v6468_v52 = vpop.f32.mrb[27].mxu1  ;;  %8263 = vrot.lane.b32.xlu1 %v8256_v9, %s10752_s13  ;;  %8261 = vrot.lane.b32.xlu0 %v8253_v28, %s10752_s13  ;;  %v7578_v8 = vadd.f32 %v7574_v29, %v7545_v13 }
0x108a   :  { %v6487_v47 = vsel %vm636_vm8, %v6468_v52, 0.0 }
0x108b   :  { %v6481_v46 = vadd.f32 %v6480_v54, %v6479_v10  ;;  %v6489_v22 = vadd.f32 %v6488_v48, %v6487_v47  ;;  %v7599_v38 = vpop.permute.xlu1 %7598  ;;  %v7597_v57 = vpop.permute.xlu0 %7596  ;;  %v8946_v10 = vld [vmem:[%s16126_s15 + $0x5] ss:$0 sm:$0xff] }
0x108c   :  { %v7604_v15 = vsel %vm3425_vm5, %v7597_v57, %v7599_v38  ;;  %v7679_v11 = vmul.f32 %v8946_v10, %v15685_v50  ;;  %v7680_v31 = vmul.f32 %v8946_v10, %v15671_v34  ;;  %v15715_v38 = vld [vmem:[#allocation2 + $0x20] sm:$0xff] }
0x108d   :  { %v6482_v18 = vrot.slane %v6481_v46, 2  ;;  %v6490_v42 = vrot.slane %v6489_v22, 4  ;;  %8267 = vrot.lane.b32.xlu1 %v8260_v61, %s10752_s13  ;;  %8265 = vrot.lane.b32.xlu0 %v8258_v58, %s10752_s13  ;;  %v7608_v9 = vadd.f32 %v7604_v15, %v7577_v25  ;;  %v7681_v0 = vmul.f32 %v8946_v10, %v15715_v38  ;;  %v10478_v10 = vld [vmem:[%s16285_s20] sm:$0xff] }
0x108f   :  { %v6483_v37 = vadd.f32 %v6482_v18, %v6481_v46  ;;  %v6491_v12 = vadd.f32 %v6490_v42, %v6489_v22  ;;  %v7603_v44 = vpop.permute.xlu1 %7602  ;;  %v7601_v20 = vpop.permute.xlu0 %7600  ;;  %v8327_v46 = vmul.f32 %v15553_v6, %v15626_v26  ;;  %v8326_v22 = vmul.f32 %v15557_v14, %v15626_v26 }
0x1090   :  { %v7605_v4 = vsel %vm3425_vm5, %v7601_v20, %v7603_v44  ;;  %v7685_v18 = vrot.slane %v7679_v11, 2  ;;  %v7686_v42 = vrot.slane %v7680_v31, 2  ;;  %v8356_v26 = vmul.f32 %v15540_v63, %v15636_v17 }
0x1091   :  { %v6484_v23 = vrot.slane %v6483_v37, 1  ;;  %v6492_v40 = vrot.slane %v6491_v12, 2  ;;  %8303 = vrot.lane.b32.xlu1 %v8294_v56, %s10744_s4  ;;  %8301 = vrot.lane.b32.xlu0 %v8293_v27, %s10744_s4  ;;  %v7609_v16 = vadd.f32 %v7605_v4, %v7578_v8  ;;  %v8355_v44 = vmul.f32 %v15547_v45, %v15636_v17 }
0x1092   :  { %v7687_v27 = vsel %vm410_vm13, %v7685_v18, %v7686_v42 }
0x1093   :  { %v6485_v43 = vadd.f32 %v6484_v23, %v6483_v37  ;;  %v6493_v5 = vadd.f32 %v6492_v40, %v6491_v12  ;;  %v7630_v21 = vpop.permute.xlu1 %7629  ;;  %v7628_v35 = vpop.permute.xlu0 %7627  ;;  %v7688_v23 = vrot.slane %v7681_v0, 2  ;;  %v16642_v0 = vld [vmem:[#allocation30_spill] sm:$0xff] }
0x1094   :  { %v7636_v59 = vsel %vm7635_vm7, %v7628_v35, %v7630_v21 }
0x1095   :  { %v15692_v36 = vmul.f32 0.001953125, %v6485_v43  ;;  %v6494_v7 = vrot.slane %v6493_v5, 1  ;;  %8307 = vrot.lane.b32.xlu1 %v8296_v39, %s10744_s4  ;;  %8305 = vrot.lane.b32.xlu0 %v8295_v19, %s10744_s4  ;;  %v7640_v48 = vadd.f32 %v7636_v59, %v7608_v9  ;;  %s8867_s4 = sld [smem:[#allocation4 + $0x5]]  ;;  %v8358_v43 = vmul.f32 %v15553_v6, %v15636_v17  ;;  %v16638_v9 = vld [vmem:[#allocation49_spill] sm:$0xff] }
0x1096   :  { %v7689_v39 = vsel %vm410_vm13, %v7686_v42, %v7688_v23  ;;  %v8387_v59 = vmul.f32 %v15540_v63, %v15638_v24  ;;  %v8388_v63 = vmul.f32 %v15557_v14, %v15638_v24 }
0x1097   :  { %v6495_v32 = vadd.f32 %v6494_v7, %v6493_v5  ;;  %v7634_v53 = vpop.permute.xlu1 %7633  ;;  %v7632_v30 = vpop.permute.xlu0 %7631  ;;  %v6497_v2 = vmul.f32 %v15692_v36, %v15692_v36  ;;  %v8357_v5 = vmul.f32 %v15557_v14, %v15636_v17 }
0x1098   :  { %v7637_v3 = vsel %vm7635_vm7, %v7632_v30, %v7634_v53  ;;  %v8389_v53 = vmul.f32 %v15553_v6, %v15638_v24  ;;  %v10479_v6 = vld [vmem:[%s16285_s20 + $0x8] sm:$0xff]  ;;  %v15762_v24 = vld [vmem:[#allocation10] sm:$0xf] }
0x1099   :  { %v6496_v60 = vmul.f32 0.001953125, %v6495_v32  ;;  %v7641_v28 = vadd.f32 %v7637_v3, %v7609_v16  ;;  %8334 = vrot.lane.b32.xlu1 %v8325_v1, %s10751_s2  ;;  %8332 = vrot.lane.b32.xlu0 %v8324_v55, %s10751_s2 }
0x109b   :  { %v6498_v54 = vsub.f32 %v6496_v60, %v6497_v2  ;;  %v7662_v52 = vpop.permute.xlu1 %7661  ;;  %v7660_v47 = vpop.permute.xlu0 %7659  ;;  %v6501_v17 = vstv %s8867_s4  ;;  %v16637_v2 = vld [vmem:[#allocation47_spill] sm:$0xff] }
0x109c   :  { %v7668_v57 = vsel %vm7667_vm9, %v7660_v47, %v7662_v52 }
0x109d   :  { %v6499_v61 = vadd.f32 1e-05, %v6498_v54  ;;  %v7672_v58 = vadd.f32 %v7668_v57, %v7640_v48  ;;  %8338 = vrot.lane.b32.xlu1 %v8327_v46, %s10751_s2  ;;  %8336 = vrot.lane.b32.xlu0 %v8326_v22, %s10751_s2  ;;  %s15729_s2 = sld [smem:[#allocation4 + $0x3]]  ;;  %v16639_v54 = vld [vmem:[#allocation29_spill] sm:$0xff]  ;;  %v16640_v22 = vld [vmem:[#allocation48_spill] sm:$0xff] }
0x109f   :  { %10439 = vrsqrt.f32 %v6499_v61  ;;  %v7666_v37 = vpop.permute.xlu1 %7665  ;;  %v7664_v12 = vpop.permute.xlu0 %7663  ;;  %v7692_v13 = vadd.f32 %v7687_v27, %v7672_v58  ;;  %v16641_v61 = vld [vmem:[#allocation50_spill] sm:$0xff] }
0x10a0   :  { %v7669_v20 = vsel %vm7667_vm9, %v7664_v12, %v7666_v37 }
0x10a1   :  { %v7673_v56 = vadd.f32 %v7669_v20, %v7641_v28  ;;  %8365 = vrot.lane.b32.xlu1 %v8356_v26, %s10753_s14  ;;  %8363 = vrot.lane.b32.xlu0 %v8355_v44, %s10753_s14 }
0x10a3   :  { %v7728_v40 = vpop.permute.xlu1 %7727  ;;  %v7726_v29 = vpop.permute.xlu0 %7725  ;;  %v7693_v33 = vadd.f32 %v7689_v39, %v7673_v56  ;;  %v1460_v25 = vstv %s15729_s2  ;;  %v16644_v56 = vld [vmem:[#allocation31_spill] sm:$0xff] }
0x10a4   :  { %v7733_v21 = vsel %vm317_vm15, %v7726_v29, %v7728_v40  ;;  %v1461_v3 = vmul.f32 %v10478_v10, %v1460_v25  ;;  %v1462_v14 = vmul.f32 %v10479_v6, %v1460_v25  ;;  %v16645_v29 = vld [vmem:[#allocation32_spill] sm:$0xff]  ;;  %v16651_v25 = vld [vmem:[#allocation35_spill] sm:$0xff] }
0x10a5   :  { %v7737_v35 = vadd.f32 %v7733_v21, %v7692_v13  ;;  %8369 = vrot.lane.b32.xlu1 %v8358_v43, %s10753_s14  ;;  %8367 = vrot.lane.b32.xlu0 %v8357_v5, %s10753_s14  ;;  %v16646_v21 = vld [vmem:[#allocation56_spill] sm:$0xff] }
0x10a6   :  { %v1465_v47 = vrot.slane %v1461_v3, 5  ;;  %v1466_v46 = vrot.slane %v1462_v14, 5 }
0x10a7   :  { %v7732_v19 = vpop.permute.xlu1 %7731  ;;  %v7730_v4 = vpop.permute.xlu0 %7729 }
0x10a8   :  { %v7734_v8 = vsel %vm317_vm15, %v7730_v4, %v7732_v19  ;;  %v1467_v26 = vsel %vm16643_vm10, %v1465_v47, %v1466_v46  ;;  %v16647_v19 = vld [vmem:[#allocation33_spill] sm:$0xff] }
0x10a9   :  { %v10440_v7 = vpop.eup %10439  ;;  %v7738_v15 = vadd.f32 %v7734_v8, %v7693_v33  ;;  %8396 = vrot.lane.b32.xlu1 %v8387_v59, %s10752_s13  ;;  %8394 = vrot.lane.b32.xlu0 %v8386_v51, %s10752_s13  ;;  %v16648_v59 = vld [vmem:[#allocation53_spill] sm:$0xff]  ;;  %v16649_v51 = vld [vmem:[#allocation55_spill] sm:$0xff] }
0x10aa   :  { %v6502_v1 = vmul.f32 %v10440_v7, %v6501_v17  ;;  %v16650_v7 = vld [vmem:[#allocation34_spill] sm:$0xff] }
0x10ab   :  { %v7773_v32 = vpop.permute.xlu1 %7772  ;;  %v7771_v16 = vpop.permute.xlu0 %7770 }
0x10ac   :  { %v7778_v45 = vsel %vm3425_vm5, %v7771_v16, %v7773_v32  ;;  %9691 = vmatmul.mubr.msk.f32.vlgmr.msra.gmra.mrb[24].mxu0 %vm636_vm8, %v6502_v1  ;;  %v6576_v30 = vmul.f32 %v6502_v1, %v15692_v36  ;;  %v16636_v36 = vld [vmem:[#allocation54_spill] sm:$0xff]  ;;  %v8408_v32 = vld [vmem:[%s16127_s16] sm:$0xff] }
0x10ad   :  { %v7782_v55 = vadd.f32 %v7778_v45, %v7737_v35  ;;  %8400 = vrot.lane.b32.xlu1 %v8389_v53, %s10752_s13  ;;  %8398 = vrot.lane.b32.xlu0 %v8388_v63, %s10752_s13  ;;  %v816_v60 = vrot.slane %v16637_v2, %v16636_v36  ;;  %v1428_v28 = vrot.slane %v16638_v9, %v16636_v36  ;;  %v8409_v16 = vld [vmem:[%s16127_s16 + $0x8] sm:$0xff] }
0x10ae   :  { %9694 = vmatpush3.msk.msra.mxu0 %vm243_vm0, %v15762_v24  ;;  %9695 = vmatprep.mubr.msk.f32.mxu0 %vm10748_vm6, %v16635_v41  ;;  %v830_v57 = vrot.slane %v16640_v22, %v16636_v36  ;;  %v1442_v58 = vrot.slane %v16641_v61, %v16636_v36  ;;  %v16652_v45 = vld [vmem:[#allocation37_spill] sm:$0xff] }
0x10af   :  { %v7777_v11 = vpop.permute.xlu1 %7776  ;;  %v7775_v31 = vpop.permute.xlu0 %7774  ;;  %10217 = vmatprep.subr.bf16.mxu0 %v16639_v54 }
0x10b0   :  { %v7779_v48 = vsel %vm3425_vm5, %v7775_v31, %v7777_v11  ;;  %9696 = vmatmul.mubr.msk.f32.vlgmr.msra.gmra.mrb[26].mxu0 %vm636_vm8, %v6576_v30  ;;  %v10248_v30 = vpack.c.bf16 %v8409_v16, %v8408_v32  ;;  %v8418_v32 = vld [vmem:[%s16127_s16 + $0x50] sm:$0xff]  ;;  %v8419_v16 = vld [vmem:[%s16127_s16 + $0x58] sm:$0xff] }
0x10b1   :  { %v7783_v52 = vadd.f32 %v7779_v48, %v7738_v15  ;;  %1430 = vrot.lane.b32.xlu1 %v1428_v28, %s10747_s9  ;;  %818 = vrot.lane.b32.xlu0 %v816_v60, %s10747_s9 }
0x10b2   :  { %10219 = vmatpush3.bf16.msra.mxu0 %v16639_v54 }
0x10b3   :  { %v7818_v18 = vpop.permute.xlu1 %7817  ;;  %v7816_v42 = vpop.permute.xlu0 %7815  ;;  %10221 = vmatprep.subr.bf16.mxu0 %v16642_v0 }
0x10b4   :  { %v7823_v37 = vsel %vm7635_vm7, %v7816_v42, %v7818_v18  ;;  %v8412_v42 = vld [vmem:[%s16127_s16 + $0x20] sm:$0xff] }
0x10b5   :  { %v7827_v12 = vadd.f32 %v7823_v37, %v7782_v55  ;;  %1444 = vrot.lane.b32.xlu1 %v1442_v58, %s10747_s9  ;;  %832 = vrot.lane.b32.xlu0 %v830_v57, %s10747_s9  ;;  %v8413_v37 = vld [vmem:[%s16127_s16 + $0x28] sm:$0xff] }
0x10b6   :  { %10223 = vmatpush3.bf16.msra.mxu0 %v16642_v0 }
0x10b7   :  { %v7822_v44 = vpop.permute.xlu1 %7821  ;;  %v7820_v20 = vpop.permute.xlu0 %7819  ;;  %10225 = vmatprep.subr.bf16.mxu0 %v16644_v56 }
0x10b8   :  { %v7824_v27 = vsel %vm7635_vm7, %v7820_v20, %v7822_v44 }
0x10b9   :  { %v7828_v23 = vadd.f32 %v7824_v27, %v7783_v52  ;;  %1470 = vrot.lane.b32.xlu1 %v1467_v26, %s10747_s9  ;;  %1468 = vrot.lane.b32.xlu0 %v1465_v47, %s10747_s9  ;;  %v8410_v52 = vld [vmem:[%s16127_s16 + $0x10] sm:$0xff]  ;;  %v8411_v47 = vld [vmem:[%s16127_s16 + $0x18] sm:$0xff]  ;;  %v10256_v26 = vpack.c.bf16 %v8413_v37, %v8412_v42 }
0x10ba   :  { %10227 = vmatpush3.bf16.msra.mxu0 %v16644_v56  ;;  %v10252_v57 = vpack.c.bf16 %v8411_v47, %v8410_v52  ;;  %v8414_v27 = vld [vmem:[%s16127_s16 + $0x30] sm:$0xff]  ;;  %v10268_v47 = vpack.c.bf16 %v8419_v16, %v8418_v32  ;;  %v8420_v42 = vld [vmem:[%s16127_s16 + $0x60] sm:$0xff]  ;;  %v8421_v37 = vld [vmem:[%s16127_s16 + $0x68] sm:$0xff] }
0x10bb   :  { %v7863_v40 = vpop.permute.xlu1 %7862  ;;  %v7861_v13 = vpop.permute.xlu0 %7860  ;;  %10229 = vmatprep.subr.bf16.mxu0 %v16645_v29  ;;  %v8423_v32 = vld [vmem:[%s16127_s16 + $0x78] sm:$0xff] }
0x10bc   :  { %v7868_v43 = vsel %vm7667_vm9, %v7861_v13, %v7863_v40 }
0x10bd   :  { %v15795_v5 = vadd.f32 %v7868_v43, %v7827_v12  ;;  %3205 = vrot.lane.b32.xlu1 %v16646_v21, %s10747_s9  ;;  %1472 = vrot.lane.b32.xlu0 %v1466_v46, %s10747_s9  ;;  %v8416_v21 = vld [vmem:[%s16127_s16 + $0x40] sm:$0xff] }
0x10be   :  { %10231 = vmatpush3.bf16.msra.mxu0 %v16645_v29 }
0x10bf   :  { %v7867_v35 = vpop.permute.xlu1 %7866  ;;  %v7865_v39 = vpop.permute.xlu0 %7864  ;;  %10233 = vmatprep.subr.bf16.mxu0 %v16647_v19 }
0x10c0   :  { %v7869_v33 = vsel %vm7667_vm9, %v7865_v39, %v7867_v35  ;;  %v8417_v35 = vld [vmem:[%s16127_s16 + $0x48] sm:$0xff] }
0x10c1   :  { %v15803_v4 = vadd.f32 %v7869_v33, %v7828_v23  ;;  %3209 = vrot.lane.b32.xlu1 %v16648_v59, %s10747_s9  ;;  %3207 = vrot.lane.b32.xlu0 %v16649_v51, %s10747_s9  ;;  %v8415_v23 = vld [vmem:[%s16127_s16 + $0x38] sm:$0xff]  ;;  %v8951_v39 = vld [vmem:[%s16126_s15 + $0xa] ss:$0 sm:$0xff]  ;;  %v10264_v33 = vpack.c.bf16 %v8417_v35, %v8416_v21 }
0x10c2   :  { %10235 = vmatpush3.bf16.msra.mxu0 %v16647_v19  ;;  %v10260_v40 = vpack.c.bf16 %v8415_v23, %v8414_v27  ;;  %v7880_v52 = vmul.f32 %v8951_v39, %v15671_v34  ;;  %v7881_v27 = vmul.f32 %v8951_v39, %v15715_v38  ;;  %v10272_v23 = vpack.c.bf16 %v8421_v37, %v8420_v42  ;;  %v8422_v35 = vld [vmem:[%s16127_s16 + $0x70] sm:$0xff] }
0x10c3   :  { %v15810_v17 = vpop.permute.xlu1 %7927  ;;  %v15812_v8 = vpop.permute.xlu0 %7925  ;;  %10237 = vmatprep.subr.bf16.mxu0 %v16650_v7  ;;  %v10276_v37 = vpack.c.bf16 %v8423_v32, %v8422_v35 }
0x10c6   :  { %10239 = vmatpush3.bf16.msra.mxu0 %v16650_v7 }
0x10c7   :  { %v15816_v15 = vpop.permute.xlu1 %7931  ;;  %v15818_v1 = vpop.permute.xlu0 %7929  ;;  %10241 = vmatprep.subr.bf16.mxu0 %v16651_v25 }
0x10ca   :  { %10243 = vmatpush3.bf16.msra.mxu0 %v16651_v25 }
0x10cb   :  { %v15828_v53 = vpop.permute.xlu1 %7972  ;;  %v15830_v63 = vpop.permute.xlu0 %7970  ;;  %10245 = vmatprep.subr.bf16.mxu0 %v16652_v45 }
0x10cc   :  { %v7978_v42 = vsel %vm3425_vm5, %v15830_v63, %v15828_v53 }
0x10ce   :  { %10247 = vmatpush3.bf16.msra.mxu0 %v16652_v45 }
0x10cf   :  { %v15834_v55 = vpop.permute.xlu1 %7976  ;;  %v15836_v10 = vpop.permute.xlu0 %7974  ;;  %10249 = vmatprep.subr.bf16.mxu0 %v10248_v30 }
0x10d3   :  { %v15838_v3 = vpop.permute.xlu1 %8017  ;;  %v15840_v6 = vpop.permute.xlu0 %8015 }
0x10d7   :  { %v15842_v14 = vpop.permute.xlu1 %8021  ;;  %v15844_v2 = vpop.permute.xlu0 %8019 }
0x10db   :  { %v15846_v60 = vpop.permute.xlu1 %8062  ;;  %v15848_v9 = vpop.permute.xlu0 %8060 }
0x10df   :  { %v15850_v28 = vpop.permute.xlu1 %8066  ;;  %v15852_v11 = vpop.permute.xlu0 %8064 }
0x10e3   :  { %v15854_v31 = vpop.permute.xlu1 %8128  ;;  %v15856_v48 = vpop.permute.xlu0 %8126 }
0x10e5   :  { %v15864_v46 = vpop.f32.mrb[28].mxu1 }
0x10e6   :  { %16653 = vst [vmem:[#allocation66_spill] sm:$0xff] %v15864_v46  ;;  %v15866_v22 = vpop.f32.mrb[29].mxu1  ;;  %v7244_v12 = vmul.f32 %v15864_v46, %v15864_v46 }
0x10e7   :  { %16654 = vst [vmem:[#allocation67_spill] sm:$0xff] %v15866_v22  ;;  %v7243_v61 = vmul.f32 %v15866_v22, %v15866_v22  ;;  %v15870_v58 = vpop.permute.xlu1 %8132  ;;  %v15872_v18 = vpop.permute.xlu0 %8130  ;;  %9765 = vmatprep.mubr.f32.mxu0 %v15866_v22 }
0x10e8   :  { %9766 = vmatmul.mubr.f32.vlgmr.msra.gmra.mrb[28].mxu0 %v15864_v46 }
0x10e9   :  { %9768 = vmatprep.mubr.f32.mxu0 %v7243_v61  ;;  %10251 = vmatpush3.bf16.msra.mxu0 %v10248_v30  ;;  %v7879_v30 = vmul.f32 %v8951_v39, %v15685_v50  ;;  %v7888_v39 = vrot.slane %v7881_v27, 4 }
0x10ea   :  { %10253 = vmatprep.subr.bf16.mxu0 %v10252_v57 }
0x10eb   :  { %v15884_v44 = vpop.permute.xlu1 %8173  ;;  %v15886_v20 = vpop.permute.xlu0 %8171 }
0x10ec   :  { %9769 = vmatmul.mubr.f32.gmra.mrb[30].mxu0 %v7244_v12  ;;  %v7885_v12 = vrot.slane %v7879_v30, 4  ;;  %v7933_v30 = vsel %vm317_vm15, %v15812_v8, %v15810_v17  ;;  %v7934_v8 = vsel %vm317_vm15, %v15818_v1, %v15816_v15 }
0x10ed   :  { %10255 = vmatpush3.bf16.msra.mxu0 %v10252_v57 }
0x10ee   :  { %10257 = vmatprep.subr.bf16.mxu0 %v10256_v26 }
0x10ef   :  { %v15894_v13 = vpop.permute.xlu1 %8177  ;;  %v15896_v43 = vpop.permute.xlu0 %8175 }
0x10f1   :  { %10259 = vmatpush3.bf16.msra.mxu0 %v10256_v26  ;;  %v7886_v26 = vrot.slane %v7880_v52, 4 }
0x10f2   :  { %10261 = vmatprep.subr.bf16.mxu0 %v10260_v40 }
0x10f3   :  { %v15907_v59 = vpop.permute.xlu1 %8218  ;;  %v15909_v51 = vpop.permute.xlu0 %8216  ;;  %v7887_v16 = vsel %vm243_vm0, %v7885_v12, %v7886_v26  ;;  %v7889_v17 = vsel %vm243_vm0, %v7886_v26, %v7888_v39  ;;  %v8068_v26 = vsel %vm7667_vm9, %v15848_v9, %v15846_v60 }
0x10f4   :  { %v7892_v52 = vadd.f32 %v7887_v16, %v15795_v5  ;;  %v8023_v5 = vsel %vm7635_vm7, %v15840_v6, %v15838_v3  ;;  %v7893_v53 = vadd.f32 %v7889_v17, %v15803_v4  ;;  %v8024_v3 = vsel %vm7635_vm7, %v15844_v2, %v15842_v14 }
0x10f5   :  { %10263 = vmatpush3.bf16.msra.mxu0 %v10260_v40  ;;  %v8134_v14 = vsel %vm317_vm15, %v15856_v48, %v15854_v31  ;;  %v8224_v31 = vsel %vm7635_vm7, %v15909_v51, %v15907_v59  ;;  %v8180_v17 = vsel %vm3425_vm5, %v15896_v43, %v15894_v13 }
0x10f6   :  { %10265 = vmatprep.subr.bf16.mxu0 %v10264_v33  ;;  %v7937_v46 = vadd.f32 %v7933_v30, %v7892_v52  ;;  %v7938_v15 = vadd.f32 %v7934_v8, %v7893_v53 }
0x10f7   :  { %v15919_v57 = vpop.permute.xlu1 %8222  ;;  %v15921_v61 = vpop.permute.xlu0 %8220 }
0x10f8   :  { %v7982_v63 = vadd.f32 %v7978_v42, %v7937_v46 }
0x10f9   :  { %10267 = vmatpush3.bf16.msra.mxu0 %v10264_v33  ;;  %v8956_v33 = vld [vmem:[%s16126_s15 + $0xf] ss:$0 sm:$0xff] }
0x10fa   :  { %10269 = vmatprep.subr.bf16.mxu0 %v10268_v47  ;;  %v8079_v12 = vmul.f32 %v8956_v33, %v15685_v50  ;;  %v7979_v50 = vsel %vm3425_vm5, %v15836_v10, %v15834_v55  ;;  %v8027_v1 = vadd.f32 %v8023_v5, %v7982_v63  ;;  %v8081_v46 = vmul.f32 %v8956_v33, %v15715_v38 }
0x10fb   :  { %v8264_v40 = vpop.permute.xlu1 %8263  ;;  %v8262_v21 = vpop.permute.xlu0 %8261  ;;  %v8069_v55 = vsel %vm7667_vm9, %v15852_v11, %v15850_v28 }
0x10fc   :  { %v8086_v4 = vrot.slane %v8079_v12, 6  ;;  %v8072_v32 = vadd.f32 %v8068_v26, %v8027_v1  ;;  %v8089_v2 = vrot.slane %v8081_v46, 6 }
0x10fd   :  { %10271 = vmatpush3.bf16.msra.mxu0 %v10268_v47  ;;  %v8080_v47 = vmul.f32 %v8956_v33, %v15671_v34  ;;  %v8179_v33 = vsel %vm3425_vm5, %v15886_v20, %v15884_v44  ;;  %v8269_v44 = vsel %vm7667_vm9, %v8262_v21, %v8264_v40 }
0x10fe   :  { %10273 = vmatprep.subr.bf16.mxu0 %v10272_v23 }
0x10ff   :  { %v8268_v22 = vpop.permute.xlu1 %8267  ;;  %v8266_v45 = vpop.permute.xlu0 %8265  ;;  %v8087_v6 = vrot.slane %v8080_v47, 6 }
0x1100   :  { %v8270_v53 = vsel %vm7667_vm9, %v8266_v45, %v8268_v22 }
0x1101   :  { %10275 = vmatpush3.bf16.msra.mxu0 %v10272_v23  ;;  %v7983_v23 = vadd.f32 %v7979_v50, %v7938_v15  ;;  %v8088_v16 = vsel %vm8085_vm3, %v8086_v4, %v8087_v6  ;;  %v8090_v42 = vsel %vm8085_vm3, %v8087_v6, %v8089_v2 }
0x1102   :  { %10277 = vmatprep.subr.bf16.mxu0 %v10276_v37  ;;  %v8093_v39 = vadd.f32 %v8088_v16, %v8072_v32 }
0x1103   :  { %v8304_v27 = vpop.permute.xlu1 %8303  ;;  %v8302_v35 = vpop.permute.xlu0 %8301  ;;  %v8028_v10 = vadd.f32 %v8024_v3, %v7983_v23 }
0x1104   :  { %v8138_v52 = vadd.f32 %v8134_v14, %v8093_v39  ;;  %v8309_v21 = vsel %vm317_vm15, %v8302_v35, %v8304_v27 }
0x1105   :  { %10279 = vmatpush3.bf16.msra.mxu0 %v10276_v37  ;;  %v8073_v30 = vadd.f32 %v8069_v55, %v8028_v10  ;;  %v8135_v37 = vsel %vm317_vm15, %v15872_v18, %v15870_v58  ;;  %v8225_v58 = vsel %vm7635_vm7, %v15921_v61, %v15919_v57  ;;  %v8961_v18 = vld [vmem:[%s16126_s15 + $0x14] ss:$0 sm:$0xff]  ;;  %s8926_s15 = sld [smem:[#allocation4 + $0x6]] }
0x1106   :  { %9854 = vmatprep.subr.mxu0 %v16635_v41  ;;  %v8183_v12 = vadd.f32 %v8179_v33, %v8138_v52  ;;  %v8280_v13 = vmul.f32 %v8961_v18, %v15671_v34  ;;  %v8281_v61 = vmul.f32 %v8961_v18, %v15715_v38 }
0x1107   :  { %v8308_v60 = vpop.permute.xlu1 %8307  ;;  %v8306_v9 = vpop.permute.xlu0 %8305  ;;  %v8094_v48 = vadd.f32 %v8090_v42, %v8073_v30 }
0x1108   :  { %v8228_v8 = vadd.f32 %v8224_v31, %v8183_v12  ;;  %v8310_v4 = vsel %vm317_vm15, %v8306_v9, %v8308_v60 }
0x1109   :  { %v8139_v20 = vadd.f32 %v8135_v37, %v8094_v48 }
0x110a   :  { %v8273_v51 = vadd.f32 %v8269_v44, %v8228_v8 }
0x110b   :  { %v8335_v28 = vpop.permute.xlu1 %8334  ;;  %v8333_v11 = vpop.permute.xlu0 %8332  ;;  %v8184_v59 = vadd.f32 %v8180_v17, %v8139_v20 }
0x110c   :  { %v8282_v26 = vadd.f32 %v8280_v13, %v8273_v51  ;;  %v8340_v15 = vsel %vm3425_vm5, %v8333_v11, %v8335_v28 }
0x110d   :  { %v8229_v63 = vadd.f32 %v8225_v58, %v8184_v59 }
0x110e   :  { %v8313_v57 = vadd.f32 %v8309_v21, %v8282_v26 }
0x110f   :  { %v8339_v5 = vpop.permute.xlu1 %8338  ;;  %v8337_v47 = vpop.permute.xlu0 %8336  ;;  %v8274_v50 = vadd.f32 %v8270_v53, %v8229_v63 }
0x1110   :  { %v8344_v6 = vadd.f32 %v8340_v15, %v8313_v57  ;;  %v8341_v34 = vsel %vm3425_vm5, %v8337_v47, %v8339_v5  ;;  %vm16655_vm5 = vmmov %vm16643_vm10 }
0x1111   :  { %v8283_v22 = vadd.f32 %v8281_v61, %v8274_v50  ;;  %vm16659_vm11 = vmmov %vm16655_vm5 }
0x1113   :  { %v8366_v43 = vpop.permute.xlu1 %8365  ;;  %v8364_v40 = vpop.permute.xlu0 %8363  ;;  %v8314_v46 = vadd.f32 %v8310_v4, %v8283_v22 }
0x1114   :  { %v8371_v45 = vsel %vm7635_vm7, %v8364_v40, %v8366_v43 }
0x1115   :  { %v8375_v23 = vadd.f32 %v8371_v45, %v8344_v6  ;;  %v8345_v10 = vadd.f32 %v8341_v34, %v8314_v46  ;;  %v7354_v34 = vstv %s8926_s15 }
0x1117   :  { %v8370_v1 = vpop.permute.xlu1 %8369  ;;  %v8368_v3 = vpop.permute.xlu0 %8367 }
0x1118   :  { %v8372_v32 = vsel %vm7635_vm7, %v8368_v3, %v8370_v1 }
0x1119   :  { %v8376_v16 = vadd.f32 %v8372_v32, %v8345_v10  ;;  %v16658_v10 = vld [vmem:[#allocation66_spill] sm:$0xff] }
0x111b   :  { %v8397_v27 = vpop.permute.xlu1 %8396  ;;  %v8395_v35 = vpop.permute.xlu0 %8394 }
0x111c   :  { %v8402_v55 = vsel %vm7667_vm9, %v8395_v35, %v8397_v27 }
0x111d   :  { %v8406_v38 = vadd.f32 %v8402_v55, %v8375_v23  ;;  %v16657_v55 = vld [vmem:[#allocation67_spill] sm:$0xff] }
0x111f   :  { %v8401_v14 = vpop.permute.xlu1 %8400  ;;  %v8399_v2 = vpop.permute.xlu0 %8398  ;;  %9813 = vmatprep.mubr.f32.mxu0 %v8406_v38 }
0x1120   :  { %v8403_v60 = vsel %vm7667_vm9, %v8399_v2, %v8401_v14 }
0x1121   :  { %v8407_v9 = vadd.f32 %v8403_v60, %v8376_v16 }
0x1123   :  { %9814 = vmatmul.mubr.f32.vlgmr.msra.gmra.mrb[32].mxu0 %v8407_v9 }
0x1124   :  { %9855 = vmatpush3.msk.msra.mxu0 %vm243_vm0, %v15762_v24  ;;  %9856 = vmatprep.mubr.msk.f32.mxu0 %vm10748_vm6, %v16635_v41 }
0x1125   :  { %9859 = vmatprep.subr.mxu0 %v16635_v41 }
0x117f   :  { %v6572_v30 = vpop.f32.mrb[24].mxu0 }
0x1180   :  { %v6653_v39 = vrot.slane %v6572_v30, %v16636_v36  ;;  %v9692_v33 = vpop.f32.mrb[25].mxu0 }
0x1182   :  { %v6654_v52 = vmul.f32 %v6653_v39, %v15351_v62  ;;  %v6655_v28 = vmul.f32 %v15343_v49, %v6653_v39 }
0x1183   :  { %v6646_v11 = vpop.f32.mrb[26].mxu0 }
0x1184   :  { %v6659_v42 = vrot.slane %v6646_v11, %v16636_v36  ;;  %v9697_v37 = vpop.f32.mrb[27].mxu0 }
0x1186   :  { %v6660_v31 = vsub.f32 %v6654_v52, %v6659_v42  ;;  %v6661_v48 = vsub.f32 %v6655_v28, %v6659_v42 }
0x1188   :  { %v6664_v12 = vrot.slane %v6660_v31, 5  ;;  %v6665_v17 = vrot.slane %v6661_v48, 5 }
0x118a   :  { %6667 = vrot.lane.b32.xlu0 %v6664_v12, %s10747_s9  ;;  %v6666_v44 = vsel %vm16655_vm5, %v6664_v12, %v6665_v17 }
0x118b   :  { %6669 = vrot.lane.b32.xlu1 %v6666_v44, %s10747_s9 }
0x118e   :  { %6671 = vrot.lane.b32.xlu0 %v6665_v17, %s10747_s9 }
0x11bb   :  { %v9767_v20 = vpop.f32.mrb[28].mxu0 }
0x11bc   :  { %v7331_v62 = vsel %vm636_vm8, %v9767_v20, 0.0  ;;  %v7311_v49 = vpop.f32.mrb[29].mxu0 }
0x11bd   :  { %v7330_v8 = vsel %vm636_vm8, %v7311_v49, 0.0 }
0x11be   :  { %v7332_v5 = vadd.f32 %v7331_v62, %v7330_v8 }
0x11bf   :  { %v9770_v47 = vpop.f32.mrb[30].mxu0 }
0x11c0   :  { %v7333_v58 = vrot.slane %v7332_v5, 4  ;;  %v7341_v18 = vsel %vm636_vm8, %v9770_v47, 0.0  ;;  %v7321_v59 = vpop.f32.mrb[31].mxu0 }
0x11c1   :  { %v7340_v51 = vsel %vm636_vm8, %v7321_v59, 0.0 }
0x11c2   :  { %v7334_v53 = vadd.f32 %v7333_v58, %v7332_v5  ;;  %v7342_v63 = vadd.f32 %v7341_v18, %v7340_v51 }
0x11c4   :  { %v7335_v13 = vrot.slane %v7334_v53, 2  ;;  %v7343_v43 = vrot.slane %v7342_v63, 4 }
0x11c6   :  { %v7336_v40 = vadd.f32 %v7335_v13, %v7334_v53  ;;  %v7344_v21 = vadd.f32 %v7343_v43, %v7342_v63 }
0x11c8   :  { %v7337_v50 = vrot.slane %v7336_v40, 1  ;;  %v7345_v26 = vrot.slane %v7344_v21, 2 }
0x11ca   :  { %v7338_v15 = vadd.f32 %v7337_v50, %v7336_v40  ;;  %v7346_v57 = vadd.f32 %v7345_v26, %v7344_v21  ;;  %v8610_v26 = vstv %s8940_s23 }
0x11cc   :  { %v7339_v61 = vmul.f32 0.001953125, %v7338_v15  ;;  %v7347_v1 = vrot.slane %v7346_v57, 1 }
0x11ce   :  { %v7348_v3 = vadd.f32 %v7347_v1, %v7346_v57  ;;  %v7350_v4 = vmul.f32 %v7339_v61, %v7339_v61 }
0x11d0   :  { %v7349_v45 = vmul.f32 0.001953125, %v7348_v3 }
0x11d2   :  { %v7351_v22 = vsub.f32 %v7349_v45, %v7350_v4 }
0x11d4   :  { %v7352_v6 = vadd.f32 1e-05, %v7351_v22 }
0x11d6   :  { %10441 = vrsqrt.f32 %v7352_v6 }
0x11e0   :  { %v10442_v46 = vpop.eup %10441 }
0x11e1   :  { %v7355_v23 = vmul.f32 %v10442_v46, %v7354_v34 }
0x11e3   :  { %9774 = vmatmul.mubr.msk.f32.vlgmr.msra.gmra.mrb[30].mxu1 %vm636_vm8, %v7355_v23  ;;  %v7429_v27 = vmul.f32 %v7355_v23, %v7339_v61 }
0x11e4   :  { %9777 = vmatpush3.msk.msra.mxu1 %vm243_vm0, %v15762_v24  ;;  %9778 = vmatprep.mubr.msk.f32.mxu1 %vm10748_vm6, %v16635_v41 }
0x11e5   :  { %10281 = vmatprep.subr.bf16.mxu1 %v16639_v54 }
0x11e7   :  { %9779 = vmatmul.mubr.msk.f32.vlgmr.msra.gmra.mrb[32].mxu1 %vm636_vm8, %v7429_v27 }
0x11e8   :  { %10283 = vmatpush3.bf16.msra.mxu1 %v16639_v54  ;;  %v16656_v54 = vld [vmem:[#allocation37_spill] sm:$0xff] }
0x11e9   :  { %10285 = vmatprep.subr.bf16.mxu1 %v16642_v0 }
0x11ec   :  { %10287 = vmatpush3.bf16.msra.mxu1 %v16642_v0 }
0x11ed   :  { %10289 = vmatprep.subr.bf16.mxu1 %v16644_v56 }
0x11f0   :  { %10291 = vmatpush3.bf16.msra.mxu1 %v16644_v56 }
0x11f1   :  { %10293 = vmatprep.subr.bf16.mxu1 %v16645_v29 }
0x11f4   :  { %10295 = vmatpush3.bf16.msra.mxu1 %v16645_v29 }
0x11f5   :  { %10297 = vmatprep.subr.bf16.mxu1 %v16647_v19 }
0x11f6   :  { %v16038_v35 = vpop.f32.mrb[32].mxu0 }
0x11f7   :  { %v16040_v32 = vpop.f32.mrb[33].mxu0  ;;  %v8500_v56 = vmul.f32 %v16038_v35, %v16038_v35 }
0x11f8   :  { %10299 = vmatpush3.bf16.msra.mxu1 %v16647_v19  ;;  %9848 = vmatprep.mubr.f32.mxu1 %v16040_v32  ;;  %v8499_v0 = vmul.f32 %v16040_v32, %v16040_v32 }
0x11f9   :  { %10301 = vmatprep.subr.bf16.mxu1 %v16650_v7 }
0x11fc   :  { %10303 = vmatpush3.bf16.msra.mxu1 %v16650_v7 }
0x11fd   :  { %10305 = vmatprep.subr.bf16.mxu1 %v16651_v25 }
0x1200   :  { %10307 = vmatpush3.bf16.msra.mxu1 %v16651_v25 }
0x1201   :  { %10309 = vmatprep.subr.bf16.mxu1 %v16656_v54 }
0x1204   :  { %10311 = vmatpush3.bf16.msra.mxu1 %v16656_v54 }
0x1207   :  { %9849 = vmatmul.mubr.f32.vlgmr.msra.gmra.mrb[34].mxu1 %v16038_v35 }
0x1208   :  { %9851 = vmatprep.mubr.f32.mxu1 %v8499_v0  ;;  %v819_v0 = vpop.permute.xlu0 %818 }
0x120b   :  { %9852 = vmatmul.mubr.f32.gmra.mrb[36].mxu1 %v8500_v56 }
0x120c   :  { %v833_v56 = vpop.permute.xlu0 %832 }
0x12b6   :  { %v7425_v29 = vpop.f32.mrb[30].mxu1 }
0x12b7   :  { %v7506_v19 = vrot.slane %v7425_v29, %v16636_v36  ;;  %v9775_v7 = vpop.f32.mrb[31].mxu1  ;;  %v1469_v29 = vpop.permute.xlu0 %1468 }
0x12b9   :  { %v7507_v25 = vmul.f32 %v7506_v19, %v16657_v55  ;;  %v7508_v38 = vmul.f32 %v16658_v10, %v7506_v19 }
0x12ba   :  { %v7499_v16 = vpop.f32.mrb[32].mxu1 }
0x12bb   :  { %v7512_v14 = vrot.slane %v7499_v16, %v16636_v36  ;;  %v9780_v2 = vpop.f32.mrb[33].mxu1 }
0x12bd   :  { %v7513_v60 = vsub.f32 %v7507_v25, %v7512_v14  ;;  %v7514_v9 = vsub.f32 %v7508_v38, %v7512_v14  ;;  %v16661_v25 = vld [vmem:[#allocation38_spill] sm:$0xff]  ;;  %v16662_v38 = vld [vmem:[#allocation36_spill] sm:$0xff] }
0x12be   :  { %v821_v10 = vmul.f32 %v819_v0, %v16661_v25  ;;  %v822_v16 = vmul.f32 %v819_v0, %v16662_v38  ;;  %v16663_v14 = vld [vmem:[#allocation46_spill] sm:$0xff] }
0x12bf   :  { %v7517_v30 = vrot.slane %v7513_v60, 5  ;;  %v7518_v39 = vrot.slane %v7514_v9, 5  ;;  %v16664_v60 = vld [vmem:[#allocation44_spill] sm:$0xff] }
0x12c1   :  { %7520 = vrot.lane.b32.xlu1 %v7517_v30, %s10747_s9  ;;  %v7519_v33 = vsel %vm16659_vm11, %v7517_v30, %v7518_v39 }
0x12c2   :  { %7522 = vrot.lane.b32.xlu0 %v7519_v33, %s10747_s9  ;;  %v836_v33 = vsub.f32 %v822_v16, %v833_v56 }
0x12c5   :  { %7524 = vrot.lane.b32.xlu1 %v7518_v39, %s10747_s9  ;;  %v835_v39 = vsub.f32 %v821_v10, %v833_v56 }
0x12da   :  { %v9850_v52 = vpop.f32.mrb[34].mxu1 }
0x12db   :  { %v8587_v28 = vsel %vm636_vm8, %v9850_v52, 0.0  ;;  %v8567_v11 = vpop.f32.mrb[35].mxu1 }
0x12dc   :  { %v8586_v42 = vsel %vm636_vm8, %v8567_v11, 0.0  ;;  %v16665_v11 = vld [vmem:[#allocation43_spill] sm:$0xff] }
0x12dd   :  { %v8588_v37 = vadd.f32 %v8587_v28, %v8586_v42 }
0x12de   :  { %v9853_v31 = vpop.f32.mrb[36].mxu1 }
0x12df   :  { %v8589_v48 = vrot.slane %v8588_v37, 4  ;;  %v8597_v12 = vsel %vm636_vm8, %v9853_v31, 0.0  ;;  %v8577_v17 = vpop.f32.mrb[37].mxu1 }
0x12e0   :  { %v8596_v44 = vsel %vm636_vm8, %v8577_v17, 0.0 }
0x12e1   :  { %v8590_v20 = vadd.f32 %v8589_v48, %v8588_v37  ;;  %v8598_v62 = vadd.f32 %v8597_v12, %v8596_v44  ;;  %v16666_v37 = vld [vmem:[#allocation45_spill] sm:$0xff]  ;;  %v16667_v12 = vld [vmem:[#allocation40_spill] sm:$0xff]  ;;  %v16668_v44 = vld [vmem:[#allocation39_spill] sm:$0xff] }
0x12e2   :  { %v823_v17 = vmul.f32 %v819_v0, %v16667_v12 }
0x12e3   :  { %v8591_v49 = vrot.slane %v8590_v20, 2  ;;  %v8599_v8 = vrot.slane %v8598_v62, 4 }
0x12e5   :  { %v8592_v5 = vadd.f32 %v8591_v49, %v8590_v20  ;;  %v8600_v47 = vadd.f32 %v8599_v8, %v8598_v62  ;;  %v824_v20 = vmul.f32 %v819_v0, %v16668_v44 }
0x12e7   :  { %v8593_v58 = vrot.slane %v8592_v5, 1  ;;  %v8601_v18 = vrot.slane %v8600_v47, 2 }
0x12e9   :  { %v8594_v59 = vadd.f32 %v8593_v58, %v8592_v5  ;;  %v8602_v51 = vadd.f32 %v8601_v18, %v8600_v47  ;;  %v837_v5 = vsub.f32 %v823_v17, %v833_v56  ;;  %v838_v47 = vsub.f32 %v824_v20, %v833_v56 }
0x12eb   :  { %v8595_v53 = vmul.f32 0.001953125, %v8594_v59  ;;  %v8603_v63 = vrot.slane %v8602_v51, 1  ;;  %v16669_v59 = vld [vmem:[#allocation42_spill] sm:$0xff] }
0x12ed   :  { %v8604_v13 = vadd.f32 %v8603_v63, %v8602_v51  ;;  %v8606_v43 = vmul.f32 %v8595_v53, %v8595_v53  ;;  %v825_v51 = vmul.f32 %v819_v0, %v16669_v59 }
0x12ef   :  { %v8605_v40 = vmul.f32 0.001953125, %v8604_v13  ;;  %v16671_v13 = vld [vmem:[#allocation52_spill] sm:$0xff] }
0x12f1   :  { %v8607_v21 = vsub.f32 %v8605_v40, %v8606_v43  ;;  %v16672_v40 = vld [vmem:[#allocation51_spill] sm:$0xff] }
0x12f3   :  { %v8608_v50 = vadd.f32 1e-05, %v8607_v21 }
0x12f5   :  { %10443 = vrsqrt.f32 %v8608_v50 }
0x12ff   :  { %v10444_v15 = vpop.eup %10443 }
0x1300   :  { %v8611_v57 = vmul.f32 %v10444_v15, %v8610_v26 }
0x1302   :  { %9857 = vmatmul.mubr.msk.f32.vlgmr.msra.gmra.mrb[34].mxu0 %vm636_vm8, %v8611_v57  ;;  %v8685_v61 = vmul.f32 %v8611_v57, %v8595_v53  ;;  %v16670_v53 = vld [vmem:[#allocation41_spill] sm:$0xff] }
0x1303   :  { %9860 = vmatpush3.msk.msra.mxu0 %vm243_vm0, %v15762_v24  ;;  %9861 = vmatprep.mubr.msk.f32.mxu0 %vm10748_vm6, %v16635_v41  ;;  %vm16660_vm0 = vmmov %vm16655_vm5  ;;  %v826_v63 = vmul.f32 %v819_v0, %v16670_v53 }
0x1306   :  { %9862 = vmatmul.mubr.msk.f32.vlgmr.msra.gmra.mrb[36].mxu0 %vm636_vm8, %v8685_v61 }
0x13d5   :  { %v8681_v1 = vpop.f32.mrb[34].mxu0 }
0x13d6   :  { %v8762_v3 = vrot.slane %v8681_v1, %v16636_v36  ;;  %v9858_v4 = vpop.f32.mrb[35].mxu0 }
0x13d7   :  { %v840_v4 = vsub.f32 %v826_v63, %v833_v56 }
0x13d8   :  { %v8763_v45 = vmul.f32 %v8762_v3, %v16040_v32  ;;  %v8764_v22 = vmul.f32 %v16038_v35, %v8762_v3  ;;  %v1431_v32 = vpop.permute.xlu1 %1430  ;;  %v839_v3 = vsub.f32 %v825_v51, %v833_v56 }
0x13d9   :  { %v8755_v6 = vpop.f32.mrb[36].mxu0  ;;  %v1433_v2 = vmul.f32 %v1431_v32, %v16663_v14  ;;  %v1434_v9 = vmul.f32 %v1431_v32, %v16664_v60  ;;  %v1435_v42 = vmul.f32 %v1431_v32, %v16665_v11  ;;  %v1436_v31 = vmul.f32 %v1431_v32, %v16666_v37 }
0x13da   :  { %v8768_v34 = vrot.slane %v8755_v6, %v16636_v36  ;;  %v9863_v46 = vpop.f32.mrb[37].mxu0  ;;  %v1473_v36 = vpop.permute.xlu0 %1472  ;;  %v1437_v43 = vmul.f32 %v1431_v32, %v16671_v13  ;;  %v1438_v21 = vmul.f32 %v1431_v32, %v16672_v40 }
0x13dc   :  { %v8769_v23 = vsub.f32 %v8763_v45, %v8768_v34  ;;  %v8770_v27 = vsub.f32 %v8764_v22, %v8768_v34  ;;  %v1445_v35 = vpop.permute.xlu1 %1444 }
0x13dd   :  { %v1447_v52 = vsub.f32 %v1433_v2, %v1445_v35  ;;  %v1448_v28 = vsub.f32 %v1434_v9, %v1445_v35  ;;  %v1449_v62 = vsub.f32 %v1435_v42, %v1445_v35  ;;  %v1450_v49 = vsub.f32 %v1436_v31, %v1445_v35 }
0x13de   :  { %v8773_v24 = vrot.slane %v8769_v23, 5  ;;  %v8774_v54 = vrot.slane %v8770_v27, 5  ;;  %v3208_v55 = vpop.permute.xlu0 %3207  ;;  %v1451_v45 = vsub.f32 %v1437_v43, %v1445_v35  ;;  %v1452_v22 = vsub.f32 %v1438_v21, %v1445_v35 }
0x13df   :  { %v1453_v58 = vadd.f32 %v1447_v52, %v835_v39  ;;  %v1454_v18 = vadd.f32 %v1448_v28, %v836_v33  ;;  %v1455_v15 = vadd.f32 %v1449_v62, %v837_v5  ;;  %v1456_v57 = vadd.f32 %v1450_v49, %v838_v47 }
0x13e0   :  { %8776 = vrot.lane.b32.xlu0 %v8773_v24, %s10747_s9  ;;  %v8775_v41 = vsel %vm16660_vm0, %v8773_v24, %v8774_v54  ;;  %v1471_v19 = vpop.permute.xlu1 %1470  ;;  %v1458_v0 = vadd.f32 %v1452_v22, %v840_v4 }
0x13e1   :  { %8778 = vrot.lane.b32.xlu1 %v8775_v41, %s10747_s9  ;;  %v1477_v61 = vadd.f32 %v1469_v29, %v1453_v58  ;;  %v1478_v1 = vadd.f32 %v1469_v29, %v1454_v18  ;;  %v1479_v23 = vadd.f32 %v1471_v19, %v1455_v15  ;;  %v1480_v27 = vadd.f32 %v1471_v19, %v1456_v57 }
0x13e2   :  { %v6668_v48 = vpop.permute.xlu0 %6667  ;;  %v1457_v41 = vadd.f32 %v1451_v45, %v839_v3  ;;  %v1482_v29 = vadd.f32 %v1473_v36, %v1458_v0 }
0x13e3   :  { %v3216_v25 = vadd.f32 %v3208_v55, %v1479_v23  ;;  %v3217_v10 = vadd.f32 %v3208_v55, %v1480_v27 }
0x13e4   :  { %8780 = vrot.lane.b32.xlu0 %v8774_v54, %s10747_s9  ;;  %v3206_v7 = vpop.permute.xlu1 %3205  ;;  %v1481_v14 = vadd.f32 %v1473_v36, %v1457_v41 }
0x13e5   :  { %v3214_v6 = vadd.f32 %v3206_v7, %v1477_v61  ;;  %v3215_v34 = vadd.f32 %v3206_v7, %v1478_v1 }
0x13e6   :  { %v6672_v50 = vpop.permute.xlu0 %6671 }
0x13e7   :  { %v6676_v24 = vadd.f32 %v6668_v48, %v3214_v6  ;;  %v6677_v54 = vadd.f32 %v6668_v48, %v3215_v34 }
0x13e8   :  { %v3210_v30 = vpop.permute.xlu1 %3209 }
0x13e9   :  { %v3218_v7 = vadd.f32 %v3210_v30, %v1481_v14  ;;  %v3219_v33 = vadd.f32 %v3210_v30, %v1482_v29 }
0x13ea   :  { %v7523_v46 = vpop.permute.xlu0 %7522 }
0x13eb   :  { %v6680_v28 = vadd.f32 %v6672_v50, %v3218_v7  ;;  %v6681_v55 = vadd.f32 %v6672_v50, %v3219_v33 }
0x13ec   :  { %v6670_v8 = vpop.permute.xlu1 %6669 }
0x13ed   :  { %v6678_v56 = vadd.f32 %v6670_v8, %v3216_v25  ;;  %v6679_v60 = vadd.f32 %v6670_v8, %v3217_v10 }
0x13ef   :  { %v7531_v19 = vadd.f32 %v7523_v46, %v6678_v56  ;;  %v7532_v52 = vadd.f32 %v7523_v46, %v6679_v60 }
0x13f0   :  { %v7521_v26 = vpop.permute.xlu1 %7520 }
0x13f1   :  { %v7529_v38 = vadd.f32 %v7521_v26, %v6676_v24  ;;  %v7530_v16 = vadd.f32 %v7521_v26, %v6677_v54 }
0x13f4   :  { %v7525_v32 = vpop.permute.xlu1 %7524 }
0x13f5   :  { %v7533_v36 = vadd.f32 %v7525_v32, %v6680_v28  ;;  %v7534_v31 = vadd.f32 %v7525_v32, %v6681_v55 }
0x1452   :  { %v8777_v2 = vpop.permute.xlu0 %8776 }
0x1453   :  { %v8785_v35 = vadd.f32 %v8777_v2, %v7529_v38  ;;  %v8786_v9 = vadd.f32 %v8777_v2, %v7530_v16  ;;  %v8779_v39 = vpop.permute.xlu1 %8778 }
0x1454   :  { %v8787_v11 = vadd.f32 %v8779_v39, %v7531_v19  ;;  %v8788_v42 = vadd.f32 %v8779_v39, %v7532_v52 }
0x1455   :  { %8799 = vrot.lane.b32.xlu0 %v8786_v9, %s10745_s29  ;;  %8797 = vrot.lane.b32.xlu1 %v8785_v35, %s10745_s29 }
0x1456   :  { %v8781_v37 = vpop.permute.xlu0 %8780 }
0x1457   :  { %v8789_v48 = vadd.f32 %v8781_v37, %v7533_v36  ;;  %v8790_v12 = vadd.f32 %v8781_v37, %v7534_v31 }
0x1459   :  { %8803 = vrot.lane.b32.xlu0 %v8788_v42, %s10745_s29  ;;  %8801 = vrot.lane.b32.xlu1 %v8787_v11, %s10745_s29 }
0x145d   :  { %8807 = vrot.lane.b32.xlu0 %v8790_v12, %s10745_s29  ;;  %8805 = vrot.lane.b32.xlu1 %v8789_v48, %s10745_s29 }
0x14c7   :  { %v8800_v30 = vpop.permute.xlu0 %8799  ;;  %v8798_v17 = vpop.permute.xlu1 %8797 }
0x14c8   :  { %v8809_v44 = vsel %vm542_vm4, %v8798_v17, %v8800_v30 }
0x14c9   :  { %8815 = vst [vmem:[%s16128_s17 - $0x3] sm:$0xf8] %v8809_v44 }
0x14cb   :  { %v8804_v20 = vpop.permute.xlu0 %8803  ;;  %v8802_v62 = vpop.permute.xlu1 %8801 }
0x14cc   :  { %v8810_v49 = vsel %vm542_vm4, %v8802_v62, %v8804_v20 }
0x14cd   :  { %8816 = vst [vmem:[%s16128_s17 + $0x5] sm:$0xff] %v8810_v49 }
0x14cf   :  { %v8808_v8 = vpop.permute.xlu0 %8807  ;;  %v8806_v5 = vpop.permute.xlu1 %8805 }
0x14d0   :  { %v8811_v47 = vsel %vm542_vm4, %v8806_v5, %v8808_v8 }
0x14d1   :  { %8817 = vst [vmem:[%s16128_s17 + $0xd] sm:$0x7] %v8811_v47 }
0x14d2   :  { %8822 = vsyncpa [#allocation5], 1 }
0x14d3   :  { %8823 = vsyncpa [#allocation9], 1 }
0x14d4   :  { %8824 = vsyncpa [#allocation12], 1 }
0x14d5   :  { %8825 = vsyncpa [#allocation15], 1 }
0x14d6   :  { %8826 = vsyncpa [#allocation18], 1 }
0x14d7   :  { %8827 = vsyncpa [#allocation21], 1 }
0x14d8   :  { %8828 = vsyncpa [#allocation6], 1 }

</bundles_post_ra>
